<compile_context>
chip_gen: v6e
topology: v6e:2x2x1
jax: 0.10.0
libtpu: 0.0.40
codegen_flags: <defaults>
</compile_context>

<pallas_src>
import jax
import jax.numpy as jnp
from jax.experimental import pallas as pl
from jax.experimental.pallas import tpu as pltpu


def _round_up(n, m):
    return ((n + m - 1) // m) * m


def _audio_head_kernel(x_ref, valid_ref, div_ref, w1_ref, b1_ref, w2_ref,
                       b2_ref, out_ref, acc_ref):
    t = pl.program_id(1)

    @pl.when(t == 0)
    def _init():
        acc_ref[...] = jnp.zeros_like(acc_ref)

    x = x_ref[...]                                    # (TB, TT, D)
    valid = valid_ref[...].astype(x.dtype)            # (TB, TT), 1.0 = valid

    # Masked time-sum on the MXU: (TB,1,TT) @ (TB,TT,D) -> (TB,1,D).
    # (x[padding_mask] = 0 ; x.sum(dim=1)), accumulated across the T axis.
    partial = jnp.einsum("bqt,btd->bqd", valid[:, None, :], x,
                         preferred_element_type=jnp.float32)
    acc_ref[...] += partial[:, 0, :]

    @pl.when(t == pl.num_programs(1) - 1)
    def _finalize():
        # divisor = ~padding_mask.bool().sum(dim=1) == -(n_padded + 1),
        # precomputed in the wrapper.
        pooled = acc_ref[...] / div_ref[...]           # (TB, D)
        # dropout(p=0.2) -> identity at inference; linear 768 -> E_pad
        h = jnp.dot(pooled, w1_ref[...],
                    preferred_element_type=jnp.float32) + b1_ref[...]
        # dropout -> identity; leaky_relu (negative_slope = 0.01)
        h = jnp.where(h >= 0, h, jnp.float32(0.01) * h)
        # classifier E_pad -> C_pad (padded columns are exactly zero)
        out_ref[...] = jnp.dot(h, w2_ref[...],
                               preferred_element_type=jnp.float32) + b2_ref[...]


def audio_encoder_head(x, padding_mask, w1, b1, w2, b2,
                       *, tile_b=None, tile_t=None):
    """x: (B, T, 768) BEATs features; padding_mask: (B, T) bool/int (1 = pad)."""
    B, T, D = x.shape
    E = w1.shape[1]
    C = w2.shape[1]
    f32 = jnp.float32

    # ---- lane-pad hidden / output dims (E=300 -> 384, C=3 -> 128) ----------
    E_pad = _round_up(E, 128)
    C_pad = _round_up(C, 128)
    w1p = jnp.zeros((D, E_pad), f32).at[:, :E].set(w1.astype(f32))
    b1p = jnp.zeros((1, E_pad), f32).at[0, :E].set(b1.astype(f32))
    w2p = jnp.zeros((E_pad, C_pad), f32).at[:E, :C].set(w2.astype(f32))
    b2p = jnp.zeros((1, C_pad), f32).at[0, :C].set(b2.astype(f32))

    # ---- divisor quirk, computed from the ORIGINAL (unpadded) mask ---------
    mask_b = padding_mask.astype(jnp.bool_)
    valid = jnp.logical_not(mask_b).astype(f32)                      # (B, T)
    n_padded = jnp.sum(mask_b.astype(f32), axis=1, keepdims=True)    # (B, 1)
    divisor = -(n_padded + f32(1.0))                                 # never 0

    # ---- tile selection -----------------------------------------------------
    if tile_b is None:
        # >= 2 batch blocks whenever B > 8 so both v7x TensorCores get work.
        tile_b = 8 if B > 8 else max(B, 1)
    B_pad = _round_up(B, tile_b)

    if tile_t is None:
        T_pad = _round_up(T, 128)
        tile_t = 128
        for cand in (512, 384, 256, 128):    # big time slabs amortize per-step overhead
            if cand <= T_pad and T_pad % cand == 0:
                tile_t = cand
                break
    else:
        assert tile_t % 128 == 0, tile_t
        T_pad = _round_up(T, tile_t)

    # ---- wrapper-side padding (x=0, valid=0 -> sum & pad-count unchanged) --
    if (B_pad, T_pad) != (B, T):
        x = jnp.pad(x, ((0, B_pad - B), (0, T_pad - T), (0, 0)))
        valid = jnp.pad(valid, ((0, B_pad - B), (0, T_pad - T)))
    if B_pad != B:
        divisor = jnp.pad(divisor, ((0, B_pad - B), (0, 0)),
                          constant_values=-1.0)

    grid = (B_pad // tile_b, T_pad // tile_t)

    # ---- VMEM budget / cost hints ------------------------------------------
    x_blk_bytes = tile_b * tile_t * D * x.dtype.itemsize
    v_blk_bytes = tile_b * tile_t * 4
    w_bytes = (w1p.size + b1p.size + w2p.size + b2p.size) * 4
    vmem_limit = int(min(48 << 20,
                         max(32 << 20,
                             2 * (x_blk_bytes + v_blk_bytes) + 2 * w_bytes
                             + (8 << 20))))

    flops = 2 * B_pad * (T_pad * D + D * E_pad + E_pad * C_pad)
    bytes_accessed = int(x.size * x.dtype.itemsize + valid.size * 4
                         + divisor.size * 4 + w_bytes + B_pad * C_pad * 4)
    cost = pl.CostEstimate(flops=flops, transcendentals=0,
                           bytes_accessed=bytes_accessed)

    out_padded = pl.pallas_call(
        _audio_head_kernel,
        out_shape=jax.ShapeDtypeStruct((B_pad, C_pad), f32),
        grid_spec=pltpu.PrefetchScalarGridSpec(
            num_scalar_prefetch=0,
            grid=grid,
            in_specs=[
                # Streamed feature slab (double-buffered by the pipeline).
                pl.BlockSpec((tile_b, tile_t, D), lambda b, t: (b, t, 0)),
                # Matching validity slab (1.0 = valid frame).
                pl.BlockSpec((tile_b, tile_t), lambda b, t: (b, t)),
                # Precomputed divisor per batch row.
                pl.BlockSpec((tile_b, 1), lambda b, t: (b, 0)),
                # Weights / biases: constant block index -> VMEM-resident.
                pl.BlockSpec((D, E_pad), lambda b, t: (0, 0)),
                pl.BlockSpec((1, E_pad), lambda b, t: (0, 0)),
                pl.BlockSpec((E_pad, C_pad), lambda b, t: (0, 0)),
                pl.BlockSpec((1, C_pad), lambda b, t: (0, 0)),
            ],
            out_specs=pl.BlockSpec((tile_b, C_pad), lambda b, t: (b, 0)),
            scratch_shapes=[
                pltpu.VMEM((tile_b, D), jnp.float32),   # pooled-sum accumulator
            ],
        ),
        compiler_params=pltpu.CompilerParams(
            dimension_semantics=("parallel", "arbitrary"),
            vmem_limit_bytes=vmem_limit),
        cost_estimate=cost,
    )(x, valid, divisor, w1p, b1p, w2p, b2p)

    return out_padded[:B, :C]


def _reference(x, padding_mask, w1, b1, w2, b2):
    mask = padding_mask.astype(jnp.int32)
    xm = jnp.where(mask[:, :, None] != 0, 0.0, x)
    s = jnp.sum(xm, axis=1)
    divisor = (-(jnp.sum(mask, axis=1, keepdims=True) + 1)).astype(jnp.float32)
    pooled = s / divisor
    h = pooled @ w1 + b1
    h = jnp.where(h >= 0, h, 0.01 * h)
    return h @ w2 + b2


if __name__ == "__main__":
    # D=768 fixed by BEATs; E=300 / C=3 fixed by the module. B=12 exercises
    # batch padding (12 -> 16, 2 parallel blocks); T=300 exercises T padding
    # (300 -> 384).
    B, T, D = 12, 300, 768
    E, C = 300, 3

    key = jax.random.PRNGKey(0)
    k_x, k_w1, k_b1, k_w2, k_b2 = jax.random.split(key, 5)

    # Synthetic BEATs features and a padding mask with varied (including
    # zero) pad lengths per batch row.
    x = jax.random.normal(k_x, (B, T, D), dtype=jnp.float32)
    t_idx = jnp.arange(T)
    pad_lens = (jnp.arange(B) * 37) % (T // 2)
    padding_mask = t_idx[None, :] >= (T - pad_lens[:, None])

    # Deterministic parameter init (PyTorch nn.Linear-style uniform bounds).
    lim1 = 1.0 / jnp.sqrt(jnp.float32(D))
    lim2 = 1.0 / jnp.sqrt(jnp.float32(E))
    w1 = jax.random.uniform(k_w1, (D, E), jnp.float32, -lim1, lim1)
    b1 = jax.random.uniform(k_b1, (E,), jnp.float32, -lim1, lim1)
    w2 = jax.random.uniform(k_w2, (E, C), jnp.float32, -lim2, lim2)
    b2 = jax.random.uniform(k_b2, (C,), jnp.float32, -lim2, lim2)

    ref = _reference(x, padding_mask, w1, b1, w2, b2)

    # 1) Default tiling (single large time tile).
    out = jax.block_until_ready(
        audio_encoder_head(x, padding_mask, w1, b1, w2, b2))
    assert out.shape == (B, C)
    err = float(jnp.max(jnp.abs(out - ref)))
    assert jnp.allclose(out, ref, atol=2e-3, rtol=2e-3), f"max err {err}"

    # 2) Small time tile -> exercises multi-step accumulation across the
    #    "arbitrary" time grid axis.
    out2 = jax.block_until_ready(
        audio_encoder_head(x, padding_mask, w1, b1, w2, b2, tile_t=128))
    err2 = float(jnp.max(jnp.abs(out2 - ref)))
    assert jnp.allclose(out2, ref, atol=2e-3, rtol=2e-3), f"max err {err2}"

    print("KERNEL_OK")
</pallas_src>

<mosaic_0001>
module attributes {stable_mosaic.version = 11 : i64} {
  func.func @_audio_head_kernel(%arg0: i32, %arg1: i32, %arg2: memref<8x384x768xf32, #tpu.memory_space<vmem>>, %arg3: memref<8x384xf32, #tpu.memory_space<vmem>>, %arg4: memref<8x1xf32, #tpu.memory_space<vmem>>, %arg5: memref<768x384xf32, #tpu.memory_space<vmem>>, %arg6: memref<1x384xf32, #tpu.memory_space<vmem>>, %arg7: memref<384x128xf32, #tpu.memory_space<vmem>>, %arg8: memref<1x128xf32, #tpu.memory_space<vmem>>, %arg9: memref<8x128xf32, #tpu.memory_space<vmem>>, %arg10: memref<8x768xf32, #tpu.memory_space<vmem>>) attributes {dimension_semantics = [#tpu.dimension_semantics<parallel>, #tpu.dimension_semantics<arbitrary>], iteration_bounds = array<i64: 2, 1>, scalar_prefetch = 0 : i64, scratch_operands = 1 : i64, tpu.core_type = #tpu.core_type<tc>, window_params = [{transform_indices = @transform_0, window_bounds = array<i64: 8, 384, 768>}, {transform_indices = @transform_1, window_bounds = array<i64: 8, 384>}, {transform_indices = @transform_2, window_bounds = array<i64: 8, 1>}, {pipeline_mode = #tpu.pipeline_mode<synchronous>, transform_indices = @transform_3, window_bounds = array<i64: 768, 384>}, {pipeline_mode = #tpu.pipeline_mode<synchronous>, transform_indices = @transform_4, window_bounds = array<i64: 1, 384>}, {pipeline_mode = #tpu.pipeline_mode<synchronous>, transform_indices = @transform_5, window_bounds = array<i64: 384, 128>}, {pipeline_mode = #tpu.pipeline_mode<synchronous>, transform_indices = @transform_6, window_bounds = array<i64: 1, 128>}, {transform_indices = @transform_7, window_bounds = array<i64: 8, 128>}]} {
    %c0_i32 = arith.constant 0 : i32
    %0 = arith.cmpi eq, %arg1, %c0_i32 : i32
    %1 = arith.extui %0 : i1 to i32
    %c0_i32_0 = arith.constant 0 : i32
    %2 = arith.cmpi ne, %1, %c0_i32_0 : i32
    scf.if %2 {
      %cst_11 = arith.constant 0.000000e+00 : f32
      %14 = vector.broadcast %cst_11 : f32 to vector<8x768xf32>
      %c0_12 = arith.constant 0 : index
      %c0_13 = arith.constant 0 : index
      %15 = vector.load %arg10[%c0_12, %c0_13] : memref<8x768xf32, #tpu.memory_space<vmem>>, vector<8x768xf32>
      tpu.vector_store %arg10[%c0_12, %c0_13], %14 {strides = array<i32>} : memref<8x768xf32, #tpu.memory_space<vmem>>, vector<8x768xf32>,
    } else {
    }
    %c0 = arith.constant 0 : index
    %c0_1 = arith.constant 0 : index
    %c0_2 = arith.constant 0 : index
    %3 = vector.load %arg2[%c0, %c0_1, %c0_2] : memref<8x384x768xf32, #tpu.memory_space<vmem>>, vector<8x384x768xf32>
    %c0_3 = arith.constant 0 : index
    %c0_4 = arith.constant 0 : index
    %4 = vector.load %arg3[%c0_3, %c0_4] : memref<8x384xf32, #tpu.memory_space<vmem>>, vector<8x384xf32>
    %5 = vector.shape_cast %4 : vector<8x384xf32> to vector<8x1x384xf32>
    "tpu.trace_start"() <{level = 10 : i32, message = "bqt,btd->bqd"}> : () -> ()
    %cst = arith.constant dense<0.000000e+00> : vector<8x1x768xf32>
    %6 = tpu.matmul %5, %3, %cst {dimension_numbers = #tpu.dot_dimension_numbers<[2], [1], [1], [2], [0, 0, 0, 1, 1, 2], [0], [0]>} : vector<8x1x384xf32>, vector<8x384x768xf32>, vector<8x1x768xf32> -> vector<8x1x768xf32>
    "tpu.trace_stop"() : () -> ()
    %c0_5 = arith.constant 0 : index
    %c0_6 = arith.constant 0 : index
    %7 = vector.load %arg10[%c0_5, %c0_6] : memref<8x768xf32, #tpu.memory_space<vmem>>, vector<8x768xf32>
    %8 = vector.shape_cast %6 : vector<8x1x768xf32> to vector<8x768xf32>
    %9 = arith.addf %7, %8 : vector<8x768xf32>
    %c0_7 = arith.constant 0 : index
    %c0_8 = arith.constant 0 : index
    %10 = vector.load %arg10[%c0_7, %c0_8] : memref<8x768xf32, #tpu.memory_space<vmem>>, vector<8x768xf32>
    tpu.vector_store %arg10[%c0_7, %c0_8], %9 {strides = array<i32>} : memref<8x768xf32, #tpu.memory_space<vmem>>, vector<8x768xf32>,
    %c0_i32_9 = arith.constant 0 : i32
    %11 = arith.cmpi eq, %arg1, %c0_i32_9 : i32
    %12 = arith.extui %11 : i1 to i32
    %c0_i32_10 = arith.constant 0 : i32
    %13 = arith.cmpi ne, %12, %c0_i32_10 : i32
    scf.if %13 {
      %c0_11 = arith.constant 0 : index
      %c0_12 = arith.constant 0 : index
      %14 = vector.load %arg10[%c0_11, %c0_12] : memref<8x768xf32, #tpu.memory_space<vmem>>, vector<8x768xf32>
      %c0_13 = arith.constant 0 : index
      %c0_14 = arith.constant 0 : index
      %15 = vector.load %arg4[%c0_13, %c0_14] : memref<8x1xf32, #tpu.memory_space<vmem>>, vector<8x1xf32>
      %16 = vector.broadcast %15 : vector<8x1xf32> to vector<8x768xf32>
      %17 = arith.divf %14, %16 : vector<8x768xf32>
      %c0_15 = arith.constant 0 : index
      %c0_16 = arith.constant 0 : index
      %18 = vector.load %arg5[%c0_15, %c0_16] : memref<768x384xf32, #tpu.memory_space<vmem>>, vector<768x384xf32>
      %cst_17 = arith.constant dense<0.000000e+00> : vector<8x384xf32>
      %19 = tpu.matmul %17, %18, %cst_17 {dimension_numbers = #tpu.dot_dimension_numbers<[1], [0], [0], [1], [0, 0, 1, 1], [], []>} : vector<8x768xf32>, vector<768x384xf32>, vector<8x384xf32> -> vector<8x384xf32>
      %c0_18 = arith.constant 0 : index
      %c0_19 = arith.constant 0 : index
      %20 = vector.load %arg6[%c0_18, %c0_19] : memref<1x384xf32, #tpu.memory_space<vmem>>, vector<1x384xf32>
      %21 = vector.broadcast %20 : vector<1x384xf32> to vector<8x384xf32>
      %22 = arith.addf %19, %21 : vector<8x384xf32>
      %cst_20 = arith.constant 0.000000e+00 : f32
      %23 = vector.broadcast %cst_20 : f32 to vector<8x384xf32>
      %24 = arith.cmpf oge, %22, %23 : vector<8x384xf32>
      %cst_21 = arith.constant 0.00999999977 : f32
      %25 = vector.broadcast %cst_21 : f32 to vector<8x384xf32>
      %26 = arith.mulf %25, %22 : vector<8x384xf32>
      %27 = arith.select %24, %22, %26 : vector<8x384xi1>, vector<8x384xf32>
      %c0_22 = arith.constant 0 : index
      %c0_23 = arith.constant 0 : index
      %28 = vector.load %arg7[%c0_22, %c0_23] : memref<384x128xf32, #tpu.memory_space<vmem>>, vector<384x128xf32>
      %cst_24 = arith.constant dense<0.000000e+00> : vector<8x128xf32>
      %29 = tpu.matmul %27, %28, %cst_24 {dimension_numbers = #tpu.dot_dimension_numbers<[1], [0], [0], [1], [0, 0, 1, 1], [], []>} : vector<8x384xf32>, vector<384x128xf32>, vector<8x128xf32> -> vector<8x128xf32>
      %c0_25 = arith.constant 0 : index
      %c0_26 = arith.constant 0 : index
      %30 = vector.load %arg8[%c0_25, %c0_26] : memref<1x128xf32, #tpu.memory_space<vmem>>, vector<1x128xf32>
      %31 = vector.broadcast %30 : vector<1x128xf32> to vector<8x128xf32>
      %32 = arith.addf %29, %31 : vector<8x128xf32>
      %c0_27 = arith.constant 0 : index
      %c0_28 = arith.constant 0 : index
      %33 = vector.load %arg9[%c0_27, %c0_28] : memref<8x128xf32, #tpu.memory_space<vmem>>, vector<8x128xf32>
      tpu.vector_store %arg9[%c0_27, %c0_28], %32 {strides = array<i32>} : memref<8x128xf32, #tpu.memory_space<vmem>>, vector<8x128xf32>,
    } else {
    }
    return
  }
  func.func @transform_0(%arg0: i32, %arg1: i32) -> (i32, i32, i32) {
    %c0_i32 = arith.constant 0 : i32
    %c0_i32_0 = arith.constant 0 : i32
    return %arg0, %arg1, %c0_i32 : i32, i32, i32
  }
  func.func @transform_1(%arg0: i32, %arg1: i32) -> (i32, i32) {
    %c0_i32 = arith.constant 0 : i32
    return %arg0, %arg1 : i32, i32
  }
  func.func @transform_2(%arg0: i32, %arg1: i32) -> (i32, i32) {
    %c0_i32 = arith.constant 0 : i32
    %c0_i32_0 = arith.constant 0 : i32
    return %arg0, %c0_i32 : i32, i32
  }
  func.func @transform_3(%arg0: i32, %arg1: i32) -> (i32, i32) {
    %c0_i32 = arith.constant 0 : i32
    %c0_i32_0 = arith.constant 0 : i32
    %c0_i32_1 = arith.constant 0 : i32
    return %c0_i32, %c0_i32_0 : i32, i32
  }
  func.func @transform_4(%arg0: i32, %arg1: i32) -> (i32, i32) {
    %c0_i32 = arith.constant 0 : i32
    %c0_i32_0 = arith.constant 0 : i32
    %c0_i32_1 = arith.constant 0 : i32
    return %c0_i32, %c0_i32_0 : i32, i32
  }
  func.func @transform_5(%arg0: i32, %arg1: i32) -> (i32, i32) {
    %c0_i32 = arith.constant 0 : i32
    %c0_i32_0 = arith.constant 0 : i32
    %c0_i32_1 = arith.constant 0 : i32
    return %c0_i32, %c0_i32_0 : i32, i32
  }
  func.func @transform_6(%arg0: i32, %arg1: i32) -> (i32, i32) {
    %c0_i32 = arith.constant 0 : i32
    %c0_i32_0 = arith.constant 0 : i32
    %c0_i32_1 = arith.constant 0 : i32
    return %c0_i32, %c0_i32_0 : i32, i32
  }
  func.func @transform_7(%arg0: i32, %arg1: i32) -> (i32, i32) {
    %c0_i32 = arith.constant 0 : i32
    %c0_i32_0 = arith.constant 0 : i32
    return %arg0, %c0_i32 : i32, i32
  }
}

</mosaic_0001>

<bundles_post_ra>
// kernel: tpu_custom_call.1
= control target key start
LH: loop header
LB: loop body
LE: loop exit
PB: predicated region body
PF: predicated region fallthrough
CT: control target
= control target key end

     0   :  { %s11336_s0 = inlined_call_operand.hbm [shape: f32[16,384,768], index: 0, kind: input, shape index: {}]   ;;  %s11337_s1 = inlined_call_operand.hbm [shape: f32[16,384], index: 1, kind: input, shape index: {}]   ;;  %s11338_s2 = inlined_call_operand.vmem [shape: f32[16,1], index: 2, kind: input, shape index: {}]   ;;  %s11339_s3 = inlined_call_operand.hbm [shape: f32[768,384], index: 3, kind: input, shape index: {}]   ;;  %s11340_s4 = inlined_call_operand.hbm [shape: f32[1,384], index: 4, kind: input, shape index: {}]   ;;  %s11341_s5 = inlined_call_operand.hbm [shape: f32[384,128], index: 5, kind: input, shape index: {}]   ;;  %s11342_s6 = inlined_call_operand.hbm [shape: f32[1,128], index: 6, kind: input, shape index: {}]   ;;  %s11343_s7 = inlined_call_operand.hbm [shape: f32[16,128], index: 7, kind: output, shape index: {}]  }
   0x1   :  { %11349 = sst [smem:[#allocation25_spill]] %s11336_s0 }
   0x2   :  { %11350 = sst [smem:[#allocation26_spill]] %s11339_s3 }
   0x3   :  { %11351 = sst [smem:[#allocation27_spill]] %s11340_s4 }
   0x4   :  { %11352 = sst [smem:[#allocation28_spill]] %s11341_s5 }
   0x5   :  { %11353 = sst [smem:[#allocation29_spill]] %s11342_s6 }
   0x6   :  { %12 = vsyncpa [#allocation4], 0 }
   0x7   :  { %14 = vsyncpa [#allocation4 + $0x1], 0 }
   0x8   :  { %15 = vsyncpa [#allocation7], 0 }
   0x9   :  { %17 = vsyncpa [#allocation7 + $0x1], 0 }
   0xa   :  { %18 = vsyncpa [#allocation10], 0 }
   0xb   :  { %19 = vsyncpa [#allocation13], 0 }
   0xc   :  { %20 = vsyncpa [#allocation5], 0 }
   0xd   :  { %22 = vsyncpa [#allocation5 + $0x1], 0  ;;  %s8299_s24 = smov 0   ;;  %s8301_s25 = smov 0  }
   0xe   :  { %s8303_s26 = smov 0   ;;  %s8305_s27 = smov 0  }
   0xf   :  { %s8307_s28 = smov 0   ;;  %s8309_s29 = smov 0  }
  0x10 LB: > { %11354 = sst [smem:[#allocation21_spill]] %s8228_s26  ;;  %s8330_s30 = sadd.s32 4294967295, %s8240_s29   ;;  %s8240_s29 = sphi %s8309_s29, %s28_s29   ;;  %s8236_s28 = sphi %s8307_s28, %s11386_s28   ;;  %s8232_s27 = sphi %s8305_s27, %s11385_s27   ;;  %s8228_s26 = sphi %s8303_s26, %s11381_s26   ;;  %s8224_s25 = sphi %s8301_s25, %s11384_s25   ;;  %s8220_s24 = sphi %s8299_s24, %s11383_s24  }
  0x11   : > { %s7636_s8 = sadd.s32 4294967294, %s8240_s29   ;;  %p62_p0 = scmp.ne.s32.totalorder %s8224_s25, %s8220_s24 }
  0x12   : > { %p11344_p1 = scmp.eq.s32.totalorder %s8330_s30, 0  ;;  %p230_p3 = scmp.eq.s32.totalorder %s7636_s8, 1 }
  0x13   : > { %p7637_p5 = scmp.ge.s32.totalorder %s8240_s29, 1  ;;  %p237_p7 = scmp.lt.s32.totalorder %s8240_s29, 3 }
  0x14   : > { %p8339_p4 = por %p11344_p1, %p62_p0  ;;  %p8344_p6 = por %p230_p3, %p62_p0 }
  0x15   : > { %p8349_p8 = pnand %p7637_p5, %p237_p7  ;;  %s8242_s12 = smov [#allocation8]  }
  0x16   : > { %s11355_s9 = scalar_select %p8339_p4, 1, 0 }
  0x17   : > { %s11356_s10 = scalar_select %p8344_p6, 1, 0 }
  0x18   : > { %s249_s13 = sshll.u32 %s8242_s12, 4  ;;  %p7879_p9 = pneg %p8349_p8  ;;  %s250_s13 = int_to_ptr.vmem [resolvable:$true] %s249_s13 }
  0x19   : > { %11357 = sst [smem:[#allocation22_spill]] %s11356_s10  ;;  %s8243_s15 = smov [#allocation9]  }
  0x1a   : > { %p8358_p11 = pnand %p7879_p9, %p11344_p1  ;;  %s263_s16 = sshll.u32 %s8243_s15, 4  ;;  %s264_s16 = int_to_ptr.vmem [resolvable:$true] %s263_s16 }
  0x1b   : > { %s8244_s17 = smov [#allocation11]   ;;  %s7995_s19 = scalar_lea.vmem %s250_s13, 36864 }
  0x1c   : > { %s273_s18 = sshll.u32 %s8244_s17, 4  ;;  %p7986_p12 = pneg %p8358_p11  ;;  %s274_s18 = int_to_ptr.vmem [resolvable:$true] %s273_s18 }
  0x1d   : > { %p7996_p13 = scmp.ne.s32.totalorder %s250_s13, %s7995_s19  ;;  %p8003_p5 = scmp.lt.s32.totalorder %s250_s13, %s250_s13 }
  0x1e   : > { %p8004_p7 = scmp.lt.s32.totalorder %s7995_s19, %s7995_s19 }
  0x1f   : > { %p7998_p0 = pnand %p7996_p13, %p7986_p12 }
  0x20   : > { %p8005_p9 = por %p8004_p7, %p8003_p5 }
  0x21   : > { %p7999_p3 = pneg %p7998_p0 }
  0x23   : > { %p8006_p10 = pnand %p8005_p9, %p7999_p3 }
  0x25   : > { %8009 = shalt.err (!%p8006_p10)
}
  0x26   : > { %s8245_s20 = smov 384   ;;  %s8246_s21 = smov 24  }
  0x27   : > { %s11360_s3 = sld [smem:[#allocation26_spill]]  ;;  %s8021_s8 = scalar_lea.vmem %s264_s16, 48 }
  0x28   : > { %p8022_p1 = scmp.ne.s32.totalorder %s264_s16, %s8021_s8  ;;  %s8028_s12 = scalar_lea.vmem %s264_s16, 64 }
  0x29   : > { %p8029_p2 = scmp.lt.s32.totalorder %s264_s16, %s264_s16  ;;  %p8030_p5 = scmp.lt.s32.totalorder %s8028_s12, %s8021_s8 }
  0x2a   : > { %p8024_p13 = pnand %p8022_p1, %p7986_p12 }
  0x2b   : > { %p8031_p3 = por %p8030_p5, %p8029_p2 }
  0x2c   : > { %p8025_p0 = pneg %p8024_p13 }
  0x2d   : > { %7882 = dma.hbm_to_vmem [thread:$0]  (!%p8358_p11), %s11360_s3, 36864, %s250_s13, [#allocation7], %s8245_s20, %s8245_s20, %s8246_s21  }
  0x2e   : > { %p8032_p10 = pnand %p8031_p3, %p8025_p0 }
  0x30   : > { %8035 = shalt.err (!%p8032_p10)
}
  0x31   : > { %s11361_s4 = sld [smem:[#allocation27_spill]]  ;;  %s8047_s13 = scalar_lea.vmem %s274_s18, 6144 }
  0x32   : > { %p8048_p7 = scmp.ne.s32.totalorder %s274_s18, %s8047_s13  ;;  %p8055_p13 = scmp.lt.s32.totalorder %s274_s18, %s274_s18 }
  0x33   : > { %p8056_p6 = scmp.lt.s32.totalorder %s8047_s13, %s8047_s13 }
  0x34   : > { %p8050_p1 = pnand %p8048_p7, %p7986_p12 }
  0x35   : > { %p8057_p4 = por %p8056_p6, %p8055_p13 }
  0x36   : > { %p8051_p9 = pneg %p8050_p1 }
  0x37   : > { %7885 = dma.hbm_to_vmem [thread:$0]  (!%p8358_p11), %s11361_s4, 48, %s264_s16, [#allocation10]  }
  0x38   : > { %p8058_p2 = pnand %p8057_p4, %p8051_p9 }
  0x3a   : > { %8061 = shalt.err (!%p8058_p2)
}
  0x3b   : > { %s8247_s19 = smov 128   ;;  %s8248_s20 = smov 8  }
  0x3c   : > { %s11362_s5 = sld [smem:[#allocation28_spill]]  ;;  %s8249_s16 = smov [#allocation12]  }
  0x3d   : > { %s287_s23 = sshll.u32 %s8249_s16, 4  ;;  %s288_s23 = int_to_ptr.vmem [resolvable:$true] %s287_s23 }
  0x3e   : > { %s8073_s8 = scalar_lea.vmem %s288_s23, 16  ;;  %s8080_s12 = scalar_lea.vmem %s288_s23, 32 }
  0x3f   : > { %p8074_p0 = scmp.ne.s32.totalorder %s288_s23, %s8073_s8  ;;  %p8081_p4 = scmp.lt.s32.totalorder %s288_s23, %s288_s23 }
  0x40   : > { %p8082_p3 = scmp.lt.s32.totalorder %s8080_s12, %s8073_s8 }
  0x41   : > { %p8076_p5 = pnand %p8074_p0, %p7986_p12 }
  0x42   : > { %7888 = dma.hbm_to_vmem [thread:$0]  (!%p8358_p11), %s11362_s5, 6144, %s274_s18, [#allocation10], %s8247_s19, %s8247_s19, %s8248_s20  }
  0x43   : > { %p8077_p6 = pneg %p8076_p5  ;;  %p8083_p10 = por %p8082_p3, %p8081_p4 }
  0x45   : > { %p8084_p7 = pnand %p8083_p10, %p8077_p6 }
  0x47   : > { %8087 = shalt.err (!%p8084_p7)
}
  0x48   : > { %s11363_s6 = sld [smem:[#allocation29_spill]]  ;;  %s40_s18 = sadd.s32 1, %s8236_s28 }
  0x49   : > { %s49_s13 = sadd.s32 1, %s8228_s26  ;;  %p42_p12 = scmp.ge.s32.totalorder %s40_s18, 2 }
  0x4a   : > { %p56_p1 = scmp.ne.s32.totalorder %s8228_s26, %s8224_s25  ;;  %p57_p9 = scmp.eq.s32.totalorder %s8240_s29, 0 }
  0x4b   : > { %p7907_p13 = scmp.lt.s32.totalorder %s8240_s29, 2  ;;  %s11388_s18 = smov (%p42_p12, %s40_s18), 0 }
  0x4c   : > { %11364 = sst [smem:[#allocation23_spill]] %s11388_s18  ;;  %p58_p2 = por %p57_p9, %p56_p1 }
  0x4d   : > { %p11365_p0 = scmp.eq.s32.totalorder %s8330_s30, 1  ;;  %s44_s19 = ssub.s32 %s8236_s28, %s11388_s18 }
  0x4e   : > { %7891 = dma.hbm_to_vmem [thread:$0]  (!%p8358_p11), %s11363_s6, 16, %s288_s23, [#allocation13]  }
  0x4f   : > { %p8406_p5 = por %p11365_p0, %p56_p1  ;;  %s8413_s20 = sand.u32 1, %s8228_s26  }
  0x50   : > { %p47_p11 = scmp.eq.s32.totalorder %s44_s19, 0  ;;  %s7851_s21 = smul.u32 18432, %s8413_s20 }
  0x51   : > { %p8416_p6 = pnand %p7907_p13, %p58_p2  ;;  %s7852_s23 = smul.u32 294912, %s8236_s28 }
  0x52   : > { %s8421_s16 = scalar_select %p47_p11, %s8228_s26, %s49_s13  }
  0x53   : > { %s302_s8 = scalar_lea.vmem [#allocation3], %s7851_s21  ;;  %s11369_s0 = sld [smem:[#allocation25_spill]] }
  0x54   : > { %11368 = sst [smem:[#allocation24_spill]] %s8421_s16  ;;  %s313_s12 = sshll.u32 %s302_s8, 4  ;;  %s314_s12 = int_to_ptr.vmem [resolvable:$true] %s313_s12 }
  0x55   : > { %s299_s4 = scalar_lea.sflag [#allocation4], %s8413_s20  ;;  %p8090_p4 = pneg %p8416_p6 }
  0x56   : > { %s8101_s19 = scalar_lea.vmem %s314_s12, 294912  ;;  %s8250_s5 = smov [#allocation3]  }
  0x57   : > { %p8102_p3 = scmp.ne.s32.totalorder %s314_s12, %s8101_s19  ;;  %s8106_s13 = sshll.u32 %s8250_s5, 4  ;;  %s8107_s13 = int_to_ptr.vmem [resolvable:$false] %s8106_s13 }
  0x58   : > { %s8108_s6 = scalar_lea.vmem %s8107_s13, 589824  ;;  %p8109_p12 = scmp.lt.s32.totalorder %s314_s12, %s8107_s13 }
  0x59   : > { %s312_s3 = scalar_lea.hbm %s11369_s0, %s7852_s23  ;;  %p8104_p10 = pnand %p8102_p3, %p8090_p4 }
  0x5a   : > { %p8110_p1 = scmp.lt.s32.totalorder %s8108_s6, %s8101_s19 }
  0x5b   : > { %p8105_p7 = pneg %p8104_p10 }
  0x5c   : > { %p8111_p9 = por %p8110_p1, %p8109_p12 }
  0x5e   : > { %p8112_p13 = pnand %p8111_p9, %p8105_p7 }
  0x60   : > { %8115 = shalt.err (!%p8112_p13)
}
  0x61   : > { %s8251_s21 = smov 768   ;;  %s8252_s23 = smov 48  }
  0x62   : > { %7895 = dma.hbm_to_vmem [thread:$0]  (!%p8416_p6), %s312_s3, 294912, %s314_s12, %s299_s4, %s8251_s21, %s8251_s21, %s8252_s23  }
  0x63   : > { %s323_s8 = sand.u32 1, %s8240_s29   ;;  %s7853_s15 = smul.u32 24, %s8413_s20 }
  0x64   : > { %s7854_s17 = smul.u32 384, %s8236_s28  ;;  %s324_s18 = scalar_lea.sflag [#allocation7], %s323_s8 }
  0x65   : > { %s327_s6 = scalar_lea.vmem [#allocation6], %s7853_s15  ;;  %s8253_s26 = smov [#allocation6]  }
  0x66   : > { %s335_s13 = scalar_lea.hbm %s11337_s1, %s7854_s17  ;;  %s337_s19 = sshll.u32 %s327_s6, 4  ;;  %s338_s19 = int_to_ptr.vmem [resolvable:$true] %s337_s19 }
  0x67   : > { %s8129_s16 = scalar_lea.vmem %s338_s19, 384  ;;  %s8134_s10 = sshll.u32 %s8253_s26, 4  ;;  %s8135_s10 = int_to_ptr.vmem [resolvable:$false] %s8134_s10 }
  0x68   : > { %p8130_p2 = scmp.ne.s32.totalorder %s338_s19, %s8129_s16  ;;  %s8136_s3 = scalar_lea.vmem %s8135_s10, 768 }
  0x69   : > { %p8137_p3 = scmp.lt.s32.totalorder %s338_s19, %s8135_s10  ;;  %p8138_p10 = scmp.lt.s32.totalorder %s8136_s3, %s8129_s16 }
  0x6a   : > { %p8132_p0 = pnand %p8130_p2, %p8090_p4 }
  0x6b   : > { %p8139_p7 = por %p8138_p10, %p8137_p3 }
  0x6c   : > { %p8133_p11 = pneg %p8132_p0 }
  0x6e   : > { %p8140_p12 = pnand %p8139_p7, %p8133_p11 }
  0x70   : > { %8143 = shalt.err (!%p8140_p12)
}
  0x71   : > { %7898 = dma.hbm_to_vmem [thread:$0]  (!%p8416_p6), %s335_s13, 384, %s338_s19, %s324_s18  }
  0x72   : > { %353 = sbr.rel (%p8349_p8) target bundleno = 1982 (0x7be), region = 48  ;;  %s8449_s0 = sand.u32 (!%p8349_p8), 1, %s8224_s25  }
  0x73   : > { %s7855_s4 = smul.u32 (!%p8349_p8), 18432, %s8449_s0  ;;  %s356_s26 = scalar_lea.sflag (!%p8349_p8), [#allocation4], %s8449_s0 }
  0x74   : > { %p11370_p4 = scmp.ne.s32.totalorder (!%p8349_p8), %s11355_s9, 0 }
  0x75   : > { %s8453_s20 = scalar_lea.vmem (!%p8349_p8), [#allocation3], %s7855_s4 }
  0x77   : > { %8195 = dma.done.wait (%p11370_p4), %s356_s26, 294912  }
  0x78   : > { %8197 = vsyncadd (%p11370_p4), %s356_s26, 4294672384  ;;  %s364_s10 = sand.u32 1, %s8330_s30   ;;  %s7856_s11 = smul.u32 24, %s8449_s0 }
  0x79   : > { %s365_s18 = scalar_lea.sflag [#allocation7], %s364_s10 }
  0x7a   : > { %s8461_s22 = scalar_lea.vmem [#allocation6], %s7856_s11 }
  0x7b   : > { %8199 = dma.done.wait (%p11370_p4), %s365_s18, 384  }
  0x7c   : > { %8201 = vsyncadd (%p11370_p4), %s365_s18, 4294966912  ;;  %p11371_p8 = scmp.eq.s32.totalorder %s8330_s30, 0 }
  0x7e   : > { %8203 = dma.done.wait (%p11371_p8), [#allocation7], 36864   ;;  %p11372_p6 = pmov %p11371_p8 }
  0x80   : > { %8205 = vsyncadd (%p11372_p6), [#allocation7], 4294930432  ;;  %p11373_p1 = pmov %p11372_p6 }
  0x82   : > { %8207 = dma.done.wait (%p11373_p1), [#allocation10], 6192   ;;  %p11374_p9 = pmov %p11373_p1 }
  0x83   : > { %p11375_p13 = pmov %p11373_p1 }
  0x84   : > { %8209 = vsyncadd (%p11374_p9), [#allocation10], 4294961104 }
  0x85   : > { %8211 = dma.done.wait (%p11375_p13), [#allocation13], 16   ;;  %p11376_p2 = pmov %p11373_p1 }
  0x86   : > { %v8254_v0 = vmov 0.0   ;;  %v532_v1 = vld [vmem:[%s8453_s20 + $0x2d8] sm:$0xff]  ;;  %v531_v3 = vld [vmem:[%s8453_s20 + $0x2d0] sm:$0xff]  ;;  %v526_v5 = vld [vmem:[%s8453_s20 + $0x2a8] sm:$0xff]  ;;  %v8255_v31 = vmov 1966171168   ;;  %v2757_v33 = vlaneseq }
  0x87   : > { %8213 = vsyncadd (%p11376_p2), [#allocation13], 4294967280  ;;  %2968 = vmatprep.mubr.f32.mxu1 %v8254_v0  ;;  %v724_v2 = vld [vmem:[%s8453_s20 + $0x8d8] sm:$0xff]  ;;  %2833 = vmatprep.subr.mxu0 %v532_v1  ;;  %v723_v4 = vld [vmem:[%s8453_s20 + $0x8d0] sm:$0xff]  ;;  %v2755_v32 = vunpack.c.l.s4 %v8255_v31  ;;  %vm6401_vm0 = vcmask 1041409   ;;  %vm6404_vm1 = vcmask 1042434  }
  0x88   : > { %2904 = vmatprep.subr.mxu1 %v724_v2  ;;  %v718_v6 = vld [vmem:[%s8453_s20 + $0x8a8] sm:$0xff]  ;;  %2834 = vmatpush1.msra.mxu0 %v531_v3  ;;  %v525_v7 = vld [vmem:[%s8453_s20 + $0x2a0] sm:$0xff]  ;;  %v520_v9 = vld [vmem:[%s8453_s20 + $0x278] sm:$0xff]  ;;  %v8518_v43 = vshrl.u32 %v2757_v33, 7  ;;  %vm6407_vm2 = vcmask 1043459   ;;  %vm6410_vm3 = vcmask 1044484  }
  0x89   : > { %2905 = vmatpush1.msra.mxu1 %v723_v4  ;;  %v717_v8 = vld [vmem:[%s8453_s20 + $0x8a0] sm:$0xff]  ;;  %2835 = vmatprep.subr.mxu0 %v526_v5  ;;  %v712_v10 = vld [vmem:[%s8453_s20 + $0x878] sm:$0xff]  ;;  %v519_v11 = vld [vmem:[%s8453_s20 + $0x270] sm:$0xff]  ;;  %v2756_v42 = vunpack.c.0.s8 %v2755_v32  ;;  %vm6413_vm4 = vcmask 1045509   ;;  %p427_p0 = scmp.lt.s32.totalorder %s8232_s27, 1  ;;  %vm6416_vm5 = vcmask 1046534  }
  0x8a   : > { %2906 = vmatprep.subr.mxu1 %v718_v6  ;;  %v711_v12 = vld [vmem:[%s8453_s20 + $0x870] sm:$0xff]  ;;  %2836 = vmatpush1.msra.mxu0 %v525_v7  ;;  %v514_v13 = vld [vmem:[%s8453_s20 + $0x248] sm:$0xff]  ;;  %v513_v15 = vld [vmem:[%s8453_s20 + $0x240] sm:$0xff]  ;;  %vm6419_vm6 = vcmask 1047559   ;;  %vm8257_vm7 = vmmov 0   ;;  %s7652_s23 = sshll.u32 %s8449_s0, 3 }
  0x8b   : > { %2907 = vmatpush1.msra.mxu1 %v717_v8  ;;  %v706_v14 = vld [vmem:[%s8453_s20 + $0x848] sm:$0xff]  ;;  %2837 = vmatprep.subr.mxu0 %v520_v9  ;;  %v705_v16 = vld [vmem:[%s8453_s20 + $0x840] sm:$0xff]  ;;  %v508_v17 = vld [vmem:[%s8453_s20 + $0x218] sm:$0xff]  ;;  %v8530_v53 = vsub.s32 %v2756_v42, %v8518_v43  ;;  %v8555_v8 = vsub.s32 2, %v8518_v43  ;;  %s11074_s30 = scalar_select %p427_p0, %s8232_s27, 1 }
  0x8c   : > { %2908 = vmatprep.subr.mxu1 %v712_v10  ;;  %2838 = vmatpush1.msra.mxu0 %v519_v11  ;;  %v700_v18 = vld [vmem:[%s8453_s20 + $0x818] sm:$0xff]  ;;  %v507_v19 = vld [vmem:[%s8453_s20 + $0x210] sm:$0xff]  ;;  %v502_v21 = vld [vmem:[%s8453_s20 + $0x1e8] sm:$0xff]  ;;  %s7656_s8 = sshll.u32 %s8232_s27, 7  ;;  %s423_s15 = scalar_lea.vmem [#allocation14], %s7652_s23 }
  0x8d   : > { %2909 = vmatpush1.msra.mxu1 %v711_v12  ;;  %2839 = vmatprep.subr.mxu0 %v514_v13  ;;  %v699_v20 = vld [vmem:[%s8453_s20 + $0x810] sm:$0xff]  ;;  %v694_v22 = vld [vmem:[%s8453_s20 + $0x7e8] sm:$0xff]  ;;  %v501_v23 = vld [vmem:[%s8453_s20 + $0x1e0] sm:$0xff]  ;;  %s7653_s9 = sshll.u32 %s11074_s30, 3  ;;  %s7478_s17 = sshll.u32 %s423_s15, 4  ;;  %s7479_s17 = int_to_ptr.vmem [resolvable:$true] %s7478_s17 }
  0x8e   : > { %2910 = vmatprep.subr.mxu1 %v706_v14  ;;  %2840 = vmatpush1.msra.mxu0 %v513_v15  ;;  %v693_v24 = vld [vmem:[%s8453_s20 + $0x7e0] sm:$0xff]  ;;  %v496_v25 = vld [vmem:[%s8453_s20 + $0x1b8] sm:$0xff]  ;;  %v495_v27 = vld [vmem:[%s8453_s20 + $0x1b0] sm:$0xff]  ;;  %s430_s21 = scalar_lea.vmem %s11338_s2, %s7653_s9  ;;  %s11294_s6 = scalar_lea.hbm %s11343_s7, %s7656_s8 }
  0x8f   : > { %2911 = vmatpush1.msra.mxu1 %v705_v16  ;;  %2841 = vmatprep.subr.mxu0 %v508_v17  ;;  %v688_v26 = vld [vmem:[%s8453_s20 + $0x7b8] sm:$0xff]  ;;  %v687_v28 = vld [vmem:[%s8453_s20 + $0x7b0] sm:$0xff]  ;;  %v490_v29 = vld [vmem:[%s8453_s20 + $0x188] sm:$0xff]  ;;  %s7465_s19 = scalar_lea.sflag [#allocation5], %s8449_s0  ;;  %s8144_s3 = scalar_lea.vmem %s7479_s17, 128 }
  0x90   : > { %2912 = vmatprep.subr.mxu1 %v700_v18  ;;  %2842 = vmatpush1.msra.mxu0 %v507_v19  ;;  %v682_v30 = vld [vmem:[%s8453_s20 + $0x788] sm:$0xff]  ;;  %v489_v34 = vld [vmem:[%s8453_s20 + $0x180] sm:$0xff]  ;;  %v484_v36 = vld [vmem:[%s8453_s20 + $0x158] sm:$0xff]  ;;  %p8145_p11 = scmp.ne.s32.totalorder %s7479_s17, %s8144_s3  ;;  %s8258_s27 = smov [#allocation14]  }
  0x91   : > { %2913 = vmatpush1.msra.mxu1 %v699_v20  ;;  %2843 = vmatprep.subr.mxu0 %v502_v21  ;;  %v681_v35 = vld [vmem:[%s8453_s20 + $0x780] sm:$0xff]  ;;  %v676_v37 = vld [vmem:[%s8453_s20 + $0x758] sm:$0xff]  ;;  %v483_v38 = vld [vmem:[%s8453_s20 + $0x150] sm:$0xff]  ;;  %s8148_s4 = sshll.u32 %s8258_s27, 4  ;;  %s8149_s4 = int_to_ptr.vmem [resolvable:$false] %s8148_s4 }
  0x92   : > { %2914 = vmatprep.subr.mxu1 %v694_v22  ;;  %2844 = vmatpush1.msra.mxu0 %v501_v23  ;;  %v675_v39 = vld [vmem:[%s8453_s20 + $0x750] sm:$0xff]  ;;  %v478_v40 = vld [vmem:[%s8453_s20 + $0x128] sm:$0xff]  ;;  %v477_v44 = vld [vmem:[%s8453_s20 + $0x120] sm:$0xff]  ;;  %p8146_p3 = pnand %p8145_p11, %p8406_p5  ;;  %s8150_s26 = scalar_lea.vmem %s8149_s4, 256 }
  0x93   : > { %2915 = vmatpush1.msra.mxu1 %v693_v24  ;;  %2845 = vmatprep.subr.mxu0 %v496_v25  ;;  %v670_v41 = vld [vmem:[%s8453_s20 + $0x728] sm:$0xff]  ;;  %v669_v45 = vld [vmem:[%s8453_s20 + $0x720] sm:$0xff]  ;;  %v472_v46 = vld [vmem:[%s8453_s20 + $0xf8] sm:$0xff]  ;;  %p8151_p7 = scmp.lt.s32.totalorder %s7479_s17, %s8149_s4  ;;  %p8152_p12 = scmp.lt.s32.totalorder %s8150_s26, %s8144_s3 }
  0x94   : > { %2916 = vmatprep.subr.mxu1 %v688_v26  ;;  %2846 = vmatpush1.msra.mxu0 %v495_v27  ;;  %v664_v47 = vld [vmem:[%s8453_s20 + $0x6f8] sm:$0xff]  ;;  %v471_v48 = vld [vmem:[%s8453_s20 + $0xf0] sm:$0xff]  ;;  %v466_v50 = vld [vmem:[%s8453_s20 + $0xc8] sm:$0xff]  ;;  %p8147_p10 = pneg %p8146_p3 }
  0x95   : > { %2917 = vmatpush1.msra.mxu1 %v687_v28  ;;  %2847 = vmatprep.subr.mxu0 %v490_v29  ;;  %v663_v49 = vld [vmem:[%s8453_s20 + $0x6f0] sm:$0xff]  ;;  %v658_v51 = vld [vmem:[%s8453_s20 + $0x6c8] sm:$0xff]  ;;  %v465_v52 = vld [vmem:[%s8453_s20 + $0xc0] sm:$0xff]  ;;  %p8153_p4 = por %p8152_p12, %p8151_p7 }
  0x96   : > { %2918 = vmatprep.subr.mxu1 %v682_v30  ;;  %2848 = vmatpush1.msra.mxu0 %v489_v34  ;;  %v657_v54 = vld [vmem:[%s8453_s20 + $0x6c0] sm:$0xff]  ;;  %v460_v55 = vld [vmem:[%s8453_s20 + $0x98] sm:$0xff]  ;;  %v459_v57 = vld [vmem:[%s8453_s20 + $0x90] sm:$0xff] }
  0x97   : > { %2919 = vmatpush1.msra.mxu1 %v681_v35  ;;  %2849 = vmatprep.subr.mxu0 %v484_v36  ;;  %v652_v56 = vld [vmem:[%s8453_s20 + $0x698] sm:$0xff]  ;;  %v651_v58 = vld [vmem:[%s8453_s20 + $0x690] sm:$0xff]  ;;  %v454_v61 = vld [vmem:[%s8453_s20 + $0x68] sm:$0xff]  ;;  %p8154_p8 = pnand %p8153_p4, %p8147_p10 }
  0x98   : > { %2920 = vmatprep.subr.mxu1 %v676_v37  ;;  %2850 = vmatpush1.msra.mxu0 %v483_v38  ;;  %v8538_v59 = vld.sshfl [vmem:[%s8461_s22 + $0x10] sm:$0xff pattern:$0x75316420]  ;;  %v7976_v60 = vld [vmem:[%s8461_s22] ss:$8 sps:$4 sm:$0xff]  }
  0x99   : > { %2921 = vmatpush1.msra.mxu1 %v675_v39  ;;  %2851 = vmatprep.subr.mxu0 %v478_v40  ;;  %v646_v62 = vld [vmem:[%s8453_s20 + $0x668] sm:$0xff]  ;;  %v453_v63 = vld [vmem:[%s8453_s20 + $0x60] sm:$0xff]  ;;  %v8546_v2 = vrot.slane %v7976_v60, %v8530_v53  ;;  %v448_v3 = vld [vmem:[%s8453_s20 + $0x38] sm:$0xff] }
  0x9a   : > { %2922 = vmatprep.subr.mxu1 %v670_v41  ;;  %2852 = vmatpush1.msra.mxu0 %v477_v44  ;;  %v645_v1 = vld [vmem:[%s8453_s20 + $0x660] sm:$0xff]  ;;  %v640_v4 = vld [vmem:[%s8453_s20 + $0x638] sm:$0xff]  ;;  %v447_v5 = vld [vmem:[%s8453_s20 + $0x30] sm:$0xff] }
  0x9b   : > { %2923 = vmatpush1.msra.mxu1 %v669_v45  ;;  %2853 = vmatprep.subr.mxu0 %v472_v46  ;;  %v639_v6 = vld [vmem:[%s8453_s20 + $0x630] sm:$0xff]  ;;  %v2782_v7 = vcombine.low %v8546_v2, %v8538_v59  ;;  %v442_v9 = vld [vmem:[%s8453_s20 + $0x8] sm:$0xff]  ;;  %v441_v11 = vld [vmem:[%s8453_s20] sm:$0xff] }
  0x9c   : > { %2924 = vmatprep.subr.mxu1 %v664_v47  ;;  %2854 = vmatpush1.msra.mxu0 %v471_v48  ;;  %v634_v10 = vld [vmem:[%s8453_s20 + $0x608] sm:$0xff]  ;;  %v633_v12 = vld [vmem:[%s8453_s20 + $0x600] sm:$0xff]  ;;  %v628_v14 = vld [vmem:[%s8453_s20 + $0x5d8] sm:$0xff] }
  0x9d   : > { %2925 = vmatpush1.msra.mxu1 %v663_v49  ;;  %2855 = vmatprep.subr.mxu0 %v466_v50  ;;  %v8562_v13 = vrot.slane %v2782_v7, %v8530_v53  ;;  %v534_v15 = vld [vmem:[%s8453_s20 + $0x2e8] sm:$0xff]  ;;  %v627_v16 = vld [vmem:[%s8453_s20 + $0x5d0] sm:$0xff]  ;;  %v533_v18 = vld [vmem:[%s8453_s20 + $0x2e0] sm:$0xff] }
  0x9e   : > { %2926 = vmatprep.subr.mxu1 %v658_v51  ;;  %2856 = vmatpush1.msra.mxu0 %v465_v52  ;;  %v622_v19 = vld [vmem:[%s8453_s20 + $0x5a8] sm:$0xff]  ;;  %v528_v20 = vld [vmem:[%s8453_s20 + $0x2b8] sm:$0xff]  ;;  %v621_v21 = vld [vmem:[%s8453_s20 + $0x5a0] sm:$0xff] }
  0x9f   : > { %2927 = vmatpush1.msra.mxu1 %v657_v54  ;;  %2857 = vmatprep.subr.mxu0 %v460_v55  ;;  %v8569_v17 = vrot.slane %v8562_v13, %v8555_v8  ;;  %v527_v22 = vld [vmem:[%s8453_s20 + $0x2b0] sm:$0xff]  ;;  %v616_v23 = vld [vmem:[%s8453_s20 + $0x578] sm:$0xff]  ;;  %v522_v24 = vld [vmem:[%s8453_s20 + $0x288] sm:$0xff] }
  0xa0   : > { %2928 = vmatprep.subr.mxu1 %v652_v56  ;;  %2858 = vmatpush1.msra.mxu0 %v459_v57  ;;  %v615_v25 = vld [vmem:[%s8453_s20 + $0x570] sm:$0xff]  ;;  %v521_v26 = vld [vmem:[%s8453_s20 + $0x280] sm:$0xff]  ;;  %v610_v27 = vld [vmem:[%s8453_s20 + $0x548] sm:$0xff] }
  0xa1   : > { %2929 = vmatpush1.msra.mxu1 %v651_v58  ;;  %2859 = vmatprep.subr.mxu0 %v454_v61  ;;  %v516_v28 = vld [vmem:[%s8453_s20 + $0x258] sm:$0xff]  ;;  %v609_v29 = vld [vmem:[%s8453_s20 + $0x540] sm:$0xff]  ;;  %v515_v30 = vld [vmem:[%s8453_s20 + $0x250] sm:$0xff] }
  0xa2   : > { %2930 = vmatprep.subr.mxu1 %v646_v62  ;;  %2860 = vmatpush1.msra.mxu0 %v453_v63  ;;  %v604_v31 = vld [vmem:[%s8453_s20 + $0x518] sm:$0xff]  ;;  %v510_v32 = vld [vmem:[%s8453_s20 + $0x228] sm:$0xff]  ;;  %v603_v33 = vld [vmem:[%s8453_s20 + $0x510] sm:$0xff] }
  0xa3   : > { %2931 = vmatpush1.msra.mxu1 %v645_v1  ;;  %2861 = vmatprep.subr.mxu0 %v448_v3  ;;  %v509_v34 = vld [vmem:[%s8453_s20 + $0x220] sm:$0xff]  ;;  %v598_v35 = vld [vmem:[%s8453_s20 + $0x4e8] sm:$0xff]  ;;  %v504_v36 = vld [vmem:[%s8453_s20 + $0x1f8] sm:$0xff] }
  0xa4   : > { %2932 = vmatprep.subr.mxu1 %v640_v4  ;;  %2862 = vmatpush1.msra.mxu0 %v447_v5  ;;  %v597_v37 = vld [vmem:[%s8453_s20 + $0x4e0] sm:$0xff]  ;;  %v503_v38 = vld [vmem:[%s8453_s20 + $0x1f0] sm:$0xff]  ;;  %v592_v39 = vld [vmem:[%s8453_s20 + $0x4b8] sm:$0xff] }
  0xa5   : > { %2933 = vmatpush1.msra.mxu1 %v639_v6  ;;  %2863 = vmatprep.subr.mxu0 %v442_v9  ;;  %v498_v40 = vld [vmem:[%s8453_s20 + $0x1c8] sm:$0xff]  ;;  %v591_v41 = vld [vmem:[%s8453_s20 + $0x4b0] sm:$0xff]  ;;  %v497_v42 = vld [vmem:[%s8453_s20 + $0x1c0] sm:$0xff] }
  0xa6   : > { %2934 = vmatprep.subr.mxu1 %v634_v10  ;;  %2864 = vmatpush1.msra.mxu0 %v441_v11  ;;  %v586_v44 = vld [vmem:[%s8453_s20 + $0x488] sm:$0xff]  ;;  %v492_v45 = vld [vmem:[%s8453_s20 + $0x198] sm:$0xff]  ;;  %v585_v46 = vld [vmem:[%s8453_s20 + $0x480] sm:$0xff] }
  0xa7   : > { %2935 = vmatpush1.msra.mxu1 %v633_v12  ;;  %2865 = vmatprep.subr.mxu0 %v628_v14  ;;  %v491_v47 = vld [vmem:[%s8453_s20 + $0x190] sm:$0xff]  ;;  %v580_v48 = vld [vmem:[%s8453_s20 + $0x458] sm:$0xff]  ;;  %v486_v49 = vld [vmem:[%s8453_s20 + $0x168] sm:$0xff]  ;;  %v8625_v12 = vsub.s32 1, %v8518_v43 }
  0xa8   : > { %2975 = vmatprep.subr.mxu1 %v534_v15  ;;  %2866 = vmatpush2.msra.mxu0 %v627_v16  ;;  %v579_v50 = vld [vmem:[%s8453_s20 + $0x450] sm:$0xff]  ;;  %v485_v51 = vld [vmem:[%s8453_s20 + $0x160] sm:$0xff]  ;;  %v574_v52 = vld [vmem:[%s8453_s20 + $0x428] sm:$0xff]  ;;  %v8630_v16 = vsub.s32 0, %v8518_v43 }
  0xa9   : > { %2969 = vmatmul.mubr.f32.vlgmr.msra.gmra.mxu1 %v8569_v17  ;;  %2867 = vmatprep.subr.mxu0 %v622_v19  ;;  %v480_v54 = vld [vmem:[%s8453_s20 + $0x138] sm:$0xff]  ;;  %v573_v55 = vld [vmem:[%s8453_s20 + $0x420] sm:$0xff]  ;;  %v479_v56 = vld [vmem:[%s8453_s20 + $0x130] sm:$0xff]  ;;  %v8640_v43 = vrot.slane %v8562_v13, %v8625_v12 }
  0xaa   : > { %2976 = vmatpush1.msra.mxu1 %v533_v18  ;;  %2868 = vmatpush2.msra.mxu0 %v621_v21  ;;  %v568_v57 = vld [vmem:[%s8453_s20 + $0x3f8] sm:$0xff]  ;;  %v474_v58 = vld [vmem:[%s8453_s20 + $0x108] sm:$0xff]  ;;  %v567_v60 = vld [vmem:[%s8453_s20 + $0x3f0] sm:$0xff] }
  0xab   : > { %2977 = vmatprep.subr.mxu1 %v528_v20  ;;  %2869 = vmatprep.subr.mxu0 %v616_v23  ;;  %v473_v61 = vld [vmem:[%s8453_s20 + $0x100] sm:$0xff]  ;;  %v562_v62 = vld [vmem:[%s8453_s20 + $0x3c8] sm:$0xff]  ;;  %v468_v63 = vld [vmem:[%s8453_s20 + $0xd8] sm:$0xff] }
  0xac   : > { %2978 = vmatpush1.msra.mxu1 %v527_v22  ;;  %2870 = vmatpush2.msra.mxu0 %v615_v25  ;;  %v561_v1 = vld [vmem:[%s8453_s20 + $0x3c0] sm:$0xff]  ;;  %v467_v3 = vld [vmem:[%s8453_s20 + $0xd0] sm:$0xff]  ;;  %v556_v4 = vld [vmem:[%s8453_s20 + $0x398] sm:$0xff]  ;;  %v8645_v25 = vrot.slane %v8562_v13, %v8630_v16 }
  0xad   : > { %2979 = vmatprep.subr.mxu1 %v522_v24  ;;  %2871 = vmatprep.subr.mxu0 %v610_v27  ;;  %v462_v5 = vld [vmem:[%s8453_s20 + $0xa8] sm:$0xff]  ;;  %v555_v6 = vld [vmem:[%s8453_s20 + $0x390] sm:$0xff]  ;;  %v461_v7 = vld [vmem:[%s8453_s20 + $0xa0] sm:$0xff] }
  0xae   : > { %2980 = vmatpush1.msra.mxu1 %v521_v26  ;;  %2872 = vmatpush2.msra.mxu0 %v609_v29  ;;  %v550_v9 = vld [vmem:[%s8453_s20 + $0x368] sm:$0xff]  ;;  %v456_v10 = vld [vmem:[%s8453_s20 + $0x78] sm:$0xff]  ;;  %v549_v11 = vld [vmem:[%s8453_s20 + $0x360] sm:$0xff]  ;;  %v2783_v29 = vcombine.high %v8546_v2, %v8538_v59 }
  0xaf   : > { %2981 = vmatprep.subr.mxu1 %v516_v28  ;;  %2873 = vmatprep.subr.mxu0 %v604_v31  ;;  %v455_v14 = vld [vmem:[%s8453_s20 + $0x70] sm:$0xff]  ;;  %v544_v15 = vld [vmem:[%s8453_s20 + $0x338] sm:$0xff]  ;;  %v450_v18 = vld [vmem:[%s8453_s20 + $0x48] sm:$0xff] }
  0xb0   : > { %2982 = vmatpush1.msra.mxu1 %v515_v30  ;;  %2874 = vmatpush2.msra.mxu0 %v603_v33  ;;  %v543_v19 = vld [vmem:[%s8453_s20 + $0x330] sm:$0xff]  ;;  %v449_v20 = vld [vmem:[%s8453_s20 + $0x40] sm:$0xff]  ;;  %v538_v21 = vld [vmem:[%s8453_s20 + $0x308] sm:$0xff] }
  0xb1   : > { %2983 = vmatprep.subr.mxu1 %v510_v32  ;;  %2875 = vmatprep.subr.mxu0 %v598_v35  ;;  %v444_v22 = vld [vmem:[%s8453_s20 + $0x18] sm:$0xff]  ;;  %v537_v23 = vld [vmem:[%s8453_s20 + $0x300] sm:$0xff]  ;;  %v443_v24 = vld [vmem:[%s8453_s20 + $0x10] sm:$0xff] }
  0xb2   : > { %2984 = vmatpush1.msra.mxu1 %v509_v34  ;;  %2876 = vmatpush2.msra.mxu0 %v597_v37  ;;  %v630_v26 = vld [vmem:[%s8453_s20 + $0x5e8] sm:$0xff]  ;;  %v629_v28 = vld [vmem:[%s8453_s20 + $0x5e0] sm:$0xff]  ;;  %v624_v31 = vld [vmem:[%s8453_s20 + $0x5b8] sm:$0xff] }
  0xb3   : > { %2985 = vmatprep.subr.mxu1 %v504_v36  ;;  %2877 = vmatprep.subr.mxu0 %v592_v39  ;;  %v726_v27 = vld [vmem:[%s8453_s20 + $0x8e8] sm:$0xff]  ;;  %v725_v30 = vld [vmem:[%s8453_s20 + $0x8e0] sm:$0xff]  ;;  %v720_v32 = vld [vmem:[%s8453_s20 + $0x8b8] sm:$0xff] }
  0xb4   : > { %2986 = vmatpush1.msra.mxu1 %v503_v38  ;;  %2878 = vmatpush2.msra.mxu0 %v591_v41  ;;  %v623_v33 = vld [vmem:[%s8453_s20 + $0x5b0] sm:$0xff]  ;;  %v618_v35 = vld [vmem:[%s8453_s20 + $0x588] sm:$0xff]  ;;  %v617_v37 = vld [vmem:[%s8453_s20 + $0x580] sm:$0xff] }
  0xb5   : > { %2987 = vmatprep.subr.mxu1 %v498_v40  ;;  %2879 = vmatprep.subr.mxu0 %v586_v44  ;;  %v719_v34 = vld [vmem:[%s8453_s20 + $0x8b0] sm:$0xff]  ;;  %v714_v36 = vld [vmem:[%s8453_s20 + $0x888] sm:$0xff]  ;;  %v713_v38 = vld [vmem:[%s8453_s20 + $0x880] sm:$0xff] }
  0xb6   : > { %2988 = vmatpush1.msra.mxu1 %v497_v42  ;;  %2880 = vmatpush2.msra.mxu0 %v585_v46  ;;  %v612_v39 = vld [vmem:[%s8453_s20 + $0x558] sm:$0xff]  ;;  %v611_v41 = vld [vmem:[%s8453_s20 + $0x550] sm:$0xff]  ;;  %v606_v44 = vld [vmem:[%s8453_s20 + $0x528] sm:$0xff] }
  0xb7   : > { %2989 = vmatprep.subr.mxu1 %v492_v45  ;;  %2881 = vmatprep.subr.mxu0 %v580_v48  ;;  %v708_v40 = vld [vmem:[%s8453_s20 + $0x858] sm:$0xff]  ;;  %v707_v42 = vld [vmem:[%s8453_s20 + $0x850] sm:$0xff]  ;;  %v702_v45 = vld [vmem:[%s8453_s20 + $0x828] sm:$0xff] }
  0xb8   : > { %2990 = vmatpush1.msra.mxu1 %v491_v47  ;;  %2882 = vmatpush2.msra.mxu0 %v579_v50  ;;  %v605_v46 = vld [vmem:[%s8453_s20 + $0x520] sm:$0xff]  ;;  %v600_v48 = vld [vmem:[%s8453_s20 + $0x4f8] sm:$0xff]  ;;  %v599_v50 = vld [vmem:[%s8453_s20 + $0x4f0] sm:$0xff] }
  0xb9   : > { %2991 = vmatprep.subr.mxu1 %v486_v49  ;;  %2883 = vmatprep.subr.mxu0 %v574_v52  ;;  %v701_v47 = vld [vmem:[%s8453_s20 + $0x820] sm:$0xff]  ;;  %v696_v49 = vld [vmem:[%s8453_s20 + $0x7f8] sm:$0xff]  ;;  %v594_v52 = vld [vmem:[%s8453_s20 + $0x4c8] sm:$0xff] }
  0xba   : > { %2992 = vmatpush1.msra.mxu1 %v485_v51  ;;  %2884 = vmatpush2.msra.mxu0 %v573_v55  ;;  %v695_v51 = vld [vmem:[%s8453_s20 + $0x7f0] sm:$0xff]  ;;  %v593_v55 = vld [vmem:[%s8453_s20 + $0x4c0] sm:$0xff]  ;;  %v922_v59 = vld [vmem:[%s8453_s20 + $0xf08] sm:$0xff] }
  0xbb   : > { %2993 = vmatprep.subr.mxu1 %v480_v54  ;;  %2885 = vmatprep.subr.mxu0 %v568_v57  ;;  %v690_v54 = vld [vmem:[%s8453_s20 + $0x7c8] sm:$0xff]  ;;  %v588_v57 = vld [vmem:[%s8453_s20 + $0x498] sm:$0xff]  ;;  %v825_v2 = vld [vmem:[%s8453_s20 + $0xc00] sm:$0xff] }
  0xbc   : > { %2994 = vmatpush1.msra.mxu1 %v479_v56  ;;  %2886 = vmatpush2.msra.mxu0 %v567_v60  ;;  %v689_v56 = vld [vmem:[%s8453_s20 + $0x7c0] sm:$0xff]  ;;  %v587_v60 = vld [vmem:[%s8453_s20 + $0x490] sm:$0xff] }
  0xbd   : > { %2995 = vmatprep.subr.mxu1 %v474_v58  ;;  %2887 = vmatprep.subr.mxu0 %v562_v62  ;;  %v684_v58 = vld [vmem:[%s8453_s20 + $0x798] sm:$0xff]  ;;  %v582_v62 = vld [vmem:[%s8453_s20 + $0x468] sm:$0xff] }
  0xbe   : > { %2996 = vmatpush1.msra.mxu1 %v473_v61  ;;  %2888 = vmatpush2.msra.mxu0 %v561_v1  ;;  %v683_v61 = vld [vmem:[%s8453_s20 + $0x790] sm:$0xff]  ;;  %v581_v1 = vld [vmem:[%s8453_s20 + $0x460] sm:$0xff] }
  0xbf   : > { %2997 = vmatprep.subr.mxu1 %v468_v63  ;;  %2889 = vmatprep.subr.mxu0 %v556_v4  ;;  %v678_v63 = vld [vmem:[%s8453_s20 + $0x768] sm:$0xff]  ;;  %v576_v4 = vld [vmem:[%s8453_s20 + $0x438] sm:$0xff] }
  0xc0   : > { %2998 = vmatpush1.msra.mxu1 %v467_v3  ;;  %2890 = vmatpush2.msra.mxu0 %v555_v6  ;;  %v677_v3 = vld [vmem:[%s8453_s20 + $0x760] sm:$0xff]  ;;  %v575_v6 = vld [vmem:[%s8453_s20 + $0x430] sm:$0xff] }
  0xc1   : > { %2999 = vmatprep.subr.mxu1 %v462_v5  ;;  %2891 = vmatprep.subr.mxu0 %v550_v9  ;;  %v672_v5 = vld [vmem:[%s8453_s20 + $0x738] sm:$0xff]  ;;  %v570_v9 = vld [vmem:[%s8453_s20 + $0x408] sm:$0xff] }
  0xc2   : > { %3000 = vmatpush1.msra.mxu1 %v461_v7  ;;  %2892 = vmatpush2.msra.mxu0 %v549_v11  ;;  %v671_v7 = vld [vmem:[%s8453_s20 + $0x730] sm:$0xff]  ;;  %v569_v11 = vld [vmem:[%s8453_s20 + $0x400] sm:$0xff] }
  0xc3   : > { %3001 = vmatprep.subr.mxu1 %v456_v10  ;;  %2893 = vmatprep.subr.mxu0 %v544_v15  ;;  %v666_v10 = vld [vmem:[%s8453_s20 + $0x708] sm:$0xff]  ;;  %v564_v15 = vld [vmem:[%s8453_s20 + $0x3d8] sm:$0xff] }
  0xc4   : > { %3002 = vmatpush1.msra.mxu1 %v455_v14  ;;  %2894 = vmatpush2.msra.mxu0 %v543_v19  ;;  %v665_v14 = vld [vmem:[%s8453_s20 + $0x700] sm:$0xff]  ;;  %v563_v19 = vld [vmem:[%s8453_s20 + $0x3d0] sm:$0xff] }
  0xc5   : > { %3003 = vmatprep.subr.mxu1 %v450_v18  ;;  %2895 = vmatprep.subr.mxu0 %v538_v21  ;;  %v660_v18 = vld [vmem:[%s8453_s20 + $0x6d8] sm:$0xff]  ;;  %v558_v21 = vld [vmem:[%s8453_s20 + $0x3a8] sm:$0xff] }
  0xc6   : > { %3004 = vmatpush1.msra.mxu1 %v449_v20  ;;  %2896 = vmatpush2.msra.mxu0 %v537_v23  ;;  %v659_v20 = vld [vmem:[%s8453_s20 + $0x6d0] sm:$0xff]  ;;  %v557_v23 = vld [vmem:[%s8453_s20 + $0x3a0] sm:$0xff] }
  0xc7   : > { %3005 = vmatprep.subr.mxu1 %v444_v22  ;;  %2897 = vmatprep.mubr.f32.mxu0 %v8640_v43  ;;  %v654_v22 = vld [vmem:[%s8453_s20 + $0x6a8] sm:$0xff] }
  0xc8   : > { %3006 = vmatpush1.msra.mxu1 %v443_v24  ;;  %2898 = vmatmul.mubr.f32.vlgmr.msra.gmra.mxu0 %v8645_v25  ;;  %v653_v24 = vld [vmem:[%s8453_s20 + $0x6a0] sm:$0xff] }
  0xc9   : > { %3007 = vmatprep.subr.mxu1 %v630_v26  ;;  %3046 = vmatprep.subr.mxu0 %v726_v27  ;;  %v552_v26 = vld [vmem:[%s8453_s20 + $0x378] sm:$0xff] }
  0xca   : > { %3008 = vmatpush2.msra.mxu1 %v629_v28  ;;  %3047 = vmatpush1.msra.mxu0 %v725_v30  ;;  %v648_v27 = vld [vmem:[%s8453_s20 + $0x678] sm:$0xff]  ;;  %v551_v28 = vld [vmem:[%s8453_s20 + $0x370] sm:$0xff] }
  0xcb   : > { %3009 = vmatprep.subr.mxu1 %v624_v31  ;;  %3048 = vmatprep.subr.mxu0 %v720_v32  ;;  %v647_v30 = vld [vmem:[%s8453_s20 + $0x670] sm:$0xff]  ;;  %v546_v31 = vld [vmem:[%s8453_s20 + $0x348] sm:$0xff] }
  0xcc   : > { %3010 = vmatpush2.msra.mxu1 %v623_v33  ;;  %3049 = vmatpush1.msra.mxu0 %v719_v34  ;;  %v642_v32 = vld [vmem:[%s8453_s20 + $0x648] sm:$0xff]  ;;  %v545_v33 = vld [vmem:[%s8453_s20 + $0x340] sm:$0xff] }
  0xcd   : > { %3011 = vmatprep.subr.mxu1 %v618_v35  ;;  %3050 = vmatprep.subr.mxu0 %v714_v36  ;;  %v641_v34 = vld [vmem:[%s8453_s20 + $0x640] sm:$0xff]  ;;  %v540_v35 = vld [vmem:[%s8453_s20 + $0x318] sm:$0xff] }
  0xce   : > { %3012 = vmatpush2.msra.mxu1 %v617_v37  ;;  %3051 = vmatpush1.msra.mxu0 %v713_v38  ;;  %v636_v36 = vld [vmem:[%s8453_s20 + $0x618] sm:$0xff]  ;;  %v539_v37 = vld [vmem:[%s8453_s20 + $0x310] sm:$0xff] }
  0xcf   : > { %3013 = vmatprep.subr.mxu1 %v612_v39  ;;  %3052 = vmatprep.subr.mxu0 %v708_v40  ;;  %v635_v38 = vld [vmem:[%s8453_s20 + $0x610] sm:$0xff]  ;;  %v536_v39 = vld [vmem:[%s8453_s20 + $0x2f8] sm:$0xff] }
  0xd0   : > { %3014 = vmatpush2.msra.mxu1 %v611_v41  ;;  %3053 = vmatpush1.msra.mxu0 %v707_v42  ;;  %v728_v40 = vld [vmem:[%s8453_s20 + $0x8f8] sm:$0xff]  ;;  %v535_v41 = vld [vmem:[%s8453_s20 + $0x2f0] sm:$0xff] }
  0xd1   : > { %3015 = vmatprep.subr.mxu1 %v606_v44  ;;  %3054 = vmatprep.subr.mxu0 %v702_v45  ;;  %v727_v42 = vld [vmem:[%s8453_s20 + $0x8f0] sm:$0xff]  ;;  %v530_v44 = vld [vmem:[%s8453_s20 + $0x2c8] sm:$0xff] }
  0xd2   : > { %3016 = vmatpush2.msra.mxu1 %v605_v46  ;;  %3055 = vmatpush1.msra.mxu0 %v701_v47  ;;  %v722_v45 = vld [vmem:[%s8453_s20 + $0x8c8] sm:$0xff]  ;;  %v529_v46 = vld [vmem:[%s8453_s20 + $0x2c0] sm:$0xff] }
  0xd3   : > { %3017 = vmatprep.subr.mxu1 %v600_v48  ;;  %3056 = vmatprep.subr.mxu0 %v696_v49  ;;  %v721_v47 = vld [vmem:[%s8453_s20 + $0x8c0] sm:$0xff]  ;;  %v524_v48 = vld [vmem:[%s8453_s20 + $0x298] sm:$0xff] }
  0xd4   : > { %3018 = vmatpush2.msra.mxu1 %v599_v50  ;;  %3057 = vmatpush1.msra.mxu0 %v695_v51  ;;  %v716_v49 = vld [vmem:[%s8453_s20 + $0x898] sm:$0xff]  ;;  %v523_v50 = vld [vmem:[%s8453_s20 + $0x290] sm:$0xff] }
  0xd5   : > { %3019 = vmatprep.subr.mxu1 %v594_v52  ;;  %3058 = vmatprep.subr.mxu0 %v690_v54  ;;  %v715_v51 = vld [vmem:[%s8453_s20 + $0x890] sm:$0xff]  ;;  %v518_v52 = vld [vmem:[%s8453_s20 + $0x268] sm:$0xff] }
  0xd6   : > { %3020 = vmatpush2.msra.mxu1 %v593_v55  ;;  %3059 = vmatpush1.msra.mxu0 %v689_v56  ;;  %v710_v54 = vld [vmem:[%s8453_s20 + $0x868] sm:$0xff]  ;;  %v517_v55 = vld [vmem:[%s8453_s20 + $0x260] sm:$0xff] }
  0xd7   : > { %3021 = vmatprep.subr.mxu1 %v588_v57  ;;  %3060 = vmatprep.subr.mxu0 %v684_v58  ;;  %v709_v56 = vld [vmem:[%s8453_s20 + $0x860] sm:$0xff]  ;;  %v512_v57 = vld [vmem:[%s8453_s20 + $0x238] sm:$0xff] }
  0xd8   : > { %3022 = vmatpush2.msra.mxu1 %v587_v60  ;;  %3061 = vmatpush1.msra.mxu0 %v683_v61  ;;  %v704_v58 = vld [vmem:[%s8453_s20 + $0x838] sm:$0xff]  ;;  %v511_v60 = vld [vmem:[%s8453_s20 + $0x230] sm:$0xff] }
  0xd9   : > { %3023 = vmatprep.subr.mxu1 %v582_v62  ;;  %3062 = vmatprep.subr.mxu0 %v678_v63  ;;  %v703_v61 = vld [vmem:[%s8453_s20 + $0x830] sm:$0xff]  ;;  %v506_v62 = vld [vmem:[%s8453_s20 + $0x208] sm:$0xff] }
  0xda   : > { %3024 = vmatpush2.msra.mxu1 %v581_v1  ;;  %3063 = vmatpush1.msra.mxu0 %v677_v3  ;;  %v698_v63 = vld [vmem:[%s8453_s20 + $0x808] sm:$0xff]  ;;  %v505_v1 = vld [vmem:[%s8453_s20 + $0x200] sm:$0xff] }
  0xdb   : > { %3025 = vmatprep.subr.mxu1 %v576_v4  ;;  %3064 = vmatprep.subr.mxu0 %v672_v5  ;;  %v697_v3 = vld [vmem:[%s8453_s20 + $0x800] sm:$0xff]  ;;  %v500_v4 = vld [vmem:[%s8453_s20 + $0x1d8] sm:$0xff] }
  0xdc   : > { %3026 = vmatpush2.msra.mxu1 %v575_v6  ;;  %3065 = vmatpush1.msra.mxu0 %v671_v7  ;;  %v692_v5 = vld [vmem:[%s8453_s20 + $0x7d8] sm:$0xff]  ;;  %v499_v6 = vld [vmem:[%s8453_s20 + $0x1d0] sm:$0xff] }
  0xdd   : > { %3027 = vmatprep.subr.mxu1 %v570_v9  ;;  %3066 = vmatprep.subr.mxu0 %v666_v10  ;;  %v691_v7 = vld [vmem:[%s8453_s20 + $0x7d0] sm:$0xff]  ;;  %v494_v9 = vld [vmem:[%s8453_s20 + $0x1a8] sm:$0xff] }
  0xde   : > { %3028 = vmatpush2.msra.mxu1 %v569_v11  ;;  %3067 = vmatpush1.msra.mxu0 %v665_v14  ;;  %v686_v10 = vld [vmem:[%s8453_s20 + $0x7a8] sm:$0xff]  ;;  %v493_v11 = vld [vmem:[%s8453_s20 + $0x1a0] sm:$0xff] }
  0xdf   : > { %3029 = vmatprep.subr.mxu1 %v564_v15  ;;  %3068 = vmatprep.subr.mxu0 %v660_v18  ;;  %v685_v14 = vld [vmem:[%s8453_s20 + $0x7a0] sm:$0xff]  ;;  %v488_v15 = vld [vmem:[%s8453_s20 + $0x178] sm:$0xff] }
  0xe0   : > { %3030 = vmatpush2.msra.mxu1 %v563_v19  ;;  %3069 = vmatpush1.msra.mxu0 %v659_v20  ;;  %v680_v18 = vld [vmem:[%s8453_s20 + $0x778] sm:$0xff]  ;;  %v487_v19 = vld [vmem:[%s8453_s20 + $0x170] sm:$0xff] }
  0xe1   : > { %3031 = vmatprep.subr.mxu1 %v558_v21  ;;  %3070 = vmatprep.subr.mxu0 %v654_v22  ;;  %v679_v20 = vld [vmem:[%s8453_s20 + $0x770] sm:$0xff]  ;;  %v482_v21 = vld [vmem:[%s8453_s20 + $0x148] sm:$0xff] }
  0xe2   : > { %3032 = vmatpush2.msra.mxu1 %v557_v23  ;;  %3071 = vmatpush1.msra.mxu0 %v653_v24  ;;  %v674_v22 = vld [vmem:[%s8453_s20 + $0x748] sm:$0xff]  ;;  %v481_v23 = vld [vmem:[%s8453_s20 + $0x140] sm:$0xff] }
  0xe3   : > { %3033 = vmatprep.subr.mxu1 %v552_v26  ;;  %3072 = vmatprep.subr.mxu0 %v648_v27  ;;  %v673_v24 = vld [vmem:[%s8453_s20 + $0x740] sm:$0xff]  ;;  %v476_v26 = vld [vmem:[%s8453_s20 + $0x118] sm:$0xff] }
  0xe4   : > { %3034 = vmatpush2.msra.mxu1 %v551_v28  ;;  %3073 = vmatpush1.msra.mxu0 %v647_v30  ;;  %v668_v27 = vld [vmem:[%s8453_s20 + $0x718] sm:$0xff]  ;;  %v475_v28 = vld [vmem:[%s8453_s20 + $0x110] sm:$0xff] }
  0xe5   : > { %3035 = vmatprep.subr.mxu1 %v546_v31  ;;  %3074 = vmatprep.subr.mxu0 %v642_v32  ;;  %v667_v30 = vld [vmem:[%s8453_s20 + $0x710] sm:$0xff]  ;;  %v470_v31 = vld [vmem:[%s8453_s20 + $0xe8] sm:$0xff] }
  0xe6   : > { %3036 = vmatpush2.msra.mxu1 %v545_v33  ;;  %3075 = vmatpush1.msra.mxu0 %v641_v34  ;;  %v662_v32 = vld [vmem:[%s8453_s20 + $0x6e8] sm:$0xff]  ;;  %v469_v33 = vld [vmem:[%s8453_s20 + $0xe0] sm:$0xff] }
  0xe7   : > { %3037 = vmatprep.subr.mxu1 %v540_v35  ;;  %3076 = vmatprep.subr.mxu0 %v636_v36  ;;  %v661_v34 = vld [vmem:[%s8453_s20 + $0x6e0] sm:$0xff]  ;;  %v464_v35 = vld [vmem:[%s8453_s20 + $0xb8] sm:$0xff] }
  0xe8   : > { %3038 = vmatpush2.msra.mxu1 %v539_v37  ;;  %3039 = vmatprep.mubr.f32.mxu1 %v8640_v43  ;;  %v656_v36 = vld [vmem:[%s8453_s20 + $0x6b8] sm:$0xff]  ;;  %v463_v37 = vld [vmem:[%s8453_s20 + $0xb0] sm:$0xff] }
  0xe9   : > { %3077 = vmatpush1.msra.mxu0 %v635_v38  ;;  %3110 = vmatprep.mubr.f32.mxu0 %v8254_v0  ;;  %v655_v38 = vld [vmem:[%s8453_s20 + $0x6b0] sm:$0xff] }
  0xea   : > { %3040 = vmatmul.mubr.f32.vlgmr.msra.gmra.mxu1 %v8645_v25  ;;  %3111 = vmatmul.mubr.f32.vlgmr.msra.gmra.mxu0 %v8569_v17 }
  0xeb   : > { %3117 = vmatprep.subr.mxu0 %v536_v39  ;;  %3188 = vmatprep.subr.mxu1 %v728_v40  ;;  %v458_v39 = vld [vmem:[%s8453_s20 + $0x88] sm:$0xff] }
  0xec   : > { %3118 = vmatpush1.msra.mxu0 %v535_v41  ;;  %3189 = vmatpush1.msra.mxu1 %v727_v42  ;;  %v650_v40 = vld [vmem:[%s8453_s20 + $0x688] sm:$0xff]  ;;  %v457_v41 = vld [vmem:[%s8453_s20 + $0x80] sm:$0xff] }
  0xed   : > { %3119 = vmatprep.subr.mxu0 %v530_v44  ;;  %3190 = vmatprep.subr.mxu1 %v722_v45  ;;  %v649_v42 = vld [vmem:[%s8453_s20 + $0x680] sm:$0xff]  ;;  %v452_v44 = vld [vmem:[%s8453_s20 + $0x58] sm:$0xff] }
  0xee   : > { %3120 = vmatpush1.msra.mxu0 %v529_v46  ;;  %3191 = vmatpush1.msra.mxu1 %v721_v47  ;;  %v644_v45 = vld [vmem:[%s8453_s20 + $0x658] sm:$0xff]  ;;  %v451_v46 = vld [vmem:[%s8453_s20 + $0x50] sm:$0xff] }
  0xef   : > { %3121 = vmatprep.subr.mxu0 %v524_v48  ;;  %3192 = vmatprep.subr.mxu1 %v716_v49  ;;  %v643_v47 = vld [vmem:[%s8453_s20 + $0x650] sm:$0xff]  ;;  %v446_v48 = vld [vmem:[%s8453_s20 + $0x28] sm:$0xff] }
  0xf0   : > { %3122 = vmatpush1.msra.mxu0 %v523_v50  ;;  %3193 = vmatpush1.msra.mxu1 %v715_v51  ;;  %v638_v49 = vld [vmem:[%s8453_s20 + $0x628] sm:$0xff]  ;;  %v445_v50 = vld [vmem:[%s8453_s20 + $0x20] sm:$0xff] }
  0xf1   : > { %3123 = vmatprep.subr.mxu0 %v518_v52  ;;  %3194 = vmatprep.subr.mxu1 %v710_v54  ;;  %v637_v51 = vld [vmem:[%s8453_s20 + $0x620] sm:$0xff]  ;;  %v632_v52 = vld [vmem:[%s8453_s20 + $0x5f8] sm:$0xff] }
  0xf2   : > { %3124 = vmatpush1.msra.mxu0 %v517_v55  ;;  %3195 = vmatpush1.msra.mxu1 %v709_v56  ;;  %v820_v54 = vld [vmem:[%s8453_s20 + $0xbd8] sm:$0xff]  ;;  %v631_v55 = vld [vmem:[%s8453_s20 + $0x5f0] sm:$0xff] }
  0xf3   : > { %3125 = vmatprep.subr.mxu0 %v512_v57  ;;  %3196 = vmatprep.subr.mxu1 %v704_v58  ;;  %v819_v56 = vld [vmem:[%s8453_s20 + $0xbd0] sm:$0xff]  ;;  %v626_v57 = vld [vmem:[%s8453_s20 + $0x5c8] sm:$0xff] }
  0xf4   : > { %3126 = vmatpush1.msra.mxu0 %v511_v60  ;;  %3197 = vmatpush1.msra.mxu1 %v703_v61  ;;  %v814_v58 = vld [vmem:[%s8453_s20 + $0xba8] sm:$0xff]  ;;  %v625_v60 = vld [vmem:[%s8453_s20 + $0x5c0] sm:$0xff] }
  0xf5   : > { %3127 = vmatprep.subr.mxu0 %v506_v62  ;;  %3198 = vmatprep.subr.mxu1 %v698_v63  ;;  %v813_v61 = vld [vmem:[%s8453_s20 + $0xba0] sm:$0xff]  ;;  %v620_v62 = vld [vmem:[%s8453_s20 + $0x598] sm:$0xff] }
  0xf6   : > { %3128 = vmatpush1.msra.mxu0 %v505_v1  ;;  %3199 = vmatpush1.msra.mxu1 %v697_v3  ;;  %v808_v63 = vld [vmem:[%s8453_s20 + $0xb78] sm:$0xff]  ;;  %v619_v1 = vld [vmem:[%s8453_s20 + $0x590] sm:$0xff] }
  0xf7   : > { %3129 = vmatprep.subr.mxu0 %v500_v4  ;;  %3200 = vmatprep.subr.mxu1 %v692_v5  ;;  %v807_v3 = vld [vmem:[%s8453_s20 + $0xb70] sm:$0xff]  ;;  %v614_v4 = vld [vmem:[%s8453_s20 + $0x568] sm:$0xff] }
  0xf8   : > { %3130 = vmatpush1.msra.mxu0 %v499_v6  ;;  %3201 = vmatpush1.msra.mxu1 %v691_v7  ;;  %v802_v5 = vld [vmem:[%s8453_s20 + $0xb48] sm:$0xff]  ;;  %v801_v6 = vld [vmem:[%s8453_s20 + $0xb40] sm:$0xff]  ;;  %v608_v7 = vld [vmem:[%s8453_s20 + $0x538] sm:$0xff] }
  0xf9   : > { %3131 = vmatprep.subr.mxu0 %v494_v9  ;;  %3202 = vmatprep.subr.mxu1 %v686_v10  ;;  %v796_v9 = vld [vmem:[%s8453_s20 + $0xb18] sm:$0xff]  ;;  %v607_v10 = vld [vmem:[%s8453_s20 + $0x530] sm:$0xff] }
  0xfa   : > { %3132 = vmatpush1.msra.mxu0 %v493_v11  ;;  %3203 = vmatpush1.msra.mxu1 %v685_v14  ;;  %v795_v11 = vld [vmem:[%s8453_s20 + $0xb10] sm:$0xff]  ;;  %v602_v14 = vld [vmem:[%s8453_s20 + $0x508] sm:$0xff] }
  0xfb   : > { %3133 = vmatprep.subr.mxu0 %v488_v15  ;;  %3204 = vmatprep.subr.mxu1 %v680_v18  ;;  %v790_v15 = vld [vmem:[%s8453_s20 + $0xae8] sm:$0xff]  ;;  %v601_v18 = vld [vmem:[%s8453_s20 + $0x500] sm:$0xff] }
  0xfc   : > { %3134 = vmatpush1.msra.mxu0 %v487_v19  ;;  %3205 = vmatpush1.msra.mxu1 %v679_v20  ;;  %v789_v19 = vld [vmem:[%s8453_s20 + $0xae0] sm:$0xff]  ;;  %v596_v20 = vld [vmem:[%s8453_s20 + $0x4d8] sm:$0xff] }
  0xfd   : > { %3135 = vmatprep.subr.mxu0 %v482_v21  ;;  %3206 = vmatprep.subr.mxu1 %v674_v22  ;;  %v784_v21 = vld [vmem:[%s8453_s20 + $0xab8] sm:$0xff]  ;;  %v595_v22 = vld [vmem:[%s8453_s20 + $0x4d0] sm:$0xff] }
  0xfe   : > { %3136 = vmatpush1.msra.mxu0 %v481_v23  ;;  %3207 = vmatpush1.msra.mxu1 %v673_v24  ;;  %v783_v23 = vld [vmem:[%s8453_s20 + $0xab0] sm:$0xff]  ;;  %v590_v24 = vld [vmem:[%s8453_s20 + $0x4a8] sm:$0xff] }
  0xff   : > { %3137 = vmatprep.subr.mxu0 %v476_v26  ;;  %3208 = vmatprep.subr.mxu1 %v668_v27  ;;  %v778_v26 = vld [vmem:[%s8453_s20 + $0xa88] sm:$0xff]  ;;  %v589_v27 = vld [vmem:[%s8453_s20 + $0x4a0] sm:$0xff] }
 0x100   : > { %3138 = vmatpush1.msra.mxu0 %v475_v28  ;;  %3209 = vmatpush1.msra.mxu1 %v667_v30  ;;  %v777_v28 = vld [vmem:[%s8453_s20 + $0xa80] sm:$0xff]  ;;  %v584_v30 = vld [vmem:[%s8453_s20 + $0x478] sm:$0xff] }
 0x101   : > { %3139 = vmatprep.subr.mxu0 %v470_v31  ;;  %3210 = vmatprep.subr.mxu1 %v662_v32  ;;  %v772_v31 = vld [vmem:[%s8453_s20 + $0xa58] sm:$0xff]  ;;  %v583_v32 = vld [vmem:[%s8453_s20 + $0x470] sm:$0xff] }
 0x102   : > { %3140 = vmatpush1.msra.mxu0 %v469_v33  ;;  %3211 = vmatpush1.msra.mxu1 %v661_v34  ;;  %v771_v33 = vld [vmem:[%s8453_s20 + $0xa50] sm:$0xff]  ;;  %v578_v34 = vld [vmem:[%s8453_s20 + $0x448] sm:$0xff] }
 0x103   : > { %3141 = vmatprep.subr.mxu0 %v464_v35  ;;  %3212 = vmatprep.subr.mxu1 %v656_v36  ;;  %v766_v35 = vld [vmem:[%s8453_s20 + $0xa28] sm:$0xff]  ;;  %v577_v36 = vld [vmem:[%s8453_s20 + $0x440] sm:$0xff] }
 0x104   : > { %3142 = vmatpush1.msra.mxu0 %v463_v37  ;;  %3213 = vmatpush1.msra.mxu1 %v655_v38  ;;  %v765_v37 = vld [vmem:[%s8453_s20 + $0xa20] sm:$0xff]  ;;  %v572_v38 = vld [vmem:[%s8453_s20 + $0x418] sm:$0xff] }
 0x105   : > { %3143 = vmatprep.subr.mxu0 %v458_v39  ;;  %3214 = vmatprep.subr.mxu1 %v650_v40  ;;  %v760_v39 = vld [vmem:[%s8453_s20 + $0x9f8] sm:$0xff]  ;;  %v571_v40 = vld [vmem:[%s8453_s20 + $0x410] sm:$0xff] }
 0x106   : > { %3144 = vmatpush1.msra.mxu0 %v457_v41  ;;  %3215 = vmatpush1.msra.mxu1 %v649_v42  ;;  %v759_v41 = vld [vmem:[%s8453_s20 + $0x9f0] sm:$0xff]  ;;  %v566_v42 = vld [vmem:[%s8453_s20 + $0x3e8] sm:$0xff] }
 0x107   : > { %3145 = vmatprep.subr.mxu0 %v452_v44  ;;  %3216 = vmatprep.subr.mxu1 %v644_v45  ;;  %v754_v44 = vld [vmem:[%s8453_s20 + $0x9c8] sm:$0xff]  ;;  %v565_v45 = vld [vmem:[%s8453_s20 + $0x3e0] sm:$0xff] }
 0x108   : > { %3146 = vmatpush1.msra.mxu0 %v451_v46  ;;  %3217 = vmatpush1.msra.mxu1 %v643_v47  ;;  %v753_v46 = vld [vmem:[%s8453_s20 + $0x9c0] sm:$0xff]  ;;  %v560_v47 = vld [vmem:[%s8453_s20 + $0x3b8] sm:$0xff] }
 0x109   : > { %3147 = vmatprep.subr.mxu0 %v446_v48  ;;  %3218 = vmatprep.subr.mxu1 %v638_v49  ;;  %v748_v48 = vld [vmem:[%s8453_s20 + $0x998] sm:$0xff]  ;;  %v559_v49 = vld [vmem:[%s8453_s20 + $0x3b0] sm:$0xff] }
 0x10a   : > { %3148 = vmatpush1.msra.mxu0 %v445_v50  ;;  %3219 = vmatpush1.msra.mxu1 %v637_v51  ;;  %v747_v50 = vld [vmem:[%s8453_s20 + $0x990] sm:$0xff]  ;;  %v554_v51 = vld [vmem:[%s8453_s20 + $0x388] sm:$0xff] }
 0x10b   : > { %3149 = vmatprep.subr.mxu0 %v632_v52  ;;  %3252 = vmatprep.mubr.f32.mxu1 %v8254_v0  ;;  %v742_v52 = vld [vmem:[%s8453_s20 + $0x968] sm:$0xff] }
 0x10c   : > { %3274 = vmatprep.subr.mxu1 %v820_v54  ;;  %3150 = vmatpush2.msra.mxu0 %v631_v55  ;;  %v553_v54 = vld [vmem:[%s8453_s20 + $0x380] sm:$0xff] }
 0x10d   : > { %3253 = vmatmul.mubr.f32.vlgmr.msra.gmra.mxu1 %v8569_v17  ;;  %3151 = vmatprep.subr.mxu0 %v626_v57  ;;  %v613_v17 = vld [vmem:[%s8453_s20 + $0x560] sm:$0xff]  ;;  %v736_v57 = vld [vmem:[%s8453_s20 + $0x938] sm:$0xff] }
 0x10e   : > { %3275 = vmatpush1.msra.mxu1 %v819_v56  ;;  %3152 = vmatpush2.msra.mxu0 %v625_v60  ;;  %v741_v55 = vld [vmem:[%s8453_s20 + $0x960] sm:$0xff]  ;;  %v548_v56 = vld [vmem:[%s8453_s20 + $0x358] sm:$0xff]  ;;  %v735_v60 = vld [vmem:[%s8453_s20 + $0x930] sm:$0xff] }
 0x10f   : > { %3276 = vmatprep.subr.mxu1 %v814_v58  ;;  %3153 = vmatprep.subr.mxu0 %v620_v62  ;;  %v547_v58 = vld [vmem:[%s8453_s20 + $0x350] sm:$0xff]  ;;  %v730_v62 = vld [vmem:[%s8453_s20 + $0x908] sm:$0xff] }
 0x110   : > { %3277 = vmatpush1.msra.mxu1 %v813_v61  ;;  %3154 = vmatpush2.msra.mxu0 %v619_v1  ;;  %v542_v61 = vld [vmem:[%s8453_s20 + $0x328] sm:$0xff]  ;;  %v729_v1 = vld [vmem:[%s8453_s20 + $0x900] sm:$0xff] }
 0x111   : > { %3278 = vmatprep.subr.mxu1 %v808_v63  ;;  %3155 = vmatprep.subr.mxu0 %v614_v4  ;;  %v541_v63 = vld [vmem:[%s8453_s20 + $0x320] sm:$0xff]  ;;  %v1012_v4 = vld [vmem:[%s8453_s20 + $0x11d8] sm:$0xff] }
 0x112   : > { %3279 = vmatpush1.msra.mxu1 %v807_v3  ;;  %3156 = vmatpush2.msra.mxu0 %v613_v17  ;;  %v916_v3 = vld [vmem:[%s8453_s20 + $0xed8] sm:$0xff]  ;;  %v1011_v17 = vld [vmem:[%s8453_s20 + $0x11d0] sm:$0xff] }
 0x113   : > { %3280 = vmatprep.subr.mxu1 %v802_v5  ;;  %3157 = vmatprep.subr.mxu0 %v608_v7  ;;  %v915_v5 = vld [vmem:[%s8453_s20 + $0xed0] sm:$0xff]  ;;  %v1006_v7 = vld [vmem:[%s8453_s20 + $0x11a8] sm:$0xff] }
 0x114   : > { %3281 = vmatpush1.msra.mxu1 %v801_v6  ;;  %3158 = vmatpush2.msra.mxu0 %v607_v10  ;;  %v910_v6 = vld [vmem:[%s8453_s20 + $0xea8] sm:$0xff]  ;;  %v1005_v10 = vld [vmem:[%s8453_s20 + $0x11a0] sm:$0xff] }
 0x115   : > { %3282 = vmatprep.subr.mxu1 %v796_v9  ;;  %3159 = vmatprep.subr.mxu0 %v602_v14  ;;  %v909_v9 = vld [vmem:[%s8453_s20 + $0xea0] sm:$0xff]  ;;  %v903_v14 = vld [vmem:[%s8453_s20 + $0xe70] sm:$0xff] }
 0x116   : > { %3283 = vmatpush1.msra.mxu1 %v795_v11  ;;  %3160 = vmatpush2.msra.mxu0 %v601_v18  ;;  %v904_v11 = vld [vmem:[%s8453_s20 + $0xe78] sm:$0xff]  ;;  %v994_v18 = vld [vmem:[%s8453_s20 + $0x1148] sm:$0xff] }
 0x117   : > { %3284 = vmatprep.subr.mxu1 %v790_v15  ;;  %3161 = vmatprep.subr.mxu0 %v596_v20  ;;  %v898_v15 = vld [vmem:[%s8453_s20 + $0xe48] sm:$0xff]  ;;  %v993_v20 = vld [vmem:[%s8453_s20 + $0x1140] sm:$0xff] }
 0x118   : > { %3285 = vmatpush1.msra.mxu1 %v789_v19  ;;  %3162 = vmatpush2.msra.mxu0 %v595_v22  ;;  %v897_v19 = vld [vmem:[%s8453_s20 + $0xe40] sm:$0xff]  ;;  %v988_v22 = vld [vmem:[%s8453_s20 + $0x1118] sm:$0xff] }
 0x119   : > { %3286 = vmatprep.subr.mxu1 %v784_v21  ;;  %3163 = vmatprep.subr.mxu0 %v590_v24  ;;  %v892_v21 = vld [vmem:[%s8453_s20 + $0xe18] sm:$0xff]  ;;  %v987_v24 = vld [vmem:[%s8453_s20 + $0x1110] sm:$0xff] }
 0x11a   : > { %3287 = vmatpush1.msra.mxu1 %v783_v23  ;;  %3164 = vmatpush2.msra.mxu0 %v589_v27  ;;  %v891_v23 = vld [vmem:[%s8453_s20 + $0xe10] sm:$0xff]  ;;  %v982_v27 = vld [vmem:[%s8453_s20 + $0x10e8] sm:$0xff] }
 0x11b   : > { %3288 = vmatprep.subr.mxu1 %v778_v26  ;;  %3165 = vmatprep.subr.mxu0 %v584_v30  ;;  %v886_v26 = vld [vmem:[%s8453_s20 + $0xde8] sm:$0xff]  ;;  %v981_v30 = vld [vmem:[%s8453_s20 + $0x10e0] sm:$0xff] }
 0x11c   : > { %3289 = vmatpush1.msra.mxu1 %v777_v28  ;;  %3166 = vmatpush2.msra.mxu0 %v583_v32  ;;  %v885_v28 = vld [vmem:[%s8453_s20 + $0xde0] sm:$0xff]  ;;  %v976_v32 = vld [vmem:[%s8453_s20 + $0x10b8] sm:$0xff] }
 0x11d   : > { %3290 = vmatprep.subr.mxu1 %v772_v31  ;;  %3167 = vmatprep.subr.mxu0 %v578_v34  ;;  %v880_v31 = vld [vmem:[%s8453_s20 + $0xdb8] sm:$0xff]  ;;  %v975_v34 = vld [vmem:[%s8453_s20 + $0x10b0] sm:$0xff] }
 0x11e   : > { %3291 = vmatpush1.msra.mxu1 %v771_v33  ;;  %3168 = vmatpush2.msra.mxu0 %v577_v36  ;;  %v879_v33 = vld [vmem:[%s8453_s20 + $0xdb0] sm:$0xff]  ;;  %v970_v36 = vld [vmem:[%s8453_s20 + $0x1088] sm:$0xff] }
 0x11f   : > { %3292 = vmatprep.subr.mxu1 %v766_v35  ;;  %3169 = vmatprep.subr.mxu0 %v572_v38  ;;  %v874_v35 = vld [vmem:[%s8453_s20 + $0xd88] sm:$0xff]  ;;  %v969_v38 = vld [vmem:[%s8453_s20 + $0x1080] sm:$0xff] }
 0x120   : > { %3293 = vmatpush1.msra.mxu1 %v765_v37  ;;  %3170 = vmatpush2.msra.mxu0 %v571_v40  ;;  %v873_v37 = vld [vmem:[%s8453_s20 + $0xd80] sm:$0xff]  ;;  %v964_v40 = vld [vmem:[%s8453_s20 + $0x1058] sm:$0xff] }
 0x121   : > { %3294 = vmatprep.subr.mxu1 %v760_v39  ;;  %3171 = vmatprep.subr.mxu0 %v566_v42  ;;  %v868_v39 = vld [vmem:[%s8453_s20 + $0xd58] sm:$0xff]  ;;  %v963_v42 = vld [vmem:[%s8453_s20 + $0x1050] sm:$0xff] }
 0x122   : > { %3295 = vmatpush1.msra.mxu1 %v759_v41  ;;  %3172 = vmatpush2.msra.mxu0 %v565_v45  ;;  %v867_v41 = vld [vmem:[%s8453_s20 + $0xd50] sm:$0xff]  ;;  %v958_v45 = vld [vmem:[%s8453_s20 + $0x1028] sm:$0xff] }
 0x123   : > { %3296 = vmatprep.subr.mxu1 %v754_v44  ;;  %3173 = vmatprep.subr.mxu0 %v560_v47  ;;  %v862_v44 = vld [vmem:[%s8453_s20 + $0xd28] sm:$0xff]  ;;  %v957_v47 = vld [vmem:[%s8453_s20 + $0x1020] sm:$0xff] }
 0x124   : > { %3297 = vmatpush1.msra.mxu1 %v753_v46  ;;  %3174 = vmatpush2.msra.mxu0 %v559_v49  ;;  %v861_v46 = vld [vmem:[%s8453_s20 + $0xd20] sm:$0xff]  ;;  %v952_v49 = vld [vmem:[%s8453_s20 + $0xff8] sm:$0xff] }
 0x125   : > { %3298 = vmatprep.subr.mxu1 %v748_v48  ;;  %3175 = vmatprep.subr.mxu0 %v554_v51  ;;  %v856_v48 = vld [vmem:[%s8453_s20 + $0xcf8] sm:$0xff]  ;;  %v951_v51 = vld [vmem:[%s8453_s20 + $0xff0] sm:$0xff] }
 0x126   : > { %3299 = vmatpush1.msra.mxu1 %v747_v50  ;;  %3176 = vmatpush2.msra.mxu0 %v553_v54  ;;  %v855_v50 = vld [vmem:[%s8453_s20 + $0xcf0] sm:$0xff]  ;;  %v946_v54 = vld [vmem:[%s8453_s20 + $0xfc8] sm:$0xff] }
 0x127   : > { %3300 = vmatprep.subr.mxu1 %v742_v52  ;;  %3177 = vmatprep.subr.mxu0 %v548_v56  ;;  %v850_v52 = vld [vmem:[%s8453_s20 + $0xcc8] sm:$0xff]  ;;  %v945_v56 = vld [vmem:[%s8453_s20 + $0xfc0] sm:$0xff] }
 0x128   : > { %3301 = vmatpush1.msra.mxu1 %v741_v55  ;;  %3178 = vmatpush2.msra.mxu0 %v547_v58  ;;  %v849_v55 = vld [vmem:[%s8453_s20 + $0xcc0] sm:$0xff]  ;;  %v940_v58 = vld [vmem:[%s8453_s20 + $0xf98] sm:$0xff] }
 0x129   : > { %3302 = vmatprep.subr.mxu1 %v736_v57  ;;  %3179 = vmatprep.subr.mxu0 %v542_v61  ;;  %v844_v57 = vld [vmem:[%s8453_s20 + $0xc98] sm:$0xff]  ;;  %v939_v61 = vld [vmem:[%s8453_s20 + $0xf90] sm:$0xff] }
 0x12a   : > { %3303 = vmatpush1.msra.mxu1 %v735_v60  ;;  %3180 = vmatpush2.msra.mxu0 %v541_v63  ;;  %v843_v60 = vld [vmem:[%s8453_s20 + $0xc90] sm:$0xff]  ;;  %v934_v63 = vld [vmem:[%s8453_s20 + $0xf68] sm:$0xff] }
 0x12b   : > { %3304 = vmatprep.subr.mxu1 %v730_v62  ;;  %3181 = vmatprep.mubr.f32.mxu0 %v8640_v43  ;;  %v1000_v43 = vld [vmem:[%s8453_s20 + $0x1178] sm:$0xff]  ;;  %v838_v62 = vld [vmem:[%s8453_s20 + $0xc68] sm:$0xff] }
 0x12c   : > { %3305 = vmatpush1.msra.mxu1 %v729_v1  ;;  %3182 = vmatmul.mubr.f32.vlgmr.msra.gmra.mxu0 %v8645_v25  ;;  %v999_v25 = vld [vmem:[%s8453_s20 + $0x1170] sm:$0xff]  ;;  %v837_v1 = vld [vmem:[%s8453_s20 + $0xc60] sm:$0xff] }
 0x12d   : > { %3306 = vmatprep.subr.mxu1 %v916_v3  ;;  %3345 = vmatprep.subr.mxu0 %v1012_v4  ;;  %v8910_v3 = vrot.slane %v2783_v29, %v8530_v53  ;;  %v933_v4 = vld [vmem:[%s8453_s20 + $0xf60] sm:$0xff] }
 0x12e   : > { %3307 = vmatpush2.msra.mxu1 %v915_v5  ;;  %3346 = vmatpush1.msra.mxu0 %v1011_v17  ;;  %v832_v5 = vld [vmem:[%s8453_s20 + $0xc38] sm:$0xff] }
 0x12f   : > { %3308 = vmatprep.subr.mxu1 %v910_v6  ;;  %3347 = vmatprep.subr.mxu0 %v1006_v7  ;;  %v928_v17 = vld [vmem:[%s8453_s20 + $0xf38] sm:$0xff]  ;;  %v831_v6 = vld [vmem:[%s8453_s20 + $0xc30] sm:$0xff]  ;;  %v8922_v29 = vrot.slane %v8910_v3, %v8625_v12 }
 0x130   : > { %3309 = vmatpush2.msra.mxu1 %v909_v9  ;;  %3348 = vmatpush1.msra.mxu0 %v1005_v10  ;;  %v927_v7 = vld [vmem:[%s8453_s20 + $0xf30] sm:$0xff]  ;;  %v826_v9 = vld [vmem:[%s8453_s20 + $0xc08] sm:$0xff]  ;;  %v921_v10 = vld [vmem:[%s8453_s20 + $0xf00] sm:$0xff] }
 0x131   : > { %3310 = vmatprep.subr.mxu1 %v904_v11  ;;  %3349 = vmatprep.subr.mxu0 %v1000_v43  ;;  %v8927_v11 = vrot.slane %v8910_v3, %v8630_v16  ;;  %v8931_v43 = vrot.slane %v8910_v3, %v8555_v8 }
 0x132   : > { %3311 = vmatpush2.msra.mxu1 %v903_v14  ;;  %3350 = vmatpush1.msra.mxu0 %v999_v25  ;;  %v822_v14 = vld [vmem:[%s8453_s20 + $0xbe8] sm:$0xff] }
 0x133   : > { %3312 = vmatprep.subr.mxu1 %v898_v15  ;;  %3351 = vmatprep.subr.mxu0 %v994_v18  ;;  %v1014_v25 = vld [vmem:[%s8453_s20 + $0x11e8] sm:$0xff]  ;;  %v821_v15 = vld [vmem:[%s8453_s20 + $0xbe0] sm:$0xff] }
 0x134   : > { %3313 = vmatpush2.msra.mxu1 %v897_v19  ;;  %3352 = vmatpush1.msra.mxu0 %v993_v20  ;;  %v1013_v18 = vld [vmem:[%s8453_s20 + $0x11e0] sm:$0xff]  ;;  %v816_v19 = vld [vmem:[%s8453_s20 + $0xbb8] sm:$0xff] }
 0x135   : > { %3314 = vmatprep.subr.mxu1 %v892_v21  ;;  %3353 = vmatprep.subr.mxu0 %v988_v22  ;;  %v1008_v20 = vld [vmem:[%s8453_s20 + $0x11b8] sm:$0xff]  ;;  %v815_v21 = vld [vmem:[%s8453_s20 + $0xbb0] sm:$0xff] }
 0x136   : > { %3315 = vmatpush2.msra.mxu1 %v891_v23  ;;  %3354 = vmatpush1.msra.mxu0 %v987_v24  ;;  %v1007_v22 = vld [vmem:[%s8453_s20 + $0x11b0] sm:$0xff]  ;;  %v810_v23 = vld [vmem:[%s8453_s20 + $0xb88] sm:$0xff] }
 0x137   : > { %3316 = vmatprep.subr.mxu1 %v886_v26  ;;  %3355 = vmatprep.subr.mxu0 %v982_v27  ;;  %v1002_v24 = vld [vmem:[%s8453_s20 + $0x1188] sm:$0xff]  ;;  %v809_v26 = vld [vmem:[%s8453_s20 + $0xb80] sm:$0xff] }
 0x138   : > { %3317 = vmatpush2.msra.mxu1 %v885_v28  ;;  %3356 = vmatpush1.msra.mxu0 %v981_v30  ;;  %v1001_v27 = vld [vmem:[%s8453_s20 + $0x1180] sm:$0xff]  ;;  %v804_v28 = vld [vmem:[%s8453_s20 + $0xb58] sm:$0xff] }
 0x139   : > { %3318 = vmatprep.subr.mxu1 %v880_v31  ;;  %3357 = vmatprep.subr.mxu0 %v976_v32  ;;  %v996_v30 = vld [vmem:[%s8453_s20 + $0x1158] sm:$0xff]  ;;  %v803_v31 = vld [vmem:[%s8453_s20 + $0xb50] sm:$0xff] }
 0x13a   : > { %3319 = vmatpush2.msra.mxu1 %v879_v33  ;;  %3358 = vmatpush1.msra.mxu0 %v975_v34  ;;  %v995_v32 = vld [vmem:[%s8453_s20 + $0x1150] sm:$0xff]  ;;  %v798_v33 = vld [vmem:[%s8453_s20 + $0xb28] sm:$0xff] }
 0x13b   : > { %3320 = vmatprep.subr.mxu1 %v874_v35  ;;  %3359 = vmatprep.subr.mxu0 %v970_v36  ;;  %v990_v34 = vld [vmem:[%s8453_s20 + $0x1128] sm:$0xff]  ;;  %v797_v35 = vld [vmem:[%s8453_s20 + $0xb20] sm:$0xff] }
 0x13c   : > { %3321 = vmatpush2.msra.mxu1 %v873_v37  ;;  %3360 = vmatpush1.msra.mxu0 %v969_v38  ;;  %v989_v36 = vld [vmem:[%s8453_s20 + $0x1120] sm:$0xff]  ;;  %v792_v37 = vld [vmem:[%s8453_s20 + $0xaf8] sm:$0xff] }
 0x13d   : > { %3322 = vmatprep.subr.mxu1 %v868_v39  ;;  %3361 = vmatprep.subr.mxu0 %v964_v40  ;;  %v984_v38 = vld [vmem:[%s8453_s20 + $0x10f8] sm:$0xff]  ;;  %v791_v39 = vld [vmem:[%s8453_s20 + $0xaf0] sm:$0xff] }
 0x13e   : > { %3323 = vmatpush2.msra.mxu1 %v867_v41  ;;  %3362 = vmatpush1.msra.mxu0 %v963_v42  ;;  %v983_v40 = vld [vmem:[%s8453_s20 + $0x10f0] sm:$0xff]  ;;  %v786_v41 = vld [vmem:[%s8453_s20 + $0xac8] sm:$0xff] }
 0x13f   : > { %3324 = vmatprep.subr.mxu1 %v862_v44  ;;  %3363 = vmatprep.subr.mxu0 %v958_v45  ;;  %v978_v42 = vld [vmem:[%s8453_s20 + $0x10c8] sm:$0xff]  ;;  %v785_v44 = vld [vmem:[%s8453_s20 + $0xac0] sm:$0xff] }
 0x140   : > { %3325 = vmatpush2.msra.mxu1 %v861_v46  ;;  %3364 = vmatpush1.msra.mxu0 %v957_v47  ;;  %v977_v45 = vld [vmem:[%s8453_s20 + $0x10c0] sm:$0xff]  ;;  %v780_v46 = vld [vmem:[%s8453_s20 + $0xa98] sm:$0xff] }
 0x141   : > { %3326 = vmatprep.subr.mxu1 %v856_v48  ;;  %3365 = vmatprep.subr.mxu0 %v952_v49  ;;  %v972_v47 = vld [vmem:[%s8453_s20 + $0x1098] sm:$0xff]  ;;  %v779_v48 = vld [vmem:[%s8453_s20 + $0xa90] sm:$0xff] }
 0x142   : > { %3327 = vmatpush2.msra.mxu1 %v855_v50  ;;  %3366 = vmatpush1.msra.mxu0 %v951_v51  ;;  %v971_v49 = vld [vmem:[%s8453_s20 + $0x1090] sm:$0xff]  ;;  %v774_v50 = vld [vmem:[%s8453_s20 + $0xa68] sm:$0xff] }
 0x143   : > { %3328 = vmatprep.subr.mxu1 %v850_v52  ;;  %3367 = vmatprep.subr.mxu0 %v946_v54  ;;  %v966_v51 = vld [vmem:[%s8453_s20 + $0x1068] sm:$0xff]  ;;  %v773_v52 = vld [vmem:[%s8453_s20 + $0xa60] sm:$0xff] }
 0x144   : > { %3329 = vmatpush2.msra.mxu1 %v849_v55  ;;  %3368 = vmatpush1.msra.mxu0 %v945_v56  ;;  %v965_v54 = vld [vmem:[%s8453_s20 + $0x1060] sm:$0xff]  ;;  %v768_v55 = vld [vmem:[%s8453_s20 + $0xa38] sm:$0xff] }
 0x145   : > { %3330 = vmatprep.subr.mxu1 %v844_v57  ;;  %3369 = vmatprep.subr.mxu0 %v940_v58  ;;  %v960_v56 = vld [vmem:[%s8453_s20 + $0x1038] sm:$0xff]  ;;  %v767_v57 = vld [vmem:[%s8453_s20 + $0xa30] sm:$0xff] }
 0x146   : > { %3331 = vmatpush2.msra.mxu1 %v843_v60  ;;  %3370 = vmatpush1.msra.mxu0 %v939_v61  ;;  %v959_v58 = vld [vmem:[%s8453_s20 + $0x1030] sm:$0xff]  ;;  %v762_v60 = vld [vmem:[%s8453_s20 + $0xa08] sm:$0xff] }
 0x147   : > { %3332 = vmatprep.subr.mxu1 %v838_v62  ;;  %3371 = vmatprep.subr.mxu0 %v934_v63  ;;  %v954_v61 = vld [vmem:[%s8453_s20 + $0x1008] sm:$0xff]  ;;  %v761_v62 = vld [vmem:[%s8453_s20 + $0xa00] sm:$0xff] }
 0x148   : > { %3333 = vmatpush2.msra.mxu1 %v837_v1  ;;  %3372 = vmatpush1.msra.mxu0 %v933_v4  ;;  %v953_v63 = vld [vmem:[%s8453_s20 + $0x1000] sm:$0xff]  ;;  %v756_v1 = vld [vmem:[%s8453_s20 + $0x9d8] sm:$0xff] }
 0x149   : > { %3334 = vmatprep.subr.mxu1 %v832_v5  ;;  %3373 = vmatprep.subr.mxu0 %v928_v17  ;;  %v948_v4 = vld [vmem:[%s8453_s20 + $0xfd8] sm:$0xff]  ;;  %v755_v5 = vld [vmem:[%s8453_s20 + $0x9d0] sm:$0xff] }
 0x14a   : > { %3335 = vmatpush2.msra.mxu1 %v831_v6  ;;  %3374 = vmatpush1.msra.mxu0 %v927_v7  ;;  %v947_v17 = vld [vmem:[%s8453_s20 + $0xfd0] sm:$0xff]  ;;  %v750_v6 = vld [vmem:[%s8453_s20 + $0x9a8] sm:$0xff] }
 0x14b   : > { %3336 = vmatprep.subr.mxu1 %v826_v9  ;;  %3375 = vmatprep.subr.mxu0 %v922_v59  ;;  %v942_v7 = vld [vmem:[%s8453_s20 + $0xfa8] sm:$0xff]  ;;  %v749_v9 = vld [vmem:[%s8453_s20 + $0x9a0] sm:$0xff] }
 0x14c   : > { %3337 = vmatpush2.msra.mxu1 %v825_v2  ;;  %3338 = vmatprep.mubr.f32.mxu1 %v8922_v29  ;;  %v941_v59 = vld [vmem:[%s8453_s20 + $0xfa0] sm:$0xff]  ;;  %v744_v2 = vld [vmem:[%s8453_s20 + $0x978] sm:$0xff] }
 0x14d   : > { %3376 = vmatpush1.msra.mxu0 %v921_v10  ;;  %3409 = vmatprep.mubr.f32.mxu0 %v8254_v0  ;;  %v936_v10 = vld [vmem:[%s8453_s20 + $0xf78] sm:$0xff] }
 0x14e   : > { %3339 = vmatmul.mubr.f32.vlgmr.msra.gmra.mxu1 %v8927_v11  ;;  %3410 = vmatmul.mubr.f32.vlgmr.msra.gmra.mxu0 %v8931_v43 }
 0x14f   : > { %3416 = vmatprep.subr.mxu0 %v822_v14  ;;  %3487 = vmatprep.subr.mxu1 %v1014_v25  ;;  %v743_v14 = vld [vmem:[%s8453_s20 + $0x970] sm:$0xff] }
 0x150   : > { %3417 = vmatpush1.msra.mxu0 %v821_v15  ;;  %3488 = vmatpush1.msra.mxu1 %v1013_v18  ;;  %v935_v25 = vld [vmem:[%s8453_s20 + $0xf70] sm:$0xff]  ;;  %v738_v15 = vld [vmem:[%s8453_s20 + $0x948] sm:$0xff] }
 0x151   : > { %3418 = vmatprep.subr.mxu0 %v816_v19  ;;  %3489 = vmatprep.subr.mxu1 %v1008_v20  ;;  %v930_v18 = vld [vmem:[%s8453_s20 + $0xf48] sm:$0xff]  ;;  %v737_v19 = vld [vmem:[%s8453_s20 + $0x940] sm:$0xff] }
 0x152   : > { %3419 = vmatpush1.msra.mxu0 %v815_v21  ;;  %3490 = vmatpush1.msra.mxu1 %v1007_v22  ;;  %v929_v20 = vld [vmem:[%s8453_s20 + $0xf40] sm:$0xff]  ;;  %v732_v21 = vld [vmem:[%s8453_s20 + $0x918] sm:$0xff] }
 0x153   : > { %3420 = vmatprep.subr.mxu0 %v810_v23  ;;  %3491 = vmatprep.subr.mxu1 %v1002_v24  ;;  %v924_v22 = vld [vmem:[%s8453_s20 + $0xf18] sm:$0xff]  ;;  %v731_v23 = vld [vmem:[%s8453_s20 + $0x910] sm:$0xff] }
 0x154   : > { %3421 = vmatpush1.msra.mxu0 %v809_v26  ;;  %3492 = vmatpush1.msra.mxu1 %v1001_v27  ;;  %v923_v24 = vld [vmem:[%s8453_s20 + $0xf10] sm:$0xff]  ;;  %v918_v26 = vld [vmem:[%s8453_s20 + $0xee8] sm:$0xff]  ;;  %v824_v27 = vld [vmem:[%s8453_s20 + $0xbf8] sm:$0xff] }
 0x155   : > { %3422 = vmatprep.subr.mxu0 %v804_v28  ;;  %3493 = vmatprep.subr.mxu1 %v996_v30  ;;  %v917_v28 = vld [vmem:[%s8453_s20 + $0xee0] sm:$0xff]  ;;  %v823_v30 = vld [vmem:[%s8453_s20 + $0xbf0] sm:$0xff] }
 0x156   : > { %3423 = vmatpush1.msra.mxu0 %v803_v31  ;;  %3494 = vmatpush1.msra.mxu1 %v995_v32  ;;  %v912_v31 = vld [vmem:[%s8453_s20 + $0xeb8] sm:$0xff]  ;;  %v818_v32 = vld [vmem:[%s8453_s20 + $0xbc8] sm:$0xff] }
 0x157   : > { %3424 = vmatprep.subr.mxu0 %v798_v33  ;;  %3495 = vmatprep.subr.mxu1 %v990_v34  ;;  %v911_v33 = vld [vmem:[%s8453_s20 + $0xeb0] sm:$0xff]  ;;  %v817_v34 = vld [vmem:[%s8453_s20 + $0xbc0] sm:$0xff] }
 0x158   : > { %3425 = vmatpush1.msra.mxu0 %v797_v35  ;;  %3496 = vmatpush1.msra.mxu1 %v989_v36  ;;  %v906_v35 = vld [vmem:[%s8453_s20 + $0xe88] sm:$0xff]  ;;  %v812_v36 = vld [vmem:[%s8453_s20 + $0xb98] sm:$0xff] }
 0x159   : > { %3426 = vmatprep.subr.mxu0 %v792_v37  ;;  %3497 = vmatprep.subr.mxu1 %v984_v38  ;;  %v905_v37 = vld [vmem:[%s8453_s20 + $0xe80] sm:$0xff]  ;;  %v811_v38 = vld [vmem:[%s8453_s20 + $0xb90] sm:$0xff] }
 0x15a   : > { %3427 = vmatpush1.msra.mxu0 %v791_v39  ;;  %3498 = vmatpush1.msra.mxu1 %v983_v40  ;;  %v900_v39 = vld [vmem:[%s8453_s20 + $0xe58] sm:$0xff]  ;;  %v806_v40 = vld [vmem:[%s8453_s20 + $0xb68] sm:$0xff] }
 0x15b   : > { %3428 = vmatprep.subr.mxu0 %v786_v41  ;;  %3499 = vmatprep.subr.mxu1 %v978_v42  ;;  %v899_v41 = vld [vmem:[%s8453_s20 + $0xe50] sm:$0xff]  ;;  %v805_v42 = vld [vmem:[%s8453_s20 + $0xb60] sm:$0xff] }
 0x15c   : > { %3429 = vmatpush1.msra.mxu0 %v785_v44  ;;  %3500 = vmatpush1.msra.mxu1 %v977_v45  ;;  %v894_v44 = vld [vmem:[%s8453_s20 + $0xe28] sm:$0xff]  ;;  %v800_v45 = vld [vmem:[%s8453_s20 + $0xb38] sm:$0xff] }
 0x15d   : > { %3430 = vmatprep.subr.mxu0 %v780_v46  ;;  %3501 = vmatprep.subr.mxu1 %v972_v47  ;;  %v893_v46 = vld [vmem:[%s8453_s20 + $0xe20] sm:$0xff]  ;;  %v799_v47 = vld [vmem:[%s8453_s20 + $0xb30] sm:$0xff] }
 0x15e   : > { %3431 = vmatpush1.msra.mxu0 %v779_v48  ;;  %3502 = vmatpush1.msra.mxu1 %v971_v49  ;;  %v888_v48 = vld [vmem:[%s8453_s20 + $0xdf8] sm:$0xff]  ;;  %v794_v49 = vld [vmem:[%s8453_s20 + $0xb08] sm:$0xff] }
 0x15f   : > { %3432 = vmatprep.subr.mxu0 %v774_v50  ;;  %3503 = vmatprep.subr.mxu1 %v966_v51  ;;  %v887_v50 = vld [vmem:[%s8453_s20 + $0xdf0] sm:$0xff]  ;;  %v793_v51 = vld [vmem:[%s8453_s20 + $0xb00] sm:$0xff] }
 0x160   : > { %3433 = vmatpush1.msra.mxu0 %v773_v52  ;;  %3504 = vmatpush1.msra.mxu1 %v965_v54  ;;  %v882_v52 = vld [vmem:[%s8453_s20 + $0xdc8] sm:$0xff]  ;;  %v788_v54 = vld [vmem:[%s8453_s20 + $0xad8] sm:$0xff] }
 0x161   : > { %3434 = vmatprep.subr.mxu0 %v768_v55  ;;  %3505 = vmatprep.subr.mxu1 %v960_v56  ;;  %v881_v55 = vld [vmem:[%s8453_s20 + $0xdc0] sm:$0xff]  ;;  %v787_v56 = vld [vmem:[%s8453_s20 + $0xad0] sm:$0xff] }
 0x162   : > { %3435 = vmatpush1.msra.mxu0 %v767_v57  ;;  %3506 = vmatpush1.msra.mxu1 %v959_v58  ;;  %v876_v57 = vld [vmem:[%s8453_s20 + $0xd98] sm:$0xff]  ;;  %v782_v58 = vld [vmem:[%s8453_s20 + $0xaa8] sm:$0xff] }
 0x163   : > { %3436 = vmatprep.subr.mxu0 %v762_v60  ;;  %3507 = vmatprep.subr.mxu1 %v954_v61  ;;  %v875_v60 = vld [vmem:[%s8453_s20 + $0xd90] sm:$0xff]  ;;  %v781_v61 = vld [vmem:[%s8453_s20 + $0xaa0] sm:$0xff] }
 0x164   : > { %3437 = vmatpush1.msra.mxu0 %v761_v62  ;;  %3508 = vmatpush1.msra.mxu1 %v953_v63  ;;  %v870_v62 = vld [vmem:[%s8453_s20 + $0xd68] sm:$0xff]  ;;  %v776_v63 = vld [vmem:[%s8453_s20 + $0xa78] sm:$0xff] }
 0x165   : > { %3438 = vmatprep.subr.mxu0 %v756_v1  ;;  %3509 = vmatprep.subr.mxu1 %v948_v4  ;;  %v869_v1 = vld [vmem:[%s8453_s20 + $0xd60] sm:$0xff]  ;;  %v775_v4 = vld [vmem:[%s8453_s20 + $0xa70] sm:$0xff] }
 0x166   : > { %3439 = vmatpush1.msra.mxu0 %v755_v5  ;;  %3510 = vmatpush1.msra.mxu1 %v947_v17  ;;  %v864_v5 = vld [vmem:[%s8453_s20 + $0xd38] sm:$0xff]  ;;  %v770_v17 = vld [vmem:[%s8453_s20 + $0xa48] sm:$0xff] }
 0x167   : > { %3440 = vmatprep.subr.mxu0 %v750_v6  ;;  %3511 = vmatprep.subr.mxu1 %v942_v7  ;;  %v863_v6 = vld [vmem:[%s8453_s20 + $0xd30] sm:$0xff]  ;;  %v769_v7 = vld [vmem:[%s8453_s20 + $0xa40] sm:$0xff] }
 0x168   : > { %3441 = vmatpush1.msra.mxu0 %v749_v9  ;;  %3512 = vmatpush1.msra.mxu1 %v941_v59  ;;  %v858_v9 = vld [vmem:[%s8453_s20 + $0xd08] sm:$0xff]  ;;  %v764_v59 = vld [vmem:[%s8453_s20 + $0xa18] sm:$0xff] }
 0x169   : > { %3442 = vmatprep.subr.mxu0 %v744_v2  ;;  %3513 = vmatprep.subr.mxu1 %v936_v10  ;;  %v857_v2 = vld [vmem:[%s8453_s20 + $0xd00] sm:$0xff]  ;;  %v763_v10 = vld [vmem:[%s8453_s20 + $0xa10] sm:$0xff] }
 0x16a   : > { %3443 = vmatpush1.msra.mxu0 %v743_v14  ;;  %3514 = vmatpush1.msra.mxu1 %v935_v25  ;;  %v852_v14 = vld [vmem:[%s8453_s20 + $0xcd8] sm:$0xff]  ;;  %v758_v25 = vld [vmem:[%s8453_s20 + $0x9e8] sm:$0xff] }
 0x16b   : > { %3444 = vmatprep.subr.mxu0 %v738_v15  ;;  %3515 = vmatprep.subr.mxu1 %v930_v18  ;;  %v851_v15 = vld [vmem:[%s8453_s20 + $0xcd0] sm:$0xff]  ;;  %v757_v18 = vld [vmem:[%s8453_s20 + $0x9e0] sm:$0xff] }
 0x16c   : > { %3445 = vmatpush1.msra.mxu0 %v737_v19  ;;  %3516 = vmatpush1.msra.mxu1 %v929_v20  ;;  %v846_v19 = vld [vmem:[%s8453_s20 + $0xca8] sm:$0xff]  ;;  %v752_v20 = vld [vmem:[%s8453_s20 + $0x9b8] sm:$0xff] }
 0x16d   : > { %3446 = vmatprep.subr.mxu0 %v732_v21  ;;  %3517 = vmatprep.subr.mxu1 %v924_v22  ;;  %v845_v21 = vld [vmem:[%s8453_s20 + $0xca0] sm:$0xff]  ;;  %v2970_v22 = vpop.f32.mrf.mxu1 }
 0x16e   : > { %3447 = vmatpush1.msra.mxu0 %v731_v23  ;;  %3518 = vmatpush1.msra.mxu1 %v923_v24  ;;  %v751_v23 = vld [vmem:[%s8453_s20 + $0x9b0] sm:$0xff]  ;;  %v840_v24 = vld [vmem:[%s8453_s20 + $0xc78] sm:$0xff] }
 0x16f   : > { %3448 = vmatprep.subr.mxu0 %v918_v26  ;;  %3551 = vmatprep.mubr.f32.mxu1 %v8254_v0  ;;  %v746_v26 = vld [vmem:[%s8453_s20 + $0x988] sm:$0xff] }
 0x170   : > { %3558 = vmatprep.subr.mxu1 %v824_v27  ;;  %3449 = vmatpush2.msra.mxu0 %v917_v28  ;;  %v839_v27 = vld [vmem:[%s8453_s20 + $0xc70] sm:$0xff]  ;;  %v745_v28 = vld [vmem:[%s8453_s20 + $0x980] sm:$0xff] }
 0x171   : > { %3552 = vmatmul.mubr.f32.vlgmr.msra.gmra.mxu1 %v8931_v43  ;;  %3450 = vmatprep.subr.mxu0 %v912_v31 }
 0x172   : > { %3559 = vmatpush1.msra.mxu1 %v823_v30  ;;  %3451 = vmatpush2.msra.mxu0 %v911_v33  ;;  %v834_v30 = vld [vmem:[%s8453_s20 + $0xc48] sm:$0xff]  ;;  %v833_v33 = vld [vmem:[%s8453_s20 + $0xc40] sm:$0xff] }
 0x173   : > { %3560 = vmatprep.subr.mxu1 %v818_v32  ;;  %3452 = vmatprep.subr.mxu0 %v906_v35  ;;  %v740_v32 = vld [vmem:[%s8453_s20 + $0x958] sm:$0xff]  ;;  %v2972_v35 = vpop.f32.mrf.mxu1 }
 0x174   : > { %3561 = vmatpush1.msra.mxu1 %v817_v34  ;;  %3453 = vmatpush2.msra.mxu0 %v905_v37  ;;  %v828_v37 = vld [vmem:[%s8453_s20 + $0xc18] sm:$0xff] }
 0x175   : > { %3562 = vmatprep.subr.mxu1 %v812_v36  ;;  %3454 = vmatprep.subr.mxu0 %v900_v39  ;;  %v739_v36 = vld [vmem:[%s8453_s20 + $0x950] sm:$0xff]  ;;  %v734_v39 = vld [vmem:[%s8453_s20 + $0x928] sm:$0xff] }
 0x176   : > { %3563 = vmatpush1.msra.mxu1 %v811_v38  ;;  %3455 = vmatpush2.msra.mxu0 %v899_v41 }
 0x177   : > { %3564 = vmatprep.subr.mxu1 %v806_v40  ;;  %3456 = vmatprep.subr.mxu0 %v894_v44  ;;  %v827_v40 = vld [vmem:[%s8453_s20 + $0xc10] sm:$0xff]  ;;  %v920_v44 = vld [vmem:[%s8453_s20 + $0xef8] sm:$0xff] }
 0x178   : > { %3565 = vmatpush1.msra.mxu1 %v805_v42  ;;  %3457 = vmatpush2.msra.mxu0 %v893_v46  ;;  %v733_v42 = vld [vmem:[%s8453_s20 + $0x920] sm:$0xff]  ;;  %v919_v46 = vld [vmem:[%s8453_s20 + $0xef0] sm:$0xff] }
 0x179   : > { %3566 = vmatprep.subr.mxu1 %v800_v45  ;;  %3458 = vmatprep.subr.mxu0 %v888_v48  ;;  %v1016_v45 = vld [vmem:[%s8453_s20 + $0x11f8] sm:$0xff]  ;;  %v914_v48 = vld [vmem:[%s8453_s20 + $0xec8] sm:$0xff] }
 0x17a   : > { %3567 = vmatpush1.msra.mxu1 %v799_v47  ;;  %3459 = vmatpush2.msra.mxu0 %v887_v50  ;;  %v1015_v47 = vld [vmem:[%s8453_s20 + $0x11f0] sm:$0xff]  ;;  %v913_v50 = vld [vmem:[%s8453_s20 + $0xec0] sm:$0xff] }
 0x17b   : > { %3568 = vmatprep.subr.mxu1 %v794_v49  ;;  %3460 = vmatprep.subr.mxu0 %v882_v52  ;;  %v1010_v49 = vld [vmem:[%s8453_s20 + $0x11c8] sm:$0xff]  ;;  %v908_v52 = vld [vmem:[%s8453_s20 + $0xe98] sm:$0xff] }
 0x17c   : > { %3569 = vmatpush1.msra.mxu1 %v793_v51  ;;  %3461 = vmatpush2.msra.mxu0 %v881_v55  ;;  %v1009_v51 = vld [vmem:[%s8453_s20 + $0x11c0] sm:$0xff]  ;;  %v907_v55 = vld [vmem:[%s8453_s20 + $0xe90] sm:$0xff] }
 0x17d   : > { %3570 = vmatprep.subr.mxu1 %v788_v54  ;;  %3462 = vmatprep.subr.mxu0 %v876_v57  ;;  %v1004_v54 = vld [vmem:[%s8453_s20 + $0x1198] sm:$0xff]  ;;  %v902_v57 = vld [vmem:[%s8453_s20 + $0xe68] sm:$0xff] }
 0x17e   : > { %3571 = vmatpush1.msra.mxu1 %v787_v56  ;;  %3463 = vmatpush2.msra.mxu0 %v875_v60  ;;  %v1003_v56 = vld [vmem:[%s8453_s20 + $0x1190] sm:$0xff]  ;;  %v901_v60 = vld [vmem:[%s8453_s20 + $0xe60] sm:$0xff] }
 0x17f   : > { %3572 = vmatprep.subr.mxu1 %v782_v58  ;;  %3464 = vmatprep.subr.mxu0 %v870_v62  ;;  %v998_v58 = vld [vmem:[%s8453_s20 + $0x1168] sm:$0xff]  ;;  %v896_v62 = vld [vmem:[%s8453_s20 + $0xe38] sm:$0xff] }
 0x180   : > { %3573 = vmatpush1.msra.mxu1 %v781_v61  ;;  %3465 = vmatpush2.msra.mxu0 %v869_v1  ;;  %v997_v61 = vld [vmem:[%s8453_s20 + $0x1160] sm:$0xff]  ;;  %v895_v1 = vld [vmem:[%s8453_s20 + $0xe30] sm:$0xff] }
 0x181   : > { %3574 = vmatprep.subr.mxu1 %v776_v63  ;;  %3466 = vmatprep.subr.mxu0 %v864_v5  ;;  %v992_v63 = vld [vmem:[%s8453_s20 + $0x1138] sm:$0xff]  ;;  %v890_v5 = vld [vmem:[%s8453_s20 + $0xe08] sm:$0xff] }
 0x182   : > { %3575 = vmatpush1.msra.mxu1 %v775_v4  ;;  %3467 = vmatpush2.msra.mxu0 %v863_v6  ;;  %v991_v4 = vld [vmem:[%s8453_s20 + $0x1130] sm:$0xff]  ;;  %v889_v6 = vld [vmem:[%s8453_s20 + $0xe00] sm:$0xff] }
 0x183   : > { %3576 = vmatprep.subr.mxu1 %v770_v17  ;;  %3468 = vmatprep.subr.mxu0 %v858_v9  ;;  %v986_v17 = vld [vmem:[%s8453_s20 + $0x1108] sm:$0xff]  ;;  %v884_v9 = vld [vmem:[%s8453_s20 + $0xdd8] sm:$0xff] }
 0x184   : > { %3577 = vmatpush1.msra.mxu1 %v769_v7  ;;  %3469 = vmatpush2.msra.mxu0 %v857_v2  ;;  %v985_v7 = vld [vmem:[%s8453_s20 + $0x1100] sm:$0xff]  ;;  %v883_v2 = vld [vmem:[%s8453_s20 + $0xdd0] sm:$0xff] }
 0x185   : > { %3578 = vmatprep.subr.mxu1 %v764_v59  ;;  %3470 = vmatprep.subr.mxu0 %v852_v14  ;;  %v980_v59 = vld [vmem:[%s8453_s20 + $0x10d8] sm:$0xff]  ;;  %v878_v14 = vld [vmem:[%s8453_s20 + $0xda8] sm:$0xff] }
 0x186   : > { %3579 = vmatpush1.msra.mxu1 %v763_v10  ;;  %3471 = vmatpush2.msra.mxu0 %v851_v15  ;;  %v979_v10 = vld [vmem:[%s8453_s20 + $0x10d0] sm:$0xff]  ;;  %v877_v15 = vld [vmem:[%s8453_s20 + $0xda0] sm:$0xff] }
 0x187   : > { %3580 = vmatprep.subr.mxu1 %v758_v25  ;;  %3472 = vmatprep.subr.mxu0 %v846_v19  ;;  %v974_v25 = vld [vmem:[%s8453_s20 + $0x10a8] sm:$0xff]  ;;  %v872_v19 = vld [vmem:[%s8453_s20 + $0xd78] sm:$0xff] }
 0x188   : > { %3581 = vmatpush1.msra.mxu1 %v757_v18  ;;  %3473 = vmatpush2.msra.mxu0 %v845_v21  ;;  %v2899_v31 = vpop.f32.mrf.mxu0  ;;  %v973_v18 = vld [vmem:[%s8453_s20 + $0x10a0] sm:$0xff]  ;;  %v871_v21 = vld [vmem:[%s8453_s20 + $0xd70] sm:$0xff] }
 0x189   : > { %3582 = vmatprep.subr.mxu1 %v752_v20  ;;  %3474 = vmatprep.subr.mxu0 %v840_v24  ;;  %v9062_v34 = vadd.f32 %v2970_v22, %v2899_v31  ;;  %v968_v20 = vld [vmem:[%s8453_s20 + $0x1078] sm:$0xff]  ;;  %v967_v22 = vld [vmem:[%s8453_s20 + $0x1070] sm:$0xff]  ;;  %v962_v24 = vld [vmem:[%s8453_s20 + $0x1048] sm:$0xff] }
 0x18a   : > { %3583 = vmatpush1.msra.mxu1 %v751_v23  ;;  %3475 = vmatpush2.msra.mxu0 %v839_v27  ;;  %v2901_v38 = vpop.f32.mrf.mxu0  ;;  %v866_v23 = vld [vmem:[%s8453_s20 + $0xd48] sm:$0xff]  ;;  %v961_v27 = vld [vmem:[%s8453_s20 + $0x1040] sm:$0xff]  ;;  %v859_v31 = vld [vmem:[%s8453_s20 + $0xd10] sm:$0xff] }
 0x18b   : > { %3584 = vmatprep.subr.mxu1 %v746_v26  ;;  %3476 = vmatprep.subr.mxu0 %v834_v30  ;;  %v9068_v41 = vadd.f32 %v2972_v35, %v2901_v38  ;;  %v865_v26 = vld [vmem:[%s8453_s20 + $0xd40] sm:$0xff]  ;;  %v956_v30 = vld [vmem:[%s8453_s20 + $0x1018] sm:$0xff]  ;;  %v950_v35 = vld [vmem:[%s8453_s20 + $0xfe8] sm:$0xff] }
 0x18c   : > { %3585 = vmatpush1.msra.mxu1 %v745_v28  ;;  %3477 = vmatpush2.msra.mxu0 %v833_v33  ;;  %v860_v28 = vld [vmem:[%s8453_s20 + $0xd18] sm:$0xff]  ;;  %v854_v33 = vld [vmem:[%s8453_s20 + $0xce8] sm:$0xff] }
 0x18d   : > { %3586 = vmatprep.subr.mxu1 %v740_v32  ;;  %3478 = vmatprep.subr.mxu0 %v828_v37  ;;  %v955_v32 = vld [vmem:[%s8453_s20 + $0x1010] sm:$0xff]  ;;  %v949_v37 = vld [vmem:[%s8453_s20 + $0xfe0] sm:$0xff]  ;;  %v848_v38 = vld [vmem:[%s8453_s20 + $0xcb8] sm:$0xff] }
 0x18e   : > { %3587 = vmatpush1.msra.mxu1 %v739_v36  ;;  %3479 = vmatpush2.msra.mxu0 %v827_v40  ;;  %v853_v36 = vld [vmem:[%s8453_s20 + $0xce0] sm:$0xff]  ;;  %v847_v40 = vld [vmem:[%s8453_s20 + $0xcb0] sm:$0xff] }
 0x18f   : > { %3588 = vmatprep.subr.mxu1 %v734_v39  ;;  %3480 = vmatprep.mubr.f32.mxu0 %v8922_v29  ;;  %v944_v39 = vld [vmem:[%s8453_s20 + $0xfb8] sm:$0xff] }
 0x190   : > { %3589 = vmatpush1.msra.mxu1 %v733_v42  ;;  %3481 = vmatmul.mubr.f32.vlgmr.msra.gmra.mxu0 %v8927_v11  ;;  %v943_v42 = vld [vmem:[%s8453_s20 + $0xfb0] sm:$0xff] }
 0x191   : > { %3590 = vmatprep.subr.mxu1 %v920_v44  ;;  %3629 = vmatprep.subr.mxu0 %v1016_v45  ;;  %v842_v44 = vld [vmem:[%s8453_s20 + $0xc88] sm:$0xff] }
 0x192   : > { %3591 = vmatpush2.msra.mxu1 %v919_v46  ;;  %3630 = vmatpush1.msra.mxu0 %v1015_v47  ;;  %v938_v45 = vld [vmem:[%s8453_s20 + $0xf88] sm:$0xff]  ;;  %v841_v46 = vld [vmem:[%s8453_s20 + $0xc80] sm:$0xff] }
 0x193   : > { %3592 = vmatprep.subr.mxu1 %v914_v48  ;;  %3631 = vmatprep.subr.mxu0 %v1010_v49  ;;  %v937_v47 = vld [vmem:[%s8453_s20 + $0xf80] sm:$0xff]  ;;  %v836_v48 = vld [vmem:[%s8453_s20 + $0xc58] sm:$0xff] }
 0x194   : > { %3593 = vmatpush2.msra.mxu1 %v913_v50  ;;  %3632 = vmatpush1.msra.mxu0 %v1009_v51  ;;  %v932_v50 = vld [vmem:[%s8453_s20 + $0xf58] sm:$0xff]  ;;  %v835_v51 = vld [vmem:[%s8453_s20 + $0xc50] sm:$0xff] }
 0x195   : > { %3594 = vmatprep.subr.mxu1 %v908_v52  ;;  %3633 = vmatprep.subr.mxu0 %v1004_v54  ;;  %v931_v54 = vld [vmem:[%s8453_s20 + $0xf50] sm:$0xff] }
 0x196   : > { %3595 = vmatpush2.msra.mxu1 %v907_v55  ;;  %3634 = vmatpush1.msra.mxu0 %v1003_v56  ;;  %v830_v55 = vld [vmem:[%s8453_s20 + $0xc28] sm:$0xff] }
 0x197   : > { %3596 = vmatprep.subr.mxu1 %v902_v57  ;;  %3635 = vmatprep.subr.mxu0 %v998_v58  ;;  %v926_v58 = vld [vmem:[%s8453_s20 + $0xf28] sm:$0xff] }
 0x198   : > { %3597 = vmatpush2.msra.mxu1 %v901_v60  ;;  %3636 = vmatpush1.msra.mxu0 %v997_v61  ;;  %v829_v60 = vld [vmem:[%s8453_s20 + $0xc20] sm:$0xff] }
 0x199   : > { %3598 = vmatprep.subr.mxu1 %v896_v62  ;;  %3637 = vmatprep.subr.mxu0 %v992_v63  ;;  %v925_v62 = vld [vmem:[%s8453_s20 + $0xf20] sm:$0xff] }
 0x19a   : > { %3599 = vmatpush2.msra.mxu1 %v895_v1  ;;  %3638 = vmatpush1.msra.mxu0 %v991_v4  ;;  %v1108_v1 = vld [vmem:[%s8453_s20 + $0x14d8] sm:$0xff] }
 0x19b   : > { %3600 = vmatprep.subr.mxu1 %v890_v5  ;;  %3639 = vmatprep.subr.mxu0 %v986_v17  ;;  %v1300_v4 = vld [vmem:[%s8453_s20 + $0x1ad8] sm:$0xff]  ;;  %v1107_v5 = vld [vmem:[%s8453_s20 + $0x14d0] sm:$0xff] }
 0x19c   : > { %3601 = vmatpush2.msra.mxu1 %v889_v6  ;;  %3640 = vmatpush1.msra.mxu0 %v985_v7  ;;  %v1299_v17 = vld [vmem:[%s8453_s20 + $0x1ad0] sm:$0xff]  ;;  %v1102_v6 = vld [vmem:[%s8453_s20 + $0x14a8] sm:$0xff] }
 0x19d   : > { %3602 = vmatprep.subr.mxu1 %v884_v9  ;;  %3641 = vmatprep.subr.mxu0 %v980_v59  ;;  %v1294_v7 = vld [vmem:[%s8453_s20 + $0x1aa8] sm:$0xff]  ;;  %v1101_v9 = vld [vmem:[%s8453_s20 + $0x14a0] sm:$0xff]  ;;  %v1096_v59 = vld [vmem:[%s8453_s20 + $0x1478] sm:$0xff] }
 0x19e   : > { %3603 = vmatpush2.msra.mxu1 %v883_v2  ;;  %3642 = vmatpush1.msra.mxu0 %v979_v10  ;;  %v1095_v2 = vld [vmem:[%s8453_s20 + $0x1470] sm:$0xff]  ;;  %v1090_v10 = vld [vmem:[%s8453_s20 + $0x1448] sm:$0xff] }
 0x19f   : > { %3604 = vmatprep.subr.mxu1 %v878_v14  ;;  %3643 = vmatprep.subr.mxu0 %v974_v25  ;;  %v1282_v14 = vld [vmem:[%s8453_s20 + $0x1a48] sm:$0xff]  ;;  %v1089_v25 = vld [vmem:[%s8453_s20 + $0x1440] sm:$0xff] }
 0x1a0   : > { %3605 = vmatpush2.msra.mxu1 %v877_v15  ;;  %3644 = vmatpush1.msra.mxu0 %v973_v18  ;;  %v1281_v15 = vld [vmem:[%s8453_s20 + $0x1a40] sm:$0xff]  ;;  %v1084_v18 = vld [vmem:[%s8453_s20 + $0x1418] sm:$0xff] }
 0x1a1   : > { %3606 = vmatprep.subr.mxu1 %v872_v19  ;;  %3645 = vmatprep.subr.mxu0 %v968_v20  ;;  %v1276_v19 = vld [vmem:[%s8453_s20 + $0x1a18] sm:$0xff]  ;;  %v1083_v20 = vld [vmem:[%s8453_s20 + $0x1410] sm:$0xff] }
 0x1a2   : > { %3607 = vmatpush2.msra.mxu1 %v871_v21  ;;  %3646 = vmatpush1.msra.mxu0 %v967_v22  ;;  %v1275_v21 = vld [vmem:[%s8453_s20 + $0x1a10] sm:$0xff]  ;;  %v1078_v22 = vld [vmem:[%s8453_s20 + $0x13e8] sm:$0xff] }
 0x1a3   : > { %3608 = vmatprep.subr.mxu1 %v866_v23  ;;  %3647 = vmatprep.subr.mxu0 %v962_v24  ;;  %v1270_v23 = vld [vmem:[%s8453_s20 + $0x19e8] sm:$0xff]  ;;  %v1077_v24 = vld [vmem:[%s8453_s20 + $0x13e0] sm:$0xff] }
 0x1a4   : > { %3609 = vmatpush2.msra.mxu1 %v865_v26  ;;  %3648 = vmatpush1.msra.mxu0 %v961_v27  ;;  %v1269_v26 = vld [vmem:[%s8453_s20 + $0x19e0] sm:$0xff]  ;;  %v1072_v27 = vld [vmem:[%s8453_s20 + $0x13b8] sm:$0xff] }
 0x1a5   : > { %3610 = vmatprep.subr.mxu1 %v860_v28  ;;  %3649 = vmatprep.subr.mxu0 %v956_v30  ;;  %v1264_v28 = vld [vmem:[%s8453_s20 + $0x19b8] sm:$0xff]  ;;  %v1071_v30 = vld [vmem:[%s8453_s20 + $0x13b0] sm:$0xff] }
 0x1a6   : > { %3611 = vmatpush2.msra.mxu1 %v859_v31  ;;  %3650 = vmatpush1.msra.mxu0 %v955_v32  ;;  %v1263_v31 = vld [vmem:[%s8453_s20 + $0x19b0] sm:$0xff]  ;;  %v1066_v32 = vld [vmem:[%s8453_s20 + $0x1388] sm:$0xff] }
 0x1a7   : > { %3612 = vmatprep.subr.mxu1 %v854_v33  ;;  %3651 = vmatprep.subr.mxu0 %v950_v35  ;;  %v1258_v33 = vld [vmem:[%s8453_s20 + $0x1988] sm:$0xff]  ;;  %v1065_v35 = vld [vmem:[%s8453_s20 + $0x1380] sm:$0xff] }
 0x1a8   : > { %3613 = vmatpush2.msra.mxu1 %v853_v36  ;;  %3652 = vmatpush1.msra.mxu0 %v949_v37  ;;  %v1257_v36 = vld [vmem:[%s8453_s20 + $0x1980] sm:$0xff]  ;;  %v1060_v37 = vld [vmem:[%s8453_s20 + $0x1358] sm:$0xff] }
 0x1a9   : > { %3614 = vmatprep.subr.mxu1 %v848_v38  ;;  %3653 = vmatprep.subr.mxu0 %v944_v39  ;;  %v1252_v38 = vld [vmem:[%s8453_s20 + $0x1958] sm:$0xff]  ;;  %v1059_v39 = vld [vmem:[%s8453_s20 + $0x1350] sm:$0xff] }
 0x1aa   : > { %3615 = vmatpush2.msra.mxu1 %v847_v40  ;;  %v3041_v49 = vpop.f32.mrf.mxu1  ;;  %3654 = vmatpush1.msra.mxu0 %v943_v42  ;;  %v3112_v52 = vpop.f32.mrf.mxu0  ;;  %v1251_v40 = vld [vmem:[%s8453_s20 + $0x1950] sm:$0xff]  ;;  %v1054_v42 = vld [vmem:[%s8453_s20 + $0x1328] sm:$0xff] }
 0x1ab   : > { %3616 = vmatprep.subr.mxu1 %v842_v44  ;;  %3655 = vmatprep.subr.mxu0 %v938_v45  ;;  %v9134_v56 = vadd.f32 %v3112_v52, %v3041_v49  ;;  %v1246_v44 = vld [vmem:[%s8453_s20 + $0x1928] sm:$0xff]  ;;  %v1053_v45 = vld [vmem:[%s8453_s20 + $0x1320] sm:$0xff]  ;;  %v1047_v49 = vld [vmem:[%s8453_s20 + $0x12f0] sm:$0xff] }
 0x1ac   : > { %3617 = vmatpush2.msra.mxu1 %v841_v46  ;;  %v3043_v57 = vpop.f32.mrf.mxu1  ;;  %3656 = vmatpush1.msra.mxu0 %v937_v47  ;;  %v3114_v61 = vpop.f32.mrf.mxu0  ;;  %v1245_v46 = vld [vmem:[%s8453_s20 + $0x1920] sm:$0xff]  ;;  %v1048_v47 = vld [vmem:[%s8453_s20 + $0x12f8] sm:$0xff]  ;;  %v1234_v52 = vld [vmem:[%s8453_s20 + $0x18c8] sm:$0xff] }
 0x1ad   : > { %3618 = vmatprep.subr.mxu1 %v836_v48  ;;  %3657 = vmatprep.subr.mxu0 %v932_v50  ;;  %v9139_v63 = vadd.f32 %v3114_v61, %v3043_v57  ;;  %v1240_v48 = vld [vmem:[%s8453_s20 + $0x18f8] sm:$0xff]  ;;  %v1239_v50 = vld [vmem:[%s8453_s20 + $0x18f0] sm:$0xff] }
 0x1ae   : > { %3619 = vmatpush2.msra.mxu1 %v835_v51  ;;  %3658 = vmatpush1.msra.mxu0 %v931_v54  ;;  %v1042_v51 = vld [vmem:[%s8453_s20 + $0x12c8] sm:$0xff]  ;;  %v1041_v54 = vld [vmem:[%s8453_s20 + $0x12c0] sm:$0xff]  ;;  %v1036_v57 = vld [vmem:[%s8453_s20 + $0x1298] sm:$0xff] }
 0x1af   : > { %3620 = vmatprep.subr.mxu1 %v830_v55  ;;  %3659 = vmatprep.subr.mxu0 %v926_v58  ;;  %v1233_v55 = vld [vmem:[%s8453_s20 + $0x18c0] sm:$0xff]  ;;  %v1228_v58 = vld [vmem:[%s8453_s20 + $0x1898] sm:$0xff]  ;;  %v1227_v61 = vld [vmem:[%s8453_s20 + $0x1890] sm:$0xff] }
 0x1b0   : > { %3621 = vmatpush2.msra.mxu1 %v829_v60  ;;  %3622 = vmatprep.mubr.f32.mxu1 %v8922_v29  ;;  %v1293_v29 = vld [vmem:[%s8453_s20 + $0x1aa0] sm:$0xff]  ;;  %v1035_v60 = vld [vmem:[%s8453_s20 + $0x1290] sm:$0xff] }
 0x1b1   : > { %3660 = vmatpush1.msra.mxu0 %v925_v62  ;;  %3693 = vmatprep.mubr.f32.mxu0 %v8254_v0  ;;  %v1030_v62 = vld [vmem:[%s8453_s20 + $0x1268] sm:$0xff] }
 0x1b2   : > { %3623 = vmatmul.mubr.f32.vlgmr.msra.gmra.mxu1 %v8927_v11  ;;  %3694 = vmatmul.mubr.f32.vlgmr.msra.gmra.mxu0 %v8931_v43  ;;  %v1288_v11 = vld [vmem:[%s8453_s20 + $0x1a78] sm:$0xff]  ;;  %v1287_v43 = vld [vmem:[%s8453_s20 + $0x1a70] sm:$0xff] }
 0x1b3   : > { %3715 = vmatprep.subr.mxu0 %v1108_v1  ;;  %3786 = vmatprep.subr.mxu1 %v1300_v4  ;;  %v1222_v1 = vld [vmem:[%s8453_s20 + $0x1868] sm:$0xff]  ;;  %v1029_v4 = vld [vmem:[%s8453_s20 + $0x1260] sm:$0xff] }
 0x1b4   : > { %3716 = vmatpush1.msra.mxu0 %v1107_v5  ;;  %3787 = vmatpush1.msra.mxu1 %v1299_v17  ;;  %v1221_v5 = vld [vmem:[%s8453_s20 + $0x1860] sm:$0xff]  ;;  %v1024_v17 = vld [vmem:[%s8453_s20 + $0x1238] sm:$0xff] }
 0x1b5   : > { %3717 = vmatprep.subr.mxu0 %v1102_v6  ;;  %3788 = vmatprep.subr.mxu1 %v1294_v7  ;;  %v1216_v6 = vld [vmem:[%s8453_s20 + $0x1838] sm:$0xff]  ;;  %v1023_v7 = vld [vmem:[%s8453_s20 + $0x1230] sm:$0xff] }
 0x1b6   : > { %3718 = vmatpush1.msra.mxu0 %v1101_v9  ;;  %3789 = vmatpush1.msra.mxu1 %v1293_v29  ;;  %v9206_v9 = vcombine.high %v8562_v13, %v8562_v13  ;;  %v1215_v29 = vld [vmem:[%s8453_s20 + $0x1830] sm:$0xff]  ;;  %v1110_v13 = vld [vmem:[%s8453_s20 + $0x14e8] sm:$0xff] }
 0x1b7   : > { %3719 = vmatprep.subr.mxu0 %v1096_v59  ;;  %3790 = vmatprep.subr.mxu1 %v1288_v11  ;;  %v1018_v59 = vld [vmem:[%s8453_s20 + $0x1208] sm:$0xff] }
 0x1b8   : > { %3720 = vmatpush1.msra.mxu0 %v1095_v2  ;;  %3791 = vmatpush1.msra.mxu1 %v1287_v43  ;;  %v1210_v11 = vld [vmem:[%s8453_s20 + $0x1808] sm:$0xff]  ;;  %v1017_v2 = vld [vmem:[%s8453_s20 + $0x1200] sm:$0xff] }
 0x1b9   : > { %3721 = vmatprep.subr.mxu0 %v1090_v10  ;;  %3792 = vmatprep.subr.mxu1 %v1282_v14  ;;  %v1209_v43 = vld [vmem:[%s8453_s20 + $0x1800] sm:$0xff]  ;;  %v1204_v10 = vld [vmem:[%s8453_s20 + $0x17d8] sm:$0xff]  ;;  %v9217_v14 = vrot.slane %v9206_v9, %v8555_v8 }
 0x1ba   : > { %3722 = vmatpush1.msra.mxu0 %v1089_v25  ;;  %3793 = vmatpush1.msra.mxu1 %v1281_v15  ;;  %v1203_v25 = vld [vmem:[%s8453_s20 + $0x17d0] sm:$0xff]  ;;  %v1109_v15 = vld [vmem:[%s8453_s20 + $0x14e0] sm:$0xff] }
 0x1bb   : > { %3723 = vmatprep.subr.mxu0 %v1084_v18  ;;  %3794 = vmatprep.subr.mxu1 %v1276_v19  ;;  %v1198_v18 = vld [vmem:[%s8453_s20 + $0x17a8] sm:$0xff]  ;;  %v1104_v19 = vld [vmem:[%s8453_s20 + $0x14b8] sm:$0xff] }
 0x1bc   : > { %3724 = vmatpush1.msra.mxu0 %v1083_v20  ;;  %3795 = vmatpush1.msra.mxu1 %v1275_v21  ;;  %v1197_v20 = vld [vmem:[%s8453_s20 + $0x17a0] sm:$0xff]  ;;  %v1103_v21 = vld [vmem:[%s8453_s20 + $0x14b0] sm:$0xff] }
 0x1bd   : > { %3725 = vmatprep.subr.mxu0 %v1078_v22  ;;  %3796 = vmatprep.subr.mxu1 %v1270_v23  ;;  %v1192_v22 = vld [vmem:[%s8453_s20 + $0x1778] sm:$0xff]  ;;  %v1098_v23 = vld [vmem:[%s8453_s20 + $0x1488] sm:$0xff] }
 0x1be   : > { %3726 = vmatpush1.msra.mxu0 %v1077_v24  ;;  %3797 = vmatpush1.msra.mxu1 %v1269_v26  ;;  %v1191_v24 = vld [vmem:[%s8453_s20 + $0x1770] sm:$0xff]  ;;  %v1097_v26 = vld [vmem:[%s8453_s20 + $0x1480] sm:$0xff] }
 0x1bf   : > { %3727 = vmatprep.subr.mxu0 %v1072_v27  ;;  %3798 = vmatprep.subr.mxu1 %v1264_v28  ;;  %v1186_v27 = vld [vmem:[%s8453_s20 + $0x1748] sm:$0xff]  ;;  %v1092_v28 = vld [vmem:[%s8453_s20 + $0x1458] sm:$0xff] }
 0x1c0   : > { %3728 = vmatpush1.msra.mxu0 %v1071_v30  ;;  %3799 = vmatpush1.msra.mxu1 %v1263_v31  ;;  %v1185_v30 = vld [vmem:[%s8453_s20 + $0x1740] sm:$0xff]  ;;  %v1091_v31 = vld [vmem:[%s8453_s20 + $0x1450] sm:$0xff] }
 0x1c1   : > { %3729 = vmatprep.subr.mxu0 %v1066_v32  ;;  %3800 = vmatprep.subr.mxu1 %v1258_v33  ;;  %v1180_v32 = vld [vmem:[%s8453_s20 + $0x1718] sm:$0xff]  ;;  %v1086_v33 = vld [vmem:[%s8453_s20 + $0x1428] sm:$0xff] }
 0x1c2   : > { %3730 = vmatpush1.msra.mxu0 %v1065_v35  ;;  %3801 = vmatpush1.msra.mxu1 %v1257_v36  ;;  %v1179_v35 = vld [vmem:[%s8453_s20 + $0x1710] sm:$0xff]  ;;  %v1085_v36 = vld [vmem:[%s8453_s20 + $0x1420] sm:$0xff] }
 0x1c3   : > { %3731 = vmatprep.subr.mxu0 %v1060_v37  ;;  %3802 = vmatprep.subr.mxu1 %v1252_v38  ;;  %v1174_v37 = vld [vmem:[%s8453_s20 + $0x16e8] sm:$0xff]  ;;  %v1080_v38 = vld [vmem:[%s8453_s20 + $0x13f8] sm:$0xff] }
 0x1c4   : > { %3732 = vmatpush1.msra.mxu0 %v1059_v39  ;;  %3803 = vmatpush1.msra.mxu1 %v1251_v40  ;;  %v1173_v39 = vld [vmem:[%s8453_s20 + $0x16e0] sm:$0xff]  ;;  %v1079_v40 = vld [vmem:[%s8453_s20 + $0x13f0] sm:$0xff] }
 0x1c5   : > { %3733 = vmatprep.subr.mxu0 %v1054_v42  ;;  %3804 = vmatprep.subr.mxu1 %v1246_v44  ;;  %v1168_v42 = vld [vmem:[%s8453_s20 + $0x16b8] sm:$0xff]  ;;  %v1074_v44 = vld [vmem:[%s8453_s20 + $0x13c8] sm:$0xff] }
 0x1c6   : > { %3734 = vmatpush1.msra.mxu0 %v1053_v45  ;;  %3805 = vmatpush1.msra.mxu1 %v1245_v46  ;;  %v1167_v45 = vld [vmem:[%s8453_s20 + $0x16b0] sm:$0xff]  ;;  %v1073_v46 = vld [vmem:[%s8453_s20 + $0x13c0] sm:$0xff] }
 0x1c7   : > { %3735 = vmatprep.subr.mxu0 %v1048_v47  ;;  %3806 = vmatprep.subr.mxu1 %v1240_v48  ;;  %v1162_v47 = vld [vmem:[%s8453_s20 + $0x1688] sm:$0xff]  ;;  %v1068_v48 = vld [vmem:[%s8453_s20 + $0x1398] sm:$0xff] }
 0x1c8   : > { %3736 = vmatpush1.msra.mxu0 %v1047_v49  ;;  %3807 = vmatpush1.msra.mxu1 %v1239_v50  ;;  %v1161_v49 = vld [vmem:[%s8453_s20 + $0x1680] sm:$0xff]  ;;  %v1067_v50 = vld [vmem:[%s8453_s20 + $0x1390] sm:$0xff] }
 0x1c9   : > { %3737 = vmatprep.subr.mxu0 %v1042_v51  ;;  %3808 = vmatprep.subr.mxu1 %v1234_v52  ;;  %v1156_v51 = vld [vmem:[%s8453_s20 + $0x1658] sm:$0xff]  ;;  %v1062_v52 = vld [vmem:[%s8453_s20 + $0x1368] sm:$0xff] }
 0x1ca   : > { %3738 = vmatpush1.msra.mxu0 %v1041_v54  ;;  %3809 = vmatpush1.msra.mxu1 %v1233_v55  ;;  %v1155_v54 = vld [vmem:[%s8453_s20 + $0x1650] sm:$0xff]  ;;  %v1061_v55 = vld [vmem:[%s8453_s20 + $0x1360] sm:$0xff] }
 0x1cb   : > { %3739 = vmatprep.subr.mxu0 %v1036_v57  ;;  %3810 = vmatprep.subr.mxu1 %v1228_v58  ;;  %v1150_v57 = vld [vmem:[%s8453_s20 + $0x1628] sm:$0xff]  ;;  %v1056_v58 = vld [vmem:[%s8453_s20 + $0x1338] sm:$0xff] }
 0x1cc   : > { %3740 = vmatpush1.msra.mxu0 %v1035_v60  ;;  %3811 = vmatpush1.msra.mxu1 %v1227_v61  ;;  %v1149_v60 = vld [vmem:[%s8453_s20 + $0x1620] sm:$0xff]  ;;  %v1055_v61 = vld [vmem:[%s8453_s20 + $0x1330] sm:$0xff] }
 0x1cd   : > { %3741 = vmatprep.subr.mxu0 %v1030_v62  ;;  %3812 = vmatprep.subr.mxu1 %v1222_v1  ;;  %v1144_v62 = vld [vmem:[%s8453_s20 + $0x15f8] sm:$0xff]  ;;  %v1050_v1 = vld [vmem:[%s8453_s20 + $0x1308] sm:$0xff] }
 0x1ce   : > { %3742 = vmatpush1.msra.mxu0 %v1029_v4  ;;  %3813 = vmatpush1.msra.mxu1 %v1221_v5  ;;  %v1143_v4 = vld [vmem:[%s8453_s20 + $0x15f0] sm:$0xff]  ;;  %v1049_v5 = vld [vmem:[%s8453_s20 + $0x1300] sm:$0xff] }
 0x1cf   : > { %3743 = vmatprep.subr.mxu0 %v1024_v17  ;;  %3814 = vmatprep.subr.mxu1 %v1216_v6  ;;  %v1138_v17 = vld [vmem:[%s8453_s20 + $0x15c8] sm:$0xff]  ;;  %v1044_v6 = vld [vmem:[%s8453_s20 + $0x12d8] sm:$0xff] }
 0x1d0   : > { %3744 = vmatpush1.msra.mxu0 %v1023_v7  ;;  %3815 = vmatpush1.msra.mxu1 %v1215_v29  ;;  %v1137_v7 = vld [vmem:[%s8453_s20 + $0x15c0] sm:$0xff]  ;;  %v1043_v29 = vld [vmem:[%s8453_s20 + $0x12d0] sm:$0xff] }
 0x1d1   : > { %3745 = vmatprep.subr.mxu0 %v1018_v59  ;;  %3816 = vmatprep.subr.mxu1 %v1210_v11  ;;  %v1132_v59 = vld [vmem:[%s8453_s20 + $0x1598] sm:$0xff]  ;;  %v1038_v11 = vld [vmem:[%s8453_s20 + $0x12a8] sm:$0xff] }
 0x1d2   : > { %3746 = vmatpush1.msra.mxu0 %v1017_v2  ;;  %3817 = vmatpush1.msra.mxu1 %v1209_v43  ;;  %v1131_v2 = vld [vmem:[%s8453_s20 + $0x1590] sm:$0xff]  ;;  %v3254_v43 = vpop.f32.mrf.mxu1 }
 0x1d3   : > { %3747 = vmatprep.subr.mxu0 %v1204_v10  ;;  %3850 = vmatprep.mubr.f32.mxu1 %v8254_v0  ;;  %v1037_v10 = vld [vmem:[%s8453_s20 + $0x12a0] sm:$0xff] }
 0x1d4   : > { %3857 = vmatprep.subr.mxu1 %v1110_v13  ;;  %3748 = vmatpush2.msra.mxu0 %v1203_v25  ;;  %v1126_v13 = vld [vmem:[%s8453_s20 + $0x1568] sm:$0xff]  ;;  %v1032_v25 = vld [vmem:[%s8453_s20 + $0x1278] sm:$0xff] }
 0x1d5   : > { %3851 = vmatmul.mubr.f32.vlgmr.msra.gmra.mxu1 %v9217_v14  ;;  %3749 = vmatprep.subr.mxu0 %v1198_v18  ;;  %v1031_v18 = vld [vmem:[%s8453_s20 + $0x1270] sm:$0xff] }
 0x1d6   : > { %3858 = vmatpush1.msra.mxu1 %v1109_v15  ;;  %3750 = vmatpush2.msra.mxu0 %v1197_v20  ;;  %v1125_v15 = vld [vmem:[%s8453_s20 + $0x1560] sm:$0xff] }
 0x1d7   : > { %3859 = vmatprep.subr.mxu1 %v1104_v19  ;;  %3751 = vmatprep.subr.mxu0 %v1192_v22  ;;  %v1120_v19 = vld [vmem:[%s8453_s20 + $0x1538] sm:$0xff]  ;;  %v1119_v22 = vld [vmem:[%s8453_s20 + $0x1530] sm:$0xff] }
 0x1d8   : > { %3860 = vmatpush1.msra.mxu1 %v1103_v21  ;;  %3752 = vmatpush2.msra.mxu0 %v1191_v24  ;;  %v1026_v21 = vld [vmem:[%s8453_s20 + $0x1248] sm:$0xff]  ;;  %v3256_v24 = vpop.f32.mrf.mxu1 }
 0x1d9   : > { %3861 = vmatprep.subr.mxu1 %v1098_v23  ;;  %3753 = vmatprep.subr.mxu0 %v1186_v27  ;;  %v1114_v27 = vld [vmem:[%s8453_s20 + $0x1508] sm:$0xff] }
 0x1da   : > { %3862 = vmatpush1.msra.mxu1 %v1097_v26  ;;  %3754 = vmatpush2.msra.mxu0 %v1185_v30  ;;  %v1025_v26 = vld [vmem:[%s8453_s20 + $0x1240] sm:$0xff]  ;;  %v1020_v30 = vld [vmem:[%s8453_s20 + $0x1218] sm:$0xff] }
 0x1db   : > { %3863 = vmatprep.subr.mxu1 %v1092_v28  ;;  %3755 = vmatprep.subr.mxu0 %v1180_v32  ;;  %v9286_v32 = vrot.slane %v9206_v9, %v8625_v12 }
 0x1dc   : > { %3864 = vmatpush1.msra.mxu1 %v1091_v31  ;;  %3756 = vmatpush2.msra.mxu0 %v1179_v35  ;;  %v1113_v31 = vld [vmem:[%s8453_s20 + $0x1500] sm:$0xff]  ;;  %v1019_v35 = vld [vmem:[%s8453_s20 + $0x1210] sm:$0xff] }
 0x1dd   : > { %3865 = vmatprep.subr.mxu1 %v1086_v33  ;;  %3757 = vmatprep.subr.mxu0 %v1174_v37  ;;  %v1206_v37 = vld [vmem:[%s8453_s20 + $0x17e8] sm:$0xff] }
 0x1de   : > { %3866 = vmatpush1.msra.mxu1 %v1085_v36  ;;  %3758 = vmatpush2.msra.mxu0 %v1173_v39  ;;  %v9293_v36 = vrot.slane %v9206_v9, %v8630_v16  ;;  %v1205_v39 = vld [vmem:[%s8453_s20 + $0x17e0] sm:$0xff]  ;;  %v1296_v9 = vld [vmem:[%s8453_s20 + $0x1ab8] sm:$0xff] }
 0x1df   : > { %3867 = vmatprep.subr.mxu1 %v1080_v38  ;;  %3759 = vmatprep.subr.mxu0 %v1168_v42  ;;  %v1302_v38 = vld [vmem:[%s8453_s20 + $0x1ae8] sm:$0xff]  ;;  %v1200_v42 = vld [vmem:[%s8453_s20 + $0x17b8] sm:$0xff] }
 0x1e0   : > { %3868 = vmatpush1.msra.mxu1 %v1079_v40  ;;  %3760 = vmatpush2.msra.mxu0 %v1167_v45  ;;  %v1301_v40 = vld [vmem:[%s8453_s20 + $0x1ae0] sm:$0xff]  ;;  %v1295_v45 = vld [vmem:[%s8453_s20 + $0x1ab0] sm:$0xff] }
 0x1e1   : > { %3869 = vmatprep.subr.mxu1 %v1074_v44  ;;  %3761 = vmatprep.subr.mxu0 %v1162_v47  ;;  %v1199_v44 = vld [vmem:[%s8453_s20 + $0x17b0] sm:$0xff]  ;;  %v1290_v47 = vld [vmem:[%s8453_s20 + $0x1a88] sm:$0xff] }
 0x1e2   : > { %3870 = vmatpush1.msra.mxu1 %v1073_v46  ;;  %3762 = vmatpush2.msra.mxu0 %v1161_v49  ;;  %v1194_v46 = vld [vmem:[%s8453_s20 + $0x1788] sm:$0xff]  ;;  %v1289_v49 = vld [vmem:[%s8453_s20 + $0x1a80] sm:$0xff] }
 0x1e3   : > { %3871 = vmatprep.subr.mxu1 %v1068_v48  ;;  %3763 = vmatprep.subr.mxu0 %v1156_v51  ;;  %v1193_v48 = vld [vmem:[%s8453_s20 + $0x1780] sm:$0xff]  ;;  %v1284_v51 = vld [vmem:[%s8453_s20 + $0x1a58] sm:$0xff] }
 0x1e4   : > { %3872 = vmatpush1.msra.mxu1 %v1067_v50  ;;  %3764 = vmatpush2.msra.mxu0 %v1155_v54  ;;  %v1188_v50 = vld [vmem:[%s8453_s20 + $0x1758] sm:$0xff]  ;;  %v1283_v54 = vld [vmem:[%s8453_s20 + $0x1a50] sm:$0xff] }
 0x1e5   : > { %3873 = vmatprep.subr.mxu1 %v1062_v52  ;;  %3765 = vmatprep.subr.mxu0 %v1150_v57  ;;  %v1187_v52 = vld [vmem:[%s8453_s20 + $0x1750] sm:$0xff]  ;;  %v1278_v57 = vld [vmem:[%s8453_s20 + $0x1a28] sm:$0xff] }
 0x1e6   : > { %3874 = vmatpush1.msra.mxu1 %v1061_v55  ;;  %3766 = vmatpush2.msra.mxu0 %v1149_v60  ;;  %v1182_v55 = vld [vmem:[%s8453_s20 + $0x1728] sm:$0xff]  ;;  %v1277_v60 = vld [vmem:[%s8453_s20 + $0x1a20] sm:$0xff] }
 0x1e7   : > { %3875 = vmatprep.subr.mxu1 %v1056_v58  ;;  %3767 = vmatprep.subr.mxu0 %v1144_v62  ;;  %v1181_v58 = vld [vmem:[%s8453_s20 + $0x1720] sm:$0xff]  ;;  %v1272_v62 = vld [vmem:[%s8453_s20 + $0x19f8] sm:$0xff] }
 0x1e8   : > { %3876 = vmatpush1.msra.mxu1 %v1055_v61  ;;  %3768 = vmatpush2.msra.mxu0 %v1143_v4  ;;  %v1176_v61 = vld [vmem:[%s8453_s20 + $0x16f8] sm:$0xff]  ;;  %v1271_v4 = vld [vmem:[%s8453_s20 + $0x19f0] sm:$0xff] }
 0x1e9   : > { %3877 = vmatprep.subr.mxu1 %v1050_v1  ;;  %3769 = vmatprep.subr.mxu0 %v1138_v17  ;;  %v1175_v1 = vld [vmem:[%s8453_s20 + $0x16f0] sm:$0xff]  ;;  %v1266_v17 = vld [vmem:[%s8453_s20 + $0x19c8] sm:$0xff] }
 0x1ea   : > { %3878 = vmatpush1.msra.mxu1 %v1049_v5  ;;  %3770 = vmatpush2.msra.mxu0 %v1137_v7  ;;  %v1170_v5 = vld [vmem:[%s8453_s20 + $0x16c8] sm:$0xff]  ;;  %v1265_v7 = vld [vmem:[%s8453_s20 + $0x19c0] sm:$0xff] }
 0x1eb   : > { %3879 = vmatprep.subr.mxu1 %v1044_v6  ;;  %3771 = vmatprep.subr.mxu0 %v1132_v59  ;;  %v1169_v6 = vld [vmem:[%s8453_s20 + $0x16c0] sm:$0xff]  ;;  %v1260_v59 = vld [vmem:[%s8453_s20 + $0x1998] sm:$0xff] }
 0x1ec   : > { %3880 = vmatpush1.msra.mxu1 %v1043_v29  ;;  %3772 = vmatpush2.msra.mxu0 %v1131_v2  ;;  %v3183_v20 = vpop.f32.mrf.mxu0  ;;  %v1164_v29 = vld [vmem:[%s8453_s20 + $0x1698] sm:$0xff]  ;;  %v1259_v2 = vld [vmem:[%s8453_s20 + $0x1990] sm:$0xff] }
 0x1ed   : > { %3881 = vmatprep.subr.mxu1 %v1038_v11  ;;  %3773 = vmatprep.subr.mxu0 %v1126_v13  ;;  %v9278_v23 = vadd.f32 %v3254_v43, %v3183_v20  ;;  %v1163_v11 = vld [vmem:[%s8453_s20 + $0x1690] sm:$0xff]  ;;  %v1158_v43 = vld [vmem:[%s8453_s20 + $0x1668] sm:$0xff]  ;;  %v1157_v13 = vld [vmem:[%s8453_s20 + $0x1660] sm:$0xff] }
 0x1ee   : > { %3882 = vmatpush1.msra.mxu1 %v1037_v10  ;;  %3774 = vmatpush2.msra.mxu0 %v1125_v15  ;;  %v3185_v28 = vpop.f32.mrf.mxu0  ;;  %v1254_v10 = vld [vmem:[%s8453_s20 + $0x1968] sm:$0xff]  ;;  %v1152_v15 = vld [vmem:[%s8453_s20 + $0x1638] sm:$0xff]  ;;  %v1247_v20 = vld [vmem:[%s8453_s20 + $0x1930] sm:$0xff] }
 0x1ef   : > { %3883 = vmatprep.subr.mxu1 %v1032_v25  ;;  %3775 = vmatprep.subr.mxu0 %v1120_v19  ;;  %v9288_v33 = vadd.f32 %v3256_v24, %v3185_v28  ;;  %v1253_v25 = vld [vmem:[%s8453_s20 + $0x1960] sm:$0xff]  ;;  %v1151_v19 = vld [vmem:[%s8453_s20 + $0x1630] sm:$0xff]  ;;  %v1236_v28 = vld [vmem:[%s8453_s20 + $0x18d8] sm:$0xff] }
 0x1f0   : > { %3884 = vmatpush1.msra.mxu1 %v1031_v18  ;;  %3776 = vmatpush2.msra.mxu0 %v1119_v22  ;;  %v1248_v18 = vld [vmem:[%s8453_s20 + $0x1938] sm:$0xff]  ;;  %v1242_v22 = vld [vmem:[%s8453_s20 + $0x1908] sm:$0xff]  ;;  %v1145_v24 = vld [vmem:[%s8453_s20 + $0x1600] sm:$0xff] }
 0x1f1   : > { %3885 = vmatprep.subr.mxu1 %v1026_v21  ;;  %3777 = vmatprep.subr.mxu0 %v1114_v27  ;;  %v1146_v21 = vld [vmem:[%s8453_s20 + $0x1608] sm:$0xff]  ;;  %v1140_v27 = vld [vmem:[%s8453_s20 + $0x15d8] sm:$0xff] }
 0x1f2   : > { %3886 = vmatpush1.msra.mxu1 %v1025_v26  ;;  %3778 = vmatpush2.msra.mxu0 %v1113_v31  ;;  %v1241_v26 = vld [vmem:[%s8453_s20 + $0x1900] sm:$0xff]  ;;  %v1235_v31 = vld [vmem:[%s8453_s20 + $0x18d0] sm:$0xff] }
 0x1f3   : > { %3887 = vmatprep.subr.mxu1 %v1020_v30  ;;  %3779 = vmatprep.mubr.f32.mxu0 %v9286_v32  ;;  %v1139_v30 = vld [vmem:[%s8453_s20 + $0x15d0] sm:$0xff] }
 0x1f4   : > { %3888 = vmatpush1.msra.mxu1 %v1019_v35  ;;  %3780 = vmatmul.mubr.f32.vlgmr.msra.gmra.mxu0 %v9293_v36  ;;  %v1134_v35 = vld [vmem:[%s8453_s20 + $0x15a8] sm:$0xff] }
 0x1f5   : > { %3889 = vmatprep.subr.mxu1 %v1206_v37  ;;  %3928 = vmatprep.subr.mxu0 %v1302_v38  ;;  %v1230_v37 = vld [vmem:[%s8453_s20 + $0x18a8] sm:$0xff]  ;;  %v1133_v38 = vld [vmem:[%s8453_s20 + $0x15a0] sm:$0xff] }
 0x1f6   : > { %3890 = vmatpush2.msra.mxu1 %v1205_v39  ;;  %3929 = vmatpush1.msra.mxu0 %v1301_v40  ;;  %v1229_v39 = vld [vmem:[%s8453_s20 + $0x18a0] sm:$0xff]  ;;  %v1128_v40 = vld [vmem:[%s8453_s20 + $0x1578] sm:$0xff] }
 0x1f7   : > { %3891 = vmatprep.subr.mxu1 %v1200_v42  ;;  %3930 = vmatprep.subr.mxu0 %v1296_v9  ;;  %v1224_v42 = vld [vmem:[%s8453_s20 + $0x1878] sm:$0xff]  ;;  %v1127_v9 = vld [vmem:[%s8453_s20 + $0x1570] sm:$0xff] }
 0x1f8   : > { %3892 = vmatpush2.msra.mxu1 %v1199_v44  ;;  %3931 = vmatpush1.msra.mxu0 %v1295_v45  ;;  %v1223_v44 = vld [vmem:[%s8453_s20 + $0x1870] sm:$0xff]  ;;  %v1122_v45 = vld [vmem:[%s8453_s20 + $0x1548] sm:$0xff] }
 0x1f9   : > { %3893 = vmatprep.subr.mxu1 %v1194_v46  ;;  %3932 = vmatprep.subr.mxu0 %v1290_v47  ;;  %v1218_v47 = vld [vmem:[%s8453_s20 + $0x1848] sm:$0xff] }
 0x1fa   : > { %3894 = vmatpush2.msra.mxu1 %v1193_v48  ;;  %3933 = vmatpush1.msra.mxu0 %v1289_v49  ;;  %v1121_v48 = vld [vmem:[%s8453_s20 + $0x1540] sm:$0xff] }
 0x1fb   : > { %3895 = vmatprep.subr.mxu1 %v1188_v50  ;;  %3934 = vmatprep.subr.mxu0 %v1284_v51  ;;  %v1217_v50 = vld [vmem:[%s8453_s20 + $0x1840] sm:$0xff]  ;;  %v1116_v51 = vld [vmem:[%s8453_s20 + $0x1518] sm:$0xff] }
 0x1fc   : > { %3896 = vmatpush2.msra.mxu1 %v1187_v52  ;;  %3935 = vmatpush1.msra.mxu0 %v1283_v54 }
 0x1fd   : > { %3897 = vmatprep.subr.mxu1 %v1182_v55  ;;  %3936 = vmatprep.subr.mxu0 %v1278_v57  ;;  %v1212_v55 = vld [vmem:[%s8453_s20 + $0x1818] sm:$0xff]  ;;  %v1115_v57 = vld [vmem:[%s8453_s20 + $0x1510] sm:$0xff] }
 0x1fe   : > { %3898 = vmatpush2.msra.mxu1 %v1181_v58  ;;  %3937 = vmatpush1.msra.mxu0 %v1277_v60  ;;  %v1211_v60 = vld [vmem:[%s8453_s20 + $0x1810] sm:$0xff] }
 0x1ff   : > { %3899 = vmatprep.subr.mxu1 %v1176_v61  ;;  %3938 = vmatprep.subr.mxu0 %v1272_v62 }
 0x200   : > { %3900 = vmatpush2.msra.mxu1 %v1175_v1  ;;  %3939 = vmatpush1.msra.mxu0 %v1271_v4  ;;  %v1112_v4 = vld [vmem:[%s8453_s20 + $0x14f8] sm:$0xff] }
 0x201   : > { %3901 = vmatprep.subr.mxu1 %v1170_v5  ;;  %3940 = vmatprep.subr.mxu0 %v1266_v17  ;;  %v1304_v17 = vld [vmem:[%s8453_s20 + $0x1af8] sm:$0xff] }
 0x202   : > { %3902 = vmatpush2.msra.mxu1 %v1169_v6  ;;  %3941 = vmatpush1.msra.mxu0 %v1265_v7  ;;  %v1111_v6 = vld [vmem:[%s8453_s20 + $0x14f0] sm:$0xff] }
 0x203   : > { %3903 = vmatprep.subr.mxu1 %v1164_v29  ;;  %3942 = vmatprep.subr.mxu0 %v1260_v59  ;;  %v1303_v7 = vld [vmem:[%s8453_s20 + $0x1af0] sm:$0xff]  ;;  %v1106_v29 = vld [vmem:[%s8453_s20 + $0x14c8] sm:$0xff] }
 0x204   : > { %3904 = vmatpush2.msra.mxu1 %v1163_v11  ;;  %3943 = vmatpush1.msra.mxu0 %v1259_v2  ;;  %v1298_v59 = vld [vmem:[%s8453_s20 + $0x1ac8] sm:$0xff]  ;;  %v1105_v11 = vld [vmem:[%s8453_s20 + $0x14c0] sm:$0xff] }
 0x205   : > { %3905 = vmatprep.subr.mxu1 %v1158_v43  ;;  %3944 = vmatprep.subr.mxu0 %v1254_v10  ;;  %v1297_v2 = vld [vmem:[%s8453_s20 + $0x1ac0] sm:$0xff]  ;;  %v1100_v43 = vld [vmem:[%s8453_s20 + $0x1498] sm:$0xff]  ;;  %v1099_v10 = vld [vmem:[%s8453_s20 + $0x1490] sm:$0xff] }
 0x206   : > { %3906 = vmatpush2.msra.mxu1 %v1157_v13  ;;  %3945 = vmatpush1.msra.mxu0 %v1253_v25  ;;  %v1291_v13 = vld [vmem:[%s8453_s20 + $0x1a90] sm:$0xff]  ;;  %v1094_v25 = vld [vmem:[%s8453_s20 + $0x1468] sm:$0xff] }
 0x207   : > { %3907 = vmatprep.subr.mxu1 %v1152_v15  ;;  %3946 = vmatprep.subr.mxu0 %v1248_v18  ;;  %v1286_v15 = vld [vmem:[%s8453_s20 + $0x1a68] sm:$0xff]  ;;  %v1093_v18 = vld [vmem:[%s8453_s20 + $0x1460] sm:$0xff] }
 0x208   : > { %3908 = vmatpush2.msra.mxu1 %v1151_v19  ;;  %3947 = vmatpush1.msra.mxu0 %v1247_v20  ;;  %v1285_v19 = vld [vmem:[%s8453_s20 + $0x1a60] sm:$0xff]  ;;  %v1088_v20 = vld [vmem:[%s8453_s20 + $0x1438] sm:$0xff] }
 0x209   : > { %3909 = vmatprep.subr.mxu1 %v1146_v21  ;;  %3948 = vmatprep.subr.mxu0 %v1242_v22  ;;  %v1280_v21 = vld [vmem:[%s8453_s20 + $0x1a38] sm:$0xff]  ;;  %v1087_v22 = vld [vmem:[%s8453_s20 + $0x1430] sm:$0xff] }
 0x20a   : > { %3910 = vmatpush2.msra.mxu1 %v1145_v24  ;;  %3949 = vmatpush1.msra.mxu0 %v1241_v26  ;;  %v1279_v24 = vld [vmem:[%s8453_s20 + $0x1a30] sm:$0xff]  ;;  %v1082_v26 = vld [vmem:[%s8453_s20 + $0x1408] sm:$0xff] }
 0x20b   : > { %3911 = vmatprep.subr.mxu1 %v1140_v27  ;;  %3950 = vmatprep.subr.mxu0 %v1236_v28  ;;  %v1274_v27 = vld [vmem:[%s8453_s20 + $0x1a08] sm:$0xff]  ;;  %v1081_v28 = vld [vmem:[%s8453_s20 + $0x1400] sm:$0xff] }
 0x20c   : > { %3912 = vmatpush2.msra.mxu1 %v1139_v30  ;;  %3951 = vmatpush1.msra.mxu0 %v1235_v31  ;;  %v1273_v30 = vld [vmem:[%s8453_s20 + $0x1a00] sm:$0xff]  ;;  %v1076_v31 = vld [vmem:[%s8453_s20 + $0x13d8] sm:$0xff] }
 0x20d   : > { %3913 = vmatprep.subr.mxu1 %v1134_v35  ;;  %3952 = vmatprep.subr.mxu0 %v1230_v37  ;;  %v1268_v35 = vld [vmem:[%s8453_s20 + $0x19d8] sm:$0xff]  ;;  %v1075_v37 = vld [vmem:[%s8453_s20 + $0x13d0] sm:$0xff] }
 0x20e   : > { %3914 = vmatpush2.msra.mxu1 %v1133_v38  ;;  %v3340_v46 = vpop.f32.mrf.mxu1  ;;  %3953 = vmatpush1.msra.mxu0 %v1229_v39  ;;  %v3411_v49 = vpop.f32.mrf.mxu0  ;;  %v1267_v38 = vld [vmem:[%s8453_s20 + $0x19d0] sm:$0xff]  ;;  %v1070_v39 = vld [vmem:[%s8453_s20 + $0x13a8] sm:$0xff] }
 0x20f   : > { %3915 = vmatprep.subr.mxu1 %v1128_v40  ;;  %3954 = vmatprep.subr.mxu0 %v1224_v42  ;;  %v3412_v52 = vadd.f32 %v3411_v49, %v3340_v46  ;;  %v1262_v40 = vld [vmem:[%s8453_s20 + $0x19a8] sm:$0xff]  ;;  %v1069_v42 = vld [vmem:[%s8453_s20 + $0x13a0] sm:$0xff]  ;;  %v1063_v46 = vld [vmem:[%s8453_s20 + $0x1370] sm:$0xff] }
 0x210   : > { %3916 = vmatpush2.msra.mxu1 %v1127_v9  ;;  %v3342_v54 = vpop.f32.mrf.mxu1  ;;  %3955 = vmatpush1.msra.mxu0 %v1223_v44  ;;  %v3413_v58 = vpop.f32.mrf.mxu0  ;;  %v1261_v9 = vld [vmem:[%s8453_s20 + $0x19a0] sm:$0xff]  ;;  %v1064_v44 = vld [vmem:[%s8453_s20 + $0x1378] sm:$0xff]  ;;  %v1250_v49 = vld [vmem:[%s8453_s20 + $0x1948] sm:$0xff] }
 0x211   : > { %3917 = vmatprep.subr.mxu1 %v1122_v45  ;;  %3956 = vmatprep.subr.mxu0 %v1218_v47  ;;  %v6400_v61 = vrot.slane %v3412_v52, 7  ;;  %v3414_v62 = vadd.f32 %v3413_v58, %v3342_v54  ;;  %v1256_v45 = vld [vmem:[%s8453_s20 + $0x1978] sm:$0xff]  ;;  %v1255_v47 = vld [vmem:[%s8453_s20 + $0x1970] sm:$0xff]  ;;  %v1046_v58 = vld [vmem:[%s8453_s20 + $0x12e8] sm:$0xff] }
 0x212   : > { %3918 = vmatpush2.msra.mxu1 %v1121_v48  ;;  %3957 = vmatpush1.msra.mxu0 %v1217_v50  ;;  %v1058_v48 = vld [vmem:[%s8453_s20 + $0x1348] sm:$0xff]  ;;  %v1057_v50 = vld [vmem:[%s8453_s20 + $0x1340] sm:$0xff]  ;;  %v1052_v52 = vld [vmem:[%s8453_s20 + $0x1318] sm:$0xff] }
 0x213   : > { %3919 = vmatprep.subr.mxu1 %v1116_v51  ;;  %3958 = vmatprep.subr.mxu0 %v1212_v55  ;;  %v9363_v1 = vsel %vm6401_vm0, %v6400_v61, %v9062_v34  ;;  %v6421_v5 = vrot.slane %v3414_v62, 7  ;;  %v1249_v51 = vld [vmem:[%s8453_s20 + $0x1940] sm:$0xff]  ;;  %v1244_v54 = vld [vmem:[%s8453_s20 + $0x1918] sm:$0xff]  ;;  %v1051_v55 = vld [vmem:[%s8453_s20 + $0x1310] sm:$0xff] }
 0x214   : > { %3920 = vmatpush2.msra.mxu1 %v1115_v57  ;;  %3921 = vmatprep.mubr.f32.mxu1 %v9286_v32  ;;  %v1243_v57 = vld [vmem:[%s8453_s20 + $0x1910] sm:$0xff]  ;;  %v1045_v61 = vld [vmem:[%s8453_s20 + $0x12e0] sm:$0xff] }
 0x215   : > { %3959 = vmatpush1.msra.mxu0 %v1211_v60  ;;  %3992 = vmatprep.mubr.f32.mxu0 %v8254_v0  ;;  %v9374_v34 = vsel %vm6401_vm0, %v6421_v5, %v9068_v41  ;;  %v1292_v41 = vld [vmem:[%s8453_s20 + $0x1a98] sm:$0xff]  ;;  %v1238_v60 = vld [vmem:[%s8453_s20 + $0x18e8] sm:$0xff]  ;;  %v1237_v62 = vld [vmem:[%s8453_s20 + $0x18e0] sm:$0xff] }
 0x216   : > { %3922 = vmatmul.mubr.f32.vlgmr.msra.gmra.mxu1 %v9293_v36  ;;  %3993 = vmatmul.mubr.f32.vlgmr.msra.gmra.mxu0 %v9217_v14  ;;  %v1232_v5 = vld [vmem:[%s8453_s20 + $0x18b8] sm:$0xff] }
 0x217   : > { %3999 = vmatprep.subr.mxu0 %v1112_v4  ;;  %4070 = vmatprep.subr.mxu1 %v1304_v17  ;;  %v1040_v4 = vld [vmem:[%s8453_s20 + $0x12b8] sm:$0xff]  ;;  %v1039_v17 = vld [vmem:[%s8453_s20 + $0x12b0] sm:$0xff] }
 0x218   : > { %4000 = vmatpush1.msra.mxu0 %v1111_v6  ;;  %4071 = vmatpush1.msra.mxu1 %v1303_v7  ;;  %v1231_v6 = vld [vmem:[%s8453_s20 + $0x18b0] sm:$0xff]  ;;  %v1034_v7 = vld [vmem:[%s8453_s20 + $0x1288] sm:$0xff] }
 0x219   : > { %4001 = vmatprep.subr.mxu0 %v1106_v29  ;;  %4072 = vmatprep.subr.mxu1 %v1298_v59  ;;  %v1226_v29 = vld [vmem:[%s8453_s20 + $0x1888] sm:$0xff]  ;;  %v1033_v59 = vld [vmem:[%s8453_s20 + $0x1280] sm:$0xff] }
 0x21a   : > { %4002 = vmatpush1.msra.mxu0 %v1105_v11  ;;  %4073 = vmatpush1.msra.mxu1 %v1297_v2  ;;  %v1225_v11 = vld [vmem:[%s8453_s20 + $0x1880] sm:$0xff]  ;;  %v1028_v2 = vld [vmem:[%s8453_s20 + $0x1258] sm:$0xff] }
 0x21b   : > { %4003 = vmatprep.subr.mxu0 %v1100_v43  ;;  %4074 = vmatprep.subr.mxu1 %v1292_v41  ;;  %v1220_v43 = vld [vmem:[%s8453_s20 + $0x1858] sm:$0xff]  ;;  %v1027_v41 = vld [vmem:[%s8453_s20 + $0x1250] sm:$0xff] }
 0x21c   : > { %4004 = vmatpush1.msra.mxu0 %v1099_v10  ;;  %4075 = vmatpush1.msra.mxu1 %v1291_v13  ;;  %v1219_v10 = vld [vmem:[%s8453_s20 + $0x1850] sm:$0xff]  ;;  %v1022_v13 = vld [vmem:[%s8453_s20 + $0x1228] sm:$0xff] }
 0x21d   : > { %4005 = vmatprep.subr.mxu0 %v1094_v25  ;;  %4076 = vmatprep.subr.mxu1 %v1286_v15  ;;  %v1214_v25 = vld [vmem:[%s8453_s20 + $0x1828] sm:$0xff]  ;;  %v1021_v15 = vld [vmem:[%s8453_s20 + $0x1220] sm:$0xff] }
 0x21e   : > { %4006 = vmatpush1.msra.mxu0 %v1093_v18  ;;  %4077 = vmatpush1.msra.mxu1 %v1285_v19  ;;  %v1213_v18 = vld [vmem:[%s8453_s20 + $0x1820] sm:$0xff]  ;;  %v1208_v19 = vld [vmem:[%s8453_s20 + $0x17f8] sm:$0xff] }
 0x21f   : > { %4007 = vmatprep.subr.mxu0 %v1088_v20  ;;  %4078 = vmatprep.subr.mxu1 %v1280_v21  ;;  %v1396_v20 = vld [vmem:[%s8453_s20 + $0x1dd8] sm:$0xff]  ;;  %v1207_v21 = vld [vmem:[%s8453_s20 + $0x17f0] sm:$0xff] }
 0x220   : > { %4008 = vmatpush1.msra.mxu0 %v1087_v22  ;;  %4079 = vmatpush1.msra.mxu1 %v1279_v24  ;;  %v1395_v22 = vld [vmem:[%s8453_s20 + $0x1dd0] sm:$0xff]  ;;  %v1202_v24 = vld [vmem:[%s8453_s20 + $0x17c8] sm:$0xff] }
 0x221   : > { %4009 = vmatprep.subr.mxu0 %v1082_v26  ;;  %4080 = vmatprep.subr.mxu1 %v1274_v27  ;;  %v1390_v26 = vld [vmem:[%s8453_s20 + $0x1da8] sm:$0xff]  ;;  %v1201_v27 = vld [vmem:[%s8453_s20 + $0x17c0] sm:$0xff] }
 0x222   : > { %4010 = vmatpush1.msra.mxu0 %v1081_v28  ;;  %4081 = vmatpush1.msra.mxu1 %v1273_v30  ;;  %v1389_v28 = vld [vmem:[%s8453_s20 + $0x1da0] sm:$0xff]  ;;  %v1196_v30 = vld [vmem:[%s8453_s20 + $0x1798] sm:$0xff] }
 0x223   : > { %4011 = vmatprep.subr.mxu0 %v1076_v31  ;;  %4082 = vmatprep.subr.mxu1 %v1268_v35  ;;  %v1384_v31 = vld [vmem:[%s8453_s20 + $0x1d78] sm:$0xff]  ;;  %v1195_v35 = vld [vmem:[%s8453_s20 + $0x1790] sm:$0xff] }
 0x224   : > { %4012 = vmatpush1.msra.mxu0 %v1075_v37  ;;  %4083 = vmatpush1.msra.mxu1 %v1267_v38  ;;  %v1383_v37 = vld [vmem:[%s8453_s20 + $0x1d70] sm:$0xff]  ;;  %v1190_v38 = vld [vmem:[%s8453_s20 + $0x1768] sm:$0xff] }
 0x225   : > { %4013 = vmatprep.subr.mxu0 %v1070_v39  ;;  %4084 = vmatprep.subr.mxu1 %v1262_v40  ;;  %v1378_v39 = vld [vmem:[%s8453_s20 + $0x1d48] sm:$0xff]  ;;  %v1377_v40 = vld [vmem:[%s8453_s20 + $0x1d40] sm:$0xff] }
 0x226   : > { %4014 = vmatpush1.msra.mxu0 %v1069_v42  ;;  %4085 = vmatpush1.msra.mxu1 %v1261_v9  ;;  %v1184_v42 = vld [vmem:[%s8453_s20 + $0x1738] sm:$0xff] }
 0x227   : > { %4015 = vmatprep.subr.mxu0 %v1064_v44  ;;  %4086 = vmatprep.subr.mxu1 %v1256_v45  ;;  %v1372_v9 = vld [vmem:[%s8453_s20 + $0x1d18] sm:$0xff]  ;;  %v1183_v44 = vld [vmem:[%s8453_s20 + $0x1730] sm:$0xff] }
 0x228   : > { %4016 = vmatpush1.msra.mxu0 %v1063_v46  ;;  %4087 = vmatpush1.msra.mxu1 %v1255_v47  ;;  %v1371_v45 = vld [vmem:[%s8453_s20 + $0x1d10] sm:$0xff]  ;;  %v1178_v46 = vld [vmem:[%s8453_s20 + $0x1708] sm:$0xff] }
 0x229   : > { %4017 = vmatprep.subr.mxu0 %v1058_v48  ;;  %4088 = vmatprep.subr.mxu1 %v1250_v49  ;;  %v1366_v47 = vld [vmem:[%s8453_s20 + $0x1ce8] sm:$0xff]  ;;  %v1177_v48 = vld [vmem:[%s8453_s20 + $0x1700] sm:$0xff] }
 0x22a   : > { %4018 = vmatpush1.msra.mxu0 %v1057_v50  ;;  %4089 = vmatpush1.msra.mxu1 %v1249_v51  ;;  %v1365_v49 = vld [vmem:[%s8453_s20 + $0x1ce0] sm:$0xff]  ;;  %v1172_v50 = vld [vmem:[%s8453_s20 + $0x16d8] sm:$0xff] }
 0x22b   : > { %4019 = vmatprep.subr.mxu0 %v1052_v52  ;;  %4090 = vmatprep.subr.mxu1 %v1244_v54  ;;  %v1360_v51 = vld [vmem:[%s8453_s20 + $0x1cb8] sm:$0xff]  ;;  %v1171_v52 = vld [vmem:[%s8453_s20 + $0x16d0] sm:$0xff] }
 0x22c   : > { %4020 = vmatpush1.msra.mxu0 %v1051_v55  ;;  %4091 = vmatpush1.msra.mxu1 %v1243_v57  ;;  %v1359_v54 = vld [vmem:[%s8453_s20 + $0x1cb0] sm:$0xff]  ;;  %v1166_v55 = vld [vmem:[%s8453_s20 + $0x16a8] sm:$0xff] }
 0x22d   : > { %4021 = vmatprep.subr.mxu0 %v1046_v58  ;;  %4092 = vmatprep.subr.mxu1 %v1238_v60  ;;  %v1354_v57 = vld [vmem:[%s8453_s20 + $0x1c88] sm:$0xff]  ;;  %v1165_v58 = vld [vmem:[%s8453_s20 + $0x16a0] sm:$0xff] }
 0x22e   : > { %4022 = vmatpush1.msra.mxu0 %v1045_v61  ;;  %4093 = vmatpush1.msra.mxu1 %v1237_v62  ;;  %v1353_v60 = vld [vmem:[%s8453_s20 + $0x1c80] sm:$0xff]  ;;  %v1160_v61 = vld [vmem:[%s8453_s20 + $0x1678] sm:$0xff] }
 0x22f   : > { %4023 = vmatprep.subr.mxu0 %v1040_v4  ;;  %4094 = vmatprep.subr.mxu1 %v1232_v5  ;;  %v1348_v62 = vld [vmem:[%s8453_s20 + $0x1c58] sm:$0xff]  ;;  %v1159_v4 = vld [vmem:[%s8453_s20 + $0x1670] sm:$0xff] }
 0x230   : > { %4024 = vmatpush1.msra.mxu0 %v1039_v17  ;;  %4095 = vmatpush1.msra.mxu1 %v1231_v6  ;;  %v1347_v5 = vld [vmem:[%s8453_s20 + $0x1c50] sm:$0xff]  ;;  %v1154_v17 = vld [vmem:[%s8453_s20 + $0x1648] sm:$0xff] }
 0x231   : > { %4025 = vmatprep.subr.mxu0 %v1034_v7  ;;  %4096 = vmatprep.subr.mxu1 %v1226_v29  ;;  %v1342_v6 = vld [vmem:[%s8453_s20 + $0x1c28] sm:$0xff]  ;;  %v1153_v7 = vld [vmem:[%s8453_s20 + $0x1640] sm:$0xff] }
 0x232   : > { %4026 = vmatpush1.msra.mxu0 %v1033_v59  ;;  %4097 = vmatpush1.msra.mxu1 %v1225_v11  ;;  %v1341_v29 = vld [vmem:[%s8453_s20 + $0x1c20] sm:$0xff]  ;;  %v1148_v59 = vld [vmem:[%s8453_s20 + $0x1618] sm:$0xff] }
 0x233   : > { %4027 = vmatprep.subr.mxu0 %v1028_v2  ;;  %4098 = vmatprep.subr.mxu1 %v1220_v43  ;;  %v1336_v11 = vld [vmem:[%s8453_s20 + $0x1bf8] sm:$0xff]  ;;  %v1147_v2 = vld [vmem:[%s8453_s20 + $0x1610] sm:$0xff] }
 0x234   : > { %4028 = vmatpush1.msra.mxu0 %v1027_v41  ;;  %4099 = vmatpush1.msra.mxu1 %v1219_v10  ;;  %v1335_v43 = vld [vmem:[%s8453_s20 + $0x1bf0] sm:$0xff]  ;;  %v1142_v41 = vld [vmem:[%s8453_s20 + $0x15e8] sm:$0xff] }
 0x235   : > { %4029 = vmatprep.subr.mxu0 %v1022_v13  ;;  %4100 = vmatprep.subr.mxu1 %v1214_v25  ;;  %v1330_v10 = vld [vmem:[%s8453_s20 + $0x1bc8] sm:$0xff]  ;;  %v1141_v13 = vld [vmem:[%s8453_s20 + $0x15e0] sm:$0xff] }
 0x236   : > { %4030 = vmatpush1.msra.mxu0 %v1021_v15  ;;  %4101 = vmatpush1.msra.mxu1 %v1213_v18  ;;  %v1329_v25 = vld [vmem:[%s8453_s20 + $0x1bc0] sm:$0xff]  ;;  %v1136_v15 = vld [vmem:[%s8453_s20 + $0x15b8] sm:$0xff] }
 0x237   : > { %4031 = vmatprep.subr.mxu0 %v1208_v19  ;;  %4134 = vmatprep.mubr.f32.mxu1 %v8254_v0  ;;  %v1324_v18 = vld [vmem:[%s8453_s20 + $0x1b98] sm:$0xff]  ;;  %v1135_v19 = vld [vmem:[%s8453_s20 + $0x15b0] sm:$0xff] }
 0x238   : > { %4156 = vmatprep.subr.mxu1 %v1396_v20  ;;  %4032 = vmatpush2.msra.mxu0 %v1207_v21  ;;  %v3553_v20 = vpop.f32.mrf.mxu1  ;;  %v1323_v21 = vld [vmem:[%s8453_s20 + $0x1b90] sm:$0xff] }
 0x239   : > { %4135 = vmatmul.mubr.f32.vlgmr.msra.gmra.mxu1 %v9217_v14  ;;  %4033 = vmatprep.subr.mxu0 %v1202_v24  ;;  %v1189_v14 = vld [vmem:[%s8453_s20 + $0x1760] sm:$0xff]  ;;  %v1318_v24 = vld [vmem:[%s8453_s20 + $0x1b68] sm:$0xff] }
 0x23a   : > { %4157 = vmatpush1.msra.mxu1 %v1395_v22  ;;  %4034 = vmatpush2.msra.mxu0 %v1201_v27  ;;  %v1130_v22 = vld [vmem:[%s8453_s20 + $0x1588] sm:$0xff]  ;;  %v1317_v27 = vld [vmem:[%s8453_s20 + $0x1b60] sm:$0xff] }
 0x23b   : > { %4158 = vmatprep.subr.mxu1 %v1390_v26  ;;  %4035 = vmatprep.subr.mxu0 %v1196_v30  ;;  %v1129_v26 = vld [vmem:[%s8453_s20 + $0x1580] sm:$0xff] }
 0x23c   : > { %4159 = vmatpush1.msra.mxu1 %v1389_v28  ;;  %4036 = vmatpush2.msra.mxu0 %v1195_v35  ;;  %v1124_v28 = vld [vmem:[%s8453_s20 + $0x1558] sm:$0xff]  ;;  %v1123_v35 = vld [vmem:[%s8453_s20 + $0x1550] sm:$0xff] }
 0x23d   : > { %4160 = vmatprep.subr.mxu1 %v1384_v31  ;;  %4037 = vmatprep.subr.mxu0 %v1190_v38  ;;  %v1312_v31 = vld [vmem:[%s8453_s20 + $0x1b38] sm:$0xff]  ;;  %v3555_v38 = vpop.f32.mrf.mxu1 }
 0x23e   : > { %4161 = vmatpush1.msra.mxu1 %v1383_v37  ;;  %4038 = vmatpush2.msra.mxu0 %v1189_v14  ;;  %v1118_v14 = vld [vmem:[%s8453_s20 + $0x1528] sm:$0xff] }
 0x23f   : > { %4162 = vmatprep.subr.mxu1 %v1378_v39  ;;  %4039 = vmatprep.subr.mxu0 %v1184_v42  ;;  %v1311_v39 = vld [vmem:[%s8453_s20 + $0x1b30] sm:$0xff]  ;;  %v1306_v42 = vld [vmem:[%s8453_s20 + $0x1b08] sm:$0xff] }
 0x240   : > { %4163 = vmatpush1.msra.mxu1 %v1377_v40  ;;  %4040 = vmatpush2.msra.mxu0 %v1183_v44 }
 0x241   : > { %4164 = vmatprep.subr.mxu1 %v1372_v9  ;;  %4041 = vmatprep.subr.mxu0 %v1178_v46  ;;  %v1117_v9 = vld [vmem:[%s8453_s20 + $0x1520] sm:$0xff] }
 0x242   : > { %4165 = vmatpush1.msra.mxu1 %v1371_v45  ;;  %4042 = vmatpush2.msra.mxu0 %v1177_v48  ;;  %v1305_v46 = vld [vmem:[%s8453_s20 + $0x1b00] sm:$0xff]  ;;  %v1492_v48 = vld [vmem:[%s8453_s20 + $0x20d8] sm:$0xff] }
 0x243   : > { %4166 = vmatprep.subr.mxu1 %v1366_v47  ;;  %4043 = vmatprep.subr.mxu0 %v1172_v50  ;;  %v1588_v50 = vld [vmem:[%s8453_s20 + $0x23d8] sm:$0xff] }
 0x244   : > { %4167 = vmatpush1.msra.mxu1 %v1365_v49  ;;  %4044 = vmatpush2.msra.mxu0 %v1171_v52  ;;  %v1587_v52 = vld [vmem:[%s8453_s20 + $0x23d0] sm:$0xff] }
 0x245   : > { %4168 = vmatprep.subr.mxu1 %v1360_v51  ;;  %4045 = vmatprep.subr.mxu0 %v1166_v55  ;;  %v1491_v51 = vld [vmem:[%s8453_s20 + $0x20d0] sm:$0xff]  ;;  %v1582_v55 = vld [vmem:[%s8453_s20 + $0x23a8] sm:$0xff] }
 0x246   : > { %4169 = vmatpush1.msra.mxu1 %v1359_v54  ;;  %4046 = vmatpush2.msra.mxu0 %v1165_v58  ;;  %v1480_v58 = vld [vmem:[%s8453_s20 + $0x2078] sm:$0xff] }
 0x247   : > { %4170 = vmatprep.subr.mxu1 %v1354_v57  ;;  %4047 = vmatprep.subr.mxu0 %v1160_v61  ;;  %v1485_v57 = vld [vmem:[%s8453_s20 + $0x20a0] sm:$0xff]  ;;  %v1474_v61 = vld [vmem:[%s8453_s20 + $0x2048] sm:$0xff] }
 0x248   : > { %4171 = vmatpush1.msra.mxu1 %v1353_v60  ;;  %4048 = vmatpush2.msra.mxu0 %v1159_v4  ;;  %v1479_v60 = vld [vmem:[%s8453_s20 + $0x2070] sm:$0xff]  ;;  %v1473_v4 = vld [vmem:[%s8453_s20 + $0x2040] sm:$0xff] }
 0x249   : > { %4172 = vmatprep.subr.mxu1 %v1348_v62  ;;  %4049 = vmatprep.subr.mxu0 %v1154_v17  ;;  %v1570_v62 = vld [vmem:[%s8453_s20 + $0x2348] sm:$0xff]  ;;  %v1468_v17 = vld [vmem:[%s8453_s20 + $0x2018] sm:$0xff] }
 0x24a   : > { %4173 = vmatpush1.msra.mxu1 %v1347_v5  ;;  %4050 = vmatpush2.msra.mxu0 %v1153_v7  ;;  %v1569_v5 = vld [vmem:[%s8453_s20 + $0x2340] sm:$0xff]  ;;  %v1467_v7 = vld [vmem:[%s8453_s20 + $0x2010] sm:$0xff] }
 0x24b   : > { %4174 = vmatprep.subr.mxu1 %v1342_v6  ;;  %4051 = vmatprep.subr.mxu0 %v1148_v59  ;;  %v1564_v6 = vld [vmem:[%s8453_s20 + $0x2318] sm:$0xff]  ;;  %v1462_v59 = vld [vmem:[%s8453_s20 + $0x1fe8] sm:$0xff] }
 0x24c   : > { %4175 = vmatpush1.msra.mxu1 %v1341_v29  ;;  %4052 = vmatpush2.msra.mxu0 %v1147_v2  ;;  %v1563_v29 = vld [vmem:[%s8453_s20 + $0x2310] sm:$0xff]  ;;  %v1461_v2 = vld [vmem:[%s8453_s20 + $0x1fe0] sm:$0xff] }
 0x24d   : > { %4176 = vmatprep.subr.mxu1 %v1336_v11  ;;  %4053 = vmatprep.subr.mxu0 %v1142_v41  ;;  %v1558_v11 = vld [vmem:[%s8453_s20 + $0x22e8] sm:$0xff]  ;;  %v1456_v41 = vld [vmem:[%s8453_s20 + $0x1fb8] sm:$0xff] }
 0x24e   : > { %4177 = vmatpush1.msra.mxu1 %v1335_v43  ;;  %4054 = vmatpush2.msra.mxu0 %v1141_v13  ;;  %v1557_v43 = vld [vmem:[%s8453_s20 + $0x22e0] sm:$0xff]  ;;  %v1455_v13 = vld [vmem:[%s8453_s20 + $0x1fb0] sm:$0xff] }
 0x24f   : > { %4178 = vmatprep.subr.mxu1 %v1330_v10  ;;  %4055 = vmatprep.subr.mxu0 %v1136_v15  ;;  %v1552_v10 = vld [vmem:[%s8453_s20 + $0x22b8] sm:$0xff]  ;;  %v1450_v15 = vld [vmem:[%s8453_s20 + $0x1f88] sm:$0xff] }
 0x250   : > { %4179 = vmatpush1.msra.mxu1 %v1329_v25  ;;  %4056 = vmatpush2.msra.mxu0 %v1135_v19  ;;  %v3482_v30 = vpop.f32.mrf.mxu0  ;;  %v1551_v25 = vld [vmem:[%s8453_s20 + $0x22b0] sm:$0xff]  ;;  %v1449_v19 = vld [vmem:[%s8453_s20 + $0x1f80] sm:$0xff] }
 0x251   : > { %4180 = vmatprep.subr.mxu1 %v1324_v18  ;;  %4057 = vmatprep.subr.mxu0 %v1130_v22  ;;  %v3554_v37 = vadd.f32 %v3553_v20, %v3482_v30  ;;  %v1546_v18 = vld [vmem:[%s8453_s20 + $0x2288] sm:$0xff]  ;;  %v1545_v20 = vld [vmem:[%s8453_s20 + $0x2280] sm:$0xff]  ;;  %v1540_v22 = vld [vmem:[%s8453_s20 + $0x2258] sm:$0xff] }
 0x252   : > { %4181 = vmatpush1.msra.mxu1 %v1323_v21  ;;  %4058 = vmatpush2.msra.mxu0 %v1129_v26  ;;  %v3484_v40 = vpop.f32.mrf.mxu0  ;;  %v1444_v21 = vld [vmem:[%s8453_s20 + $0x1f58] sm:$0xff]  ;;  %v1539_v26 = vld [vmem:[%s8453_s20 + $0x2250] sm:$0xff]  ;;  %v1437_v30 = vld [vmem:[%s8453_s20 + $0x1f20] sm:$0xff] }
 0x253   : > { %4182 = vmatprep.subr.mxu1 %v1318_v24  ;;  %4059 = vmatprep.subr.mxu0 %v1124_v28  ;;  %v6435_v44 = vrot.slane %v3554_v37, 7  ;;  %v3556_v45 = vadd.f32 %v3555_v38, %v3484_v40  ;;  %v1443_v24 = vld [vmem:[%s8453_s20 + $0x1f50] sm:$0xff]  ;;  %v1534_v28 = vld [vmem:[%s8453_s20 + $0x2228] sm:$0xff]  ;;  %v1528_v37 = vld [vmem:[%s8453_s20 + $0x21f8] sm:$0xff] }
 0x254   : > { %4183 = vmatpush1.msra.mxu1 %v1317_v27  ;;  %4060 = vmatpush2.msra.mxu0 %v1123_v35  ;;  %v1438_v27 = vld [vmem:[%s8453_s20 + $0x1f28] sm:$0xff]  ;;  %v1432_v35 = vld [vmem:[%s8453_s20 + $0x1ef8] sm:$0xff]  ;;  %v1431_v38 = vld [vmem:[%s8453_s20 + $0x1ef0] sm:$0xff] }
 0x255   : > { %4184 = vmatprep.subr.mxu1 %v1312_v31  ;;  %4061 = vmatprep.subr.mxu0 %v1118_v14  ;;  %v9505_v47 = vsel %vm6401_vm0, %v6435_v44, %v9134_v56  ;;  %v6449_v49 = vrot.slane %v3556_v45, 7  ;;  %v1486_v56 = vld [vmem:[%s8453_s20 + $0x20a8] sm:$0xff]  ;;  %v1533_v31 = vld [vmem:[%s8453_s20 + $0x2220] sm:$0xff]  ;;  %v1420_v44 = vld [vmem:[%s8453_s20 + $0x1e98] sm:$0xff] }
 0x256   : > { %4185 = vmatpush1.msra.mxu1 %v1311_v39  ;;  %4062 = vmatpush2.msra.mxu0 %v1117_v9  ;;  %v1527_v39 = vld [vmem:[%s8453_s20 + $0x21f0] sm:$0xff]  ;;  %v1426_v14 = vld [vmem:[%s8453_s20 + $0x1ec8] sm:$0xff]  ;;  %v1521_v9 = vld [vmem:[%s8453_s20 + $0x21c0] sm:$0xff] }
 0x257   : > { %4186 = vmatprep.subr.mxu1 %v1306_v42  ;;  %4063 = vmatprep.mubr.f32.mxu0 %v9286_v32  ;;  %v9514_v54 = vsel %vm6401_vm0, %v6449_v49, %v9139_v63  ;;  %v1581_v32 = vld [vmem:[%s8453_s20 + $0x23a0] sm:$0xff]  ;;  %v1576_v63 = vld [vmem:[%s8453_s20 + $0x2378] sm:$0xff]  ;;  %v1522_v40 = vld [vmem:[%s8453_s20 + $0x21c8] sm:$0xff] }
 0x258   : > { %4187 = vmatpush1.msra.mxu1 %v1305_v46  ;;  %4064 = vmatmul.mubr.f32.vlgmr.msra.gmra.mxu0 %v9293_v36  ;;  %v1575_v36 = vld [vmem:[%s8453_s20 + $0x2370] sm:$0xff]  ;;  %v1425_v42 = vld [vmem:[%s8453_s20 + $0x1ec0] sm:$0xff]  ;;  %v1516_v45 = vld [vmem:[%s8453_s20 + $0x2198] sm:$0xff] }
 0x259   : > { %4188 = vmatprep.subr.mxu1 %v1492_v48  ;;  %4227 = vmatprep.subr.mxu0 %v1588_v50  ;;  %v1419_v46 = vld [vmem:[%s8453_s20 + $0x1e90] sm:$0xff]  ;;  %v1414_v49 = vld [vmem:[%s8453_s20 + $0x1e68] sm:$0xff] }
 0x25a   : > { %4189 = vmatpush2.msra.mxu1 %v1491_v51  ;;  %4228 = vmatpush1.msra.mxu0 %v1587_v52  ;;  %v1515_v48 = vld [vmem:[%s8453_s20 + $0x2190] sm:$0xff]  ;;  %v1510_v50 = vld [vmem:[%s8453_s20 + $0x2168] sm:$0xff]  ;;  %v1413_v51 = vld [vmem:[%s8453_s20 + $0x1e60] sm:$0xff]  ;;  %v2816_v52 = vcombine.high %v8910_v3, %v8910_v3 }
 0x25b   : > { %4190 = vmatprep.subr.mxu1 %v1486_v56  ;;  %4229 = vmatprep.subr.mxu0 %v1582_v55  ;;  %v1509_v56 = vld [vmem:[%s8453_s20 + $0x2160] sm:$0xff]  ;;  %v1408_v55 = vld [vmem:[%s8453_s20 + $0x1e38] sm:$0xff]  ;;  %v1498_v3 = vld [vmem:[%s8453_s20 + $0x2108] sm:$0xff] }
 0x25c   : > { %4191 = vmatpush2.msra.mxu1 %v1485_v57  ;;  %4230 = vmatpush1.msra.mxu0 %v1581_v32  ;;  %v1504_v32 = vld [vmem:[%s8453_s20 + $0x2138] sm:$0xff] }
 0x25d   : > { %4192 = vmatprep.subr.mxu1 %v1480_v58  ;;  %4231 = vmatprep.subr.mxu0 %v1576_v63  ;;  %v1407_v58 = vld [vmem:[%s8453_s20 + $0x1e30] sm:$0xff] }
 0x25e   : > { %4193 = vmatpush2.msra.mxu1 %v1479_v60  ;;  %4232 = vmatpush1.msra.mxu0 %v1575_v36  ;;  %v1503_v60 = vld [vmem:[%s8453_s20 + $0x2130] sm:$0xff]  ;;  %v1402_v36 = vld [vmem:[%s8453_s20 + $0x1e08] sm:$0xff] }
 0x25f   : > { %4194 = vmatprep.subr.mxu1 %v1474_v61  ;;  %4233 = vmatprep.subr.mxu0 %v1570_v62 }
 0x260   : > { %4195 = vmatpush2.msra.mxu1 %v1473_v4  ;;  %4234 = vmatpush1.msra.mxu0 %v1569_v5  ;;  %v1401_v4 = vld [vmem:[%s8453_s20 + $0x1e00] sm:$0xff]  ;;  %v9579_v5 = vrot.slane %v2816_v52, %v8625_v12 }
 0x261   : > { %4196 = vmatprep.subr.mxu1 %v1468_v17  ;;  %4235 = vmatprep.subr.mxu0 %v1564_v6  ;;  %v1497_v6 = vld [vmem:[%s8453_s20 + $0x2100] sm:$0xff] }
 0x262   : > { %4197 = vmatpush2.msra.mxu1 %v1467_v7  ;;  %4236 = vmatpush1.msra.mxu0 %v1563_v29  ;;  %v9583_v29 = vrot.slane %v2816_v52, %v8630_v16 }
 0x263   : > { %4198 = vmatprep.subr.mxu1 %v1462_v59  ;;  %4237 = vmatprep.subr.mxu0 %v1558_v11  ;;  %v9586_v11 = vrot.slane %v2816_v52, %v8555_v8  ;;  %v1350_v52 = vld [vmem:[%s8453_s20 + $0x1c68] sm:$0xff] }
 0x264   : > { %4199 = vmatpush2.msra.mxu1 %v1461_v2  ;;  %4238 = vmatpush1.msra.mxu0 %v1557_v43  ;;  %v1398_v43 = vld [vmem:[%s8453_s20 + $0x1de8] sm:$0xff] }
 0x265   : > { %4200 = vmatprep.subr.mxu1 %v1456_v41  ;;  %4239 = vmatprep.subr.mxu0 %v1552_v10  ;;  %v1590_v10 = vld [vmem:[%s8453_s20 + $0x23e8] sm:$0xff] }
 0x266   : > { %4201 = vmatpush2.msra.mxu1 %v1455_v13  ;;  %4240 = vmatpush1.msra.mxu0 %v1551_v25  ;;  %v1397_v13 = vld [vmem:[%s8453_s20 + $0x1de0] sm:$0xff] }
 0x267   : > { %4202 = vmatprep.subr.mxu1 %v1450_v15  ;;  %4241 = vmatprep.subr.mxu0 %v1546_v18  ;;  %v1589_v25 = vld [vmem:[%s8453_s20 + $0x23e0] sm:$0xff]  ;;  %v1392_v15 = vld [vmem:[%s8453_s20 + $0x1db8] sm:$0xff] }
 0x268   : > { %4203 = vmatpush2.msra.mxu1 %v1449_v19  ;;  %4242 = vmatpush1.msra.mxu0 %v1545_v20  ;;  %v1584_v18 = vld [vmem:[%s8453_s20 + $0x23b8] sm:$0xff]  ;;  %v1391_v19 = vld [vmem:[%s8453_s20 + $0x1db0] sm:$0xff] }
 0x269   : > { %4204 = vmatprep.subr.mxu1 %v1444_v21  ;;  %4243 = vmatprep.subr.mxu0 %v1540_v22  ;;  %v1583_v20 = vld [vmem:[%s8453_s20 + $0x23b0] sm:$0xff]  ;;  %v1386_v21 = vld [vmem:[%s8453_s20 + $0x1d88] sm:$0xff]  ;;  %v1385_v22 = vld [vmem:[%s8453_s20 + $0x1d80] sm:$0xff] }
 0x26a   : > { %4205 = vmatpush2.msra.mxu1 %v1443_v24  ;;  %4244 = vmatpush1.msra.mxu0 %v1539_v26  ;;  %v1577_v24 = vld [vmem:[%s8453_s20 + $0x2380] sm:$0xff]  ;;  %v1380_v26 = vld [vmem:[%s8453_s20 + $0x1d58] sm:$0xff] }
 0x26b   : > { %4206 = vmatprep.subr.mxu1 %v1438_v27  ;;  %4245 = vmatprep.subr.mxu0 %v1534_v28  ;;  %v1572_v27 = vld [vmem:[%s8453_s20 + $0x2358] sm:$0xff]  ;;  %v1379_v28 = vld [vmem:[%s8453_s20 + $0x1d50] sm:$0xff] }
 0x26c   : > { %4207 = vmatpush2.msra.mxu1 %v1437_v30  ;;  %4246 = vmatpush1.msra.mxu0 %v1533_v31  ;;  %v1571_v30 = vld [vmem:[%s8453_s20 + $0x2350] sm:$0xff]  ;;  %v1374_v31 = vld [vmem:[%s8453_s20 + $0x1d28] sm:$0xff] }
 0x26d   : > { %4208 = vmatprep.subr.mxu1 %v1432_v35  ;;  %4247 = vmatprep.subr.mxu0 %v1528_v37  ;;  %v1566_v35 = vld [vmem:[%s8453_s20 + $0x2328] sm:$0xff]  ;;  %v1373_v37 = vld [vmem:[%s8453_s20 + $0x1d20] sm:$0xff] }
 0x26e   : > { %4209 = vmatpush2.msra.mxu1 %v1431_v38  ;;  %4248 = vmatpush1.msra.mxu0 %v1527_v39  ;;  %v1565_v38 = vld [vmem:[%s8453_s20 + $0x2320] sm:$0xff]  ;;  %v1368_v39 = vld [vmem:[%s8453_s20 + $0x1cf8] sm:$0xff] }
 0x26f   : > { %4210 = vmatprep.subr.mxu1 %v1426_v14  ;;  %4249 = vmatprep.subr.mxu0 %v1522_v40  ;;  %v1560_v14 = vld [vmem:[%s8453_s20 + $0x22f8] sm:$0xff]  ;;  %v1367_v40 = vld [vmem:[%s8453_s20 + $0x1cf0] sm:$0xff] }
 0x270   : > { %4211 = vmatpush2.msra.mxu1 %v1425_v42  ;;  %4250 = vmatpush1.msra.mxu0 %v1521_v9  ;;  %v1559_v42 = vld [vmem:[%s8453_s20 + $0x22f0] sm:$0xff]  ;;  %v1362_v9 = vld [vmem:[%s8453_s20 + $0x1cc8] sm:$0xff] }
 0x271   : > { %4212 = vmatprep.subr.mxu1 %v1420_v44  ;;  %4251 = vmatprep.subr.mxu0 %v1516_v45  ;;  %v1554_v44 = vld [vmem:[%s8453_s20 + $0x22c8] sm:$0xff]  ;;  %v1361_v45 = vld [vmem:[%s8453_s20 + $0x1cc0] sm:$0xff] }
 0x272   : > { %4213 = vmatpush2.msra.mxu1 %v1419_v46  ;;  %v3624_v57 = vpop.f32.mrf.mxu1  ;;  %4252 = vmatpush1.msra.mxu0 %v1515_v48  ;;  %v3695_v63 = vpop.f32.mrf.mxu0  ;;  %v1553_v46 = vld [vmem:[%s8453_s20 + $0x22c0] sm:$0xff]  ;;  %v1356_v48 = vld [vmem:[%s8453_s20 + $0x1c98] sm:$0xff] }
 0x273   : > { %4214 = vmatprep.subr.mxu1 %v1414_v49  ;;  %4253 = vmatprep.subr.mxu0 %v1510_v50  ;;  %v3696_v61 = vadd.f32 %v3695_v63, %v3624_v57  ;;  %v1548_v49 = vld [vmem:[%s8453_s20 + $0x2298] sm:$0xff]  ;;  %v1355_v50 = vld [vmem:[%s8453_s20 + $0x1c90] sm:$0xff]  ;;  %v1541_v57 = vld [vmem:[%s8453_s20 + $0x2260] sm:$0xff] }
 0x274   : > { %4215 = vmatpush2.msra.mxu1 %v1413_v51  ;;  %v3626_v62 = vpop.f32.mrf.mxu1  ;;  %4254 = vmatpush1.msra.mxu0 %v1509_v56  ;;  %v3697_v17 = vpop.f32.mrf.mxu0  ;;  %v1547_v51 = vld [vmem:[%s8453_s20 + $0x2290] sm:$0xff]  ;;  %v1542_v56 = vld [vmem:[%s8453_s20 + $0x2268] sm:$0xff] }
 0x275   : > { %4216 = vmatprep.subr.mxu1 %v1408_v55  ;;  %4255 = vmatprep.subr.mxu0 %v1504_v32  ;;  %v6463_v7 = vrot.slane %v3696_v61, 7  ;;  %v3698_v59 = vadd.f32 %v3697_v17, %v3626_v62  ;;  %v1349_v55 = vld [vmem:[%s8453_s20 + $0x1c60] sm:$0xff]  ;;  %v1344_v32 = vld [vmem:[%s8453_s20 + $0x1c38] sm:$0xff]  ;;  %v1343_v63 = vld [vmem:[%s8453_s20 + $0x1c30] sm:$0xff] }
 0x276   : > { %4217 = vmatpush2.msra.mxu1 %v1407_v58  ;;  %4256 = vmatpush1.msra.mxu0 %v1503_v60  ;;  %v1536_v58 = vld [vmem:[%s8453_s20 + $0x2238] sm:$0xff]  ;;  %v1535_v60 = vld [vmem:[%s8453_s20 + $0x2230] sm:$0xff]  ;;  %v1530_v61 = vld [vmem:[%s8453_s20 + $0x2208] sm:$0xff] }
 0x277   : > { %4218 = vmatprep.subr.mxu1 %v1402_v36  ;;  %4257 = vmatprep.subr.mxu0 %v1498_v3  ;;  %v9590_v2 = vsel %vm6401_vm0, %v6463_v7, %v9278_v23  ;;  %v6477_v41 = vrot.slane %v3698_v59, 7  ;;  %v1338_v36 = vld [vmem:[%s8453_s20 + $0x1c08] sm:$0xff]  ;;  %v1337_v62 = vld [vmem:[%s8453_s20 + $0x1c00] sm:$0xff]  ;;  %v1524_v17 = vld [vmem:[%s8453_s20 + $0x21d8] sm:$0xff] }
 0x278   : > { %4219 = vmatpush2.msra.mxu1 %v1401_v4  ;;  %4220 = vmatprep.mubr.f32.mxu1 %v9579_v5  ;;  %v1529_v3 = vld [vmem:[%s8453_s20 + $0x2200] sm:$0xff]  ;;  %v1332_v4 = vld [vmem:[%s8453_s20 + $0x1bd8] sm:$0xff]  ;;  %v1523_v7 = vld [vmem:[%s8453_s20 + $0x21d0] sm:$0xff] }
 0x279   : > { %4258 = vmatpush1.msra.mxu0 %v1497_v6  ;;  %4291 = vmatprep.mubr.f32.mxu0 %v8254_v0  ;;  %v9601_v23 = vsel %vm6401_vm0, %v6477_v41, %v9288_v33  ;;  %v1578_v33 = vld [vmem:[%s8453_s20 + $0x2388] sm:$0xff]  ;;  %v1331_v6 = vld [vmem:[%s8453_s20 + $0x1bd0] sm:$0xff]  ;;  %v1325_v41 = vld [vmem:[%s8453_s20 + $0x1ba0] sm:$0xff] }
 0x27a   : > { %4221 = vmatmul.mubr.f32.vlgmr.msra.gmra.mxu1 %v9583_v29  ;;  %4292 = vmatmul.mubr.f32.vlgmr.msra.gmra.mxu0 %v9586_v11  ;;  %v1326_v59 = vld [vmem:[%s8453_s20 + $0x1ba8] sm:$0xff] }
 0x27b   : > { %4298 = vmatprep.subr.mxu0 %v1398_v43  ;;  %4369 = vmatprep.subr.mxu1 %v1590_v10  ;;  %v1518_v43 = vld [vmem:[%s8453_s20 + $0x21a8] sm:$0xff]  ;;  %v1517_v10 = vld [vmem:[%s8453_s20 + $0x21a0] sm:$0xff] }
 0x27c   : > { %4299 = vmatpush1.msra.mxu0 %v1397_v13  ;;  %4370 = vmatpush1.msra.mxu1 %v1589_v25  ;;  %v1320_v13 = vld [vmem:[%s8453_s20 + $0x1b78] sm:$0xff] }
 0x27d   : > { %4300 = vmatprep.subr.mxu0 %v1392_v15  ;;  %4371 = vmatprep.subr.mxu1 %v1584_v18  ;;  %v1512_v25 = vld [vmem:[%s8453_s20 + $0x2178] sm:$0xff]  ;;  %v1319_v15 = vld [vmem:[%s8453_s20 + $0x1b70] sm:$0xff] }
 0x27e   : > { %4301 = vmatpush1.msra.mxu0 %v1391_v19  ;;  %4372 = vmatpush1.msra.mxu1 %v1583_v20  ;;  %v1511_v18 = vld [vmem:[%s8453_s20 + $0x2170] sm:$0xff]  ;;  %v1314_v19 = vld [vmem:[%s8453_s20 + $0x1b48] sm:$0xff] }
 0x27f   : > { %4302 = vmatprep.subr.mxu0 %v1386_v21  ;;  %4373 = vmatprep.subr.mxu1 %v1578_v33  ;;  %v1506_v20 = vld [vmem:[%s8453_s20 + $0x2148] sm:$0xff]  ;;  %v1313_v21 = vld [vmem:[%s8453_s20 + $0x1b40] sm:$0xff] }
 0x280   : > { %4303 = vmatpush1.msra.mxu0 %v1385_v22  ;;  %4374 = vmatpush1.msra.mxu1 %v1577_v24  ;;  %v1505_v33 = vld [vmem:[%s8453_s20 + $0x2140] sm:$0xff]  ;;  %v1308_v22 = vld [vmem:[%s8453_s20 + $0x1b18] sm:$0xff] }
 0x281   : > { %4304 = vmatprep.subr.mxu0 %v1380_v26  ;;  %4375 = vmatprep.subr.mxu1 %v1572_v27  ;;  %v1500_v24 = vld [vmem:[%s8453_s20 + $0x2118] sm:$0xff]  ;;  %v1307_v26 = vld [vmem:[%s8453_s20 + $0x1b10] sm:$0xff] }
 0x282   : > { %4305 = vmatpush1.msra.mxu0 %v1379_v28  ;;  %4376 = vmatpush1.msra.mxu1 %v1571_v30  ;;  %v1499_v27 = vld [vmem:[%s8453_s20 + $0x2110] sm:$0xff]  ;;  %v1494_v28 = vld [vmem:[%s8453_s20 + $0x20e8] sm:$0xff]  ;;  %v1400_v30 = vld [vmem:[%s8453_s20 + $0x1df8] sm:$0xff] }
 0x283   : > { %4306 = vmatprep.subr.mxu0 %v1374_v31  ;;  %4377 = vmatprep.subr.mxu1 %v1566_v35  ;;  %v1493_v31 = vld [vmem:[%s8453_s20 + $0x20e0] sm:$0xff]  ;;  %v1399_v35 = vld [vmem:[%s8453_s20 + $0x1df0] sm:$0xff] }
 0x284   : > { %4307 = vmatpush1.msra.mxu0 %v1373_v37  ;;  %4378 = vmatpush1.msra.mxu1 %v1565_v38  ;;  %v1488_v37 = vld [vmem:[%s8453_s20 + $0x20b8] sm:$0xff]  ;;  %v1394_v38 = vld [vmem:[%s8453_s20 + $0x1dc8] sm:$0xff] }
 0x285   : > { %4308 = vmatprep.subr.mxu0 %v1368_v39  ;;  %4379 = vmatprep.subr.mxu1 %v1560_v14  ;;  %v1487_v39 = vld [vmem:[%s8453_s20 + $0x20b0] sm:$0xff]  ;;  %v1393_v14 = vld [vmem:[%s8453_s20 + $0x1dc0] sm:$0xff] }
 0x286   : > { %4309 = vmatpush1.msra.mxu0 %v1367_v40  ;;  %4380 = vmatpush1.msra.mxu1 %v1559_v42  ;;  %v1482_v40 = vld [vmem:[%s8453_s20 + $0x2088] sm:$0xff]  ;;  %v1388_v42 = vld [vmem:[%s8453_s20 + $0x1d98] sm:$0xff] }
 0x287   : > { %4310 = vmatprep.subr.mxu0 %v1362_v9  ;;  %4381 = vmatprep.subr.mxu1 %v1554_v44  ;;  %v1481_v9 = vld [vmem:[%s8453_s20 + $0x2080] sm:$0xff]  ;;  %v1387_v44 = vld [vmem:[%s8453_s20 + $0x1d90] sm:$0xff] }
 0x288   : > { %4311 = vmatpush1.msra.mxu0 %v1361_v45  ;;  %4382 = vmatpush1.msra.mxu1 %v1553_v46  ;;  %v1476_v45 = vld [vmem:[%s8453_s20 + $0x2058] sm:$0xff]  ;;  %v1382_v46 = vld [vmem:[%s8453_s20 + $0x1d68] sm:$0xff] }
 0x289   : > { %4312 = vmatprep.subr.mxu0 %v1356_v48  ;;  %4383 = vmatprep.subr.mxu1 %v1548_v49  ;;  %v1475_v48 = vld [vmem:[%s8453_s20 + $0x2050] sm:$0xff]  ;;  %v1381_v49 = vld [vmem:[%s8453_s20 + $0x1d60] sm:$0xff] }
 0x28a   : > { %4313 = vmatpush1.msra.mxu0 %v1355_v50  ;;  %4384 = vmatpush1.msra.mxu1 %v1547_v51  ;;  %v1470_v50 = vld [vmem:[%s8453_s20 + $0x2028] sm:$0xff]  ;;  %v1376_v51 = vld [vmem:[%s8453_s20 + $0x1d38] sm:$0xff] }
 0x28b   : > { %4314 = vmatprep.subr.mxu0 %v1350_v52  ;;  %4385 = vmatprep.subr.mxu1 %v1542_v56  ;;  %v1469_v52 = vld [vmem:[%s8453_s20 + $0x2020] sm:$0xff]  ;;  %v1375_v56 = vld [vmem:[%s8453_s20 + $0x1d30] sm:$0xff] }
 0x28c   : > { %4315 = vmatpush1.msra.mxu0 %v1349_v55  ;;  %4386 = vmatpush1.msra.mxu1 %v1541_v57  ;;  %v1464_v55 = vld [vmem:[%s8453_s20 + $0x1ff8] sm:$0xff]  ;;  %v1370_v57 = vld [vmem:[%s8453_s20 + $0x1d08] sm:$0xff] }
 0x28d   : > { %4316 = vmatprep.subr.mxu0 %v1344_v32  ;;  %4387 = vmatprep.subr.mxu1 %v1536_v58  ;;  %v1463_v32 = vld [vmem:[%s8453_s20 + $0x1ff0] sm:$0xff]  ;;  %v1369_v58 = vld [vmem:[%s8453_s20 + $0x1d00] sm:$0xff] }
 0x28e   : > { %4317 = vmatpush1.msra.mxu0 %v1343_v63  ;;  %4388 = vmatpush1.msra.mxu1 %v1535_v60  ;;  %v1458_v63 = vld [vmem:[%s8453_s20 + $0x1fc8] sm:$0xff]  ;;  %v1364_v60 = vld [vmem:[%s8453_s20 + $0x1cd8] sm:$0xff] }
 0x28f   : > { %4318 = vmatprep.subr.mxu0 %v1338_v36  ;;  %4389 = vmatprep.subr.mxu1 %v1530_v61  ;;  %v1457_v36 = vld [vmem:[%s8453_s20 + $0x1fc0] sm:$0xff]  ;;  %v1363_v61 = vld [vmem:[%s8453_s20 + $0x1cd0] sm:$0xff] }
 0x290   : > { %4319 = vmatpush1.msra.mxu0 %v1337_v62  ;;  %4390 = vmatpush1.msra.mxu1 %v1529_v3  ;;  %v1452_v62 = vld [vmem:[%s8453_s20 + $0x1f98] sm:$0xff]  ;;  %v1358_v3 = vld [vmem:[%s8453_s20 + $0x1ca8] sm:$0xff] }
 0x291   : > { %4320 = vmatprep.subr.mxu0 %v1332_v4  ;;  %4391 = vmatprep.subr.mxu1 %v1524_v17  ;;  %v1451_v4 = vld [vmem:[%s8453_s20 + $0x1f90] sm:$0xff]  ;;  %v1357_v17 = vld [vmem:[%s8453_s20 + $0x1ca0] sm:$0xff] }
 0x292   : > { %4321 = vmatpush1.msra.mxu0 %v1331_v6  ;;  %4392 = vmatpush1.msra.mxu1 %v1523_v7  ;;  %v1446_v6 = vld [vmem:[%s8453_s20 + $0x1f68] sm:$0xff]  ;;  %v1352_v7 = vld [vmem:[%s8453_s20 + $0x1c78] sm:$0xff] }
 0x293   : > { %4322 = vmatprep.subr.mxu0 %v1326_v59  ;;  %4393 = vmatprep.subr.mxu1 %v1518_v43  ;;  %v1445_v59 = vld [vmem:[%s8453_s20 + $0x1f60] sm:$0xff]  ;;  %v1351_v43 = vld [vmem:[%s8453_s20 + $0x1c70] sm:$0xff] }
 0x294   : > { %4323 = vmatpush1.msra.mxu0 %v1325_v41  ;;  %4394 = vmatpush1.msra.mxu1 %v1517_v10  ;;  %v1440_v41 = vld [vmem:[%s8453_s20 + $0x1f38] sm:$0xff]  ;;  %v1346_v10 = vld [vmem:[%s8453_s20 + $0x1c48] sm:$0xff] }
 0x295   : > { %4324 = vmatprep.subr.mxu0 %v1320_v13  ;;  %4395 = vmatprep.subr.mxu1 %v1512_v25  ;;  %v1439_v13 = vld [vmem:[%s8453_s20 + $0x1f30] sm:$0xff]  ;;  %v1345_v25 = vld [vmem:[%s8453_s20 + $0x1c40] sm:$0xff] }
 0x296   : > { %4325 = vmatpush1.msra.mxu0 %v1319_v15  ;;  %4396 = vmatpush1.msra.mxu1 %v1511_v18  ;;  %v1434_v15 = vld [vmem:[%s8453_s20 + $0x1f08] sm:$0xff]  ;;  %v1340_v18 = vld [vmem:[%s8453_s20 + $0x1c18] sm:$0xff] }
 0x297   : > { %4326 = vmatprep.subr.mxu0 %v1314_v19  ;;  %4397 = vmatprep.subr.mxu1 %v1506_v20  ;;  %v1433_v19 = vld [vmem:[%s8453_s20 + $0x1f00] sm:$0xff]  ;;  %v1339_v20 = vld [vmem:[%s8453_s20 + $0x1c10] sm:$0xff] }
 0x298   : > { %4327 = vmatpush1.msra.mxu0 %v1313_v21  ;;  %4398 = vmatpush1.msra.mxu1 %v1505_v33  ;;  %v1428_v21 = vld [vmem:[%s8453_s20 + $0x1ed8] sm:$0xff]  ;;  %v1334_v33 = vld [vmem:[%s8453_s20 + $0x1be8] sm:$0xff] }
 0x299   : > { %4328 = vmatprep.subr.mxu0 %v1308_v22  ;;  %4399 = vmatprep.subr.mxu1 %v1500_v24  ;;  %v1427_v22 = vld [vmem:[%s8453_s20 + $0x1ed0] sm:$0xff]  ;;  %v1333_v24 = vld [vmem:[%s8453_s20 + $0x1be0] sm:$0xff] }
 0x29a   : > { %4329 = vmatpush1.msra.mxu0 %v1307_v26  ;;  %4400 = vmatpush1.msra.mxu1 %v1499_v27  ;;  %v1422_v26 = vld [vmem:[%s8453_s20 + $0x1ea8] sm:$0xff]  ;;  %v1328_v27 = vld [vmem:[%s8453_s20 + $0x1bb8] sm:$0xff] }
 0x29b   : > { %4330 = vmatprep.subr.mxu0 %v1494_v28  ;;  %4433 = vmatprep.mubr.f32.mxu1 %v8254_v0  ;;  %v1421_v28 = vld [vmem:[%s8453_s20 + $0x1ea0] sm:$0xff] }
 0x29c   : > { %4440 = vmatprep.subr.mxu1 %v1400_v30  ;;  %4331 = vmatpush2.msra.mxu0 %v1493_v31  ;;  %v1327_v30 = vld [vmem:[%s8453_s20 + $0x1bb0] sm:$0xff]  ;;  %v1416_v31 = vld [vmem:[%s8453_s20 + $0x1e78] sm:$0xff] }
 0x29d   : > { %4434 = vmatmul.mubr.f32.vlgmr.msra.gmra.mxu1 %v9586_v11  ;;  %4332 = vmatprep.subr.mxu0 %v1488_v37  ;;  %v1415_v37 = vld [vmem:[%s8453_s20 + $0x1e70] sm:$0xff] }
 0x29e   : > { %4441 = vmatpush1.msra.mxu1 %v1399_v35  ;;  %4333 = vmatpush2.msra.mxu0 %v1487_v39  ;;  %v1322_v35 = vld [vmem:[%s8453_s20 + $0x1b88] sm:$0xff] }
 0x29f   : > { %4442 = vmatprep.subr.mxu1 %v1394_v38  ;;  %4334 = vmatprep.subr.mxu0 %v1482_v40  ;;  %v1321_v38 = vld [vmem:[%s8453_s20 + $0x1b80] sm:$0xff]  ;;  %v1410_v39 = vld [vmem:[%s8453_s20 + $0x1e48] sm:$0xff] }
 0x2a0   : > { %4443 = vmatpush1.msra.mxu1 %v1393_v14  ;;  %4335 = vmatpush2.msra.mxu0 %v1481_v9  ;;  %v1316_v14 = vld [vmem:[%s8453_s20 + $0x1b58] sm:$0xff]  ;;  %v1409_v40 = vld [vmem:[%s8453_s20 + $0x1e40] sm:$0xff] }
 0x2a1   : > { %4444 = vmatprep.subr.mxu1 %v1388_v42  ;;  %4336 = vmatprep.subr.mxu0 %v1476_v45  ;;  %v1315_v42 = vld [vmem:[%s8453_s20 + $0x1b50] sm:$0xff]  ;;  %v1404_v9 = vld [vmem:[%s8453_s20 + $0x1e18] sm:$0xff] }
 0x2a2   : > { %4445 = vmatpush1.msra.mxu1 %v1387_v44  ;;  %4337 = vmatpush2.msra.mxu0 %v1475_v48  ;;  %v1310_v44 = vld [vmem:[%s8453_s20 + $0x1b28] sm:$0xff]  ;;  %v1403_v45 = vld [vmem:[%s8453_s20 + $0x1e10] sm:$0xff]  ;;  %v1496_v48 = vld [vmem:[%s8453_s20 + $0x20f8] sm:$0xff] }
 0x2a3   : > { %4446 = vmatprep.subr.mxu1 %v1382_v46  ;;  %4338 = vmatprep.subr.mxu0 %v1470_v50  ;;  %v1309_v46 = vld [vmem:[%s8453_s20 + $0x1b20] sm:$0xff]  ;;  %v1495_v50 = vld [vmem:[%s8453_s20 + $0x20f0] sm:$0xff] }
 0x2a4   : > { %4447 = vmatpush1.msra.mxu1 %v1381_v49  ;;  %4339 = vmatpush2.msra.mxu0 %v1469_v52  ;;  %v1592_v49 = vld [vmem:[%s8453_s20 + $0x23f8] sm:$0xff]  ;;  %v1490_v52 = vld [vmem:[%s8453_s20 + $0x20c8] sm:$0xff] }
 0x2a5   : > { %4448 = vmatprep.subr.mxu1 %v1376_v51  ;;  %4340 = vmatprep.subr.mxu0 %v1464_v55  ;;  %v1591_v51 = vld [vmem:[%s8453_s20 + $0x23f0] sm:$0xff]  ;;  %v1489_v55 = vld [vmem:[%s8453_s20 + $0x20c0] sm:$0xff] }
 0x2a6   : > { %4449 = vmatpush1.msra.mxu1 %v1375_v56  ;;  %4341 = vmatpush2.msra.mxu0 %v1463_v32  ;;  %v1586_v56 = vld [vmem:[%s8453_s20 + $0x23c8] sm:$0xff]  ;;  %v1484_v32 = vld [vmem:[%s8453_s20 + $0x2098] sm:$0xff] }
 0x2a7   : > { %4450 = vmatprep.subr.mxu1 %v1370_v57  ;;  %4342 = vmatprep.subr.mxu0 %v1458_v63  ;;  %v1585_v57 = vld [vmem:[%s8453_s20 + $0x23c0] sm:$0xff]  ;;  %v1483_v63 = vld [vmem:[%s8453_s20 + $0x2090] sm:$0xff] }
 0x2a8   : > { %4451 = vmatpush1.msra.mxu1 %v1369_v58  ;;  %4343 = vmatpush2.msra.mxu0 %v1457_v36  ;;  %v1580_v58 = vld [vmem:[%s8453_s20 + $0x2398] sm:$0xff]  ;;  %v1478_v36 = vld [vmem:[%s8453_s20 + $0x2068] sm:$0xff] }
 0x2a9   : > { %4452 = vmatprep.subr.mxu1 %v1364_v60  ;;  %4344 = vmatprep.subr.mxu0 %v1452_v62  ;;  %v1579_v60 = vld [vmem:[%s8453_s20 + $0x2390] sm:$0xff]  ;;  %v1477_v62 = vld [vmem:[%s8453_s20 + $0x2060] sm:$0xff] }
 0x2aa   : > { %4453 = vmatpush1.msra.mxu1 %v1363_v61  ;;  %4345 = vmatpush2.msra.mxu0 %v1451_v4  ;;  %v1574_v61 = vld [vmem:[%s8453_s20 + $0x2368] sm:$0xff]  ;;  %v1472_v4 = vld [vmem:[%s8453_s20 + $0x2038] sm:$0xff] }
 0x2ab   : > { %4454 = vmatprep.subr.mxu1 %v1358_v3  ;;  %4346 = vmatprep.subr.mxu0 %v1446_v6  ;;  %v1573_v3 = vld [vmem:[%s8453_s20 + $0x2360] sm:$0xff]  ;;  %v1471_v6 = vld [vmem:[%s8453_s20 + $0x2030] sm:$0xff] }
 0x2ac   : > { %4455 = vmatpush1.msra.mxu1 %v1357_v17  ;;  %4347 = vmatpush2.msra.mxu0 %v1445_v59  ;;  %v1568_v17 = vld [vmem:[%s8453_s20 + $0x2338] sm:$0xff]  ;;  %v1466_v59 = vld [vmem:[%s8453_s20 + $0x2008] sm:$0xff] }
 0x2ad   : > { %4456 = vmatprep.subr.mxu1 %v1352_v7  ;;  %4348 = vmatprep.subr.mxu0 %v1440_v41  ;;  %v1567_v7 = vld [vmem:[%s8453_s20 + $0x2330] sm:$0xff]  ;;  %v1465_v41 = vld [vmem:[%s8453_s20 + $0x2000] sm:$0xff] }
 0x2ae   : > { %4457 = vmatpush1.msra.mxu1 %v1351_v43  ;;  %4349 = vmatpush2.msra.mxu0 %v1439_v13  ;;  %v1562_v43 = vld [vmem:[%s8453_s20 + $0x2308] sm:$0xff]  ;;  %v1460_v13 = vld [vmem:[%s8453_s20 + $0x1fd8] sm:$0xff] }
 0x2af   : > { %4458 = vmatprep.subr.mxu1 %v1346_v10  ;;  %4350 = vmatprep.subr.mxu0 %v1434_v15  ;;  %v1561_v10 = vld [vmem:[%s8453_s20 + $0x2300] sm:$0xff]  ;;  %v1459_v15 = vld [vmem:[%s8453_s20 + $0x1fd0] sm:$0xff] }
 0x2b0   : > { %4459 = vmatpush1.msra.mxu1 %v1345_v25  ;;  %4351 = vmatpush2.msra.mxu0 %v1433_v19  ;;  %v1556_v25 = vld [vmem:[%s8453_s20 + $0x22d8] sm:$0xff]  ;;  %v1454_v19 = vld [vmem:[%s8453_s20 + $0x1fa8] sm:$0xff] }
 0x2b1   : > { %4460 = vmatprep.subr.mxu1 %v1340_v18  ;;  %4352 = vmatprep.subr.mxu0 %v1428_v21  ;;  %v1555_v18 = vld [vmem:[%s8453_s20 + $0x22d0] sm:$0xff]  ;;  %v1453_v21 = vld [vmem:[%s8453_s20 + $0x1fa0] sm:$0xff] }
 0x2b2   : > { %4461 = vmatpush1.msra.mxu1 %v1339_v20  ;;  %4353 = vmatpush2.msra.mxu0 %v1427_v22  ;;  %v1550_v20 = vld [vmem:[%s8453_s20 + $0x22a8] sm:$0xff]  ;;  %v1448_v22 = vld [vmem:[%s8453_s20 + $0x1f78] sm:$0xff] }
 0x2b3   : > { %4462 = vmatprep.subr.mxu1 %v1334_v33  ;;  %4354 = vmatprep.subr.mxu0 %v1422_v26  ;;  %v1549_v33 = vld [vmem:[%s8453_s20 + $0x22a0] sm:$0xff]  ;;  %v1447_v26 = vld [vmem:[%s8453_s20 + $0x1f70] sm:$0xff] }
 0x2b4   : > { %4463 = vmatpush1.msra.mxu1 %v1333_v24  ;;  %4355 = vmatpush2.msra.mxu0 %v1421_v28  ;;  %v1544_v24 = vld [vmem:[%s8453_s20 + $0x2278] sm:$0xff]  ;;  %v1442_v28 = vld [vmem:[%s8453_s20 + $0x1f48] sm:$0xff] }
 0x2b5   : > { %4464 = vmatprep.subr.mxu1 %v1328_v27  ;;  %4356 = vmatprep.subr.mxu0 %v1416_v31  ;;  %v1543_v27 = vld [vmem:[%s8453_s20 + $0x2270] sm:$0xff]  ;;  %v1441_v31 = vld [vmem:[%s8453_s20 + $0x1f40] sm:$0xff] }
 0x2b6   : > { %4465 = vmatpush1.msra.mxu1 %v1327_v30  ;;  %4357 = vmatpush2.msra.mxu0 %v1415_v37  ;;  %v1538_v30 = vld [vmem:[%s8453_s20 + $0x2248] sm:$0xff]  ;;  %v1436_v37 = vld [vmem:[%s8453_s20 + $0x1f18] sm:$0xff] }
 0x2b7   : > { %4466 = vmatprep.subr.mxu1 %v1322_v35  ;;  %4358 = vmatprep.subr.mxu0 %v1410_v39  ;;  %v1537_v35 = vld [vmem:[%s8453_s20 + $0x2240] sm:$0xff]  ;;  %v1435_v39 = vld [vmem:[%s8453_s20 + $0x1f10] sm:$0xff] }
 0x2b8   : > { %4467 = vmatpush1.msra.mxu1 %v1321_v38  ;;  %4359 = vmatpush2.msra.mxu0 %v1409_v40  ;;  %v1532_v38 = vld [vmem:[%s8453_s20 + $0x2218] sm:$0xff]  ;;  %v1531_v40 = vld [vmem:[%s8453_s20 + $0x2210] sm:$0xff] }
 0x2b9   : > { %4468 = vmatprep.subr.mxu1 %v1316_v14  ;;  %4360 = vmatprep.subr.mxu0 %v1404_v9  ;;  %v9775_v14 = vpop.f32.mrf.mxu1  ;;  %v9779_v9 = vpop.f32.mrf.mxu0 }
 0x2ba   : > { %4469 = vmatpush1.msra.mxu1 %v1315_v42  ;;  %4361 = vmatpush2.msra.mxu0 %v1403_v45  ;;  %v1430_v42 = vld [vmem:[%s8453_s20 + $0x1ee8] sm:$0xff]  ;;  %v1429_v45 = vld [vmem:[%s8453_s20 + $0x1ee0] sm:$0xff] }
 0x2bb   : > { %4470 = vmatprep.subr.mxu1 %v1310_v44  ;;  %4362 = vmatprep.mubr.f32.mxu0 %v9579_v5  ;;  %v1526_v44 = vld [vmem:[%s8453_s20 + $0x21e8] sm:$0xff] }
 0x2bc   : > { %4471 = vmatpush1.msra.mxu1 %v1309_v46  ;;  %4363 = vmatmul.mubr.f32.vlgmr.msra.gmra.mxu0 %v9583_v29  ;;  %v1525_v46 = vld [vmem:[%s8453_s20 + $0x21e0] sm:$0xff] }
 0x2bd   : > { %4472 = vmatprep.subr.mxu1 %v1496_v48  ;;  %4511 = vmatprep.subr.mxu0 %v1592_v49  ;;  %v1424_v48 = vld [vmem:[%s8453_s20 + $0x1eb8] sm:$0xff] }
 0x2be   : > { %4473 = vmatpush2.msra.mxu1 %v1495_v50  ;;  %4512 = vmatpush1.msra.mxu0 %v1591_v51  ;;  %v1520_v49 = vld [vmem:[%s8453_s20 + $0x21b8] sm:$0xff]  ;;  %v1423_v50 = vld [vmem:[%s8453_s20 + $0x1eb0] sm:$0xff]  ;;  %v9787_v51 = vpop.f32.mrf.mxu1 }
 0x2bf   : > { %4474 = vmatprep.subr.mxu1 %v1490_v52  ;;  %4513 = vmatprep.subr.mxu0 %v1586_v56  ;;  %v1519_v52 = vld [vmem:[%s8453_s20 + $0x21b0] sm:$0xff]  ;;  %v1418_v56 = vld [vmem:[%s8453_s20 + $0x1e88] sm:$0xff] }
 0x2c0   : > { %4475 = vmatpush2.msra.mxu1 %v1489_v55  ;;  %4514 = vmatpush1.msra.mxu0 %v1585_v57  ;;  %v9791_v55 = vpop.f32.mrf.mxu0  ;;  %v1514_v57 = vld [vmem:[%s8453_s20 + $0x2188] sm:$0xff] }
 0x2c1   : > { %4476 = vmatprep.subr.mxu1 %v1484_v32  ;;  %4515 = vmatprep.subr.mxu0 %v1580_v58  ;;  %v1417_v32 = vld [vmem:[%s8453_s20 + $0x1e80] sm:$0xff] }
 0x2c2   : > { %4477 = vmatpush2.msra.mxu1 %v1483_v63  ;;  %4516 = vmatpush1.msra.mxu0 %v1579_v60  ;;  %v1513_v58 = vld [vmem:[%s8453_s20 + $0x2180] sm:$0xff]  ;;  %v1412_v63 = vld [vmem:[%s8453_s20 + $0x1e58] sm:$0xff] }
 0x2c3   : > { %4478 = vmatprep.subr.mxu1 %v1478_v36  ;;  %4517 = vmatprep.subr.mxu0 %v1574_v61  ;;  %v1508_v36 = vld [vmem:[%s8453_s20 + $0x2158] sm:$0xff]  ;;  %v1411_v61 = vld [vmem:[%s8453_s20 + $0x1e50] sm:$0xff] }
 0x2c4   : > { %4479 = vmatpush2.msra.mxu1 %v1477_v62  ;;  %4518 = vmatpush1.msra.mxu0 %v1573_v3  ;;  %v1507_v3 = vld [vmem:[%s8453_s20 + $0x2150] sm:$0xff] }
 0x2c5   : > { %4480 = vmatprep.subr.mxu1 %v1472_v4  ;;  %4519 = vmatprep.subr.mxu0 %v1568_v17  ;;  %v1406_v4 = vld [vmem:[%s8453_s20 + $0x1e28] sm:$0xff] }
 0x2c6   : > { %4481 = vmatpush2.msra.mxu1 %v1471_v6  ;;  %4520 = vmatpush1.msra.mxu0 %v1567_v7  ;;  %v1502_v7 = vld [vmem:[%s8453_s20 + $0x2128] sm:$0xff] }
 0x2c7   : > { %4482 = vmatprep.subr.mxu1 %v1466_v59  ;;  %4521 = vmatprep.subr.mxu0 %v1562_v43  ;;  %v1405_v59 = vld [vmem:[%s8453_s20 + $0x1e20] sm:$0xff] }
 0x2c8   : > { %4483 = vmatpush2.msra.mxu1 %v1465_v41  ;;  %4522 = vmatpush1.msra.mxu0 %v1561_v10  ;;  %v1501_v41 = vld [vmem:[%s8453_s20 + $0x2120] sm:$0xff] }
 0x2c9   : > { %4484 = vmatprep.subr.mxu1 %v1460_v13  ;;  %4523 = vmatprep.subr.mxu0 %v1556_v25 }
 0x2ca   : > { %4485 = vmatpush2.msra.mxu1 %v1459_v15  ;;  %4524 = vmatpush1.msra.mxu0 %v1555_v18  ;;  %v1684_v15 = vld [vmem:[%s8453_s20 + $0x26d8] sm:$0xff] }
 0x2cb   : > { %4486 = vmatprep.subr.mxu1 %v1454_v19  ;;  %4525 = vmatprep.subr.mxu0 %v1550_v20  ;;  %v1876_v19 = vld [vmem:[%s8453_s20 + $0x2cd8] sm:$0xff]  ;;  %v1683_v20 = vld [vmem:[%s8453_s20 + $0x26d0] sm:$0xff] }
 0x2cc   : > { %4487 = vmatpush2.msra.mxu1 %v1453_v21  ;;  %4526 = vmatpush1.msra.mxu0 %v1549_v33  ;;  %v1875_v21 = vld [vmem:[%s8453_s20 + $0x2cd0] sm:$0xff]  ;;  %v1678_v33 = vld [vmem:[%s8453_s20 + $0x26a8] sm:$0xff] }
 0x2cd   : > { %4488 = vmatprep.subr.mxu1 %v1448_v22  ;;  %4527 = vmatprep.subr.mxu0 %v1544_v24  ;;  %v1677_v22 = vld [vmem:[%s8453_s20 + $0x26a0] sm:$0xff] }
 0x2ce   : > { %4489 = vmatpush2.msra.mxu1 %v1447_v26  ;;  %4528 = vmatpush1.msra.mxu0 %v1543_v27  ;;  %v1869_v24 = vld [vmem:[%s8453_s20 + $0x2ca0] sm:$0xff]  ;;  %v1671_v26 = vld [vmem:[%s8453_s20 + $0x2670] sm:$0xff]  ;;  %v1666_v27 = vld [vmem:[%s8453_s20 + $0x2648] sm:$0xff] }
 0x2cf   : > { %4490 = vmatprep.subr.mxu1 %v1442_v28  ;;  %4529 = vmatprep.subr.mxu0 %v1538_v30  ;;  %v1858_v28 = vld [vmem:[%s8453_s20 + $0x2c48] sm:$0xff]  ;;  %v1665_v30 = vld [vmem:[%s8453_s20 + $0x2640] sm:$0xff] }
 0x2d0   : > { %4491 = vmatpush2.msra.mxu1 %v1441_v31  ;;  %4530 = vmatpush1.msra.mxu0 %v1537_v35  ;;  %v1857_v31 = vld [vmem:[%s8453_s20 + $0x2c40] sm:$0xff]  ;;  %v1660_v35 = vld [vmem:[%s8453_s20 + $0x2618] sm:$0xff] }
 0x2d1   : > { %4492 = vmatprep.subr.mxu1 %v1436_v37  ;;  %4531 = vmatprep.subr.mxu0 %v1532_v38  ;;  %v1852_v37 = vld [vmem:[%s8453_s20 + $0x2c18] sm:$0xff]  ;;  %v1659_v38 = vld [vmem:[%s8453_s20 + $0x2610] sm:$0xff] }
 0x2d2   : > { %4493 = vmatpush2.msra.mxu1 %v1435_v39  ;;  %4532 = vmatpush1.msra.mxu0 %v1531_v40  ;;  %v1851_v39 = vld [vmem:[%s8453_s20 + $0x2c10] sm:$0xff]  ;;  %v1654_v40 = vld [vmem:[%s8453_s20 + $0x25e8] sm:$0xff] }
 0x2d3   : > { %4494 = vmatprep.subr.mxu1 %v1430_v42  ;;  %4533 = vmatprep.subr.mxu0 %v1526_v44  ;;  %v1846_v42 = vld [vmem:[%s8453_s20 + $0x2be8] sm:$0xff]  ;;  %v1653_v44 = vld [vmem:[%s8453_s20 + $0x25e0] sm:$0xff] }
 0x2d4   : > { %4495 = vmatpush2.msra.mxu1 %v1429_v45  ;;  %4534 = vmatpush1.msra.mxu0 %v1525_v46  ;;  %v1845_v45 = vld [vmem:[%s8453_s20 + $0x2be0] sm:$0xff]  ;;  %v1648_v46 = vld [vmem:[%s8453_s20 + $0x25b8] sm:$0xff] }
 0x2d5   : > { %4496 = vmatprep.subr.mxu1 %v1424_v48  ;;  %4535 = vmatprep.subr.mxu0 %v1520_v49  ;;  %v1840_v48 = vld [vmem:[%s8453_s20 + $0x2bb8] sm:$0xff]  ;;  %v1647_v49 = vld [vmem:[%s8453_s20 + $0x25b0] sm:$0xff] }
 0x2d6   : > { %4497 = vmatpush2.msra.mxu1 %v1423_v50  ;;  %v3923_v60 = vpop.f32.mrf.mxu1  ;;  %4536 = vmatpush1.msra.mxu0 %v1519_v52  ;;  %v3994_v62 = vpop.f32.mrf.mxu0  ;;  %v1839_v50 = vld [vmem:[%s8453_s20 + $0x2bb0] sm:$0xff]  ;;  %v1642_v52 = vld [vmem:[%s8453_s20 + $0x2588] sm:$0xff] }
 0x2d7   : > { %4498 = vmatprep.subr.mxu1 %v1418_v56  ;;  %4537 = vmatprep.subr.mxu0 %v1514_v57  ;;  %v3995_v17 = vadd.f32 %v3994_v62, %v3923_v60  ;;  %v1834_v56 = vld [vmem:[%s8453_s20 + $0x2b88] sm:$0xff]  ;;  %v1641_v57 = vld [vmem:[%s8453_s20 + $0x2580] sm:$0xff]  ;;  %v1635_v62 = vld [vmem:[%s8453_s20 + $0x2550] sm:$0xff] }
 0x2d8   : > { %4499 = vmatpush2.msra.mxu1 %v1417_v32  ;;  %v3925_v6 = vpop.f32.mrf.mxu1  ;;  %4538 = vmatpush1.msra.mxu0 %v1513_v58  ;;  %v3996_v43 = vpop.f32.mrf.mxu0  ;;  %v1833_v32 = vld [vmem:[%s8453_s20 + $0x2b80] sm:$0xff]  ;;  %v1636_v58 = vld [vmem:[%s8453_s20 + $0x2558] sm:$0xff]  ;;  %v7982_v60 = vld [vmem:[%s8461_s22 + $0x10] sm:$0xff] }
 0x2d9   : > { %4500 = vmatprep.subr.mxu1 %v1412_v63  ;;  %4539 = vmatprep.subr.mxu0 %v1508_v36  ;;  %v6437_v10 = vrot.slane %v3995_v17, 6  ;;  %v3997_v13 = vadd.f32 %v3996_v43, %v3925_v6  ;;  %v7978_v63 = vld [vmem:[%s8461_s22 + $0x4] ss:$8 sps:$4 sm:$0xff]   ;;  %v2753_v36 = vcombine.high %v7982_v60, %v7982_v60 }
 0x2da   : > { %4501 = vmatpush2.msra.mxu1 %v1411_v61  ;;  %4540 = vmatpush1.msra.mxu0 %v1507_v3  ;;  %v1828_v61 = vld [vmem:[%s8453_s20 + $0x2b58] sm:$0xff]  ;;  %v1827_v3 = vld [vmem:[%s8453_s20 + $0x2b50] sm:$0xff]  ;;  %v1822_v17 = vld [vmem:[%s8453_s20 + $0x2b28] sm:$0xff] }
 0x2db   : > { %4502 = vmatprep.subr.mxu1 %v1406_v4  ;;  %4541 = vmatprep.subr.mxu0 %v1502_v7  ;;  %v9806_v25 = vsel %vm6404_vm1, %v6437_v10, %v9505_v47  ;;  %v6451_v18 = vrot.slane %v3997_v13, 6  ;;  %v1630_v4 = vld [vmem:[%s8453_s20 + $0x2528] sm:$0xff]  ;;  %v1629_v6 = vld [vmem:[%s8453_s20 + $0x2520] sm:$0xff]  ;;  %v1816_v43 = vld [vmem:[%s8453_s20 + $0x2af8] sm:$0xff]  ;;  %v9862_v10 = vrot.slane %v7978_v63, %v8530_v53  ;;  %v9865_v13 = vrot.slane %v2753_v36, %v8530_v53 }
 0x2dc   : > { %4503 = vmatpush2.msra.mxu1 %v1405_v59  ;;  %4504 = vmatprep.mubr.f32.mxu1 %v9579_v5  ;;  %v1870_v5 = vld [vmem:[%s8453_s20 + $0x2ca8] sm:$0xff]  ;;  %v1821_v7 = vld [vmem:[%s8453_s20 + $0x2b20] sm:$0xff]  ;;  %v1624_v59 = vld [vmem:[%s8453_s20 + $0x24f8] sm:$0xff] }
 0x2dd   : > { %4542 = vmatpush1.msra.mxu0 %v1501_v41  ;;  %4575 = vmatprep.mubr.f32.mxu0 %v8254_v0  ;;  %v9817_v47 = vsel %vm6404_vm1, %v6451_v18, %v9514_v54  ;;  %v1864_v54 = vld [vmem:[%s8453_s20 + $0x2c78] sm:$0xff]  ;;  %v1623_v41 = vld [vmem:[%s8453_s20 + $0x24f0] sm:$0xff]  ;;  %v1618_v18 = vld [vmem:[%s8453_s20 + $0x24c8] sm:$0xff] }
 0x2de   : > { %4505 = vmatmul.mubr.f32.vlgmr.msra.gmra.mxu1 %v9583_v29  ;;  %4576 = vmatmul.mubr.f32.vlgmr.msra.gmra.mxu0 %v9586_v11  ;;  %v1672_v29 = vld [vmem:[%s8453_s20 + $0x2678] sm:$0xff]  ;;  %v1863_v11 = vld [vmem:[%s8453_s20 + $0x2c70] sm:$0xff]  ;;  %v1673_v60 = vld [vmem:[%s8453_s20 + $0x2680] sm:$0xff] }
 0x2df   : > { %4597 = vmatprep.subr.mxu0 %v1684_v15  ;;  %4668 = vmatprep.subr.mxu1 %v1876_v19  ;;  %v1815_v15 = vld [vmem:[%s8453_s20 + $0x2af0] sm:$0xff]  ;;  %v1810_v19 = vld [vmem:[%s8453_s20 + $0x2ac8] sm:$0xff] }
 0x2e0   : > { %4598 = vmatpush1.msra.mxu0 %v1683_v20  ;;  %4669 = vmatpush1.msra.mxu1 %v1875_v21  ;;  %v1617_v20 = vld [vmem:[%s8453_s20 + $0x24c0] sm:$0xff]  ;;  %v1767_v63 = vld [vmem:[%s8453_s20 + $0x2970] sm:$0xff]  ;;  %v1762_v36 = vld [vmem:[%s8453_s20 + $0x2948] sm:$0xff] }
 0x2e1   : > { %4599 = vmatprep.subr.mxu0 %v1678_v33  ;;  %4670 = vmatprep.subr.mxu1 %v1870_v5  ;;  %v1809_v21 = vld [vmem:[%s8453_s20 + $0x2ac0] sm:$0xff]  ;;  %v1612_v33 = vld [vmem:[%s8453_s20 + $0x2498] sm:$0xff] }
 0x2e2   : > { %4600 = vmatpush1.msra.mxu0 %v1677_v22  ;;  %4671 = vmatpush1.msra.mxu1 %v1869_v24  ;;  %v1804_v5 = vld [vmem:[%s8453_s20 + $0x2a98] sm:$0xff]  ;;  %v1611_v22 = vld [vmem:[%s8453_s20 + $0x2490] sm:$0xff]  ;;  %v2784_v24 = vcombine.low %v9862_v10, %v9865_v13 }
 0x2e3   : > { %4601 = vmatprep.subr.mxu0 %v1672_v29  ;;  %4672 = vmatprep.subr.mxu1 %v1864_v54  ;;  %v1803_v29 = vld [vmem:[%s8453_s20 + $0x2a90] sm:$0xff]  ;;  %v1606_v54 = vld [vmem:[%s8453_s20 + $0x2468] sm:$0xff] }
 0x2e4   : > { %4602 = vmatpush1.msra.mxu0 %v1671_v26  ;;  %4673 = vmatpush1.msra.mxu1 %v1863_v11  ;;  %v1798_v26 = vld [vmem:[%s8453_s20 + $0x2a68] sm:$0xff]  ;;  %v1605_v11 = vld [vmem:[%s8453_s20 + $0x2460] sm:$0xff] }
 0x2e5   : > { %4603 = vmatprep.subr.mxu0 %v1666_v27  ;;  %4674 = vmatprep.subr.mxu1 %v1858_v28  ;;  %v1797_v27 = vld [vmem:[%s8453_s20 + $0x2a60] sm:$0xff]  ;;  %v1600_v28 = vld [vmem:[%s8453_s20 + $0x2438] sm:$0xff] }
 0x2e6   : > { %4604 = vmatpush1.msra.mxu0 %v1665_v30  ;;  %4675 = vmatpush1.msra.mxu1 %v1857_v31  ;;  %v1792_v30 = vld [vmem:[%s8453_s20 + $0x2a38] sm:$0xff]  ;;  %v1599_v31 = vld [vmem:[%s8453_s20 + $0x2430] sm:$0xff] }
 0x2e7   : > { %4605 = vmatprep.subr.mxu0 %v1660_v35  ;;  %4676 = vmatprep.subr.mxu1 %v1852_v37  ;;  %v9886_v35 = vrot.slane %v2784_v24, %v8530_v53  ;;  %v1791_v37 = vld [vmem:[%s8453_s20 + $0x2a30] sm:$0xff] }
 0x2e8   : > { %4606 = vmatpush1.msra.mxu0 %v1659_v38  ;;  %4677 = vmatpush1.msra.mxu1 %v1851_v39  ;;  %v1594_v38 = vld [vmem:[%s8453_s20 + $0x2408] sm:$0xff]  ;;  %v1643_v24 = vld [vmem:[%s8453_s20 + $0x2590] sm:$0xff] }
 0x2e9   : > { %4607 = vmatprep.subr.mxu0 %v1654_v40  ;;  %4678 = vmatprep.subr.mxu1 %v1846_v42  ;;  %v1786_v39 = vld [vmem:[%s8453_s20 + $0x2a08] sm:$0xff]  ;;  %v1593_v40 = vld [vmem:[%s8453_s20 + $0x2400] sm:$0xff] }
 0x2ea   : > { %4608 = vmatpush1.msra.mxu0 %v1653_v44  ;;  %4679 = vmatpush1.msra.mxu1 %v1845_v45  ;;  %v1785_v42 = vld [vmem:[%s8453_s20 + $0x2a00] sm:$0xff]  ;;  %v1780_v44 = vld [vmem:[%s8453_s20 + $0x29d8] sm:$0xff]  ;;  %v1686_v45 = vld [vmem:[%s8453_s20 + $0x26e8] sm:$0xff] }
 0x2eb   : > { %4609 = vmatprep.subr.mxu0 %v1648_v46  ;;  %4680 = vmatprep.subr.mxu1 %v1840_v48  ;;  %v9897_v46 = vrot.slane %v9886_v35, %v8555_v8  ;;  %v1779_v48 = vld [vmem:[%s8453_s20 + $0x29d0] sm:$0xff] }
 0x2ec   : > { %4610 = vmatpush1.msra.mxu0 %v1647_v49  ;;  %4681 = vmatpush1.msra.mxu1 %v1839_v50  ;;  %v1685_v49 = vld [vmem:[%s8453_s20 + $0x26e0] sm:$0xff]  ;;  %v1774_v50 = vld [vmem:[%s8453_s20 + $0x29a8] sm:$0xff] }
 0x2ed   : > { %4611 = vmatprep.subr.mxu0 %v1642_v52  ;;  %4682 = vmatprep.subr.mxu1 %v1834_v56  ;;  %v1680_v52 = vld [vmem:[%s8453_s20 + $0x26b8] sm:$0xff]  ;;  %v1773_v56 = vld [vmem:[%s8453_s20 + $0x29a0] sm:$0xff] }
 0x2ee   : > { %4612 = vmatpush1.msra.mxu0 %v1641_v57  ;;  %4683 = vmatpush1.msra.mxu1 %v1833_v32  ;;  %v1679_v57 = vld [vmem:[%s8453_s20 + $0x26b0] sm:$0xff]  ;;  %v1768_v32 = vld [vmem:[%s8453_s20 + $0x2978] sm:$0xff] }
 0x2ef   : > { %4613 = vmatprep.subr.mxu0 %v1636_v58  ;;  %4684 = vmatprep.subr.mxu1 %v1828_v61  ;;  %v1674_v58 = vld [vmem:[%s8453_s20 + $0x2688] sm:$0xff]  ;;  %v1668_v61 = vld [vmem:[%s8453_s20 + $0x2658] sm:$0xff] }
 0x2f0   : > { %4614 = vmatpush1.msra.mxu0 %v1635_v62  ;;  %4685 = vmatpush1.msra.mxu1 %v1827_v3  ;;  %v1761_v62 = vld [vmem:[%s8453_s20 + $0x2940] sm:$0xff]  ;;  %v1667_v3 = vld [vmem:[%s8453_s20 + $0x2650] sm:$0xff] }
 0x2f1   : > { %4615 = vmatprep.subr.mxu0 %v1630_v4  ;;  %4686 = vmatprep.subr.mxu1 %v1822_v17  ;;  %v1756_v4 = vld [vmem:[%s8453_s20 + $0x2918] sm:$0xff]  ;;  %v1662_v17 = vld [vmem:[%s8453_s20 + $0x2628] sm:$0xff] }
 0x2f2   : > { %4616 = vmatpush1.msra.mxu0 %v1629_v6  ;;  %4687 = vmatpush1.msra.mxu1 %v1821_v7  ;;  %v1755_v6 = vld [vmem:[%s8453_s20 + $0x2910] sm:$0xff]  ;;  %v1661_v7 = vld [vmem:[%s8453_s20 + $0x2620] sm:$0xff] }
 0x2f3   : > { %4617 = vmatprep.subr.mxu0 %v1624_v59  ;;  %4688 = vmatprep.subr.mxu1 %v1816_v43  ;;  %v1750_v59 = vld [vmem:[%s8453_s20 + $0x28e8] sm:$0xff]  ;;  %v1656_v43 = vld [vmem:[%s8453_s20 + $0x25f8] sm:$0xff] }
 0x2f4   : > { %4618 = vmatpush1.msra.mxu0 %v1623_v41  ;;  %4689 = vmatpush1.msra.mxu1 %v1815_v15  ;;  %v1749_v41 = vld [vmem:[%s8453_s20 + $0x28e0] sm:$0xff]  ;;  %v1655_v15 = vld [vmem:[%s8453_s20 + $0x25f0] sm:$0xff] }
 0x2f5   : > { %4619 = vmatprep.subr.mxu0 %v1618_v18  ;;  %4690 = vmatprep.subr.mxu1 %v1810_v19  ;;  %v1744_v18 = vld [vmem:[%s8453_s20 + $0x28b8] sm:$0xff]  ;;  %v1650_v19 = vld [vmem:[%s8453_s20 + $0x25c8] sm:$0xff] }
 0x2f6   : > { %4620 = vmatpush1.msra.mxu0 %v1617_v20  ;;  %4691 = vmatpush1.msra.mxu1 %v1809_v21  ;;  %v1743_v20 = vld [vmem:[%s8453_s20 + $0x28b0] sm:$0xff]  ;;  %v1649_v21 = vld [vmem:[%s8453_s20 + $0x25c0] sm:$0xff] }
 0x2f7   : > { %4621 = vmatprep.subr.mxu0 %v1612_v33  ;;  %4692 = vmatprep.subr.mxu1 %v1804_v5  ;;  %v1738_v33 = vld [vmem:[%s8453_s20 + $0x2888] sm:$0xff]  ;;  %v1644_v5 = vld [vmem:[%s8453_s20 + $0x2598] sm:$0xff] }
 0x2f8   : > { %4622 = vmatpush1.msra.mxu0 %v1611_v22  ;;  %4693 = vmatpush1.msra.mxu1 %v1803_v29  ;;  %v1737_v22 = vld [vmem:[%s8453_s20 + $0x2880] sm:$0xff]  ;;  %v1732_v29 = vld [vmem:[%s8453_s20 + $0x2858] sm:$0xff] }
 0x2f9   : > { %4623 = vmatprep.subr.mxu0 %v1606_v54  ;;  %4694 = vmatprep.subr.mxu1 %v1798_v26  ;;  %v1638_v54 = vld [vmem:[%s8453_s20 + $0x2568] sm:$0xff]  ;;  %v1731_v26 = vld [vmem:[%s8453_s20 + $0x2850] sm:$0xff] }
 0x2fa   : > { %4624 = vmatpush1.msra.mxu0 %v1605_v11  ;;  %4695 = vmatpush1.msra.mxu1 %v1797_v27  ;;  %v1637_v11 = vld [vmem:[%s8453_s20 + $0x2560] sm:$0xff]  ;;  %v1726_v27 = vld [vmem:[%s8453_s20 + $0x2828] sm:$0xff] }
 0x2fb   : > { %4625 = vmatprep.subr.mxu0 %v1600_v28  ;;  %4696 = vmatprep.subr.mxu1 %v1792_v30  ;;  %v1632_v28 = vld [vmem:[%s8453_s20 + $0x2538] sm:$0xff]  ;;  %v1725_v30 = vld [vmem:[%s8453_s20 + $0x2820] sm:$0xff] }
 0x2fc   : > { %4626 = vmatpush1.msra.mxu0 %v1599_v31  ;;  %4697 = vmatpush1.msra.mxu1 %v1791_v37  ;;  %v1631_v31 = vld [vmem:[%s8453_s20 + $0x2530] sm:$0xff]  ;;  %v1720_v37 = vld [vmem:[%s8453_s20 + $0x27f8] sm:$0xff] }
 0x2fd   : > { %4627 = vmatprep.subr.mxu0 %v1594_v38  ;;  %4698 = vmatprep.subr.mxu1 %v1786_v39  ;;  %v1626_v38 = vld [vmem:[%s8453_s20 + $0x2508] sm:$0xff]  ;;  %v1719_v39 = vld [vmem:[%s8453_s20 + $0x27f0] sm:$0xff] }
 0x2fe   : > { %4628 = vmatpush1.msra.mxu0 %v1593_v40  ;;  %4699 = vmatpush1.msra.mxu1 %v1785_v42  ;;  %v1625_v40 = vld [vmem:[%s8453_s20 + $0x2500] sm:$0xff]  ;;  %v1714_v42 = vld [vmem:[%s8453_s20 + $0x27c8] sm:$0xff] }
 0x2ff   : > { %4629 = vmatprep.subr.mxu0 %v1780_v44  ;;  %4732 = vmatprep.mubr.f32.mxu1 %v8254_v0  ;;  %v1620_v44 = vld [vmem:[%s8453_s20 + $0x24d8] sm:$0xff] }
 0x300   : > { %4739 = vmatprep.subr.mxu1 %v1686_v45  ;;  %4630 = vmatpush2.msra.mxu0 %v1779_v48  ;;  %v1713_v45 = vld [vmem:[%s8453_s20 + $0x27c0] sm:$0xff]  ;;  %v1619_v48 = vld [vmem:[%s8453_s20 + $0x24d0] sm:$0xff] }
 0x301   : > { %4733 = vmatmul.mubr.f32.vlgmr.msra.gmra.mxu1 %v9897_v46  ;;  %4631 = vmatprep.subr.mxu0 %v1774_v50  ;;  %v1614_v50 = vld [vmem:[%s8453_s20 + $0x24a8] sm:$0xff] }
 0x302   : > { %4740 = vmatpush1.msra.mxu1 %v1685_v49  ;;  %4632 = vmatpush2.msra.mxu0 %v1773_v56  ;;  %v1708_v49 = vld [vmem:[%s8453_s20 + $0x2798] sm:$0xff]  ;;  %v4136_v56 = vpop.f32.mrf.mxu1 }
 0x303   : > { %4741 = vmatprep.subr.mxu1 %v1680_v52  ;;  %4633 = vmatprep.subr.mxu0 %v1768_v32  ;;  %v1707_v52 = vld [vmem:[%s8453_s20 + $0x2790] sm:$0xff]  ;;  %v1702_v32 = vld [vmem:[%s8453_s20 + $0x2768] sm:$0xff] }
 0x304   : > { %4742 = vmatpush1.msra.mxu1 %v1679_v57  ;;  %4634 = vmatpush2.msra.mxu0 %v1767_v63  ;;  %v1613_v57 = vld [vmem:[%s8453_s20 + $0x24a0] sm:$0xff] }
 0x305   : > { %4743 = vmatprep.subr.mxu1 %v1674_v58  ;;  %4635 = vmatprep.subr.mxu0 %v1762_v36  ;;  %v1608_v58 = vld [vmem:[%s8453_s20 + $0x2478] sm:$0xff]  ;;  %v1701_v63 = vld [vmem:[%s8453_s20 + $0x2760] sm:$0xff] }
 0x306   : > { %4744 = vmatpush1.msra.mxu1 %v1673_v60  ;;  %4636 = vmatpush2.msra.mxu0 %v1761_v62  ;;  %v1607_v60 = vld [vmem:[%s8453_s20 + $0x2470] sm:$0xff]  ;;  %v1696_v36 = vld [vmem:[%s8453_s20 + $0x2738] sm:$0xff]  ;;  %v1602_v62 = vld [vmem:[%s8453_s20 + $0x2448] sm:$0xff] }
 0x307   : > { %4745 = vmatprep.subr.mxu1 %v1668_v61  ;;  %4637 = vmatprep.subr.mxu0 %v1756_v4 }
 0x308   : > { %4746 = vmatpush1.msra.mxu1 %v1667_v3  ;;  %4638 = vmatpush2.msra.mxu0 %v1755_v6  ;;  %v1695_v3 = vld [vmem:[%s8453_s20 + $0x2730] sm:$0xff]  ;;  %v1601_v6 = vld [vmem:[%s8453_s20 + $0x2440] sm:$0xff] }
 0x309   : > { %4747 = vmatprep.subr.mxu1 %v1662_v17  ;;  %4639 = vmatprep.subr.mxu0 %v1750_v59  ;;  %v4138_v17 = vpop.f32.mrf.mxu1 }
 0x30a   : > { %4748 = vmatpush1.msra.mxu1 %v1661_v7  ;;  %4640 = vmatpush2.msra.mxu0 %v1749_v41  ;;  %v1690_v7 = vld [vmem:[%s8453_s20 + $0x2708] sm:$0xff]  ;;  %v1689_v41 = vld [vmem:[%s8453_s20 + $0x2700] sm:$0xff] }
 0x30b   : > { %4749 = vmatprep.subr.mxu1 %v1656_v43  ;;  %4641 = vmatprep.subr.mxu0 %v1744_v18  ;;  %v1596_v43 = vld [vmem:[%s8453_s20 + $0x2418] sm:$0xff] }
 0x30c   : > { %4750 = vmatpush1.msra.mxu1 %v1655_v15  ;;  %4642 = vmatpush2.msra.mxu0 %v1743_v20  ;;  %v9964_v15 = vrot.slane %v9886_v35, %v8625_v12  ;;  %v1595_v20 = vld [vmem:[%s8453_s20 + $0x2410] sm:$0xff] }
 0x30d   : > { %4751 = vmatprep.subr.mxu1 %v1650_v19  ;;  %4643 = vmatprep.subr.mxu0 %v1738_v33 }
 0x30e   : > { %4752 = vmatpush1.msra.mxu1 %v1649_v21  ;;  %4644 = vmatpush2.msra.mxu0 %v1737_v22  ;;  %v9969_v21 = vrot.slane %v9886_v35, %v8630_v16 }
 0x30f   : > { %4753 = vmatprep.subr.mxu1 %v1644_v5  ;;  %4645 = vmatprep.subr.mxu0 %v1732_v29  ;;  %v1782_v5 = vld [vmem:[%s8453_s20 + $0x29e8] sm:$0xff]  ;;  %v1781_v29 = vld [vmem:[%s8453_s20 + $0x29e0] sm:$0xff] }
 0x310   : > { %4754 = vmatpush1.msra.mxu1 %v1643_v24  ;;  %4646 = vmatpush2.msra.mxu0 %v1731_v26  ;;  %v1878_v24 = vld [vmem:[%s8453_s20 + $0x2ce8] sm:$0xff] }
 0x311   : > { %4755 = vmatprep.subr.mxu1 %v1638_v54  ;;  %4647 = vmatprep.subr.mxu0 %v1726_v27  ;;  %v1877_v54 = vld [vmem:[%s8453_s20 + $0x2ce0] sm:$0xff]  ;;  %v1775_v27 = vld [vmem:[%s8453_s20 + $0x29b0] sm:$0xff] }
 0x312   : > { %4756 = vmatpush1.msra.mxu1 %v1637_v11  ;;  %4648 = vmatpush2.msra.mxu0 %v1725_v30  ;;  %v1872_v11 = vld [vmem:[%s8453_s20 + $0x2cb8] sm:$0xff]  ;;  %v1770_v30 = vld [vmem:[%s8453_s20 + $0x2988] sm:$0xff] }
 0x313   : > { %4757 = vmatprep.subr.mxu1 %v1632_v28  ;;  %4649 = vmatprep.subr.mxu0 %v1720_v37  ;;  %v1871_v28 = vld [vmem:[%s8453_s20 + $0x2cb0] sm:$0xff]  ;;  %v1865_v37 = vld [vmem:[%s8453_s20 + $0x2c80] sm:$0xff] }
 0x314   : > { %4758 = vmatpush1.msra.mxu1 %v1631_v31  ;;  %4650 = vmatpush2.msra.mxu0 %v1719_v39  ;;  %v1769_v31 = vld [vmem:[%s8453_s20 + $0x2980] sm:$0xff]  ;;  %v1860_v39 = vld [vmem:[%s8453_s20 + $0x2c58] sm:$0xff] }
 0x315   : > { %4759 = vmatprep.subr.mxu1 %v1626_v38  ;;  %4651 = vmatprep.subr.mxu0 %v1714_v42  ;;  %v1764_v38 = vld [vmem:[%s8453_s20 + $0x2958] sm:$0xff]  ;;  %v1859_v42 = vld [vmem:[%s8453_s20 + $0x2c50] sm:$0xff] }
 0x316   : > { %4760 = vmatpush1.msra.mxu1 %v1625_v40  ;;  %4652 = vmatpush2.msra.mxu0 %v1713_v45  ;;  %v1763_v40 = vld [vmem:[%s8453_s20 + $0x2950] sm:$0xff]  ;;  %v1854_v45 = vld [vmem:[%s8453_s20 + $0x2c28] sm:$0xff] }
 0x317   : > { %4761 = vmatprep.subr.mxu1 %v1620_v44  ;;  %4653 = vmatprep.subr.mxu0 %v1708_v49  ;;  %v1758_v44 = vld [vmem:[%s8453_s20 + $0x2928] sm:$0xff]  ;;  %v1853_v49 = vld [vmem:[%s8453_s20 + $0x2c20] sm:$0xff] }
 0x318   : > { %4762 = vmatpush1.msra.mxu1 %v1619_v48  ;;  %4654 = vmatpush2.msra.mxu0 %v1707_v52  ;;  %v4065_v61 = vpop.f32.mrf.mxu0  ;;  %v1757_v48 = vld [vmem:[%s8453_s20 + $0x2920] sm:$0xff]  ;;  %v1848_v52 = vld [vmem:[%s8453_s20 + $0x2bf8] sm:$0xff] }
 0x319   : > { %4763 = vmatprep.subr.mxu1 %v1614_v50  ;;  %4655 = vmatprep.subr.mxu0 %v1702_v32  ;;  %v4137_v4 = vadd.f32 %v4136_v56, %v4065_v61  ;;  %v1752_v50 = vld [vmem:[%s8453_s20 + $0x28f8] sm:$0xff]  ;;  %v1751_v56 = vld [vmem:[%s8453_s20 + $0x28f0] sm:$0xff]  ;;  %v1746_v32 = vld [vmem:[%s8453_s20 + $0x28c8] sm:$0xff] }
 0x31a   : > { %4764 = vmatpush1.msra.mxu1 %v1613_v57  ;;  %4656 = vmatpush2.msra.mxu0 %v1701_v63  ;;  %v4067_v59 = vpop.f32.mrf.mxu0  ;;  %v1847_v57 = vld [vmem:[%s8453_s20 + $0x2bf0] sm:$0xff]  ;;  %v1745_v63 = vld [vmem:[%s8453_s20 + $0x28c0] sm:$0xff]  ;;  %v1836_v61 = vld [vmem:[%s8453_s20 + $0x2b98] sm:$0xff] }
 0x31b   : > { %4765 = vmatprep.subr.mxu1 %v1608_v58  ;;  %4657 = vmatprep.subr.mxu0 %v1696_v36  ;;  %v6465_v18 = vrot.slane %v4137_v4, 6  ;;  %v4139_v19 = vadd.f32 %v4138_v17, %v4067_v59  ;;  %v1842_v58 = vld [vmem:[%s8453_s20 + $0x2bc8] sm:$0xff]  ;;  %v1740_v36 = vld [vmem:[%s8453_s20 + $0x2898] sm:$0xff] }
 0x31c   : > { %4766 = vmatpush1.msra.mxu1 %v1607_v60  ;;  %4658 = vmatpush2.msra.mxu0 %v1695_v3  ;;  %v1841_v60 = vld [vmem:[%s8453_s20 + $0x2bc0] sm:$0xff]  ;;  %v1835_v3 = vld [vmem:[%s8453_s20 + $0x2b90] sm:$0xff]  ;;  %v1734_v4 = vld [vmem:[%s8453_s20 + $0x2868] sm:$0xff] }
 0x31d   : > { %4767 = vmatprep.subr.mxu1 %v1602_v62  ;;  %4659 = vmatprep.subr.mxu0 %v1690_v7  ;;  %v9973_v33 = vsel %vm6404_vm1, %v6465_v18, %v9590_v2  ;;  %v6479_v22 = vrot.slane %v4139_v19, 6  ;;  %v1776_v2 = vld [vmem:[%s8453_s20 + $0x29b8] sm:$0xff]  ;;  %v1739_v62 = vld [vmem:[%s8453_s20 + $0x2890] sm:$0xff]  ;;  %v1830_v17 = vld [vmem:[%s8453_s20 + $0x2b68] sm:$0xff] }
 0x31e   : > { %4768 = vmatpush1.msra.mxu1 %v1601_v6  ;;  %4660 = vmatpush2.msra.mxu0 %v1689_v41  ;;  %v1733_v6 = vld [vmem:[%s8453_s20 + $0x2860] sm:$0xff]  ;;  %v1728_v59 = vld [vmem:[%s8453_s20 + $0x2838] sm:$0xff]  ;;  %v1727_v41 = vld [vmem:[%s8453_s20 + $0x2830] sm:$0xff] }
 0x31f   : > { %4769 = vmatprep.subr.mxu1 %v1596_v43  ;;  %4661 = vmatprep.mubr.f32.mxu0 %v9964_v15  ;;  %v9982_v26 = vsel %vm6404_vm1, %v6479_v22, %v9601_v23  ;;  %v1866_v23 = vld [vmem:[%s8453_s20 + $0x2c88] sm:$0xff]  ;;  %v1829_v7 = vld [vmem:[%s8453_s20 + $0x2b60] sm:$0xff]  ;;  %v1824_v43 = vld [vmem:[%s8453_s20 + $0x2b38] sm:$0xff] }
 0x320   : > { %4770 = vmatpush1.msra.mxu1 %v1595_v20  ;;  %4662 = vmatmul.mubr.f32.vlgmr.msra.gmra.mxu0 %v9969_v21  ;;  %v1823_v18 = vld [vmem:[%s8453_s20 + $0x2b30] sm:$0xff]  ;;  %v1722_v19 = vld [vmem:[%s8453_s20 + $0x2808] sm:$0xff]  ;;  %v1817_v22 = vld [vmem:[%s8453_s20 + $0x2b00] sm:$0xff] }
 0x321   : > { %4771 = vmatprep.subr.mxu1 %v1782_v5  ;;  %4810 = vmatprep.subr.mxu0 %v1878_v24  ;;  %v1818_v20 = vld [vmem:[%s8453_s20 + $0x2b08] sm:$0xff]  ;;  %v1721_v5 = vld [vmem:[%s8453_s20 + $0x2800] sm:$0xff]  ;;  %v1716_v24 = vld [vmem:[%s8453_s20 + $0x27d8] sm:$0xff] }
 0x322   : > { %4772 = vmatpush2.msra.mxu1 %v1781_v29  ;;  %4811 = vmatpush1.msra.mxu0 %v1877_v54  ;;  %v1812_v29 = vld [vmem:[%s8453_s20 + $0x2ad8] sm:$0xff]  ;;  %v1715_v54 = vld [vmem:[%s8453_s20 + $0x27d0] sm:$0xff] }
 0x323   : > { %4773 = vmatprep.subr.mxu1 %v1776_v2  ;;  %4812 = vmatprep.subr.mxu0 %v1872_v11  ;;  %v1811_v2 = vld [vmem:[%s8453_s20 + $0x2ad0] sm:$0xff]  ;;  %v1710_v11 = vld [vmem:[%s8453_s20 + $0x27a8] sm:$0xff] }
 0x324   : > { %4774 = vmatpush2.msra.mxu1 %v1775_v27  ;;  %4813 = vmatpush1.msra.mxu0 %v1871_v28  ;;  %v1806_v27 = vld [vmem:[%s8453_s20 + $0x2aa8] sm:$0xff]  ;;  %v1709_v28 = vld [vmem:[%s8453_s20 + $0x27a0] sm:$0xff] }
 0x325   : > { %4775 = vmatprep.subr.mxu1 %v1770_v30  ;;  %4814 = vmatprep.subr.mxu0 %v1866_v23  ;;  %v1805_v30 = vld [vmem:[%s8453_s20 + $0x2aa0] sm:$0xff]  ;;  %v1704_v23 = vld [vmem:[%s8453_s20 + $0x2778] sm:$0xff] }
 0x326   : > { %4776 = vmatpush2.msra.mxu1 %v1769_v31  ;;  %4815 = vmatpush1.msra.mxu0 %v1865_v37  ;;  %v1800_v31 = vld [vmem:[%s8453_s20 + $0x2a78] sm:$0xff]  ;;  %v1703_v37 = vld [vmem:[%s8453_s20 + $0x2770] sm:$0xff] }
 0x327   : > { %4777 = vmatprep.subr.mxu1 %v1764_v38  ;;  %4816 = vmatprep.subr.mxu0 %v1860_v39  ;;  %v1799_v38 = vld [vmem:[%s8453_s20 + $0x2a70] sm:$0xff]  ;;  %v1698_v39 = vld [vmem:[%s8453_s20 + $0x2748] sm:$0xff] }
 0x328   : > { %4778 = vmatpush2.msra.mxu1 %v1763_v40  ;;  %4817 = vmatpush1.msra.mxu0 %v1859_v42  ;;  %v1794_v40 = vld [vmem:[%s8453_s20 + $0x2a48] sm:$0xff]  ;;  %v1697_v42 = vld [vmem:[%s8453_s20 + $0x2740] sm:$0xff] }
 0x329   : > { %4779 = vmatprep.subr.mxu1 %v1758_v44  ;;  %4818 = vmatprep.subr.mxu0 %v1854_v45  ;;  %v1793_v44 = vld [vmem:[%s8453_s20 + $0x2a40] sm:$0xff]  ;;  %v1692_v45 = vld [vmem:[%s8453_s20 + $0x2718] sm:$0xff] }
 0x32a   : > { %4780 = vmatpush2.msra.mxu1 %v1757_v48  ;;  %4819 = vmatpush1.msra.mxu0 %v1853_v49  ;;  %v1788_v48 = vld [vmem:[%s8453_s20 + $0x2a18] sm:$0xff]  ;;  %v1691_v49 = vld [vmem:[%s8453_s20 + $0x2710] sm:$0xff] }
 0x32b   : > { %4781 = vmatprep.subr.mxu1 %v1752_v50  ;;  %4820 = vmatprep.subr.mxu0 %v1848_v52  ;;  %v1787_v50 = vld [vmem:[%s8453_s20 + $0x2a10] sm:$0xff]  ;;  %v1688_v52 = vld [vmem:[%s8453_s20 + $0x26f8] sm:$0xff] }
 0x32c   : > { %4782 = vmatpush2.msra.mxu1 %v1751_v56  ;;  %4821 = vmatpush1.msra.mxu0 %v1847_v57  ;;  %v1880_v56 = vld [vmem:[%s8453_s20 + $0x2cf8] sm:$0xff]  ;;  %v1687_v57 = vld [vmem:[%s8453_s20 + $0x26f0] sm:$0xff] }
 0x32d   : > { %4783 = vmatprep.subr.mxu1 %v1746_v32  ;;  %4822 = vmatprep.subr.mxu0 %v1842_v58  ;;  %v1879_v32 = vld [vmem:[%s8453_s20 + $0x2cf0] sm:$0xff]  ;;  %v1682_v58 = vld [vmem:[%s8453_s20 + $0x26c8] sm:$0xff] }
 0x32e   : > { %4784 = vmatpush2.msra.mxu1 %v1745_v63  ;;  %4823 = vmatpush1.msra.mxu0 %v1841_v60  ;;  %v1874_v63 = vld [vmem:[%s8453_s20 + $0x2cc8] sm:$0xff]  ;;  %v1681_v60 = vld [vmem:[%s8453_s20 + $0x26c0] sm:$0xff] }
 0x32f   : > { %4785 = vmatprep.subr.mxu1 %v1740_v36  ;;  %4824 = vmatprep.subr.mxu0 %v1836_v61  ;;  %v1873_v36 = vld [vmem:[%s8453_s20 + $0x2cc0] sm:$0xff]  ;;  %v1676_v61 = vld [vmem:[%s8453_s20 + $0x2698] sm:$0xff] }
 0x330   : > { %4786 = vmatpush2.msra.mxu1 %v1739_v62  ;;  %4825 = vmatpush1.msra.mxu0 %v1835_v3  ;;  %v1868_v62 = vld [vmem:[%s8453_s20 + $0x2c98] sm:$0xff]  ;;  %v1675_v3 = vld [vmem:[%s8453_s20 + $0x2690] sm:$0xff] }
 0x331   : > { %4787 = vmatprep.subr.mxu1 %v1734_v4  ;;  %4826 = vmatprep.subr.mxu0 %v1830_v17  ;;  %v1867_v4 = vld [vmem:[%s8453_s20 + $0x2c90] sm:$0xff]  ;;  %v1670_v17 = vld [vmem:[%s8453_s20 + $0x2668] sm:$0xff] }
 0x332   : > { %4788 = vmatpush2.msra.mxu1 %v1733_v6  ;;  %4827 = vmatpush1.msra.mxu0 %v1829_v7  ;;  %v1862_v6 = vld [vmem:[%s8453_s20 + $0x2c68] sm:$0xff]  ;;  %v1669_v7 = vld [vmem:[%s8453_s20 + $0x2660] sm:$0xff] }
 0x333   : > { %4789 = vmatprep.subr.mxu1 %v1728_v59  ;;  %4828 = vmatprep.subr.mxu0 %v1824_v43  ;;  %v1861_v59 = vld [vmem:[%s8453_s20 + $0x2c60] sm:$0xff]  ;;  %v1664_v43 = vld [vmem:[%s8453_s20 + $0x2638] sm:$0xff] }
 0x334   : > { %4790 = vmatpush2.msra.mxu1 %v1727_v41  ;;  %4829 = vmatpush1.msra.mxu0 %v1823_v18  ;;  %v1856_v41 = vld [vmem:[%s8453_s20 + $0x2c38] sm:$0xff]  ;;  %v1663_v18 = vld [vmem:[%s8453_s20 + $0x2630] sm:$0xff] }
 0x335   : > { %4791 = vmatprep.subr.mxu1 %v1722_v19  ;;  %4830 = vmatprep.subr.mxu0 %v1818_v20  ;;  %v1855_v19 = vld [vmem:[%s8453_s20 + $0x2c30] sm:$0xff]  ;;  %v1658_v20 = vld [vmem:[%s8453_s20 + $0x2608] sm:$0xff] }
 0x336   : > { %4792 = vmatpush2.msra.mxu1 %v1721_v5  ;;  %4831 = vmatpush1.msra.mxu0 %v1817_v22  ;;  %v1850_v5 = vld [vmem:[%s8453_s20 + $0x2c08] sm:$0xff]  ;;  %v1657_v22 = vld [vmem:[%s8453_s20 + $0x2600] sm:$0xff] }
 0x337   : > { %4793 = vmatprep.subr.mxu1 %v1716_v24  ;;  %4832 = vmatprep.subr.mxu0 %v1812_v29  ;;  %v1849_v24 = vld [vmem:[%s8453_s20 + $0x2c00] sm:$0xff]  ;;  %v1652_v29 = vld [vmem:[%s8453_s20 + $0x25d8] sm:$0xff] }
 0x338   : > { %4794 = vmatpush2.msra.mxu1 %v1715_v54  ;;  %4833 = vmatpush1.msra.mxu0 %v1811_v2  ;;  %v1844_v54 = vld [vmem:[%s8453_s20 + $0x2bd8] sm:$0xff]  ;;  %v1651_v2 = vld [vmem:[%s8453_s20 + $0x25d0] sm:$0xff] }
 0x339   : > { %4795 = vmatprep.subr.mxu1 %v1710_v11  ;;  %4834 = vmatprep.subr.mxu0 %v1806_v27  ;;  %v1843_v11 = vld [vmem:[%s8453_s20 + $0x2bd0] sm:$0xff]  ;;  %v1646_v27 = vld [vmem:[%s8453_s20 + $0x25a8] sm:$0xff] }
 0x33a   : > { %4796 = vmatpush2.msra.mxu1 %v1709_v28  ;;  %4835 = vmatpush1.msra.mxu0 %v1805_v30  ;;  %v1838_v28 = vld [vmem:[%s8453_s20 + $0x2ba8] sm:$0xff]  ;;  %v1645_v30 = vld [vmem:[%s8453_s20 + $0x25a0] sm:$0xff] }
 0x33b   : > { %4797 = vmatprep.subr.mxu1 %v1704_v23  ;;  %4836 = vmatprep.subr.mxu0 %v1800_v31  ;;  %v1837_v23 = vld [vmem:[%s8453_s20 + $0x2ba0] sm:$0xff]  ;;  %v1640_v31 = vld [vmem:[%s8453_s20 + $0x2578] sm:$0xff] }
 0x33c   : > { %4798 = vmatpush2.msra.mxu1 %v1703_v37  ;;  %4837 = vmatpush1.msra.mxu0 %v1799_v38  ;;  %v1832_v37 = vld [vmem:[%s8453_s20 + $0x2b78] sm:$0xff]  ;;  %v1639_v38 = vld [vmem:[%s8453_s20 + $0x2570] sm:$0xff] }
 0x33d   : > { %4799 = vmatprep.subr.mxu1 %v1698_v39  ;;  %4838 = vmatprep.subr.mxu0 %v1794_v40  ;;  %v1831_v39 = vld [vmem:[%s8453_s20 + $0x2b70] sm:$0xff]  ;;  %v1634_v40 = vld [vmem:[%s8453_s20 + $0x2548] sm:$0xff] }
 0x33e   : > { %4800 = vmatpush2.msra.mxu1 %v1697_v42  ;;  %4839 = vmatpush1.msra.mxu0 %v1793_v44  ;;  %v1826_v42 = vld [vmem:[%s8453_s20 + $0x2b48] sm:$0xff]  ;;  %v1633_v44 = vld [vmem:[%s8453_s20 + $0x2540] sm:$0xff] }
 0x33f   : > { %4801 = vmatprep.subr.mxu1 %v1692_v45  ;;  %4840 = vmatprep.subr.mxu0 %v1788_v48  ;;  %v1825_v45 = vld [vmem:[%s8453_s20 + $0x2b40] sm:$0xff]  ;;  %v1628_v48 = vld [vmem:[%s8453_s20 + $0x2518] sm:$0xff] }
 0x340   : > { %4802 = vmatpush2.msra.mxu1 %v1691_v49  ;;  %4803 = vmatprep.mubr.f32.mxu1 %v9964_v15  ;;  %v1820_v49 = vld [vmem:[%s8453_s20 + $0x2b18] sm:$0xff] }
 0x341   : > { %4841 = vmatpush1.msra.mxu0 %v1787_v50  ;;  %4874 = vmatprep.mubr.f32.mxu0 %v8254_v0  ;;  %v1627_v50 = vld [vmem:[%s8453_s20 + $0x2510] sm:$0xff] }
 0x342   : > { %4804 = vmatmul.mubr.f32.vlgmr.msra.gmra.mxu1 %v9969_v21  ;;  %4875 = vmatmul.mubr.f32.vlgmr.msra.gmra.mxu0 %v9897_v46 }
 0x343   : > { %4881 = vmatprep.subr.mxu0 %v1688_v52  ;;  %4952 = vmatprep.subr.mxu1 %v1880_v56  ;;  %v1819_v52 = vld [vmem:[%s8453_s20 + $0x2b10] sm:$0xff]  ;;  %v1622_v56 = vld [vmem:[%s8453_s20 + $0x24e8] sm:$0xff] }
 0x344   : > { %4882 = vmatpush1.msra.mxu0 %v1687_v57  ;;  %4953 = vmatpush1.msra.mxu1 %v1879_v32  ;;  %v1814_v57 = vld [vmem:[%s8453_s20 + $0x2ae8] sm:$0xff]  ;;  %v1621_v32 = vld [vmem:[%s8453_s20 + $0x24e0] sm:$0xff] }
 0x345   : > { %4883 = vmatprep.subr.mxu0 %v1682_v58  ;;  %4954 = vmatprep.subr.mxu1 %v1874_v63  ;;  %v1813_v58 = vld [vmem:[%s8453_s20 + $0x2ae0] sm:$0xff]  ;;  %v1616_v63 = vld [vmem:[%s8453_s20 + $0x24b8] sm:$0xff] }
 0x346   : > { %4884 = vmatpush1.msra.mxu0 %v1681_v60  ;;  %4955 = vmatpush1.msra.mxu1 %v1873_v36  ;;  %v1808_v60 = vld [vmem:[%s8453_s20 + $0x2ab8] sm:$0xff]  ;;  %v1615_v36 = vld [vmem:[%s8453_s20 + $0x24b0] sm:$0xff] }
 0x347   : > { %4885 = vmatprep.subr.mxu0 %v1676_v61  ;;  %4956 = vmatprep.subr.mxu1 %v1868_v62  ;;  %v1807_v61 = vld [vmem:[%s8453_s20 + $0x2ab0] sm:$0xff]  ;;  %v1610_v62 = vld [vmem:[%s8453_s20 + $0x2488] sm:$0xff] }
 0x348   : > { %4886 = vmatpush1.msra.mxu0 %v1675_v3  ;;  %4957 = vmatpush1.msra.mxu1 %v1867_v4  ;;  %v1802_v3 = vld [vmem:[%s8453_s20 + $0x2a88] sm:$0xff]  ;;  %v1609_v4 = vld [vmem:[%s8453_s20 + $0x2480] sm:$0xff] }
 0x349   : > { %4887 = vmatprep.subr.mxu0 %v1670_v17  ;;  %4958 = vmatprep.subr.mxu1 %v1862_v6  ;;  %v1801_v17 = vld [vmem:[%s8453_s20 + $0x2a80] sm:$0xff]  ;;  %v1604_v6 = vld [vmem:[%s8453_s20 + $0x2458] sm:$0xff] }
 0x34a   : > { %4888 = vmatpush1.msra.mxu0 %v1669_v7  ;;  %4959 = vmatpush1.msra.mxu1 %v1861_v59  ;;  %v1796_v7 = vld [vmem:[%s8453_s20 + $0x2a58] sm:$0xff]  ;;  %v1603_v59 = vld [vmem:[%s8453_s20 + $0x2450] sm:$0xff] }
 0x34b   : > { %4889 = vmatprep.subr.mxu0 %v1664_v43  ;;  %4960 = vmatprep.subr.mxu1 %v1856_v41  ;;  %v1795_v43 = vld [vmem:[%s8453_s20 + $0x2a50] sm:$0xff]  ;;  %v1598_v41 = vld [vmem:[%s8453_s20 + $0x2428] sm:$0xff] }
 0x34c   : > { %4890 = vmatpush1.msra.mxu0 %v1663_v18  ;;  %4961 = vmatpush1.msra.mxu1 %v1855_v19  ;;  %v1790_v18 = vld [vmem:[%s8453_s20 + $0x2a28] sm:$0xff]  ;;  %v1597_v19 = vld [vmem:[%s8453_s20 + $0x2420] sm:$0xff] }
 0x34d   : > { %4891 = vmatprep.subr.mxu0 %v1658_v20  ;;  %4962 = vmatprep.subr.mxu1 %v1850_v5  ;;  %v1789_v20 = vld [vmem:[%s8453_s20 + $0x2a20] sm:$0xff]  ;;  %v1784_v5 = vld [vmem:[%s8453_s20 + $0x29f8] sm:$0xff] }
 0x34e   : > { %4892 = vmatpush1.msra.mxu0 %v1657_v22  ;;  %4963 = vmatpush1.msra.mxu1 %v1849_v24  ;;  %v1972_v22 = vld [vmem:[%s8453_s20 + $0x2fd8] sm:$0xff]  ;;  %v1783_v24 = vld [vmem:[%s8453_s20 + $0x29f0] sm:$0xff] }
 0x34f   : > { %4893 = vmatprep.subr.mxu0 %v1652_v29  ;;  %4964 = vmatprep.subr.mxu1 %v1844_v54  ;;  %v1971_v29 = vld [vmem:[%s8453_s20 + $0x2fd0] sm:$0xff]  ;;  %v1778_v54 = vld [vmem:[%s8453_s20 + $0x29c8] sm:$0xff] }
 0x350   : > { %4894 = vmatpush1.msra.mxu0 %v1651_v2  ;;  %4965 = vmatpush1.msra.mxu1 %v1843_v11  ;;  %v1966_v2 = vld [vmem:[%s8453_s20 + $0x2fa8] sm:$0xff]  ;;  %v1777_v11 = vld [vmem:[%s8453_s20 + $0x29c0] sm:$0xff] }
 0x351   : > { %4895 = vmatprep.subr.mxu0 %v1646_v27  ;;  %4966 = vmatprep.subr.mxu1 %v1838_v28  ;;  %v1965_v27 = vld [vmem:[%s8453_s20 + $0x2fa0] sm:$0xff]  ;;  %v1772_v28 = vld [vmem:[%s8453_s20 + $0x2998] sm:$0xff] }
 0x352   : > { %4896 = vmatpush1.msra.mxu0 %v1645_v30  ;;  %4967 = vmatpush1.msra.mxu1 %v1837_v23  ;;  %v1960_v30 = vld [vmem:[%s8453_s20 + $0x2f78] sm:$0xff]  ;;  %v1771_v23 = vld [vmem:[%s8453_s20 + $0x2990] sm:$0xff] }
 0x353   : > { %4897 = vmatprep.subr.mxu0 %v1640_v31  ;;  %4968 = vmatprep.subr.mxu1 %v1832_v37  ;;  %v1959_v31 = vld [vmem:[%s8453_s20 + $0x2f70] sm:$0xff]  ;;  %v1766_v37 = vld [vmem:[%s8453_s20 + $0x2968] sm:$0xff] }
 0x354   : > { %4898 = vmatpush1.msra.mxu0 %v1639_v38  ;;  %4969 = vmatpush1.msra.mxu1 %v1831_v39  ;;  %v1954_v38 = vld [vmem:[%s8453_s20 + $0x2f48] sm:$0xff]  ;;  %v1953_v39 = vld [vmem:[%s8453_s20 + $0x2f40] sm:$0xff] }
 0x355   : > { %4899 = vmatprep.subr.mxu0 %v1634_v40  ;;  %4970 = vmatprep.subr.mxu1 %v1826_v42  ;;  %v1760_v40 = vld [vmem:[%s8453_s20 + $0x2938] sm:$0xff] }
 0x356   : > { %4900 = vmatpush1.msra.mxu0 %v1633_v44  ;;  %4971 = vmatpush1.msra.mxu1 %v1825_v45  ;;  %v1948_v42 = vld [vmem:[%s8453_s20 + $0x2f18] sm:$0xff]  ;;  %v1759_v44 = vld [vmem:[%s8453_s20 + $0x2930] sm:$0xff] }
 0x357   : > { %4901 = vmatprep.subr.mxu0 %v1628_v48  ;;  %4972 = vmatprep.subr.mxu1 %v1820_v49  ;;  %v1947_v45 = vld [vmem:[%s8453_s20 + $0x2f10] sm:$0xff]  ;;  %v1754_v48 = vld [vmem:[%s8453_s20 + $0x2908] sm:$0xff] }
 0x358   : > { %4902 = vmatpush1.msra.mxu0 %v1627_v50  ;;  %4973 = vmatpush1.msra.mxu1 %v1819_v52  ;;  %v1942_v49 = vld [vmem:[%s8453_s20 + $0x2ee8] sm:$0xff]  ;;  %v1753_v50 = vld [vmem:[%s8453_s20 + $0x2900] sm:$0xff] }
 0x359   : > { %4903 = vmatprep.subr.mxu0 %v1622_v56  ;;  %4974 = vmatprep.subr.mxu1 %v1814_v57  ;;  %v1941_v52 = vld [vmem:[%s8453_s20 + $0x2ee0] sm:$0xff]  ;;  %v1748_v56 = vld [vmem:[%s8453_s20 + $0x28d8] sm:$0xff] }
 0x35a   : > { %4904 = vmatpush1.msra.mxu0 %v1621_v32  ;;  %4975 = vmatpush1.msra.mxu1 %v1813_v58  ;;  %v1936_v57 = vld [vmem:[%s8453_s20 + $0x2eb8] sm:$0xff]  ;;  %v1747_v32 = vld [vmem:[%s8453_s20 + $0x28d0] sm:$0xff] }
 0x35b   : > { %4905 = vmatprep.subr.mxu0 %v1616_v63  ;;  %4976 = vmatprep.subr.mxu1 %v1808_v60  ;;  %v1935_v58 = vld [vmem:[%s8453_s20 + $0x2eb0] sm:$0xff]  ;;  %v1742_v63 = vld [vmem:[%s8453_s20 + $0x28a8] sm:$0xff] }
 0x35c   : > { %4906 = vmatpush1.msra.mxu0 %v1615_v36  ;;  %4977 = vmatpush1.msra.mxu1 %v1807_v61  ;;  %v1930_v60 = vld [vmem:[%s8453_s20 + $0x2e88] sm:$0xff]  ;;  %v1741_v36 = vld [vmem:[%s8453_s20 + $0x28a0] sm:$0xff] }
 0x35d   : > { %4907 = vmatprep.subr.mxu0 %v1610_v62  ;;  %4978 = vmatprep.subr.mxu1 %v1802_v3  ;;  %v1929_v61 = vld [vmem:[%s8453_s20 + $0x2e80] sm:$0xff]  ;;  %v1736_v62 = vld [vmem:[%s8453_s20 + $0x2878] sm:$0xff] }
 0x35e   : > { %4908 = vmatpush1.msra.mxu0 %v1609_v4  ;;  %4979 = vmatpush1.msra.mxu1 %v1801_v17  ;;  %v1924_v3 = vld [vmem:[%s8453_s20 + $0x2e58] sm:$0xff]  ;;  %v1735_v4 = vld [vmem:[%s8453_s20 + $0x2870] sm:$0xff] }
 0x35f   : > { %4909 = vmatprep.subr.mxu0 %v1604_v6  ;;  %4980 = vmatprep.subr.mxu1 %v1796_v7  ;;  %v1923_v17 = vld [vmem:[%s8453_s20 + $0x2e50] sm:$0xff]  ;;  %v1730_v6 = vld [vmem:[%s8453_s20 + $0x2848] sm:$0xff] }
 0x360   : > { %4910 = vmatpush1.msra.mxu0 %v1603_v59  ;;  %4981 = vmatpush1.msra.mxu1 %v1795_v43  ;;  %v1918_v7 = vld [vmem:[%s8453_s20 + $0x2e28] sm:$0xff]  ;;  %v1729_v59 = vld [vmem:[%s8453_s20 + $0x2840] sm:$0xff]  ;;  %v10154_v43 = vpop.f32.mrf.mxu1 }
 0x361   : > { %4911 = vmatprep.subr.mxu0 %v1598_v41  ;;  %4982 = vmatprep.subr.mxu1 %v1790_v18  ;;  %v1917_v41 = vld [vmem:[%s8453_s20 + $0x2e20] sm:$0xff]  ;;  %v1724_v18 = vld [vmem:[%s8453_s20 + $0x2818] sm:$0xff] }
 0x362   : > { %4912 = vmatpush1.msra.mxu0 %v1597_v19  ;;  %4983 = vmatpush1.msra.mxu1 %v1789_v20  ;;  %v1912_v19 = vld [vmem:[%s8453_s20 + $0x2df8] sm:$0xff]  ;;  %v1723_v20 = vld [vmem:[%s8453_s20 + $0x2810] sm:$0xff] }
 0x363   : > { %4913 = vmatprep.subr.mxu0 %v1784_v5  ;;  %5016 = vmatprep.mubr.f32.mxu1 %v8254_v0  ;;  %v10160_v5 = vpop.f32.mrf.mxu0 }
 0x364   : > { %5038 = vmatprep.subr.mxu1 %v1972_v22  ;;  %4914 = vmatpush2.msra.mxu0 %v1783_v24  ;;  %v1911_v22 = vld [vmem:[%s8453_s20 + $0x2df0] sm:$0xff]  ;;  %v1718_v24 = vld [vmem:[%s8453_s20 + $0x27e8] sm:$0xff] }
 0x365   : > { %5017 = vmatmul.mubr.f32.vlgmr.msra.gmra.mxu1 %v9897_v46  ;;  %4915 = vmatprep.subr.mxu0 %v1778_v54  ;;  %v1765_v46 = vld [vmem:[%s8453_s20 + $0x2960] sm:$0xff] }
 0x366   : > { %5039 = vmatpush1.msra.mxu1 %v1971_v29  ;;  %4916 = vmatpush2.msra.mxu0 %v1777_v11  ;;  %v1906_v29 = vld [vmem:[%s8453_s20 + $0x2dc8] sm:$0xff]  ;;  %v1717_v54 = vld [vmem:[%s8453_s20 + $0x27e0] sm:$0xff] }
 0x367   : > { %5040 = vmatprep.subr.mxu1 %v1966_v2  ;;  %4917 = vmatprep.subr.mxu0 %v1772_v28  ;;  %v10166_v2 = vpop.f32.mrf.mxu1  ;;  %v1905_v11 = vld [vmem:[%s8453_s20 + $0x2dc0] sm:$0xff]  ;;  %v1900_v28 = vld [vmem:[%s8453_s20 + $0x2d98] sm:$0xff] }
 0x368   : > { %5041 = vmatpush1.msra.mxu1 %v1965_v27  ;;  %4918 = vmatpush2.msra.mxu0 %v1771_v23  ;;  %v1712_v27 = vld [vmem:[%s8453_s20 + $0x27b8] sm:$0xff]  ;;  %v10172_v23 = vpop.f32.mrf.mxu0 }
 0x369   : > { %5042 = vmatprep.subr.mxu1 %v1960_v30  ;;  %4919 = vmatprep.subr.mxu0 %v1766_v37  ;;  %v1711_v30 = vld [vmem:[%s8453_s20 + $0x27b0] sm:$0xff] }
 0x36a   : > { %5043 = vmatpush1.msra.mxu1 %v1959_v31  ;;  %4920 = vmatpush2.msra.mxu0 %v1765_v46  ;;  %v4435_v31 = vpop.f32.mrf.mxu1  ;;  %v1899_v37 = vld [vmem:[%s8453_s20 + $0x2d90] sm:$0xff]  ;;  %v1894_v46 = vld [vmem:[%s8453_s20 + $0x2d68] sm:$0xff] }
 0x36b   : > { %5044 = vmatprep.subr.mxu1 %v1954_v38  ;;  %4921 = vmatprep.subr.mxu0 %v1760_v40  ;;  %v1706_v38 = vld [vmem:[%s8453_s20 + $0x2788] sm:$0xff]  ;;  %v1893_v40 = vld [vmem:[%s8453_s20 + $0x2d60] sm:$0xff] }
 0x36c   : > { %5045 = vmatpush1.msra.mxu1 %v1953_v39  ;;  %4922 = vmatpush2.msra.mxu0 %v1759_v44  ;;  %v1705_v39 = vld [vmem:[%s8453_s20 + $0x2780] sm:$0xff] }
 0x36d   : > { %5046 = vmatprep.subr.mxu1 %v1948_v42  ;;  %4923 = vmatprep.subr.mxu0 %v1754_v48  ;;  %v1700_v42 = vld [vmem:[%s8453_s20 + $0x2758] sm:$0xff]  ;;  %v1699_v48 = vld [vmem:[%s8453_s20 + $0x2750] sm:$0xff] }
 0x36e   : > { %5047 = vmatpush1.msra.mxu1 %v1947_v45  ;;  %4924 = vmatpush2.msra.mxu0 %v1753_v50  ;;  %v1888_v45 = vld [vmem:[%s8453_s20 + $0x2d38] sm:$0xff]  ;;  %v4437_v50 = vpop.f32.mrf.mxu1 }
 0x36f   : > { %5048 = vmatprep.subr.mxu1 %v1942_v49  ;;  %4925 = vmatprep.subr.mxu0 %v1748_v56  ;;  %v1694_v56 = vld [vmem:[%s8453_s20 + $0x2728] sm:$0xff] }
 0x370   : > { %5049 = vmatpush1.msra.mxu1 %v1941_v52  ;;  %4926 = vmatpush2.msra.mxu0 %v1747_v32  ;;  %v1887_v52 = vld [vmem:[%s8453_s20 + $0x2d30] sm:$0xff]  ;;  %v1882_v32 = vld [vmem:[%s8453_s20 + $0x2d08] sm:$0xff] }
 0x371   : > { %5050 = vmatprep.subr.mxu1 %v1936_v57  ;;  %4927 = vmatprep.subr.mxu0 %v1742_v63 }
 0x372   : > { %5051 = vmatpush1.msra.mxu1 %v1935_v58  ;;  %4928 = vmatpush2.msra.mxu0 %v1741_v36  ;;  %v1693_v58 = vld [vmem:[%s8453_s20 + $0x2720] sm:$0xff] }
 0x373   : > { %5052 = vmatprep.subr.mxu1 %v1930_v60  ;;  %4929 = vmatprep.subr.mxu0 %v1736_v62  ;;  %v1881_v36 = vld [vmem:[%s8453_s20 + $0x2d00] sm:$0xff]  ;;  %v2068_v62 = vld [vmem:[%s8453_s20 + $0x32d8] sm:$0xff] }
 0x374   : > { %5053 = vmatpush1.msra.mxu1 %v1929_v61  ;;  %4930 = vmatpush2.msra.mxu0 %v1735_v4  ;;  %v2164_v4 = vld [vmem:[%s8453_s20 + $0x35d8] sm:$0xff] }
 0x375   : > { %5054 = vmatprep.subr.mxu1 %v1924_v3  ;;  %4931 = vmatprep.subr.mxu0 %v1730_v6  ;;  %v2163_v6 = vld [vmem:[%s8453_s20 + $0x35d0] sm:$0xff] }
 0x376   : > { %5055 = vmatpush1.msra.mxu1 %v1923_v17  ;;  %4932 = vmatpush2.msra.mxu0 %v1729_v59  ;;  %v2067_v17 = vld [vmem:[%s8453_s20 + $0x32d0] sm:$0xff]  ;;  %v2158_v59 = vld [vmem:[%s8453_s20 + $0x35a8] sm:$0xff] }
 0x377   : > { %5056 = vmatprep.subr.mxu1 %v1918_v7  ;;  %4933 = vmatprep.subr.mxu0 %v1724_v18  ;;  %v2056_v18 = vld [vmem:[%s8453_s20 + $0x3278] sm:$0xff] }
 0x378   : > { %5057 = vmatpush1.msra.mxu1 %v1917_v41  ;;  %4934 = vmatpush2.msra.mxu0 %v1723_v20  ;;  %v2061_v41 = vld [vmem:[%s8453_s20 + $0x32a0] sm:$0xff]  ;;  %v2050_v20 = vld [vmem:[%s8453_s20 + $0x3248] sm:$0xff] }
 0x379   : > { %5058 = vmatprep.subr.mxu1 %v1912_v19  ;;  %4935 = vmatprep.subr.mxu0 %v1718_v24  ;;  %v2055_v19 = vld [vmem:[%s8453_s20 + $0x3270] sm:$0xff]  ;;  %v2049_v24 = vld [vmem:[%s8453_s20 + $0x3240] sm:$0xff] }
 0x37a   : > { %5059 = vmatpush1.msra.mxu1 %v1911_v22  ;;  %4936 = vmatpush2.msra.mxu0 %v1717_v54  ;;  %v2146_v22 = vld [vmem:[%s8453_s20 + $0x3548] sm:$0xff]  ;;  %v2044_v54 = vld [vmem:[%s8453_s20 + $0x3218] sm:$0xff] }
 0x37b   : > { %5060 = vmatprep.subr.mxu1 %v1906_v29  ;;  %4937 = vmatprep.subr.mxu0 %v1712_v27  ;;  %v2145_v29 = vld [vmem:[%s8453_s20 + $0x3540] sm:$0xff]  ;;  %v2043_v27 = vld [vmem:[%s8453_s20 + $0x3210] sm:$0xff] }
 0x37c   : > { %5061 = vmatpush1.msra.mxu1 %v1905_v11  ;;  %4938 = vmatpush2.msra.mxu0 %v1711_v30  ;;  %v4364_v44 = vpop.f32.mrf.mxu0  ;;  %v2140_v11 = vld [vmem:[%s8453_s20 + $0x3518] sm:$0xff]  ;;  %v2038_v30 = vld [vmem:[%s8453_s20 + $0x31e8] sm:$0xff] }
 0x37d   : > { %5062 = vmatprep.subr.mxu1 %v1900_v28  ;;  %4939 = vmatprep.subr.mxu0 %v1706_v38  ;;  %v4436_v49 = vadd.f32 %v4435_v31, %v4364_v44  ;;  %v2139_v28 = vld [vmem:[%s8453_s20 + $0x3510] sm:$0xff]  ;;  %v2134_v31 = vld [vmem:[%s8453_s20 + $0x34e8] sm:$0xff]  ;;  %v2133_v38 = vld [vmem:[%s8453_s20 + $0x34e0] sm:$0xff] }
 0x37e   : > { %5063 = vmatpush1.msra.mxu1 %v1899_v37  ;;  %4940 = vmatpush2.msra.mxu0 %v1705_v39  ;;  %v4366_v57 = vpop.f32.mrf.mxu0  ;;  %v2037_v37 = vld [vmem:[%s8453_s20 + $0x31e0] sm:$0xff]  ;;  %v2128_v39 = vld [vmem:[%s8453_s20 + $0x34b8] sm:$0xff]  ;;  %v2026_v44 = vld [vmem:[%s8453_s20 + $0x3188] sm:$0xff] }
 0x37f   : > { %5064 = vmatprep.subr.mxu1 %v1894_v46  ;;  %4941 = vmatprep.subr.mxu0 %v1700_v42  ;;  %v6439_v63 = vrot.slane %v4436_v49, 5  ;;  %v4438_v60 = vadd.f32 %v4437_v50, %v4366_v57  ;;  %v2032_v46 = vld [vmem:[%s8453_s20 + $0x31b8] sm:$0xff]  ;;  %v2127_v42 = vld [vmem:[%s8453_s20 + $0x34b0] sm:$0xff]  ;;  %v2121_v49 = vld [vmem:[%s8453_s20 + $0x3480] sm:$0xff] }
 0x380   : > { %5065 = vmatpush1.msra.mxu1 %v1893_v40  ;;  %4942 = vmatpush2.msra.mxu0 %v1699_v48  ;;  %v2031_v40 = vld [vmem:[%s8453_s20 + $0x31b0] sm:$0xff]  ;;  %v2025_v48 = vld [vmem:[%s8453_s20 + $0x3180] sm:$0xff]  ;;  %v2020_v50 = vld [vmem:[%s8453_s20 + $0x3158] sm:$0xff] }
 0x381   : > { %5066 = vmatprep.subr.mxu1 %v1888_v45  ;;  %4943 = vmatprep.subr.mxu0 %v1694_v56  ;;  %v10189_v61 = vsel %vm6407_vm2, %v6439_v63, %v9806_v25  ;;  %v6453_v3 = vrot.slane %v4438_v60, 5  ;;  %v2062_v25 = vld [vmem:[%s8453_s20 + $0x32a8] sm:$0xff]  ;;  %v2019_v56 = vld [vmem:[%s8453_s20 + $0x3150] sm:$0xff]  ;;  %v2013_v63 = vld [vmem:[%s8453_s20 + $0x3120] sm:$0xff] }
 0x382   : > { %5067 = vmatpush1.msra.mxu1 %v1887_v52  ;;  %4944 = vmatpush2.msra.mxu0 %v1693_v58  ;;  %v2122_v45 = vld [vmem:[%s8453_s20 + $0x3488] sm:$0xff]  ;;  %v2116_v52 = vld [vmem:[%s8453_s20 + $0x3458] sm:$0xff]  ;;  %v2115_v57 = vld [vmem:[%s8453_s20 + $0x3450] sm:$0xff] }
 0x383   : > { %5068 = vmatprep.subr.mxu1 %v1882_v32  ;;  %4945 = vmatprep.mubr.f32.mxu0 %v9964_v15  ;;  %v10198_v7 = vsel %vm6407_vm2, %v6453_v3, %v9817_v47  ;;  %v2157_v15 = vld [vmem:[%s8453_s20 + $0x35a0] sm:$0xff]  ;;  %v2152_v47 = vld [vmem:[%s8453_s20 + $0x3578] sm:$0xff]  ;;  %v2014_v32 = vld [vmem:[%s8453_s20 + $0x3128] sm:$0xff] }
 0x384   : > { %5069 = vmatpush1.msra.mxu1 %v1881_v36  ;;  %4946 = vmatmul.mubr.f32.vlgmr.msra.gmra.mxu0 %v9969_v21  ;;  %v2151_v21 = vld [vmem:[%s8453_s20 + $0x3570] sm:$0xff]  ;;  %v2110_v58 = vld [vmem:[%s8453_s20 + $0x3428] sm:$0xff]  ;;  %v2109_v60 = vld [vmem:[%s8453_s20 + $0x3420] sm:$0xff] }
 0x385   : > { %5070 = vmatprep.subr.mxu1 %v2068_v62  ;;  %5109 = vmatprep.subr.mxu0 %v2164_v4  ;;  %v2008_v36 = vld [vmem:[%s8453_s20 + $0x30f8] sm:$0xff]  ;;  %v2007_v3 = vld [vmem:[%s8453_s20 + $0x30f0] sm:$0xff] }
 0x386   : > { %5071 = vmatpush2.msra.mxu1 %v2067_v17  ;;  %5110 = vmatpush1.msra.mxu0 %v2163_v6  ;;  %v2104_v62 = vld [vmem:[%s8453_s20 + $0x33f8] sm:$0xff]  ;;  %v2103_v4 = vld [vmem:[%s8453_s20 + $0x33f0] sm:$0xff]  ;;  %v2002_v17 = vld [vmem:[%s8453_s20 + $0x30c8] sm:$0xff] }
 0x387   : > { %5072 = vmatprep.subr.mxu1 %v2062_v25  ;;  %5111 = vmatprep.subr.mxu0 %v2158_v59  ;;  %v2098_v6 = vld [vmem:[%s8453_s20 + $0x33c8] sm:$0xff]  ;;  %v2001_v25 = vld [vmem:[%s8453_s20 + $0x30c0] sm:$0xff]  ;;  %v2785_v59 = vcombine.high %v9862_v10, %v9865_v13 }
 0x388   : > { %5073 = vmatpush2.msra.mxu1 %v2061_v41  ;;  %5112 = vmatpush1.msra.mxu0 %v2157_v15  ;;  %v2097_v41 = vld [vmem:[%s8453_s20 + $0x33c0] sm:$0xff]  ;;  %v1996_v15 = vld [vmem:[%s8453_s20 + $0x3098] sm:$0xff]  ;;  %v2086_v10 = vld [vmem:[%s8453_s20 + $0x3368] sm:$0xff] }
 0x389   : > { %5074 = vmatprep.subr.mxu1 %v2056_v18  ;;  %5113 = vmatprep.subr.mxu0 %v2152_v47  ;;  %v2092_v18 = vld [vmem:[%s8453_s20 + $0x3398] sm:$0xff]  ;;  %v1995_v47 = vld [vmem:[%s8453_s20 + $0x3090] sm:$0xff]  ;;  %v1989_v13 = vld [vmem:[%s8453_s20 + $0x3060] sm:$0xff] }
 0x38a   : > { %5075 = vmatpush2.msra.mxu1 %v2055_v19  ;;  %5114 = vmatpush1.msra.mxu0 %v2151_v21  ;;  %v2091_v19 = vld [vmem:[%s8453_s20 + $0x3390] sm:$0xff]  ;;  %v1990_v21 = vld [vmem:[%s8453_s20 + $0x3068] sm:$0xff] }
 0x38b   : > { %5076 = vmatprep.subr.mxu1 %v2050_v20  ;;  %5115 = vmatprep.subr.mxu0 %v2146_v22  ;;  %v10255_v20 = vrot.slane %v2785_v59, %v8530_v53  ;;  %v2085_v22 = vld [vmem:[%s8453_s20 + $0x3360] sm:$0xff]  ;;  %v2147_v59 = vld [vmem:[%s8453_s20 + $0x3550] sm:$0xff] }
 0x38c   : > { %5077 = vmatpush2.msra.mxu1 %v2049_v24  ;;  %5116 = vmatpush1.msra.mxu0 %v2145_v29  ;;  %v1984_v24 = vld [vmem:[%s8453_s20 + $0x3038] sm:$0xff] }
 0x38d   : > { %5078 = vmatprep.subr.mxu1 %v2044_v54  ;;  %5117 = vmatprep.subr.mxu0 %v2140_v11  ;;  %v2080_v54 = vld [vmem:[%s8453_s20 + $0x3338] sm:$0xff]  ;;  %v1983_v11 = vld [vmem:[%s8453_s20 + $0x3030] sm:$0xff] }
 0x38e   : > { %5079 = vmatpush2.msra.mxu1 %v2043_v27  ;;  %5118 = vmatpush1.msra.mxu0 %v2139_v28  ;;  %v2079_v28 = vld [vmem:[%s8453_s20 + $0x3330] sm:$0xff] }
 0x38f   : > { %5080 = vmatprep.subr.mxu1 %v2038_v30  ;;  %5119 = vmatprep.subr.mxu0 %v2134_v31  ;;  %v1978_v30 = vld [vmem:[%s8453_s20 + $0x3008] sm:$0xff] }
 0x390   : > { %5081 = vmatpush2.msra.mxu1 %v2037_v37  ;;  %5120 = vmatpush1.msra.mxu0 %v2133_v38  ;;  %v2074_v37 = vld [vmem:[%s8453_s20 + $0x3308] sm:$0xff]  ;;  %v1977_v38 = vld [vmem:[%s8453_s20 + $0x3000] sm:$0xff] }
 0x391   : > { %5082 = vmatprep.subr.mxu1 %v2032_v46  ;;  %5121 = vmatprep.subr.mxu0 %v2128_v39  ;;  %v10267_v46 = vrot.slane %v10255_v20, %v8625_v12 }
 0x392   : > { %5083 = vmatpush2.msra.mxu1 %v2031_v40  ;;  %5122 = vmatpush1.msra.mxu0 %v2127_v42  ;;  %v2073_v40 = vld [vmem:[%s8453_s20 + $0x3300] sm:$0xff] }
 0x393   : > { %5084 = vmatprep.subr.mxu1 %v2026_v44  ;;  %5123 = vmatprep.subr.mxu0 %v2122_v45  ;;  %v10272_v44 = vrot.slane %v10255_v20, %v8630_v16 }
 0x394   : > { %5085 = vmatpush2.msra.mxu1 %v2025_v48  ;;  %5124 = vmatpush1.msra.mxu0 %v2121_v49  ;;  %v10276_v48 = vrot.slane %v10255_v20, %v8555_v8 }
 0x395   : > { %5086 = vmatprep.subr.mxu1 %v2020_v50  ;;  %5125 = vmatprep.subr.mxu0 %v2116_v52  ;;  %v1974_v50 = vld [vmem:[%s8453_s20 + $0x2fe8] sm:$0xff] }
 0x396   : > { %5087 = vmatpush2.msra.mxu1 %v2019_v56  ;;  %5126 = vmatpush1.msra.mxu0 %v2115_v57  ;;  %v2166_v56 = vld [vmem:[%s8453_s20 + $0x35e8] sm:$0xff]  ;;  %v1973_v57 = vld [vmem:[%s8453_s20 + $0x2fe0] sm:$0xff] }
 0x397   : > { %5088 = vmatprep.subr.mxu1 %v2014_v32  ;;  %5127 = vmatprep.subr.mxu0 %v2110_v58  ;;  %v2165_v32 = vld [vmem:[%s8453_s20 + $0x35e0] sm:$0xff]  ;;  %v1968_v58 = vld [vmem:[%s8453_s20 + $0x2fb8] sm:$0xff] }
 0x398   : > { %5089 = vmatpush2.msra.mxu1 %v2013_v63  ;;  %5128 = vmatpush1.msra.mxu0 %v2109_v60  ;;  %v2160_v63 = vld [vmem:[%s8453_s20 + $0x35b8] sm:$0xff]  ;;  %v1967_v60 = vld [vmem:[%s8453_s20 + $0x2fb0] sm:$0xff] }
 0x399   : > { %5090 = vmatprep.subr.mxu1 %v2008_v36  ;;  %5129 = vmatprep.subr.mxu0 %v2104_v62  ;;  %v2159_v36 = vld [vmem:[%s8453_s20 + $0x35b0] sm:$0xff]  ;;  %v1962_v62 = vld [vmem:[%s8453_s20 + $0x2f88] sm:$0xff] }
 0x39a   : > { %5091 = vmatpush2.msra.mxu1 %v2007_v3  ;;  %5130 = vmatpush1.msra.mxu0 %v2103_v4  ;;  %v1961_v3 = vld [vmem:[%s8453_s20 + $0x2f80] sm:$0xff] }
 0x39b   : > { %5092 = vmatprep.subr.mxu1 %v2002_v17  ;;  %5131 = vmatprep.subr.mxu0 %v2098_v6  ;;  %v2153_v4 = vld [vmem:[%s8453_s20 + $0x3580] sm:$0xff]  ;;  %v1956_v17 = vld [vmem:[%s8453_s20 + $0x2f58] sm:$0xff] }
 0x39c   : > { %5093 = vmatpush2.msra.mxu1 %v2001_v25  ;;  %5132 = vmatpush1.msra.mxu0 %v2097_v41  ;;  %v2148_v6 = vld [vmem:[%s8453_s20 + $0x3558] sm:$0xff]  ;;  %v1955_v25 = vld [vmem:[%s8453_s20 + $0x2f50] sm:$0xff]  ;;  %v1950_v41 = vld [vmem:[%s8453_s20 + $0x2f28] sm:$0xff] }
 0x39d   : > { %5094 = vmatprep.subr.mxu1 %v1996_v15  ;;  %5133 = vmatprep.subr.mxu0 %v2092_v18  ;;  %v2142_v15 = vld [vmem:[%s8453_s20 + $0x3528] sm:$0xff]  ;;  %v1949_v18 = vld [vmem:[%s8453_s20 + $0x2f20] sm:$0xff] }
 0x39e   : > { %5095 = vmatpush2.msra.mxu1 %v1995_v47  ;;  %v4506_v29 = vpop.f32.mrf.mxu1  ;;  %5134 = vmatpush1.msra.mxu0 %v2091_v19  ;;  %v4577_v27 = vpop.f32.mrf.mxu0  ;;  %v2141_v47 = vld [vmem:[%s8453_s20 + $0x3520] sm:$0xff]  ;;  %v1944_v19 = vld [vmem:[%s8453_s20 + $0x2ef8] sm:$0xff] }
 0x39f   : > { %5096 = vmatprep.subr.mxu1 %v1990_v21  ;;  %5135 = vmatprep.subr.mxu0 %v2086_v10  ;;  %v4578_v31 = vadd.f32 %v4577_v27, %v4506_v29  ;;  %v2136_v21 = vld [vmem:[%s8453_s20 + $0x34f8] sm:$0xff]  ;;  %v1943_v10 = vld [vmem:[%s8453_s20 + $0x2ef0] sm:$0xff]  ;;  %v1937_v29 = vld [vmem:[%s8453_s20 + $0x2ec0] sm:$0xff] }
 0x3a0   : > { %5097 = vmatpush2.msra.mxu1 %v1989_v13  ;;  %v4508_v53 = vpop.f32.mrf.mxu1  ;;  %5136 = vmatpush1.msra.mxu0 %v2085_v22  ;;  %v4579_v39 = vpop.f32.mrf.mxu0  ;;  %v2135_v13 = vld [vmem:[%s8453_s20 + $0x34f0] sm:$0xff]  ;;  %v1938_v22 = vld [vmem:[%s8453_s20 + $0x2ec8] sm:$0xff]  ;;  %v2124_v27 = vld [vmem:[%s8453_s20 + $0x3498] sm:$0xff] }
 0x3a1   : > { %5098 = vmatprep.subr.mxu1 %v1984_v24  ;;  %5137 = vmatprep.subr.mxu0 %v2080_v54  ;;  %v6467_v42 = vrot.slane %v4578_v31, 5  ;;  %v4580_v45 = vadd.f32 %v4579_v39, %v4508_v53  ;;  %v2130_v24 = vld [vmem:[%s8453_s20 + $0x34c8] sm:$0xff]  ;;  %v2129_v54 = vld [vmem:[%s8453_s20 + $0x34c0] sm:$0xff]  ;;  %v1920_v39 = vld [vmem:[%s8453_s20 + $0x2e38] sm:$0xff] }
 0x3a2   : > { %5099 = vmatpush2.msra.mxu1 %v1983_v11  ;;  %5138 = vmatpush1.msra.mxu0 %v2079_v28  ;;  %v1932_v11 = vld [vmem:[%s8453_s20 + $0x2e98] sm:$0xff]  ;;  %v1931_v28 = vld [vmem:[%s8453_s20 + $0x2e90] sm:$0xff]  ;;  %v1926_v31 = vld [vmem:[%s8453_s20 + $0x2e68] sm:$0xff] }
 0x3a3   : > { %5100 = vmatprep.subr.mxu1 %v1978_v30  ;;  %5139 = vmatprep.subr.mxu0 %v2074_v37  ;;  %v10280_v49 = vsel %vm6407_vm2, %v6467_v42, %v9973_v33  ;;  %v6481_v52 = vrot.slane %v4580_v45, 5  ;;  %v2123_v30 = vld [vmem:[%s8453_s20 + $0x3490] sm:$0xff]  ;;  %v2118_v53 = vld [vmem:[%s8453_s20 + $0x3468] sm:$0xff]  ;;  %v1925_v37 = vld [vmem:[%s8453_s20 + $0x2e60] sm:$0xff] }
 0x3a4   : > { %5101 = vmatpush2.msra.mxu1 %v1977_v38  ;;  %5102 = vmatprep.mubr.f32.mxu1 %v10267_v46  ;;  %v2117_v38 = vld [vmem:[%s8453_s20 + $0x3460] sm:$0xff]  ;;  %v1919_v42 = vld [vmem:[%s8453_s20 + $0x2e30] sm:$0xff] }
 0x3a5   : > { %5140 = vmatpush1.msra.mxu0 %v2073_v40  ;;  %5173 = vmatprep.mubr.f32.mxu0 %v8254_v0  ;;  %v10291_v33 = vsel %vm6407_vm2, %v6481_v52, %v9982_v26  ;;  %v2154_v26 = vld [vmem:[%s8453_s20 + $0x3588] sm:$0xff]  ;;  %v2112_v40 = vld [vmem:[%s8453_s20 + $0x3438] sm:$0xff]  ;;  %v2111_v45 = vld [vmem:[%s8453_s20 + $0x3430] sm:$0xff] }
 0x3a6   : > { %5103 = vmatmul.mubr.f32.vlgmr.msra.gmra.mxu1 %v10272_v44  ;;  %5174 = vmatmul.mubr.f32.vlgmr.msra.gmra.mxu0 %v10276_v48  ;;  %v2106_v52 = vld [vmem:[%s8453_s20 + $0x3408] sm:$0xff] }
 0x3a7   : > { %5180 = vmatprep.subr.mxu0 %v1974_v50  ;;  %5251 = vmatprep.subr.mxu1 %v2166_v56  ;;  %v1914_v50 = vld [vmem:[%s8453_s20 + $0x2e08] sm:$0xff]  ;;  %v1913_v56 = vld [vmem:[%s8453_s20 + $0x2e00] sm:$0xff] }
 0x3a8   : > { %5181 = vmatpush1.msra.mxu0 %v1973_v57  ;;  %5252 = vmatpush1.msra.mxu1 %v2165_v32  ;;  %v2105_v57 = vld [vmem:[%s8453_s20 + $0x3400] sm:$0xff]  ;;  %v1908_v32 = vld [vmem:[%s8453_s20 + $0x2dd8] sm:$0xff] }
 0x3a9   : > { %5182 = vmatprep.subr.mxu0 %v1968_v58  ;;  %5253 = vmatprep.subr.mxu1 %v2160_v63  ;;  %v2100_v58 = vld [vmem:[%s8453_s20 + $0x33d8] sm:$0xff]  ;;  %v1907_v63 = vld [vmem:[%s8453_s20 + $0x2dd0] sm:$0xff] }
 0x3aa   : > { %5183 = vmatpush1.msra.mxu0 %v1967_v60  ;;  %5254 = vmatpush1.msra.mxu1 %v2159_v36  ;;  %v2099_v60 = vld [vmem:[%s8453_s20 + $0x33d0] sm:$0xff]  ;;  %v1902_v36 = vld [vmem:[%s8453_s20 + $0x2da8] sm:$0xff] }
 0x3ab   : > { %5184 = vmatprep.subr.mxu0 %v1962_v62  ;;  %5255 = vmatprep.subr.mxu1 %v2154_v26  ;;  %v2094_v62 = vld [vmem:[%s8453_s20 + $0x33a8] sm:$0xff]  ;;  %v1901_v26 = vld [vmem:[%s8453_s20 + $0x2da0] sm:$0xff] }
 0x3ac   : > { %5185 = vmatpush1.msra.mxu0 %v1961_v3  ;;  %5256 = vmatpush1.msra.mxu1 %v2153_v4  ;;  %v2093_v3 = vld [vmem:[%s8453_s20 + $0x33a0] sm:$0xff]  ;;  %v1896_v4 = vld [vmem:[%s8453_s20 + $0x2d78] sm:$0xff] }
 0x3ad   : > { %5186 = vmatprep.subr.mxu0 %v1956_v17  ;;  %5257 = vmatprep.subr.mxu1 %v2148_v6  ;;  %v2088_v17 = vld [vmem:[%s8453_s20 + $0x3378] sm:$0xff]  ;;  %v1895_v6 = vld [vmem:[%s8453_s20 + $0x2d70] sm:$0xff] }
 0x3ae   : > { %5187 = vmatpush1.msra.mxu0 %v1955_v25  ;;  %5258 = vmatpush1.msra.mxu1 %v2147_v59  ;;  %v2087_v25 = vld [vmem:[%s8453_s20 + $0x3370] sm:$0xff]  ;;  %v1890_v59 = vld [vmem:[%s8453_s20 + $0x2d48] sm:$0xff] }
 0x3af   : > { %5188 = vmatprep.subr.mxu0 %v1950_v41  ;;  %5259 = vmatprep.subr.mxu1 %v2142_v15  ;;  %v2082_v41 = vld [vmem:[%s8453_s20 + $0x3348] sm:$0xff]  ;;  %v1889_v15 = vld [vmem:[%s8453_s20 + $0x2d40] sm:$0xff] }
 0x3b0   : > { %5189 = vmatpush1.msra.mxu0 %v1949_v18  ;;  %5260 = vmatpush1.msra.mxu1 %v2141_v47  ;;  %v2081_v18 = vld [vmem:[%s8453_s20 + $0x3340] sm:$0xff]  ;;  %v1884_v47 = vld [vmem:[%s8453_s20 + $0x2d18] sm:$0xff] }
 0x3b1   : > { %5190 = vmatprep.subr.mxu0 %v1944_v19  ;;  %5261 = vmatprep.subr.mxu1 %v2136_v21  ;;  %v2076_v19 = vld [vmem:[%s8453_s20 + $0x3318] sm:$0xff]  ;;  %v1883_v21 = vld [vmem:[%s8453_s20 + $0x2d10] sm:$0xff] }
 0x3b2   : > { %5191 = vmatpush1.msra.mxu0 %v1943_v10  ;;  %5262 = vmatpush1.msra.mxu1 %v2135_v13  ;;  %v2075_v10 = vld [vmem:[%s8453_s20 + $0x3310] sm:$0xff]  ;;  %v2070_v13 = vld [vmem:[%s8453_s20 + $0x32e8] sm:$0xff] }
 0x3b3   : > { %5192 = vmatprep.subr.mxu0 %v1938_v22  ;;  %5263 = vmatprep.subr.mxu1 %v2130_v24  ;;  %v1976_v22 = vld [vmem:[%s8453_s20 + $0x2ff8] sm:$0xff]  ;;  %v2069_v24 = vld [vmem:[%s8453_s20 + $0x32e0] sm:$0xff] }
 0x3b4   : > { %5193 = vmatpush1.msra.mxu0 %v1937_v29  ;;  %5264 = vmatpush1.msra.mxu1 %v2129_v54  ;;  %v1975_v29 = vld [vmem:[%s8453_s20 + $0x2ff0] sm:$0xff]  ;;  %v2064_v54 = vld [vmem:[%s8453_s20 + $0x32b8] sm:$0xff] }
 0x3b5   : > { %5194 = vmatprep.subr.mxu0 %v1932_v11  ;;  %5265 = vmatprep.subr.mxu1 %v2124_v27  ;;  %v1970_v11 = vld [vmem:[%s8453_s20 + $0x2fc8] sm:$0xff]  ;;  %v2063_v27 = vld [vmem:[%s8453_s20 + $0x32b0] sm:$0xff] }
 0x3b6   : > { %5195 = vmatpush1.msra.mxu0 %v1931_v28  ;;  %5266 = vmatpush1.msra.mxu1 %v2123_v30  ;;  %v1969_v28 = vld [vmem:[%s8453_s20 + $0x2fc0] sm:$0xff]  ;;  %v2058_v30 = vld [vmem:[%s8453_s20 + $0x3288] sm:$0xff] }
 0x3b7   : > { %5196 = vmatprep.subr.mxu0 %v1926_v31  ;;  %5267 = vmatprep.subr.mxu1 %v2118_v53  ;;  %v1964_v31 = vld [vmem:[%s8453_s20 + $0x2f98] sm:$0xff]  ;;  %v2057_v53 = vld [vmem:[%s8453_s20 + $0x3280] sm:$0xff] }
 0x3b8   : > { %5197 = vmatpush1.msra.mxu0 %v1925_v37  ;;  %5268 = vmatpush1.msra.mxu1 %v2117_v38  ;;  %v1963_v37 = vld [vmem:[%s8453_s20 + $0x2f90] sm:$0xff]  ;;  %v2052_v38 = vld [vmem:[%s8453_s20 + $0x3258] sm:$0xff] }
 0x3b9   : > { %5198 = vmatprep.subr.mxu0 %v1920_v39  ;;  %5269 = vmatprep.subr.mxu1 %v2112_v40  ;;  %v1958_v39 = vld [vmem:[%s8453_s20 + $0x2f68] sm:$0xff]  ;;  %v2051_v40 = vld [vmem:[%s8453_s20 + $0x3250] sm:$0xff] }
 0x3ba   : > { %5199 = vmatpush1.msra.mxu0 %v1919_v42  ;;  %5270 = vmatpush1.msra.mxu1 %v2111_v45  ;;  %v1957_v42 = vld [vmem:[%s8453_s20 + $0x2f60] sm:$0xff]  ;;  %v2046_v45 = vld [vmem:[%s8453_s20 + $0x3228] sm:$0xff] }
 0x3bb   : > { %5200 = vmatprep.subr.mxu0 %v1914_v50  ;;  %5271 = vmatprep.subr.mxu1 %v2106_v52  ;;  %v1952_v50 = vld [vmem:[%s8453_s20 + $0x2f38] sm:$0xff]  ;;  %v2045_v52 = vld [vmem:[%s8453_s20 + $0x3220] sm:$0xff] }
 0x3bc   : > { %5201 = vmatpush1.msra.mxu0 %v1913_v56  ;;  %5272 = vmatpush1.msra.mxu1 %v2105_v57  ;;  %v1951_v56 = vld [vmem:[%s8453_s20 + $0x2f30] sm:$0xff]  ;;  %v2040_v57 = vld [vmem:[%s8453_s20 + $0x31f8] sm:$0xff] }
 0x3bd   : > { %5202 = vmatprep.subr.mxu0 %v1908_v32  ;;  %5273 = vmatprep.subr.mxu1 %v2100_v58  ;;  %v1946_v32 = vld [vmem:[%s8453_s20 + $0x2f08] sm:$0xff]  ;;  %v2039_v58 = vld [vmem:[%s8453_s20 + $0x31f0] sm:$0xff] }
 0x3be   : > { %5203 = vmatpush1.msra.mxu0 %v1907_v63  ;;  %5274 = vmatpush1.msra.mxu1 %v2099_v60  ;;  %v1945_v63 = vld [vmem:[%s8453_s20 + $0x2f00] sm:$0xff]  ;;  %v2034_v60 = vld [vmem:[%s8453_s20 + $0x31c8] sm:$0xff] }
 0x3bf   : > { %5204 = vmatprep.subr.mxu0 %v1902_v36  ;;  %5275 = vmatprep.subr.mxu1 %v2094_v62  ;;  %v1940_v36 = vld [vmem:[%s8453_s20 + $0x2ed8] sm:$0xff]  ;;  %v2033_v62 = vld [vmem:[%s8453_s20 + $0x31c0] sm:$0xff] }
 0x3c0   : > { %5205 = vmatpush1.msra.mxu0 %v1901_v26  ;;  %5276 = vmatpush1.msra.mxu1 %v2093_v3  ;;  %v1939_v26 = vld [vmem:[%s8453_s20 + $0x2ed0] sm:$0xff]  ;;  %v2028_v3 = vld [vmem:[%s8453_s20 + $0x3198] sm:$0xff] }
 0x3c1   : > { %5206 = vmatprep.subr.mxu0 %v1896_v4  ;;  %5277 = vmatprep.subr.mxu1 %v2088_v17  ;;  %v1934_v4 = vld [vmem:[%s8453_s20 + $0x2ea8] sm:$0xff]  ;;  %v2027_v17 = vld [vmem:[%s8453_s20 + $0x3190] sm:$0xff] }
 0x3c2   : > { %5207 = vmatpush1.msra.mxu0 %v1895_v6  ;;  %5278 = vmatpush1.msra.mxu1 %v2087_v25  ;;  %v1933_v6 = vld [vmem:[%s8453_s20 + $0x2ea0] sm:$0xff]  ;;  %v2022_v25 = vld [vmem:[%s8453_s20 + $0x3168] sm:$0xff] }
 0x3c3   : > { %5208 = vmatprep.subr.mxu0 %v1890_v59  ;;  %5279 = vmatprep.subr.mxu1 %v2082_v41  ;;  %v1928_v59 = vld [vmem:[%s8453_s20 + $0x2e78] sm:$0xff]  ;;  %v2021_v41 = vld [vmem:[%s8453_s20 + $0x3160] sm:$0xff] }
 0x3c4   : > { %5209 = vmatpush1.msra.mxu0 %v1889_v15  ;;  %5280 = vmatpush1.msra.mxu1 %v2081_v18  ;;  %v1927_v15 = vld [vmem:[%s8453_s20 + $0x2e70] sm:$0xff]  ;;  %v2016_v18 = vld [vmem:[%s8453_s20 + $0x3138] sm:$0xff] }
 0x3c5   : > { %5210 = vmatprep.subr.mxu0 %v1884_v47  ;;  %5281 = vmatprep.subr.mxu1 %v2076_v19  ;;  %v1922_v47 = vld [vmem:[%s8453_s20 + $0x2e48] sm:$0xff]  ;;  %v2015_v19 = vld [vmem:[%s8453_s20 + $0x3130] sm:$0xff] }
 0x3c6   : > { %5211 = vmatpush1.msra.mxu0 %v1883_v21  ;;  %5282 = vmatpush1.msra.mxu1 %v2075_v10  ;;  %v1921_v21 = vld [vmem:[%s8453_s20 + $0x2e40] sm:$0xff]  ;;  %v2010_v10 = vld [vmem:[%s8453_s20 + $0x3108] sm:$0xff] }
 0x3c7   : > { %5212 = vmatprep.subr.mxu0 %v2070_v13  ;;  %5315 = vmatprep.mubr.f32.mxu1 %v8254_v0  ;;  %v1916_v13 = vld [vmem:[%s8453_s20 + $0x2e18] sm:$0xff] }
 0x3c8   : > { %5322 = vmatprep.subr.mxu1 %v1976_v22  ;;  %5213 = vmatpush2.msra.mxu0 %v2069_v24  ;;  %v2009_v22 = vld [vmem:[%s8453_s20 + $0x3100] sm:$0xff]  ;;  %v1915_v24 = vld [vmem:[%s8453_s20 + $0x2e10] sm:$0xff] }
 0x3c9   : > { %5316 = vmatmul.mubr.f32.vlgmr.msra.gmra.mxu1 %v10276_v48  ;;  %5214 = vmatprep.subr.mxu0 %v2064_v54  ;;  %v1910_v54 = vld [vmem:[%s8453_s20 + $0x2de8] sm:$0xff] }
 0x3ca   : > { %5323 = vmatpush1.msra.mxu1 %v1975_v29  ;;  %5215 = vmatpush2.msra.mxu0 %v2063_v27  ;;  %v2004_v29 = vld [vmem:[%s8453_s20 + $0x30d8] sm:$0xff]  ;;  %v1909_v27 = vld [vmem:[%s8453_s20 + $0x2de0] sm:$0xff] }
 0x3cb   : > { %5324 = vmatprep.subr.mxu1 %v1970_v11  ;;  %5216 = vmatprep.subr.mxu0 %v2058_v30  ;;  %v2003_v11 = vld [vmem:[%s8453_s20 + $0x30d0] sm:$0xff]  ;;  %v1904_v30 = vld [vmem:[%s8453_s20 + $0x2db8] sm:$0xff] }
 0x3cc   : > { %5325 = vmatpush1.msra.mxu1 %v1969_v28  ;;  %5217 = vmatpush2.msra.mxu0 %v2057_v53  ;;  %v1998_v28 = vld [vmem:[%s8453_s20 + $0x30a8] sm:$0xff]  ;;  %v1903_v53 = vld [vmem:[%s8453_s20 + $0x2db0] sm:$0xff] }
 0x3cd   : > { %5326 = vmatprep.subr.mxu1 %v1964_v31  ;;  %5218 = vmatprep.subr.mxu0 %v2052_v38  ;;  %v1997_v31 = vld [vmem:[%s8453_s20 + $0x30a0] sm:$0xff]  ;;  %v1898_v38 = vld [vmem:[%s8453_s20 + $0x2d88] sm:$0xff] }
 0x3ce   : > { %5327 = vmatpush1.msra.mxu1 %v1963_v37  ;;  %5219 = vmatpush2.msra.mxu0 %v2051_v40  ;;  %v1992_v37 = vld [vmem:[%s8453_s20 + $0x3078] sm:$0xff]  ;;  %v1897_v40 = vld [vmem:[%s8453_s20 + $0x2d80] sm:$0xff] }
 0x3cf   : > { %5328 = vmatprep.subr.mxu1 %v1958_v39  ;;  %5220 = vmatprep.subr.mxu0 %v2046_v45  ;;  %v1991_v39 = vld [vmem:[%s8453_s20 + $0x3070] sm:$0xff]  ;;  %v1892_v45 = vld [vmem:[%s8453_s20 + $0x2d58] sm:$0xff] }
 0x3d0   : > { %5329 = vmatpush1.msra.mxu1 %v1957_v42  ;;  %5221 = vmatpush2.msra.mxu0 %v2045_v52  ;;  %v1986_v42 = vld [vmem:[%s8453_s20 + $0x3048] sm:$0xff]  ;;  %v1891_v52 = vld [vmem:[%s8453_s20 + $0x2d50] sm:$0xff] }
 0x3d1   : > { %5330 = vmatprep.subr.mxu1 %v1952_v50  ;;  %5222 = vmatprep.subr.mxu0 %v2040_v57  ;;  %v1985_v50 = vld [vmem:[%s8453_s20 + $0x3040] sm:$0xff]  ;;  %v1886_v57 = vld [vmem:[%s8453_s20 + $0x2d28] sm:$0xff] }
 0x3d2   : > { %5331 = vmatpush1.msra.mxu1 %v1951_v56  ;;  %5223 = vmatpush2.msra.mxu0 %v2039_v58  ;;  %v1980_v56 = vld [vmem:[%s8453_s20 + $0x3018] sm:$0xff]  ;;  %v1885_v58 = vld [vmem:[%s8453_s20 + $0x2d20] sm:$0xff] }
 0x3d3   : > { %5332 = vmatprep.subr.mxu1 %v1946_v32  ;;  %5224 = vmatprep.subr.mxu0 %v2034_v60  ;;  %v1979_v32 = vld [vmem:[%s8453_s20 + $0x3010] sm:$0xff]  ;;  %v2168_v60 = vld [vmem:[%s8453_s20 + $0x35f8] sm:$0xff] }
 0x3d4   : > { %5333 = vmatpush1.msra.mxu1 %v1945_v63  ;;  %5225 = vmatpush2.msra.mxu0 %v2033_v62  ;;  %v2072_v63 = vld [vmem:[%s8453_s20 + $0x32f8] sm:$0xff]  ;;  %v2167_v62 = vld [vmem:[%s8453_s20 + $0x35f0] sm:$0xff] }
 0x3d5   : > { %5334 = vmatprep.subr.mxu1 %v1940_v36  ;;  %5226 = vmatprep.subr.mxu0 %v2028_v3  ;;  %v2071_v36 = vld [vmem:[%s8453_s20 + $0x32f0] sm:$0xff]  ;;  %v2162_v3 = vld [vmem:[%s8453_s20 + $0x35c8] sm:$0xff] }
 0x3d6   : > { %5335 = vmatpush1.msra.mxu1 %v1939_v26  ;;  %5227 = vmatpush2.msra.mxu0 %v2027_v17  ;;  %v2066_v26 = vld [vmem:[%s8453_s20 + $0x32c8] sm:$0xff]  ;;  %v2161_v17 = vld [vmem:[%s8453_s20 + $0x35c0] sm:$0xff] }
 0x3d7   : > { %5336 = vmatprep.subr.mxu1 %v1934_v4  ;;  %5228 = vmatprep.subr.mxu0 %v2022_v25  ;;  %v2065_v4 = vld [vmem:[%s8453_s20 + $0x32c0] sm:$0xff]  ;;  %v2156_v25 = vld [vmem:[%s8453_s20 + $0x3598] sm:$0xff] }
 0x3d8   : > { %5337 = vmatpush1.msra.mxu1 %v1933_v6  ;;  %5229 = vmatpush2.msra.mxu0 %v2021_v41  ;;  %v2060_v6 = vld [vmem:[%s8453_s20 + $0x3298] sm:$0xff]  ;;  %v2155_v41 = vld [vmem:[%s8453_s20 + $0x3590] sm:$0xff] }
 0x3d9   : > { %5338 = vmatprep.subr.mxu1 %v1928_v59  ;;  %5230 = vmatprep.subr.mxu0 %v2016_v18  ;;  %v2059_v59 = vld [vmem:[%s8453_s20 + $0x3290] sm:$0xff]  ;;  %v2150_v18 = vld [vmem:[%s8453_s20 + $0x3568] sm:$0xff] }
 0x3da   : > { %5339 = vmatpush1.msra.mxu1 %v1927_v15  ;;  %5231 = vmatpush2.msra.mxu0 %v2015_v19  ;;  %v2054_v15 = vld [vmem:[%s8453_s20 + $0x3268] sm:$0xff]  ;;  %v2149_v19 = vld [vmem:[%s8453_s20 + $0x3560] sm:$0xff] }
 0x3db   : > { %5340 = vmatprep.subr.mxu1 %v1922_v47  ;;  %5232 = vmatprep.subr.mxu0 %v2010_v10  ;;  %v2053_v47 = vld [vmem:[%s8453_s20 + $0x3260] sm:$0xff]  ;;  %v2144_v10 = vld [vmem:[%s8453_s20 + $0x3538] sm:$0xff] }
 0x3dc   : > { %5341 = vmatpush1.msra.mxu1 %v1921_v21  ;;  %5233 = vmatpush2.msra.mxu0 %v2009_v22  ;;  %v2048_v21 = vld [vmem:[%s8453_s20 + $0x3238] sm:$0xff]  ;;  %v2143_v22 = vld [vmem:[%s8453_s20 + $0x3530] sm:$0xff] }
 0x3dd   : > { %5342 = vmatprep.subr.mxu1 %v1916_v13  ;;  %5234 = vmatprep.subr.mxu0 %v2004_v29  ;;  %v2047_v13 = vld [vmem:[%s8453_s20 + $0x3230] sm:$0xff]  ;;  %v2138_v29 = vld [vmem:[%s8453_s20 + $0x3508] sm:$0xff] }
 0x3de   : > { %5343 = vmatpush1.msra.mxu1 %v1915_v24  ;;  %5235 = vmatpush2.msra.mxu0 %v2003_v11  ;;  %v2042_v24 = vld [vmem:[%s8453_s20 + $0x3208] sm:$0xff]  ;;  %v2137_v11 = vld [vmem:[%s8453_s20 + $0x3500] sm:$0xff] }
 0x3df   : > { %5344 = vmatprep.subr.mxu1 %v1910_v54  ;;  %5236 = vmatprep.subr.mxu0 %v1998_v28  ;;  %v2041_v54 = vld [vmem:[%s8453_s20 + $0x3200] sm:$0xff]  ;;  %v2132_v28 = vld [vmem:[%s8453_s20 + $0x34d8] sm:$0xff] }
 0x3e0   : > { %5345 = vmatpush1.msra.mxu1 %v1909_v27  ;;  %5237 = vmatpush2.msra.mxu0 %v1997_v31  ;;  %v2036_v27 = vld [vmem:[%s8453_s20 + $0x31d8] sm:$0xff]  ;;  %v2131_v31 = vld [vmem:[%s8453_s20 + $0x34d0] sm:$0xff] }
 0x3e1   : > { %5346 = vmatprep.subr.mxu1 %v1904_v30  ;;  %5238 = vmatprep.subr.mxu0 %v1992_v37  ;;  %v2035_v30 = vld [vmem:[%s8453_s20 + $0x31d0] sm:$0xff]  ;;  %v2126_v37 = vld [vmem:[%s8453_s20 + $0x34a8] sm:$0xff] }
 0x3e2   : > { %5347 = vmatpush1.msra.mxu1 %v1903_v53  ;;  %5239 = vmatpush2.msra.mxu0 %v1991_v39  ;;  %v2030_v53 = vld [vmem:[%s8453_s20 + $0x31a8] sm:$0xff]  ;;  %v2125_v39 = vld [vmem:[%s8453_s20 + $0x34a0] sm:$0xff] }
 0x3e3   : > { %5348 = vmatprep.subr.mxu1 %v1898_v38  ;;  %5240 = vmatprep.subr.mxu0 %v1986_v42  ;;  %v2029_v38 = vld [vmem:[%s8453_s20 + $0x31a0] sm:$0xff]  ;;  %v2120_v42 = vld [vmem:[%s8453_s20 + $0x3478] sm:$0xff] }
 0x3e4   : > { %5349 = vmatpush1.msra.mxu1 %v1897_v40  ;;  %5241 = vmatpush2.msra.mxu0 %v1985_v50  ;;  %v2024_v40 = vld [vmem:[%s8453_s20 + $0x3178] sm:$0xff]  ;;  %v2119_v50 = vld [vmem:[%s8453_s20 + $0x3470] sm:$0xff] }
 0x3e5   : > { %5350 = vmatprep.subr.mxu1 %v1892_v45  ;;  %5242 = vmatprep.subr.mxu0 %v1980_v56  ;;  %v2023_v45 = vld [vmem:[%s8453_s20 + $0x3170] sm:$0xff]  ;;  %v2114_v56 = vld [vmem:[%s8453_s20 + $0x3448] sm:$0xff] }
 0x3e6   : > { %5351 = vmatpush1.msra.mxu1 %v1891_v52  ;;  %5243 = vmatpush2.msra.mxu0 %v1979_v32  ;;  %v2018_v52 = vld [vmem:[%s8453_s20 + $0x3148] sm:$0xff]  ;;  %v2113_v32 = vld [vmem:[%s8453_s20 + $0x3440] sm:$0xff] }
 0x3e7   : > { %5352 = vmatprep.subr.mxu1 %v1886_v57  ;;  %5244 = vmatprep.mubr.f32.mxu0 %v10267_v46  ;;  %v2017_v57 = vld [vmem:[%s8453_s20 + $0x3140] sm:$0xff] }
 0x3e8   : > { %5353 = vmatpush1.msra.mxu1 %v1885_v58  ;;  %5245 = vmatmul.mubr.f32.vlgmr.msra.gmra.mxu0 %v10272_v44  ;;  %v2012_v58 = vld [vmem:[%s8453_s20 + $0x3118] sm:$0xff] }
 0x3e9   : > { %5354 = vmatprep.subr.mxu1 %v2072_v63  ;;  %5393 = vmatprep.subr.mxu0 %v2168_v60  ;;  %v2108_v63 = vld [vmem:[%s8453_s20 + $0x3418] sm:$0xff]  ;;  %v2011_v60 = vld [vmem:[%s8453_s20 + $0x3110] sm:$0xff] }
 0x3ea   : > { %5355 = vmatpush2.msra.mxu1 %v2071_v36  ;;  %5394 = vmatpush1.msra.mxu0 %v2167_v62  ;;  %v10465_v36 = vpop.f32.mrf.mxu1  ;;  %v2107_v62 = vld [vmem:[%s8453_s20 + $0x3410] sm:$0xff] }
 0x3eb   : > { %5356 = vmatprep.subr.mxu1 %v2066_v26  ;;  %5395 = vmatprep.subr.mxu0 %v2162_v3  ;;  %v2006_v26 = vld [vmem:[%s8453_s20 + $0x30e8] sm:$0xff]  ;;  %v10469_v3 = vpop.f32.mrf.mxu0 }
 0x3ec   : > { %5357 = vmatpush2.msra.mxu1 %v2065_v4  ;;  %5396 = vmatpush1.msra.mxu0 %v2161_v17  ;;  %v2102_v4 = vld [vmem:[%s8453_s20 + $0x33e8] sm:$0xff]  ;;  %v2005_v17 = vld [vmem:[%s8453_s20 + $0x30e0] sm:$0xff] }
 0x3ed   : > { %5358 = vmatprep.subr.mxu1 %v2060_v6  ;;  %5397 = vmatprep.subr.mxu0 %v2156_v25  ;;  %v2101_v6 = vld [vmem:[%s8453_s20 + $0x33e0] sm:$0xff]  ;;  %v2000_v25 = vld [vmem:[%s8453_s20 + $0x30b8] sm:$0xff] }
 0x3ee   : > { %5359 = vmatpush2.msra.mxu1 %v2059_v59  ;;  %5398 = vmatpush1.msra.mxu0 %v2155_v41  ;;  %v2096_v59 = vld [vmem:[%s8453_s20 + $0x33b8] sm:$0xff]  ;;  %v1999_v41 = vld [vmem:[%s8453_s20 + $0x30b0] sm:$0xff] }
 0x3ef   : > { %5360 = vmatprep.subr.mxu1 %v2054_v15  ;;  %5399 = vmatprep.subr.mxu0 %v2150_v18  ;;  %v10477_v15 = vpop.f32.mrf.mxu1  ;;  %v2095_v18 = vld [vmem:[%s8453_s20 + $0x33b0] sm:$0xff] }
 0x3f0   : > { %5361 = vmatpush2.msra.mxu1 %v2053_v47  ;;  %5400 = vmatpush1.msra.mxu0 %v2149_v19  ;;  %v1994_v47 = vld [vmem:[%s8453_s20 + $0x3088] sm:$0xff]  ;;  %v10481_v19 = vpop.f32.mrf.mxu0 }
 0x3f1   : > { %5362 = vmatprep.subr.mxu1 %v2048_v21  ;;  %5401 = vmatprep.subr.mxu0 %v2144_v10  ;;  %v2090_v21 = vld [vmem:[%s8453_s20 + $0x3388] sm:$0xff]  ;;  %v1993_v10 = vld [vmem:[%s8453_s20 + $0x3080] sm:$0xff] }
 0x3f2   : > { %5363 = vmatpush2.msra.mxu1 %v2047_v13  ;;  %5402 = vmatpush1.msra.mxu0 %v2143_v22  ;;  %v2089_v13 = vld [vmem:[%s8453_s20 + $0x3380] sm:$0xff]  ;;  %v1988_v22 = vld [vmem:[%s8453_s20 + $0x3058] sm:$0xff] }
 0x3f3   : > { %5364 = vmatprep.subr.mxu1 %v2042_v24  ;;  %5403 = vmatprep.subr.mxu0 %v2138_v29  ;;  %v2084_v29 = vld [vmem:[%s8453_s20 + $0x3358] sm:$0xff] }
 0x3f4   : > { %5365 = vmatpush2.msra.mxu1 %v2041_v54  ;;  %5404 = vmatpush1.msra.mxu0 %v2137_v11  ;;  %v1987_v54 = vld [vmem:[%s8453_s20 + $0x3050] sm:$0xff] }
 0x3f5   : > { %5366 = vmatprep.subr.mxu1 %v2036_v27  ;;  %5405 = vmatprep.subr.mxu0 %v2132_v28  ;;  %v2083_v27 = vld [vmem:[%s8453_s20 + $0x3350] sm:$0xff]  ;;  %v1982_v28 = vld [vmem:[%s8453_s20 + $0x3028] sm:$0xff] }
 0x3f6   : > { %5367 = vmatpush2.msra.mxu1 %v2035_v30  ;;  %5406 = vmatpush1.msra.mxu0 %v2131_v31 }
 0x3f7   : > { %5368 = vmatprep.subr.mxu1 %v2030_v53  ;;  %5407 = vmatprep.subr.mxu0 %v2126_v37  ;;  %v2078_v53 = vld [vmem:[%s8453_s20 + $0x3328] sm:$0xff]  ;;  %v1981_v37 = vld [vmem:[%s8453_s20 + $0x3020] sm:$0xff] }
 0x3f8   : > { %5369 = vmatpush2.msra.mxu1 %v2029_v38  ;;  %5408 = vmatpush1.msra.mxu0 %v2125_v39  ;;  %v2077_v39 = vld [vmem:[%s8453_s20 + $0x3320] sm:$0xff] }
 0x3f9   : > { %5370 = vmatprep.subr.mxu1 %v2024_v40  ;;  %5409 = vmatprep.subr.mxu0 %v2120_v42 }
 0x3fa   : > { %5371 = vmatpush2.msra.mxu1 %v2023_v45  ;;  %5410 = vmatpush1.msra.mxu0 %v2119_v50  ;;  %v2260_v50 = vld [vmem:[%s8453_s20 + $0x38d8] sm:$0xff] }
 0x3fb   : > { %5372 = vmatprep.subr.mxu1 %v2018_v52  ;;  %5411 = vmatprep.subr.mxu0 %v2114_v56  ;;  %v2452_v56 = vld [vmem:[%s8453_s20 + $0x3ed8] sm:$0xff] }
 0x3fc   : > { %5373 = vmatpush2.msra.mxu1 %v2017_v57  ;;  %5412 = vmatpush1.msra.mxu0 %v2113_v32  ;;  %v2259_v57 = vld [vmem:[%s8453_s20 + $0x38d0] sm:$0xff] }
 0x3fd   : > { %5374 = vmatprep.subr.mxu1 %v2012_v58  ;;  %5413 = vmatprep.subr.mxu0 %v2108_v63  ;;  %v2451_v32 = vld [vmem:[%s8453_s20 + $0x3ed0] sm:$0xff]  ;;  %v2254_v58 = vld [vmem:[%s8453_s20 + $0x38a8] sm:$0xff]  ;;  %v2253_v63 = vld [vmem:[%s8453_s20 + $0x38a0] sm:$0xff] }
 0x3fe   : > { %5375 = vmatpush2.msra.mxu1 %v2011_v60  ;;  %5414 = vmatpush1.msra.mxu0 %v2107_v62  ;;  %v2445_v60 = vld [vmem:[%s8453_s20 + $0x3ea0] sm:$0xff]  ;;  %v2247_v62 = vld [vmem:[%s8453_s20 + $0x3870] sm:$0xff] }
 0x3ff   : > { %5376 = vmatprep.subr.mxu1 %v2006_v26  ;;  %5415 = vmatprep.subr.mxu0 %v2102_v4  ;;  %v2242_v26 = vld [vmem:[%s8453_s20 + $0x3848] sm:$0xff] }
 0x400   : > { %5377 = vmatpush2.msra.mxu1 %v2005_v17  ;;  %5416 = vmatpush1.msra.mxu0 %v2101_v6  ;;  %v2434_v4 = vld [vmem:[%s8453_s20 + $0x3e48] sm:$0xff]  ;;  %v2241_v17 = vld [vmem:[%s8453_s20 + $0x3840] sm:$0xff] }
 0x401   : > { %5378 = vmatprep.subr.mxu1 %v2000_v25  ;;  %5417 = vmatprep.subr.mxu0 %v2096_v59  ;;  %v2433_v6 = vld [vmem:[%s8453_s20 + $0x3e40] sm:$0xff]  ;;  %v2236_v25 = vld [vmem:[%s8453_s20 + $0x3818] sm:$0xff] }
 0x402   : > { %5379 = vmatpush2.msra.mxu1 %v1999_v41  ;;  %v4805_v24 = vpop.f32.mrf.mxu1  ;;  %5418 = vmatpush1.msra.mxu0 %v2095_v18  ;;  %v4876_v11 = vpop.f32.mrf.mxu0  ;;  %v2428_v59 = vld [vmem:[%s8453_s20 + $0x3e18] sm:$0xff]  ;;  %v2235_v41 = vld [vmem:[%s8453_s20 + $0x3810] sm:$0xff] }
 0x403   : > { %5380 = vmatprep.subr.mxu1 %v1994_v47  ;;  %5419 = vmatprep.subr.mxu0 %v2090_v21  ;;  %v4877_v30 = vadd.f32 %v4876_v11, %v4805_v24  ;;  %v2427_v18 = vld [vmem:[%s8453_s20 + $0x3e10] sm:$0xff]  ;;  %v2230_v47 = vld [vmem:[%s8453_s20 + $0x37e8] sm:$0xff]  ;;  %v2416_v24 = vld [vmem:[%s8453_s20 + $0x3db8] sm:$0xff] }
 0x404   : > { %5381 = vmatpush2.msra.mxu1 %v1993_v10  ;;  %v4807_v31 = vpop.f32.mrf.mxu1  ;;  %5420 = vmatpush1.msra.mxu0 %v2089_v13  ;;  %v4878_v38 = vpop.f32.mrf.mxu0  ;;  %v2422_v21 = vld [vmem:[%s8453_s20 + $0x3de8] sm:$0xff]  ;;  %v2229_v10 = vld [vmem:[%s8453_s20 + $0x37e0] sm:$0xff] }
 0x405   : > { %5382 = vmatprep.subr.mxu1 %v1988_v22  ;;  %5421 = vmatprep.subr.mxu0 %v2084_v29  ;;  %v6441_v40 = vrot.slane %v4877_v30, 4  ;;  %v4879_v42 = vadd.f32 %v4878_v38, %v4807_v31  ;;  %v2421_v13 = vld [vmem:[%s8453_s20 + $0x3de0] sm:$0xff]  ;;  %v2224_v22 = vld [vmem:[%s8453_s20 + $0x37b8] sm:$0xff]  ;;  %v2223_v29 = vld [vmem:[%s8453_s20 + $0x37b0] sm:$0xff] }
 0x406   : > { %5383 = vmatpush2.msra.mxu1 %v1987_v54  ;;  %5422 = vmatpush1.msra.mxu0 %v2083_v27  ;;  %v2415_v54 = vld [vmem:[%s8453_s20 + $0x3db0] sm:$0xff]  ;;  %v2218_v11 = vld [vmem:[%s8453_s20 + $0x3788] sm:$0xff]  ;;  %v2409_v30 = vld [vmem:[%s8453_s20 + $0x3d80] sm:$0xff] }
 0x407   : > { %5384 = vmatprep.subr.mxu1 %v1982_v28  ;;  %5423 = vmatprep.subr.mxu0 %v2078_v53  ;;  %v10496_v45 = vsel %vm6410_vm3, %v6441_v40, %v10189_v61  ;;  %v6455_v52 = vrot.slane %v4879_v42, 4  ;;  %v2410_v27 = vld [vmem:[%s8453_s20 + $0x3d88] sm:$0xff]  ;;  %v2217_v28 = vld [vmem:[%s8453_s20 + $0x3780] sm:$0xff]  ;;  %v2212_v31 = vld [vmem:[%s8453_s20 + $0x3758] sm:$0xff] }
 0x408   : > { %5385 = vmatpush2.msra.mxu1 %v1981_v37  ;;  %5386 = vmatprep.mubr.f32.mxu1 %v10267_v46  ;;  %v2446_v46 = vld [vmem:[%s8453_s20 + $0x3ea8] sm:$0xff]  ;;  %v2404_v53 = vld [vmem:[%s8453_s20 + $0x3d58] sm:$0xff]  ;;  %v2211_v37 = vld [vmem:[%s8453_s20 + $0x3750] sm:$0xff] }
 0x409   : > { %5424 = vmatpush1.msra.mxu0 %v2077_v39  ;;  %5457 = vmatprep.mubr.f32.mxu0 %v8254_v0  ;;  %v10507_v61 = vsel %vm6410_vm3, %v6455_v52, %v10198_v7  ;;  %v2440_v7 = vld [vmem:[%s8453_s20 + $0x3e78] sm:$0xff]  ;;  %v2403_v38 = vld [vmem:[%s8453_s20 + $0x3d50] sm:$0xff]  ;;  %v2206_v39 = vld [vmem:[%s8453_s20 + $0x3728] sm:$0xff] }
 0x40a   : > { %5387 = vmatmul.mubr.f32.vlgmr.msra.gmra.mxu1 %v10272_v44  ;;  %5458 = vmatmul.mubr.f32.vlgmr.msra.gmra.mxu0 %v10276_v48  ;;  %v2248_v44 = vld [vmem:[%s8453_s20 + $0x3878] sm:$0xff]  ;;  %v2439_v48 = vld [vmem:[%s8453_s20 + $0x3e70] sm:$0xff]  ;;  %v2398_v40 = vld [vmem:[%s8453_s20 + $0x3d28] sm:$0xff] }
 0x40b   : > { %5479 = vmatprep.subr.mxu0 %v2260_v50  ;;  %5550 = vmatprep.subr.mxu1 %v2452_v56  ;;  %v2205_v42 = vld [vmem:[%s8453_s20 + $0x3720] sm:$0xff]  ;;  %v2200_v52 = vld [vmem:[%s8453_s20 + $0x36f8] sm:$0xff] }
 0x40c   : > { %5480 = vmatpush1.msra.mxu0 %v2259_v57  ;;  %5551 = vmatpush1.msra.mxu1 %v2451_v32  ;;  %v2397_v50 = vld [vmem:[%s8453_s20 + $0x3d20] sm:$0xff]  ;;  %v2392_v56 = vld [vmem:[%s8453_s20 + $0x3cf8] sm:$0xff]  ;;  %v2199_v57 = vld [vmem:[%s8453_s20 + $0x36f0] sm:$0xff] }
 0x40d   : > { %5481 = vmatprep.subr.mxu0 %v2254_v58  ;;  %5552 = vmatprep.subr.mxu1 %v2446_v46  ;;  %v2391_v32 = vld [vmem:[%s8453_s20 + $0x3cf0] sm:$0xff]  ;;  %v2194_v58 = vld [vmem:[%s8453_s20 + $0x36c8] sm:$0xff] }
 0x40e   : > { %5482 = vmatpush1.msra.mxu0 %v2253_v63  ;;  %5553 = vmatpush1.msra.mxu1 %v2445_v60  ;;  %v2386_v46 = vld [vmem:[%s8453_s20 + $0x3cc8] sm:$0xff]  ;;  %v2193_v63 = vld [vmem:[%s8453_s20 + $0x36c0] sm:$0xff] }
 0x40f   : > { %5483 = vmatprep.subr.mxu0 %v2248_v44  ;;  %5554 = vmatprep.subr.mxu1 %v2440_v7  ;;  %v2385_v60 = vld [vmem:[%s8453_s20 + $0x3cc0] sm:$0xff]  ;;  %v2188_v44 = vld [vmem:[%s8453_s20 + $0x3698] sm:$0xff] }
 0x410   : > { %5484 = vmatpush1.msra.mxu0 %v2247_v62  ;;  %5555 = vmatpush1.msra.mxu1 %v2439_v48  ;;  %v2380_v7 = vld [vmem:[%s8453_s20 + $0x3c98] sm:$0xff]  ;;  %v2187_v62 = vld [vmem:[%s8453_s20 + $0x3690] sm:$0xff] }
 0x411   : > { %5485 = vmatprep.subr.mxu0 %v2242_v26  ;;  %5556 = vmatprep.subr.mxu1 %v2434_v4  ;;  %v2379_v48 = vld [vmem:[%s8453_s20 + $0x3c90] sm:$0xff]  ;;  %v2182_v26 = vld [vmem:[%s8453_s20 + $0x3668] sm:$0xff] }
 0x412   : > { %5486 = vmatpush1.msra.mxu0 %v2241_v17  ;;  %5557 = vmatpush1.msra.mxu1 %v2433_v6  ;;  %v2374_v4 = vld [vmem:[%s8453_s20 + $0x3c68] sm:$0xff]  ;;  %v2181_v17 = vld [vmem:[%s8453_s20 + $0x3660] sm:$0xff] }
 0x413   : > { %5487 = vmatprep.subr.mxu0 %v2236_v25  ;;  %5558 = vmatprep.subr.mxu1 %v2428_v59  ;;  %v2373_v6 = vld [vmem:[%s8453_s20 + $0x3c60] sm:$0xff]  ;;  %v2176_v25 = vld [vmem:[%s8453_s20 + $0x3638] sm:$0xff] }
 0x414   : > { %5488 = vmatpush1.msra.mxu0 %v2235_v41  ;;  %5559 = vmatpush1.msra.mxu1 %v2427_v18  ;;  %v2368_v59 = vld [vmem:[%s8453_s20 + $0x3c38] sm:$0xff]  ;;  %v2175_v41 = vld [vmem:[%s8453_s20 + $0x3630] sm:$0xff]  ;;  %v10567_v18 = vcombine.high %v9886_v35, %v9886_v35  ;;  %v2262_v35 = vld [vmem:[%s8453_s20 + $0x38e8] sm:$0xff] }
 0x415   : > { %5489 = vmatprep.subr.mxu0 %v2230_v47  ;;  %5560 = vmatprep.subr.mxu1 %v2422_v21  ;;  %v2367_v47 = vld [vmem:[%s8453_s20 + $0x3c30] sm:$0xff]  ;;  %v2170_v21 = vld [vmem:[%s8453_s20 + $0x3608] sm:$0xff] }
 0x416   : > { %5490 = vmatpush1.msra.mxu0 %v2229_v10  ;;  %5561 = vmatpush1.msra.mxu1 %v2421_v13  ;;  %v2362_v10 = vld [vmem:[%s8453_s20 + $0x3c08] sm:$0xff]  ;;  %v2169_v13 = vld [vmem:[%s8453_s20 + $0x3600] sm:$0xff] }
 0x417   : > { %5491 = vmatprep.subr.mxu0 %v2224_v22  ;;  %5562 = vmatprep.subr.mxu1 %v2416_v24  ;;  %v2361_v22 = vld [vmem:[%s8453_s20 + $0x3c00] sm:$0xff]  ;;  %v2356_v24 = vld [vmem:[%s8453_s20 + $0x3bd8] sm:$0xff] }
 0x418   : > { %5492 = vmatpush1.msra.mxu0 %v2223_v29  ;;  %5563 = vmatpush1.msra.mxu1 %v2415_v54  ;;  %v10578_v29 = vrot.slane %v10567_v18, %v8555_v8  ;;  %v2355_v54 = vld [vmem:[%s8453_s20 + $0x3bd0] sm:$0xff] }
 0x419   : > { %5493 = vmatprep.subr.mxu0 %v2218_v11  ;;  %5564 = vmatprep.subr.mxu1 %v2410_v27  ;;  %v2261_v11 = vld [vmem:[%s8453_s20 + $0x38e0] sm:$0xff]  ;;  %v2350_v27 = vld [vmem:[%s8453_s20 + $0x3ba8] sm:$0xff] }
 0x41a   : > { %5494 = vmatpush1.msra.mxu0 %v2217_v28  ;;  %5565 = vmatpush1.msra.mxu1 %v2409_v30  ;;  %v2256_v28 = vld [vmem:[%s8453_s20 + $0x38b8] sm:$0xff]  ;;  %v2349_v30 = vld [vmem:[%s8453_s20 + $0x3ba0] sm:$0xff] }
 0x41b   : > { %5495 = vmatprep.subr.mxu0 %v2212_v31  ;;  %5566 = vmatprep.subr.mxu1 %v2404_v53  ;;  %v2255_v31 = vld [vmem:[%s8453_s20 + $0x38b0] sm:$0xff]  ;;  %v2344_v53 = vld [vmem:[%s8453_s20 + $0x3b78] sm:$0xff] }
 0x41c   : > { %5496 = vmatpush1.msra.mxu0 %v2211_v37  ;;  %5567 = vmatpush1.msra.mxu1 %v2403_v38  ;;  %v2250_v37 = vld [vmem:[%s8453_s20 + $0x3888] sm:$0xff]  ;;  %v2343_v38 = vld [vmem:[%s8453_s20 + $0x3b70] sm:$0xff] }
 0x41d   : > { %5497 = vmatprep.subr.mxu0 %v2206_v39  ;;  %5568 = vmatprep.subr.mxu1 %v2398_v40  ;;  %v2249_v39 = vld [vmem:[%s8453_s20 + $0x3880] sm:$0xff]  ;;  %v2338_v40 = vld [vmem:[%s8453_s20 + $0x3b48] sm:$0xff] }
 0x41e   : > { %5498 = vmatpush1.msra.mxu0 %v2205_v42  ;;  %5569 = vmatpush1.msra.mxu1 %v2397_v50  ;;  %v2244_v42 = vld [vmem:[%s8453_s20 + $0x3858] sm:$0xff]  ;;  %v2337_v50 = vld [vmem:[%s8453_s20 + $0x3b40] sm:$0xff] }
 0x41f   : > { %5499 = vmatprep.subr.mxu0 %v2200_v52  ;;  %5570 = vmatprep.subr.mxu1 %v2392_v56  ;;  %v2243_v52 = vld [vmem:[%s8453_s20 + $0x3850] sm:$0xff]  ;;  %v2332_v56 = vld [vmem:[%s8453_s20 + $0x3b18] sm:$0xff] }
 0x420   : > { %5500 = vmatpush1.msra.mxu0 %v2199_v57  ;;  %5571 = vmatpush1.msra.mxu1 %v2391_v32  ;;  %v2238_v57 = vld [vmem:[%s8453_s20 + $0x3828] sm:$0xff]  ;;  %v2331_v32 = vld [vmem:[%s8453_s20 + $0x3b10] sm:$0xff] }
 0x421   : > { %5501 = vmatprep.subr.mxu0 %v2194_v58  ;;  %5572 = vmatprep.subr.mxu1 %v2386_v46  ;;  %v2237_v58 = vld [vmem:[%s8453_s20 + $0x3820] sm:$0xff]  ;;  %v2326_v46 = vld [vmem:[%s8453_s20 + $0x3ae8] sm:$0xff] }
 0x422   : > { %5502 = vmatpush1.msra.mxu0 %v2193_v63  ;;  %5573 = vmatpush1.msra.mxu1 %v2385_v60  ;;  %v2232_v63 = vld [vmem:[%s8453_s20 + $0x37f8] sm:$0xff]  ;;  %v2325_v60 = vld [vmem:[%s8453_s20 + $0x3ae0] sm:$0xff] }
 0x423   : > { %5503 = vmatprep.subr.mxu0 %v2188_v44  ;;  %5574 = vmatprep.subr.mxu1 %v2380_v7  ;;  %v2231_v44 = vld [vmem:[%s8453_s20 + $0x37f0] sm:$0xff]  ;;  %v2320_v7 = vld [vmem:[%s8453_s20 + $0x3ab8] sm:$0xff] }
 0x424   : > { %5504 = vmatpush1.msra.mxu0 %v2187_v62  ;;  %5575 = vmatpush1.msra.mxu1 %v2379_v48  ;;  %v2226_v62 = vld [vmem:[%s8453_s20 + $0x37c8] sm:$0xff]  ;;  %v2319_v48 = vld [vmem:[%s8453_s20 + $0x3ab0] sm:$0xff] }
 0x425   : > { %5505 = vmatprep.subr.mxu0 %v2182_v26  ;;  %5576 = vmatprep.subr.mxu1 %v2374_v4  ;;  %v2225_v26 = vld [vmem:[%s8453_s20 + $0x37c0] sm:$0xff]  ;;  %v2314_v4 = vld [vmem:[%s8453_s20 + $0x3a88] sm:$0xff] }
 0x426   : > { %5506 = vmatpush1.msra.mxu0 %v2181_v17  ;;  %5577 = vmatpush1.msra.mxu1 %v2373_v6  ;;  %v2220_v17 = vld [vmem:[%s8453_s20 + $0x3798] sm:$0xff]  ;;  %v2313_v6 = vld [vmem:[%s8453_s20 + $0x3a80] sm:$0xff] }
 0x427   : > { %5507 = vmatprep.subr.mxu0 %v2176_v25  ;;  %5578 = vmatprep.subr.mxu1 %v2368_v59  ;;  %v2219_v25 = vld [vmem:[%s8453_s20 + $0x3790] sm:$0xff]  ;;  %v2308_v59 = vld [vmem:[%s8453_s20 + $0x3a58] sm:$0xff] }
 0x428   : > { %5508 = vmatpush1.msra.mxu0 %v2175_v41  ;;  %5579 = vmatpush1.msra.mxu1 %v2367_v47  ;;  %v2214_v41 = vld [vmem:[%s8453_s20 + $0x3768] sm:$0xff]  ;;  %v2307_v47 = vld [vmem:[%s8453_s20 + $0x3a50] sm:$0xff] }
 0x429   : > { %5509 = vmatprep.subr.mxu0 %v2170_v21  ;;  %5580 = vmatprep.subr.mxu1 %v2362_v10  ;;  %v2213_v21 = vld [vmem:[%s8453_s20 + $0x3760] sm:$0xff]  ;;  %v2302_v10 = vld [vmem:[%s8453_s20 + $0x3a28] sm:$0xff] }
 0x42a   : > { %5510 = vmatpush1.msra.mxu0 %v2169_v13  ;;  %5581 = vmatpush1.msra.mxu1 %v2361_v22  ;;  %v2208_v13 = vld [vmem:[%s8453_s20 + $0x3738] sm:$0xff]  ;;  %v2301_v22 = vld [vmem:[%s8453_s20 + $0x3a20] sm:$0xff] }
 0x42b   : > { %5511 = vmatprep.subr.mxu0 %v2356_v24  ;;  %5614 = vmatprep.mubr.f32.mxu1 %v8254_v0  ;;  %v2207_v24 = vld [vmem:[%s8453_s20 + $0x3730] sm:$0xff] }
 0x42c   : > { %5621 = vmatprep.subr.mxu1 %v2262_v35  ;;  %5512 = vmatpush2.msra.mxu0 %v2355_v54  ;;  %v2296_v35 = vld [vmem:[%s8453_s20 + $0x39f8] sm:$0xff]  ;;  %v2202_v54 = vld [vmem:[%s8453_s20 + $0x3708] sm:$0xff] }
 0x42d   : > { %5615 = vmatmul.mubr.f32.vlgmr.msra.gmra.mxu1 %v10578_v29  ;;  %5513 = vmatprep.subr.mxu0 %v2350_v27  ;;  %v2201_v27 = vld [vmem:[%s8453_s20 + $0x3700] sm:$0xff] }
 0x42e   : > { %5622 = vmatpush1.msra.mxu1 %v2261_v11  ;;  %5514 = vmatpush2.msra.mxu0 %v2349_v30  ;;  %v2295_v11 = vld [vmem:[%s8453_s20 + $0x39f0] sm:$0xff]  ;;  %v2196_v30 = vld [vmem:[%s8453_s20 + $0x36d8] sm:$0xff] }
 0x42f   : > { %5623 = vmatprep.subr.mxu1 %v2256_v28  ;;  %5515 = vmatprep.subr.mxu0 %v2344_v53  ;;  %v2290_v28 = vld [vmem:[%s8453_s20 + $0x39c8] sm:$0xff]  ;;  %v2195_v53 = vld [vmem:[%s8453_s20 + $0x36d0] sm:$0xff] }
 0x430   : > { %5624 = vmatpush1.msra.mxu1 %v2255_v31  ;;  %5516 = vmatpush2.msra.mxu0 %v2343_v38  ;;  %v2289_v31 = vld [vmem:[%s8453_s20 + $0x39c0] sm:$0xff]  ;;  %v2190_v38 = vld [vmem:[%s8453_s20 + $0x36a8] sm:$0xff] }
 0x431   : > { %5625 = vmatprep.subr.mxu1 %v2250_v37  ;;  %5517 = vmatprep.subr.mxu0 %v2338_v40  ;;  %v2284_v37 = vld [vmem:[%s8453_s20 + $0x3998] sm:$0xff]  ;;  %v5018_v40 = vpop.f32.mrf.mxu1 }
 0x432   : > { %5626 = vmatpush1.msra.mxu1 %v2249_v39  ;;  %5518 = vmatpush2.msra.mxu0 %v2337_v50  ;;  %v2283_v39 = vld [vmem:[%s8453_s20 + $0x3990] sm:$0xff]  ;;  %v2278_v50 = vld [vmem:[%s8453_s20 + $0x3968] sm:$0xff] }
 0x433   : > { %5627 = vmatprep.subr.mxu1 %v2244_v42  ;;  %5519 = vmatprep.subr.mxu0 %v2332_v56  ;;  %v2189_v42 = vld [vmem:[%s8453_s20 + $0x36a0] sm:$0xff] }
 0x434   : > { %5628 = vmatpush1.msra.mxu1 %v2243_v52  ;;  %5520 = vmatpush2.msra.mxu0 %v2331_v32  ;;  %v2184_v52 = vld [vmem:[%s8453_s20 + $0x3678] sm:$0xff]  ;;  %v2277_v56 = vld [vmem:[%s8453_s20 + $0x3960] sm:$0xff] }
 0x435   : > { %5629 = vmatprep.subr.mxu1 %v2238_v57  ;;  %5521 = vmatprep.subr.mxu0 %v2326_v46  ;;  %v2183_v57 = vld [vmem:[%s8453_s20 + $0x3670] sm:$0xff]  ;;  %v2272_v32 = vld [vmem:[%s8453_s20 + $0x3938] sm:$0xff]  ;;  %v2178_v46 = vld [vmem:[%s8453_s20 + $0x3648] sm:$0xff] }
 0x436   : > { %5630 = vmatpush1.msra.mxu1 %v2237_v58  ;;  %5522 = vmatpush2.msra.mxu0 %v2325_v60 }
 0x437   : > { %5631 = vmatprep.subr.mxu1 %v2232_v63  ;;  %5523 = vmatprep.subr.mxu0 %v2320_v7  ;;  %v2271_v63 = vld [vmem:[%s8453_s20 + $0x3930] sm:$0xff]  ;;  %v2177_v7 = vld [vmem:[%s8453_s20 + $0x3640] sm:$0xff] }
 0x438   : > { %5632 = vmatpush1.msra.mxu1 %v2231_v44  ;;  %5524 = vmatpush2.msra.mxu0 %v2319_v48  ;;  %v5020_v44 = vpop.f32.mrf.mxu1 }
 0x439   : > { %5633 = vmatprep.subr.mxu1 %v2226_v62  ;;  %5525 = vmatprep.subr.mxu0 %v2314_v4  ;;  %v2266_v62 = vld [vmem:[%s8453_s20 + $0x3908] sm:$0xff]  ;;  %v2265_v4 = vld [vmem:[%s8453_s20 + $0x3900] sm:$0xff] }
 0x43a   : > { %5634 = vmatpush1.msra.mxu1 %v2225_v26  ;;  %5526 = vmatpush2.msra.mxu0 %v2313_v6  ;;  %v2172_v26 = vld [vmem:[%s8453_s20 + $0x3618] sm:$0xff] }
 0x43b   : > { %5635 = vmatprep.subr.mxu1 %v2220_v17  ;;  %5527 = vmatprep.subr.mxu0 %v2308_v59  ;;  %v10645_v17 = vrot.slane %v10567_v18, %v8625_v12  ;;  %v2171_v59 = vld [vmem:[%s8453_s20 + $0x3610] sm:$0xff] }
 0x43c   : > { %5636 = vmatpush1.msra.mxu1 %v2219_v25  ;;  %5528 = vmatpush2.msra.mxu0 %v2307_v47 }
 0x43d   : > { %5637 = vmatprep.subr.mxu1 %v2214_v41  ;;  %5529 = vmatprep.subr.mxu0 %v2302_v10  ;;  %v10650_v41 = vrot.slane %v10567_v18, %v8630_v16  ;;  %v2453_v18 = vld [vmem:[%s8453_s20 + $0x3ee0] sm:$0xff] }
 0x43e   : > { %5638 = vmatpush1.msra.mxu1 %v2213_v21  ;;  %5530 = vmatpush2.msra.mxu0 %v2301_v22  ;;  %v2358_v21 = vld [vmem:[%s8453_s20 + $0x3be8] sm:$0xff]  ;;  %v2357_v22 = vld [vmem:[%s8453_s20 + $0x3be0] sm:$0xff] }
 0x43f   : > { %5639 = vmatprep.subr.mxu1 %v2208_v13  ;;  %5531 = vmatprep.subr.mxu0 %v2296_v35  ;;  %v2454_v13 = vld [vmem:[%s8453_s20 + $0x3ee8] sm:$0xff]  ;;  %v2448_v35 = vld [vmem:[%s8453_s20 + $0x3eb8] sm:$0xff] }
 0x440   : > { %5640 = vmatpush1.msra.mxu1 %v2207_v24  ;;  %5532 = vmatpush2.msra.mxu0 %v2295_v11  ;;  %v2447_v11 = vld [vmem:[%s8453_s20 + $0x3eb0] sm:$0xff] }
 0x441   : > { %5641 = vmatprep.subr.mxu1 %v2202_v54  ;;  %5533 = vmatprep.subr.mxu0 %v2290_v28  ;;  %v2351_v54 = vld [vmem:[%s8453_s20 + $0x3bb0] sm:$0xff]  ;;  %v2345_v28 = vld [vmem:[%s8453_s20 + $0x3b80] sm:$0xff] }
 0x442   : > { %5642 = vmatpush1.msra.mxu1 %v2201_v27  ;;  %5534 = vmatpush2.msra.mxu0 %v2289_v31  ;;  %v2346_v27 = vld [vmem:[%s8453_s20 + $0x3b88] sm:$0xff]  ;;  %v2340_v31 = vld [vmem:[%s8453_s20 + $0x3b58] sm:$0xff] }
 0x443   : > { %5643 = vmatprep.subr.mxu1 %v2196_v30  ;;  %5535 = vmatprep.subr.mxu0 %v2284_v37  ;;  %v2441_v30 = vld [vmem:[%s8453_s20 + $0x3e80] sm:$0xff]  ;;  %v2339_v37 = vld [vmem:[%s8453_s20 + $0x3b50] sm:$0xff] }
 0x444   : > { %5644 = vmatpush1.msra.mxu1 %v2195_v53  ;;  %5536 = vmatpush2.msra.mxu0 %v2283_v39  ;;  %v4947_v58 = vpop.f32.mrf.mxu0  ;;  %v2436_v53 = vld [vmem:[%s8453_s20 + $0x3e58] sm:$0xff]  ;;  %v2334_v39 = vld [vmem:[%s8453_s20 + $0x3b28] sm:$0xff] }
 0x445   : > { %5645 = vmatprep.subr.mxu1 %v2190_v38  ;;  %5537 = vmatprep.subr.mxu0 %v2278_v50  ;;  %v5019_v60 = vadd.f32 %v5018_v40, %v4947_v58  ;;  %v2435_v38 = vld [vmem:[%s8453_s20 + $0x3e50] sm:$0xff]  ;;  %v2430_v40 = vld [vmem:[%s8453_s20 + $0x3e28] sm:$0xff]  ;;  %v2429_v50 = vld [vmem:[%s8453_s20 + $0x3e20] sm:$0xff] }
 0x446   : > { %5646 = vmatpush1.msra.mxu1 %v2189_v42  ;;  %5538 = vmatpush2.msra.mxu0 %v2277_v56  ;;  %v4949_v48 = vpop.f32.mrf.mxu0  ;;  %v2333_v42 = vld [vmem:[%s8453_s20 + $0x3b20] sm:$0xff]  ;;  %v2424_v56 = vld [vmem:[%s8453_s20 + $0x3df8] sm:$0xff]  ;;  %v2322_v58 = vld [vmem:[%s8453_s20 + $0x3ac8] sm:$0xff] }
 0x447   : > { %5647 = vmatprep.subr.mxu1 %v2184_v52  ;;  %5539 = vmatprep.subr.mxu0 %v2272_v32  ;;  %v6469_v6 = vrot.slane %v5019_v60, 4  ;;  %v5021_v25 = vadd.f32 %v5020_v44, %v4949_v48  ;;  %v2328_v52 = vld [vmem:[%s8453_s20 + $0x3af8] sm:$0xff]  ;;  %v2423_v32 = vld [vmem:[%s8453_s20 + $0x3df0] sm:$0xff]  ;;  %v2417_v60 = vld [vmem:[%s8453_s20 + $0x3dc0] sm:$0xff] }
 0x448   : > { %5648 = vmatpush1.msra.mxu1 %v2183_v57  ;;  %5540 = vmatpush2.msra.mxu0 %v2271_v63  ;;  %v2327_v57 = vld [vmem:[%s8453_s20 + $0x3af0] sm:$0xff]  ;;  %v2321_v63 = vld [vmem:[%s8453_s20 + $0x3ac0] sm:$0xff]  ;;  %v2316_v44 = vld [vmem:[%s8453_s20 + $0x3a98] sm:$0xff] }
 0x449   : > { %5649 = vmatprep.subr.mxu1 %v2178_v46  ;;  %5541 = vmatprep.subr.mxu0 %v2266_v62  ;;  %v10654_v47 = vsel %vm6410_vm3, %v6469_v6, %v10280_v49  ;;  %v6483_v10 = vrot.slane %v5021_v25, 4  ;;  %v2352_v49 = vld [vmem:[%s8453_s20 + $0x3bb8] sm:$0xff]  ;;  %v2418_v46 = vld [vmem:[%s8453_s20 + $0x3dc8] sm:$0xff]  ;;  %v2315_v62 = vld [vmem:[%s8453_s20 + $0x3a90] sm:$0xff] }
 0x44a   : > { %5650 = vmatpush1.msra.mxu1 %v2177_v7  ;;  %5542 = vmatpush2.msra.mxu0 %v2265_v4  ;;  %v2412_v7 = vld [vmem:[%s8453_s20 + $0x3d98] sm:$0xff]  ;;  %v2411_v48 = vld [vmem:[%s8453_s20 + $0x3d90] sm:$0xff]  ;;  %v2406_v4 = vld [vmem:[%s8453_s20 + $0x3d68] sm:$0xff] }
 0x44b   : > { %5651 = vmatprep.subr.mxu1 %v2172_v26  ;;  %5543 = vmatprep.mubr.f32.mxu0 %v10645_v17  ;;  %v10663_v24 = vsel %vm6410_vm3, %v6483_v10, %v10291_v33  ;;  %v2442_v33 = vld [vmem:[%s8453_s20 + $0x3e88] sm:$0xff]  ;;  %v2309_v6 = vld [vmem:[%s8453_s20 + $0x3a60] sm:$0xff]  ;;  %v2303_v10 = vld [vmem:[%s8453_s20 + $0x3a30] sm:$0xff] }
 0x44c   : > { %5652 = vmatpush1.msra.mxu1 %v2171_v59  ;;  %5544 = vmatmul.mubr.f32.vlgmr.msra.gmra.mxu0 %v10650_v41  ;;  %v2310_v26 = vld [vmem:[%s8453_s20 + $0x3a68] sm:$0xff]  ;;  %v2405_v25 = vld [vmem:[%s8453_s20 + $0x3d60] sm:$0xff]  ;;  %v2304_v59 = vld [vmem:[%s8453_s20 + $0x3a38] sm:$0xff] }
 0x44d   : > { %5653 = vmatprep.subr.mxu1 %v2358_v21  ;;  %5692 = vmatprep.subr.mxu0 %v2454_v13  ;;  %v2400_v21 = vld [vmem:[%s8453_s20 + $0x3d38] sm:$0xff]  ;;  %v2399_v13 = vld [vmem:[%s8453_s20 + $0x3d30] sm:$0xff] }
 0x44e   : > { %5654 = vmatpush2.msra.mxu1 %v2357_v22  ;;  %5693 = vmatpush1.msra.mxu0 %v2453_v18  ;;  %v2298_v22 = vld [vmem:[%s8453_s20 + $0x3a08] sm:$0xff] }
 0x44f   : > { %5655 = vmatprep.subr.mxu1 %v2352_v49  ;;  %5694 = vmatprep.subr.mxu0 %v2448_v35  ;;  %v2394_v18 = vld [vmem:[%s8453_s20 + $0x3d08] sm:$0xff]  ;;  %v2297_v49 = vld [vmem:[%s8453_s20 + $0x3a00] sm:$0xff] }
 0x450   : > { %5656 = vmatpush2.msra.mxu1 %v2351_v54  ;;  %5695 = vmatpush1.msra.mxu0 %v2447_v11  ;;  %v2393_v35 = vld [vmem:[%s8453_s20 + $0x3d00] sm:$0xff]  ;;  %v2292_v54 = vld [vmem:[%s8453_s20 + $0x39d8] sm:$0xff] }
 0x451   : > { %5657 = vmatprep.subr.mxu1 %v2346_v27  ;;  %5696 = vmatprep.subr.mxu0 %v2442_v33  ;;  %v2388_v11 = vld [vmem:[%s8453_s20 + $0x3cd8] sm:$0xff]  ;;  %v2291_v27 = vld [vmem:[%s8453_s20 + $0x39d0] sm:$0xff] }
 0x452   : > { %5658 = vmatpush2.msra.mxu1 %v2345_v28  ;;  %5697 = vmatpush1.msra.mxu0 %v2441_v30  ;;  %v2387_v33 = vld [vmem:[%s8453_s20 + $0x3cd0] sm:$0xff]  ;;  %v2286_v28 = vld [vmem:[%s8453_s20 + $0x39a8] sm:$0xff] }
 0x453   : > { %5659 = vmatprep.subr.mxu1 %v2340_v31  ;;  %5698 = vmatprep.subr.mxu0 %v2436_v53  ;;  %v2382_v30 = vld [vmem:[%s8453_s20 + $0x3ca8] sm:$0xff]  ;;  %v2285_v31 = vld [vmem:[%s8453_s20 + $0x39a0] sm:$0xff] }
 0x454   : > { %5660 = vmatpush2.msra.mxu1 %v2339_v37  ;;  %5699 = vmatpush1.msra.mxu0 %v2435_v38  ;;  %v2381_v53 = vld [vmem:[%s8453_s20 + $0x3ca0] sm:$0xff]  ;;  %v2280_v37 = vld [vmem:[%s8453_s20 + $0x3978] sm:$0xff] }
 0x455   : > { %5661 = vmatprep.subr.mxu1 %v2334_v39  ;;  %5700 = vmatprep.subr.mxu0 %v2430_v40  ;;  %v2376_v38 = vld [vmem:[%s8453_s20 + $0x3c78] sm:$0xff]  ;;  %v2279_v39 = vld [vmem:[%s8453_s20 + $0x3970] sm:$0xff] }
 0x456   : > { %5662 = vmatpush2.msra.mxu1 %v2333_v42  ;;  %5701 = vmatpush1.msra.mxu0 %v2429_v50  ;;  %v2375_v40 = vld [vmem:[%s8453_s20 + $0x3c70] sm:$0xff]  ;;  %v2274_v42 = vld [vmem:[%s8453_s20 + $0x3948] sm:$0xff] }
 0x457   : > { %5663 = vmatprep.subr.mxu1 %v2328_v52  ;;  %5702 = vmatprep.subr.mxu0 %v2424_v56  ;;  %v2370_v50 = vld [vmem:[%s8453_s20 + $0x3c48] sm:$0xff]  ;;  %v2273_v52 = vld [vmem:[%s8453_s20 + $0x3940] sm:$0xff] }
 0x458   : > { %5664 = vmatpush2.msra.mxu1 %v2327_v57  ;;  %5703 = vmatpush1.msra.mxu0 %v2423_v32  ;;  %v2369_v56 = vld [vmem:[%s8453_s20 + $0x3c40] sm:$0xff]  ;;  %v2268_v57 = vld [vmem:[%s8453_s20 + $0x3918] sm:$0xff] }
 0x459   : > { %5665 = vmatprep.subr.mxu1 %v2322_v58  ;;  %5704 = vmatprep.subr.mxu0 %v2418_v46  ;;  %v2364_v32 = vld [vmem:[%s8453_s20 + $0x3c18] sm:$0xff]  ;;  %v2267_v58 = vld [vmem:[%s8453_s20 + $0x3910] sm:$0xff] }
 0x45a   : > { %5666 = vmatpush2.msra.mxu1 %v2321_v63  ;;  %5705 = vmatpush1.msra.mxu0 %v2417_v60  ;;  %v2363_v46 = vld [vmem:[%s8453_s20 + $0x3c10] sm:$0xff]  ;;  %v2264_v63 = vld [vmem:[%s8453_s20 + $0x38f8] sm:$0xff] }
 0x45b   : > { %5667 = vmatprep.subr.mxu1 %v2316_v44  ;;  %5706 = vmatprep.subr.mxu0 %v2412_v7  ;;  %v2456_v60 = vld [vmem:[%s8453_s20 + $0x3ef8] sm:$0xff]  ;;  %v2263_v44 = vld [vmem:[%s8453_s20 + $0x38f0] sm:$0xff] }
 0x45c   : > { %5668 = vmatpush2.msra.mxu1 %v2315_v62  ;;  %5707 = vmatpush1.msra.mxu0 %v2411_v48  ;;  %v2455_v7 = vld [vmem:[%s8453_s20 + $0x3ef0] sm:$0xff]  ;;  %v2258_v62 = vld [vmem:[%s8453_s20 + $0x38c8] sm:$0xff] }
 0x45d   : > { %5669 = vmatprep.subr.mxu1 %v2310_v26  ;;  %5708 = vmatprep.subr.mxu0 %v2406_v4  ;;  %v2450_v48 = vld [vmem:[%s8453_s20 + $0x3ec8] sm:$0xff]  ;;  %v2257_v26 = vld [vmem:[%s8453_s20 + $0x38c0] sm:$0xff] }
 0x45e   : > { %5670 = vmatpush2.msra.mxu1 %v2309_v6  ;;  %5709 = vmatpush1.msra.mxu0 %v2405_v25  ;;  %v2449_v4 = vld [vmem:[%s8453_s20 + $0x3ec0] sm:$0xff]  ;;  %v2252_v6 = vld [vmem:[%s8453_s20 + $0x3898] sm:$0xff] }
 0x45f   : > { %5671 = vmatprep.subr.mxu1 %v2304_v59  ;;  %5710 = vmatprep.subr.mxu0 %v2400_v21  ;;  %v2444_v25 = vld [vmem:[%s8453_s20 + $0x3e98] sm:$0xff]  ;;  %v2251_v59 = vld [vmem:[%s8453_s20 + $0x3890] sm:$0xff] }
 0x460   : > { %5672 = vmatpush2.msra.mxu1 %v2303_v10  ;;  %5711 = vmatpush1.msra.mxu0 %v2399_v13  ;;  %v2443_v21 = vld [vmem:[%s8453_s20 + $0x3e90] sm:$0xff]  ;;  %v2246_v10 = vld [vmem:[%s8453_s20 + $0x3868] sm:$0xff] }
 0x461   : > { %5673 = vmatprep.subr.mxu1 %v2298_v22  ;;  %5712 = vmatprep.subr.mxu0 %v2394_v18  ;;  %v2438_v13 = vld [vmem:[%s8453_s20 + $0x3e68] sm:$0xff]  ;;  %v2245_v22 = vld [vmem:[%s8453_s20 + $0x3860] sm:$0xff] }
 0x462   : > { %5674 = vmatpush2.msra.mxu1 %v2297_v49  ;;  %5713 = vmatpush1.msra.mxu0 %v2393_v35  ;;  %v2437_v18 = vld [vmem:[%s8453_s20 + $0x3e60] sm:$0xff]  ;;  %v2240_v49 = vld [vmem:[%s8453_s20 + $0x3838] sm:$0xff] }
 0x463   : > { %5675 = vmatprep.subr.mxu1 %v2292_v54  ;;  %5714 = vmatprep.subr.mxu0 %v2388_v11  ;;  %v2432_v35 = vld [vmem:[%s8453_s20 + $0x3e38] sm:$0xff]  ;;  %v2239_v54 = vld [vmem:[%s8453_s20 + $0x3830] sm:$0xff] }
 0x464   : > { %5676 = vmatpush2.msra.mxu1 %v2291_v27  ;;  %5715 = vmatpush1.msra.mxu0 %v2387_v33  ;;  %v2431_v11 = vld [vmem:[%s8453_s20 + $0x3e30] sm:$0xff]  ;;  %v2234_v27 = vld [vmem:[%s8453_s20 + $0x3808] sm:$0xff] }
 0x465   : > { %5677 = vmatprep.subr.mxu1 %v2286_v28  ;;  %5716 = vmatprep.subr.mxu0 %v2382_v30  ;;  %v2426_v33 = vld [vmem:[%s8453_s20 + $0x3e08] sm:$0xff]  ;;  %v2233_v28 = vld [vmem:[%s8453_s20 + $0x3800] sm:$0xff] }
 0x466   : > { %5678 = vmatpush2.msra.mxu1 %v2285_v31  ;;  %5717 = vmatpush1.msra.mxu0 %v2381_v53  ;;  %v2425_v30 = vld [vmem:[%s8453_s20 + $0x3e00] sm:$0xff]  ;;  %v2228_v31 = vld [vmem:[%s8453_s20 + $0x37d8] sm:$0xff] }
 0x467   : > { %5679 = vmatprep.subr.mxu1 %v2280_v37  ;;  %5718 = vmatprep.subr.mxu0 %v2376_v38  ;;  %v2420_v53 = vld [vmem:[%s8453_s20 + $0x3dd8] sm:$0xff]  ;;  %v2227_v37 = vld [vmem:[%s8453_s20 + $0x37d0] sm:$0xff] }
 0x468   : > { %5680 = vmatpush2.msra.mxu1 %v2279_v39  ;;  %5719 = vmatpush1.msra.mxu0 %v2375_v40  ;;  %v2419_v38 = vld [vmem:[%s8453_s20 + $0x3dd0] sm:$0xff]  ;;  %v2222_v39 = vld [vmem:[%s8453_s20 + $0x37a8] sm:$0xff] }
 0x469   : > { %5681 = vmatprep.subr.mxu1 %v2274_v42  ;;  %5720 = vmatprep.subr.mxu0 %v2370_v50  ;;  %v2414_v40 = vld [vmem:[%s8453_s20 + $0x3da8] sm:$0xff]  ;;  %v2221_v42 = vld [vmem:[%s8453_s20 + $0x37a0] sm:$0xff] }
 0x46a   : > { %5682 = vmatpush2.msra.mxu1 %v2273_v52  ;;  %5721 = vmatpush1.msra.mxu0 %v2369_v56  ;;  %v2413_v50 = vld [vmem:[%s8453_s20 + $0x3da0] sm:$0xff]  ;;  %v2216_v52 = vld [vmem:[%s8453_s20 + $0x3778] sm:$0xff] }
 0x46b   : > { %5683 = vmatprep.subr.mxu1 %v2268_v57  ;;  %5722 = vmatprep.subr.mxu0 %v2364_v32  ;;  %v2408_v56 = vld [vmem:[%s8453_s20 + $0x3d78] sm:$0xff]  ;;  %v2215_v57 = vld [vmem:[%s8453_s20 + $0x3770] sm:$0xff] }
 0x46c   : > { %5684 = vmatpush2.msra.mxu1 %v2267_v58  ;;  %5685 = vmatprep.mubr.f32.mxu1 %v10645_v17  ;;  %v2407_v32 = vld [vmem:[%s8453_s20 + $0x3d70] sm:$0xff]  ;;  %v2210_v58 = vld [vmem:[%s8453_s20 + $0x3748] sm:$0xff] }
 0x46d   : > { %5723 = vmatpush1.msra.mxu0 %v2363_v46  ;;  %5756 = vmatprep.mubr.f32.mxu0 %v8254_v0  ;;  %v2402_v46 = vld [vmem:[%s8453_s20 + $0x3d48] sm:$0xff] }
 0x46e   : > { %5686 = vmatmul.mubr.f32.vlgmr.msra.gmra.mxu1 %v10650_v41  ;;  %5757 = vmatmul.mubr.f32.vlgmr.msra.gmra.mxu0 %v10578_v29 }
 0x46f   : > { %5763 = vmatprep.subr.mxu0 %v2264_v63  ;;  %5834 = vmatprep.subr.mxu1 %v2456_v60  ;;  %v2209_v63 = vld [vmem:[%s8453_s20 + $0x3740] sm:$0xff] }
 0x470   : > { %5764 = vmatpush1.msra.mxu0 %v2263_v44  ;;  %5835 = vmatpush1.msra.mxu1 %v2455_v7  ;;  %v2401_v60 = vld [vmem:[%s8453_s20 + $0x3d40] sm:$0xff]  ;;  %v2204_v44 = vld [vmem:[%s8453_s20 + $0x3718] sm:$0xff] }
 0x471   : > { %5765 = vmatprep.subr.mxu0 %v2258_v62  ;;  %5836 = vmatprep.subr.mxu1 %v2450_v48  ;;  %v2396_v7 = vld [vmem:[%s8453_s20 + $0x3d18] sm:$0xff]  ;;  %v2203_v62 = vld [vmem:[%s8453_s20 + $0x3710] sm:$0xff] }
 0x472   : > { %5766 = vmatpush1.msra.mxu0 %v2257_v26  ;;  %5837 = vmatpush1.msra.mxu1 %v2449_v4  ;;  %v2395_v48 = vld [vmem:[%s8453_s20 + $0x3d10] sm:$0xff]  ;;  %v2198_v26 = vld [vmem:[%s8453_s20 + $0x36e8] sm:$0xff] }
 0x473   : > { %5767 = vmatprep.subr.mxu0 %v2252_v6  ;;  %5838 = vmatprep.subr.mxu1 %v2444_v25  ;;  %v2390_v4 = vld [vmem:[%s8453_s20 + $0x3ce8] sm:$0xff]  ;;  %v2197_v6 = vld [vmem:[%s8453_s20 + $0x36e0] sm:$0xff] }
 0x474   : > { %5768 = vmatpush1.msra.mxu0 %v2251_v59  ;;  %5839 = vmatpush1.msra.mxu1 %v2443_v21  ;;  %v2389_v25 = vld [vmem:[%s8453_s20 + $0x3ce0] sm:$0xff]  ;;  %v2192_v59 = vld [vmem:[%s8453_s20 + $0x36b8] sm:$0xff] }
 0x475   : > { %5769 = vmatprep.subr.mxu0 %v2246_v10  ;;  %5840 = vmatprep.subr.mxu1 %v2438_v13  ;;  %v2384_v21 = vld [vmem:[%s8453_s20 + $0x3cb8] sm:$0xff]  ;;  %v2191_v10 = vld [vmem:[%s8453_s20 + $0x36b0] sm:$0xff] }
 0x476   : > { %5770 = vmatpush1.msra.mxu0 %v2245_v22  ;;  %5841 = vmatpush1.msra.mxu1 %v2437_v18  ;;  %v2383_v13 = vld [vmem:[%s8453_s20 + $0x3cb0] sm:$0xff]  ;;  %v2186_v22 = vld [vmem:[%s8453_s20 + $0x3688] sm:$0xff] }
 0x477   : > { %5771 = vmatprep.subr.mxu0 %v2240_v49  ;;  %5842 = vmatprep.subr.mxu1 %v2432_v35  ;;  %v2378_v18 = vld [vmem:[%s8453_s20 + $0x3c88] sm:$0xff]  ;;  %v2185_v49 = vld [vmem:[%s8453_s20 + $0x3680] sm:$0xff] }
 0x478   : > { %5772 = vmatpush1.msra.mxu0 %v2239_v54  ;;  %5843 = vmatpush1.msra.mxu1 %v2431_v11  ;;  %v2377_v35 = vld [vmem:[%s8453_s20 + $0x3c80] sm:$0xff]  ;;  %v2180_v54 = vld [vmem:[%s8453_s20 + $0x3658] sm:$0xff] }
 0x479   : > { %5773 = vmatprep.subr.mxu0 %v2234_v27  ;;  %5844 = vmatprep.subr.mxu1 %v2426_v33  ;;  %v2372_v11 = vld [vmem:[%s8453_s20 + $0x3c58] sm:$0xff]  ;;  %v2179_v27 = vld [vmem:[%s8453_s20 + $0x3650] sm:$0xff] }
 0x47a   : > { %5774 = vmatpush1.msra.mxu0 %v2233_v28  ;;  %5845 = vmatpush1.msra.mxu1 %v2425_v30  ;;  %v2371_v33 = vld [vmem:[%s8453_s20 + $0x3c50] sm:$0xff]  ;;  %v2174_v28 = vld [vmem:[%s8453_s20 + $0x3628] sm:$0xff] }
 0x47b   : > { %5775 = vmatprep.subr.mxu0 %v2228_v31  ;;  %5846 = vmatprep.subr.mxu1 %v2420_v53  ;;  %v2366_v30 = vld [vmem:[%s8453_s20 + $0x3c28] sm:$0xff]  ;;  %v2173_v31 = vld [vmem:[%s8453_s20 + $0x3620] sm:$0xff] }
 0x47c   : > { %5776 = vmatpush1.msra.mxu0 %v2227_v37  ;;  %5847 = vmatpush1.msra.mxu1 %v2419_v38  ;;  %v2365_v53 = vld [vmem:[%s8453_s20 + $0x3c20] sm:$0xff]  ;;  %v2360_v37 = vld [vmem:[%s8453_s20 + $0x3bf8] sm:$0xff] }
 0x47d   : > { %5777 = vmatprep.subr.mxu0 %v2222_v39  ;;  %5848 = vmatprep.subr.mxu1 %v2414_v40  ;;  %v2548_v38 = vld [vmem:[%s8453_s20 + $0x41d8] sm:$0xff]  ;;  %v2359_v39 = vld [vmem:[%s8453_s20 + $0x3bf0] sm:$0xff] }
 0x47e   : > { %5778 = vmatpush1.msra.mxu0 %v2221_v42  ;;  %5849 = vmatpush1.msra.mxu1 %v2413_v50  ;;  %v2547_v40 = vld [vmem:[%s8453_s20 + $0x41d0] sm:$0xff]  ;;  %v2354_v42 = vld [vmem:[%s8453_s20 + $0x3bc8] sm:$0xff] }
 0x47f   : > { %5779 = vmatprep.subr.mxu0 %v2216_v52  ;;  %5850 = vmatprep.subr.mxu1 %v2408_v56  ;;  %v2542_v50 = vld [vmem:[%s8453_s20 + $0x41a8] sm:$0xff]  ;;  %v2353_v52 = vld [vmem:[%s8453_s20 + $0x3bc0] sm:$0xff] }
 0x480   : > { %5780 = vmatpush1.msra.mxu0 %v2215_v57  ;;  %5851 = vmatpush1.msra.mxu1 %v2407_v32  ;;  %v2541_v56 = vld [vmem:[%s8453_s20 + $0x41a0] sm:$0xff]  ;;  %v2348_v57 = vld [vmem:[%s8453_s20 + $0x3b98] sm:$0xff] }
 0x481   : > { %5781 = vmatprep.subr.mxu0 %v2210_v58  ;;  %5852 = vmatprep.subr.mxu1 %v2402_v46  ;;  %v2536_v32 = vld [vmem:[%s8453_s20 + $0x4178] sm:$0xff]  ;;  %v2347_v58 = vld [vmem:[%s8453_s20 + $0x3b90] sm:$0xff] }
 0x482   : > { %5782 = vmatpush1.msra.mxu0 %v2209_v63  ;;  %5853 = vmatpush1.msra.mxu1 %v2401_v60  ;;  %v2535_v46 = vld [vmem:[%s8453_s20 + $0x4170] sm:$0xff]  ;;  %v2342_v63 = vld [vmem:[%s8453_s20 + $0x3b68] sm:$0xff] }
 0x483   : > { %5783 = vmatprep.subr.mxu0 %v2204_v44  ;;  %5854 = vmatprep.subr.mxu1 %v2396_v7  ;;  %v2530_v60 = vld [vmem:[%s8453_s20 + $0x4148] sm:$0xff]  ;;  %v2529_v44 = vld [vmem:[%s8453_s20 + $0x4140] sm:$0xff]  ;;  %v2336_v7 = vld [vmem:[%s8453_s20 + $0x3b38] sm:$0xff] }
 0x484   : > { %5784 = vmatpush1.msra.mxu0 %v2203_v62  ;;  %5855 = vmatpush1.msra.mxu1 %v2395_v48  ;;  %v2524_v62 = vld [vmem:[%s8453_s20 + $0x4118] sm:$0xff]  ;;  %v2335_v48 = vld [vmem:[%s8453_s20 + $0x3b30] sm:$0xff] }
 0x485   : > { %5785 = vmatprep.subr.mxu0 %v2198_v26  ;;  %5856 = vmatprep.subr.mxu1 %v2390_v4  ;;  %v2523_v26 = vld [vmem:[%s8453_s20 + $0x4110] sm:$0xff]  ;;  %v2330_v4 = vld [vmem:[%s8453_s20 + $0x3b08] sm:$0xff] }
 0x486   : > { %5786 = vmatpush1.msra.mxu0 %v2197_v6  ;;  %5857 = vmatpush1.msra.mxu1 %v2389_v25  ;;  %v2518_v6 = vld [vmem:[%s8453_s20 + $0x40e8] sm:$0xff]  ;;  %v2329_v25 = vld [vmem:[%s8453_s20 + $0x3b00] sm:$0xff] }
 0x487   : > { %5787 = vmatprep.subr.mxu0 %v2192_v59  ;;  %5858 = vmatprep.subr.mxu1 %v2384_v21  ;;  %v2517_v59 = vld [vmem:[%s8453_s20 + $0x40e0] sm:$0xff]  ;;  %v2324_v21 = vld [vmem:[%s8453_s20 + $0x3ad8] sm:$0xff] }
 0x488   : > { %5788 = vmatpush1.msra.mxu0 %v2191_v10  ;;  %5859 = vmatpush1.msra.mxu1 %v2383_v13  ;;  %v2512_v10 = vld [vmem:[%s8453_s20 + $0x40b8] sm:$0xff]  ;;  %v2323_v13 = vld [vmem:[%s8453_s20 + $0x3ad0] sm:$0xff] }
 0x489   : > { %5789 = vmatprep.subr.mxu0 %v2186_v22  ;;  %5860 = vmatprep.subr.mxu1 %v2378_v18  ;;  %v2511_v22 = vld [vmem:[%s8453_s20 + $0x40b0] sm:$0xff]  ;;  %v2318_v18 = vld [vmem:[%s8453_s20 + $0x3aa8] sm:$0xff] }
 0x48a   : > { %5790 = vmatpush1.msra.mxu0 %v2185_v49  ;;  %5861 = vmatpush1.msra.mxu1 %v2377_v35  ;;  %v2506_v49 = vld [vmem:[%s8453_s20 + $0x4088] sm:$0xff]  ;;  %v2317_v35 = vld [vmem:[%s8453_s20 + $0x3aa0] sm:$0xff] }
 0x48b   : > { %5791 = vmatprep.subr.mxu0 %v2180_v54  ;;  %5862 = vmatprep.subr.mxu1 %v2372_v11  ;;  %v2505_v54 = vld [vmem:[%s8453_s20 + $0x4080] sm:$0xff]  ;;  %v2312_v11 = vld [vmem:[%s8453_s20 + $0x3a78] sm:$0xff] }
 0x48c   : > { %5792 = vmatpush1.msra.mxu0 %v2179_v27  ;;  %5863 = vmatpush1.msra.mxu1 %v2371_v33  ;;  %v2500_v27 = vld [vmem:[%s8453_s20 + $0x4058] sm:$0xff]  ;;  %v2311_v33 = vld [vmem:[%s8453_s20 + $0x3a70] sm:$0xff] }
 0x48d   : > { %5793 = vmatprep.subr.mxu0 %v2174_v28  ;;  %5864 = vmatprep.subr.mxu1 %v2366_v30  ;;  %v2499_v28 = vld [vmem:[%s8453_s20 + $0x4050] sm:$0xff]  ;;  %v2306_v30 = vld [vmem:[%s8453_s20 + $0x3a48] sm:$0xff] }
 0x48e   : > { %5794 = vmatpush1.msra.mxu0 %v2173_v31  ;;  %5865 = vmatpush1.msra.mxu1 %v2365_v53  ;;  %v2494_v31 = vld [vmem:[%s8453_s20 + $0x4028] sm:$0xff]  ;;  %v2305_v53 = vld [vmem:[%s8453_s20 + $0x3a40] sm:$0xff] }
 0x48f   : > { %5795 = vmatprep.subr.mxu0 %v2360_v37  ;;  %5898 = vmatprep.mubr.f32.mxu1 %v8254_v0  ;;  %v10835_v37 = vpop.f32.mrf.mxu1 }
 0x490   : > { %5920 = vmatprep.subr.mxu1 %v2548_v38  ;;  %5796 = vmatpush2.msra.mxu0 %v2359_v39  ;;  %v2493_v38 = vld [vmem:[%s8453_s20 + $0x4020] sm:$0xff]  ;;  %v2300_v39 = vld [vmem:[%s8453_s20 + $0x3a18] sm:$0xff] }
 0x491   : > { %5899 = vmatmul.mubr.f32.vlgmr.msra.gmra.mxu1 %v10578_v29  ;;  %5797 = vmatprep.subr.mxu0 %v2354_v42  ;;  %v2341_v29 = vld [vmem:[%s8453_s20 + $0x3b60] sm:$0xff]  ;;  %v2299_v42 = vld [vmem:[%s8453_s20 + $0x3a10] sm:$0xff] }
 0x492   : > { %5921 = vmatpush1.msra.mxu1 %v2547_v40  ;;  %5798 = vmatpush2.msra.mxu0 %v2353_v52  ;;  %v2488_v40 = vld [vmem:[%s8453_s20 + $0x3ff8] sm:$0xff]  ;;  %v2487_v52 = vld [vmem:[%s8453_s20 + $0x3ff0] sm:$0xff] }
 0x493   : > { %5922 = vmatprep.subr.mxu1 %v2542_v50  ;;  %5799 = vmatprep.subr.mxu0 %v2348_v57  ;;  %v10841_v50 = vpop.f32.mrf.mxu0  ;;  %v2482_v57 = vld [vmem:[%s8453_s20 + $0x3fc8] sm:$0xff] }
 0x494   : > { %5923 = vmatpush1.msra.mxu1 %v2541_v56  ;;  %5800 = vmatpush2.msra.mxu0 %v2347_v58  ;;  %v2294_v56 = vld [vmem:[%s8453_s20 + $0x39e8] sm:$0xff]  ;;  %v10847_v58 = vpop.f32.mrf.mxu1 }
 0x495   : > { %5924 = vmatprep.subr.mxu1 %v2536_v32  ;;  %5801 = vmatprep.subr.mxu0 %v2342_v63  ;;  %v2293_v32 = vld [vmem:[%s8453_s20 + $0x39e0] sm:$0xff]  ;;  %v2288_v63 = vld [vmem:[%s8453_s20 + $0x39b8] sm:$0xff] }
 0x496   : > { %5925 = vmatpush1.msra.mxu1 %v2535_v46  ;;  %5802 = vmatpush2.msra.mxu0 %v2341_v29  ;;  %v2481_v46 = vld [vmem:[%s8453_s20 + $0x3fc0] sm:$0xff]  ;;  %v2287_v29 = vld [vmem:[%s8453_s20 + $0x39b0] sm:$0xff] }
 0x497   : > { %5926 = vmatprep.subr.mxu1 %v2530_v60  ;;  %5803 = vmatprep.subr.mxu0 %v2336_v7  ;;  %v2476_v60 = vld [vmem:[%s8453_s20 + $0x3f98] sm:$0xff]  ;;  %v5317_v7 = vpop.f32.mrf.mxu1 }
 0x498   : > { %5927 = vmatpush1.msra.mxu1 %v2529_v44  ;;  %5804 = vmatpush2.msra.mxu0 %v2335_v48  ;;  %v10853_v44 = vpop.f32.mrf.mxu0  ;;  %v2282_v48 = vld [vmem:[%s8453_s20 + $0x3988] sm:$0xff] }
 0x499   : > { %5928 = vmatprep.subr.mxu1 %v2524_v62  ;;  %5805 = vmatprep.subr.mxu0 %v2330_v4  ;;  %v2475_v62 = vld [vmem:[%s8453_s20 + $0x3f90] sm:$0xff]  ;;  %v2281_v4 = vld [vmem:[%s8453_s20 + $0x3980] sm:$0xff] }
 0x49a   : > { %5929 = vmatpush1.msra.mxu1 %v2523_v26  ;;  %5806 = vmatpush2.msra.mxu0 %v2329_v25  ;;  %v2470_v26 = vld [vmem:[%s8453_s20 + $0x3f68] sm:$0xff]  ;;  %v2276_v25 = vld [vmem:[%s8453_s20 + $0x3958] sm:$0xff] }
 0x49b   : > { %5930 = vmatprep.subr.mxu1 %v2518_v6  ;;  %5807 = vmatprep.subr.mxu0 %v2324_v21  ;;  %v2469_v6 = vld [vmem:[%s8453_s20 + $0x3f60] sm:$0xff]  ;;  %v2464_v21 = vld [vmem:[%s8453_s20 + $0x3f38] sm:$0xff] }
 0x49c   : > { %5931 = vmatpush1.msra.mxu1 %v2517_v59  ;;  %5808 = vmatpush2.msra.mxu0 %v2323_v13 }
 0x49d   : > { %5932 = vmatprep.subr.mxu1 %v2512_v10  ;;  %5809 = vmatprep.subr.mxu0 %v2318_v18  ;;  %v2275_v10 = vld [vmem:[%s8453_s20 + $0x3950] sm:$0xff] }
 0x49e   : > { %5933 = vmatpush1.msra.mxu1 %v2511_v22  ;;  %5810 = vmatpush2.msra.mxu0 %v2317_v35  ;;  %v5319_v22 = vpop.f32.mrf.mxu1  ;;  %v2463_v18 = vld [vmem:[%s8453_s20 + $0x3f30] sm:$0xff] }
 0x49f   : > { %5934 = vmatprep.subr.mxu1 %v2506_v49  ;;  %5811 = vmatprep.subr.mxu0 %v2312_v11  ;;  %v2270_v49 = vld [vmem:[%s8453_s20 + $0x3928] sm:$0xff]  ;;  %v2269_v11 = vld [vmem:[%s8453_s20 + $0x3920] sm:$0xff] }
 0x4a0   : > { %5935 = vmatpush1.msra.mxu1 %v2505_v54  ;;  %5812 = vmatpush2.msra.mxu0 %v2311_v33  ;;  %v2458_v54 = vld [vmem:[%s8453_s20 + $0x3f08] sm:$0xff] }
 0x4a1   : > { %5936 = vmatprep.subr.mxu1 %v2500_v27  ;;  %5813 = vmatprep.subr.mxu0 %v2306_v30 }
 0x4a2   : > { %5937 = vmatpush1.msra.mxu1 %v2499_v28  ;;  %5814 = vmatpush2.msra.mxu0 %v2305_v53  ;;  %v2457_v28 = vld [vmem:[%s8453_s20 + $0x3f00] sm:$0xff] }
 0x4a3   : > { %5938 = vmatprep.subr.mxu1 %v2494_v31  ;;  %5815 = vmatprep.subr.mxu0 %v2300_v39  ;;  %v2644_v31 = vld [vmem:[%s8453_s20 + $0x44d8] sm:$0xff]  ;;  %v2643_v39 = vld [vmem:[%s8453_s20 + $0x44d0] sm:$0xff] }
 0x4a4   : > { %5939 = vmatpush1.msra.mxu1 %v2493_v38  ;;  %5816 = vmatpush2.msra.mxu0 %v2299_v42  ;;  %v2740_v38 = vld [vmem:[%s8453_s20 + $0x47d8] sm:$0xff] }
 0x4a5   : > { %5940 = vmatprep.subr.mxu1 %v2488_v40  ;;  %5817 = vmatprep.subr.mxu0 %v2294_v56  ;;  %v2739_v40 = vld [vmem:[%s8453_s20 + $0x47d0] sm:$0xff]  ;;  %v2637_v56 = vld [vmem:[%s8453_s20 + $0x44a0] sm:$0xff] }
 0x4a6   : > { %5941 = vmatpush1.msra.mxu1 %v2487_v52  ;;  %5818 = vmatpush2.msra.mxu0 %v2293_v32  ;;  %v2734_v52 = vld [vmem:[%s8453_s20 + $0x47a8] sm:$0xff]  ;;  %v2631_v32 = vld [vmem:[%s8453_s20 + $0x4470] sm:$0xff] }
 0x4a7   : > { %5942 = vmatprep.subr.mxu1 %v2482_v57  ;;  %5819 = vmatprep.subr.mxu0 %v2288_v63  ;;  %v2632_v57 = vld [vmem:[%s8453_s20 + $0x4478] sm:$0xff]  ;;  %v2722_v63 = vld [vmem:[%s8453_s20 + $0x4748] sm:$0xff] }
 0x4a8   : > { %5943 = vmatpush1.msra.mxu1 %v2481_v46  ;;  %5820 = vmatpush2.msra.mxu0 %v2287_v29  ;;  %v5246_v59 = vpop.f32.mrf.mxu0  ;;  %v2626_v46 = vld [vmem:[%s8453_s20 + $0x4448] sm:$0xff]  ;;  %v2721_v29 = vld [vmem:[%s8453_s20 + $0x4740] sm:$0xff] }
 0x4a9   : > { %5944 = vmatprep.subr.mxu1 %v2476_v60  ;;  %5821 = vmatprep.subr.mxu0 %v2282_v48  ;;  %v5318_v13 = vadd.f32 %v5317_v7, %v5246_v59  ;;  %v2625_v60 = vld [vmem:[%s8453_s20 + $0x4440] sm:$0xff]  ;;  %v2620_v7 = vld [vmem:[%s8453_s20 + $0x4418] sm:$0xff]  ;;  %v2619_v48 = vld [vmem:[%s8453_s20 + $0x4410] sm:$0xff] }
 0x4aa   : > { %5945 = vmatpush1.msra.mxu1 %v2475_v62  ;;  %5822 = vmatpush2.msra.mxu0 %v2281_v4  ;;  %v5248_v35 = vpop.f32.mrf.mxu0  ;;  %v2716_v62 = vld [vmem:[%s8453_s20 + $0x4718] sm:$0xff]  ;;  %v2614_v4 = vld [vmem:[%s8453_s20 + $0x43e8] sm:$0xff]  ;;  %v2709_v59 = vld [vmem:[%s8453_s20 + $0x46e0] sm:$0xff] }
 0x4ab   : > { %5946 = vmatprep.subr.mxu1 %v2470_v26  ;;  %5823 = vmatprep.subr.mxu0 %v2276_v25  ;;  %v6443_v27 = vrot.slane %v5318_v13, 3  ;;  %v5320_v33 = vadd.f32 %v5319_v22, %v5248_v35  ;;  %v2715_v26 = vld [vmem:[%s8453_s20 + $0x4710] sm:$0xff]  ;;  %v2613_v25 = vld [vmem:[%s8453_s20 + $0x43e0] sm:$0xff] }
 0x4ac   : > { %5947 = vmatpush1.msra.mxu1 %v2469_v6  ;;  %5824 = vmatpush2.msra.mxu0 %v2275_v10  ;;  %v2710_v6 = vld [vmem:[%s8453_s20 + $0x46e8] sm:$0xff]  ;;  %v2704_v10 = vld [vmem:[%s8453_s20 + $0x46b8] sm:$0xff]  ;;  %v2607_v13 = vld [vmem:[%s8453_s20 + $0x43b0] sm:$0xff] }
 0x4ad   : > { %5948 = vmatprep.subr.mxu1 %v2464_v21  ;;  %5825 = vmatprep.subr.mxu0 %v2270_v49  ;;  %v10870_v30 = vsel %vm6413_vm4, %v6443_v27, %v10496_v45  ;;  %v6457_v53 = vrot.slane %v5320_v33, 3  ;;  %v2638_v45 = vld [vmem:[%s8453_s20 + $0x44a8] sm:$0xff]  ;;  %v2608_v21 = vld [vmem:[%s8453_s20 + $0x43b8] sm:$0xff]  ;;  %v2703_v22 = vld [vmem:[%s8453_s20 + $0x46b0] sm:$0xff] }
 0x4ae   : > { %5949 = vmatpush1.msra.mxu1 %v2463_v18  ;;  %5826 = vmatpush2.msra.mxu0 %v2269_v11  ;;  %v2602_v18 = vld [vmem:[%s8453_s20 + $0x4388] sm:$0xff]  ;;  %v2601_v35 = vld [vmem:[%s8453_s20 + $0x4380] sm:$0xff]  ;;  %v2596_v11 = vld [vmem:[%s8453_s20 + $0x4358] sm:$0xff] }
 0x4af   : > { %5950 = vmatprep.subr.mxu1 %v2458_v54  ;;  %5827 = vmatprep.mubr.f32.mxu0 %v10645_v17  ;;  %v10879_v42 = vsel %vm6413_vm4, %v6457_v53, %v10507_v61  ;;  %v2733_v17 = vld [vmem:[%s8453_s20 + $0x47a0] sm:$0xff]  ;;  %v2728_v61 = vld [vmem:[%s8453_s20 + $0x4778] sm:$0xff]  ;;  %v2698_v49 = vld [vmem:[%s8453_s20 + $0x4688] sm:$0xff] }
 0x4b0   : > { %5951 = vmatpush1.msra.mxu1 %v2457_v28  ;;  %5828 = vmatmul.mubr.f32.vlgmr.msra.gmra.mxu0 %v10650_v41  ;;  %v2727_v41 = vld [vmem:[%s8453_s20 + $0x4770] sm:$0xff]  ;;  %v2697_v54 = vld [vmem:[%s8453_s20 + $0x4680] sm:$0xff]  ;;  %v2692_v27 = vld [vmem:[%s8453_s20 + $0x4658] sm:$0xff] }
 0x4b1   : > { %5952 = vmatprep.subr.mxu1 %v2644_v31  ;;  %5991 = vmatprep.subr.mxu0 %v2740_v38  ;;  %v2595_v33 = vld [vmem:[%s8453_s20 + $0x4350] sm:$0xff]  ;;  %v2590_v31 = vld [vmem:[%s8453_s20 + $0x4328] sm:$0xff]  ;;  %v2589_v38 = vld [vmem:[%s8453_s20 + $0x4320] sm:$0xff] }
 0x4b2   : > { %5953 = vmatpush2.msra.mxu1 %v2643_v39  ;;  %5992 = vmatpush1.msra.mxu0 %v2739_v40  ;;  %v2691_v28 = vld [vmem:[%s8453_s20 + $0x4650] sm:$0xff]  ;;  %v2686_v53 = vld [vmem:[%s8453_s20 + $0x4628] sm:$0xff]  ;;  %v2685_v39 = vld [vmem:[%s8453_s20 + $0x4620] sm:$0xff] }
 0x4b3   : > { %5954 = vmatprep.subr.mxu1 %v2638_v45  ;;  %5993 = vmatprep.subr.mxu0 %v2734_v52  ;;  %v2584_v40 = vld [vmem:[%s8453_s20 + $0x42f8] sm:$0xff]  ;;  %v2583_v52 = vld [vmem:[%s8453_s20 + $0x42f0] sm:$0xff] }
 0x4b4   : > { %5955 = vmatpush2.msra.mxu1 %v2637_v56  ;;  %5994 = vmatpush1.msra.mxu0 %v2733_v17  ;;  %v2680_v45 = vld [vmem:[%s8453_s20 + $0x45f8] sm:$0xff]  ;;  %v2679_v56 = vld [vmem:[%s8453_s20 + $0x45f0] sm:$0xff]  ;;  %v2578_v17 = vld [vmem:[%s8453_s20 + $0x42c8] sm:$0xff] }
 0x4b5   : > { %5956 = vmatprep.subr.mxu1 %v2632_v57  ;;  %5995 = vmatprep.subr.mxu0 %v2728_v61  ;;  %v2674_v57 = vld [vmem:[%s8453_s20 + $0x45c8] sm:$0xff]  ;;  %v2577_v61 = vld [vmem:[%s8453_s20 + $0x42c0] sm:$0xff] }
 0x4b6   : > { %5957 = vmatpush2.msra.mxu1 %v2631_v32  ;;  %5996 = vmatpush1.msra.mxu0 %v2727_v41  ;;  %v2673_v32 = vld [vmem:[%s8453_s20 + $0x45c0] sm:$0xff]  ;;  %v2572_v41 = vld [vmem:[%s8453_s20 + $0x4298] sm:$0xff] }
 0x4b7   : > { %5958 = vmatprep.subr.mxu1 %v2626_v46  ;;  %5997 = vmatprep.subr.mxu0 %v2722_v63  ;;  %v2668_v46 = vld [vmem:[%s8453_s20 + $0x4598] sm:$0xff]  ;;  %v2571_v63 = vld [vmem:[%s8453_s20 + $0x4290] sm:$0xff] }
 0x4b8   : > { %5959 = vmatpush2.msra.mxu1 %v2625_v60  ;;  %5998 = vmatpush1.msra.mxu0 %v2721_v29  ;;  %v2667_v60 = vld [vmem:[%s8453_s20 + $0x4590] sm:$0xff]  ;;  %v2566_v29 = vld [vmem:[%s8453_s20 + $0x4268] sm:$0xff] }
 0x4b9   : > { %5960 = vmatprep.subr.mxu1 %v2620_v7  ;;  %5999 = vmatprep.subr.mxu0 %v2716_v62  ;;  %v2662_v7 = vld [vmem:[%s8453_s20 + $0x4568] sm:$0xff]  ;;  %v2565_v62 = vld [vmem:[%s8453_s20 + $0x4260] sm:$0xff] }
 0x4ba   : > { %5961 = vmatpush2.msra.mxu1 %v2619_v48  ;;  %6000 = vmatpush1.msra.mxu0 %v2715_v26  ;;  %v2817_v48 = vcombine.high %v10255_v20, %v10255_v20  ;;  %v2661_v26 = vld [vmem:[%s8453_s20 + $0x4560] sm:$0xff]  ;;  %v2650_v20 = vld [vmem:[%s8453_s20 + $0x4508] sm:$0xff] }
 0x4bb   : > { %5962 = vmatprep.subr.mxu1 %v2614_v4  ;;  %6001 = vmatprep.subr.mxu0 %v2710_v6  ;;  %v2560_v4 = vld [vmem:[%s8453_s20 + $0x4238] sm:$0xff] }
 0x4bc   : > { %5963 = vmatpush2.msra.mxu1 %v2613_v25  ;;  %6002 = vmatpush1.msra.mxu0 %v2709_v59  ;;  %v2656_v25 = vld [vmem:[%s8453_s20 + $0x4538] sm:$0xff]  ;;  %v2559_v59 = vld [vmem:[%s8453_s20 + $0x4230] sm:$0xff] }
 0x4bd   : > { %5964 = vmatprep.subr.mxu1 %v2608_v21  ;;  %6003 = vmatprep.subr.mxu0 %v2704_v10  ;;  %v2655_v10 = vld [vmem:[%s8453_s20 + $0x4530] sm:$0xff] }
 0x4be   : > { %5965 = vmatpush2.msra.mxu1 %v2607_v13  ;;  %6004 = vmatpush1.msra.mxu0 %v2703_v22  ;;  %v2554_v13 = vld [vmem:[%s8453_s20 + $0x4208] sm:$0xff] }
 0x4bf   : > { %5966 = vmatprep.subr.mxu1 %v2602_v18  ;;  %6005 = vmatprep.subr.mxu0 %v2698_v49  ;;  %v2553_v49 = vld [vmem:[%s8453_s20 + $0x4200] sm:$0xff] }
 0x4c0   : > { %5967 = vmatpush2.msra.mxu1 %v2601_v35  ;;  %6006 = vmatpush1.msra.mxu0 %v2697_v54  ;;  %v10944_v35 = vrot.slane %v2817_v48, %v8625_v12 }
 0x4c1   : > { %5968 = vmatprep.subr.mxu1 %v2596_v11  ;;  %6007 = vmatprep.subr.mxu0 %v2692_v27  ;;  %v2649_v11 = vld [vmem:[%s8453_s20 + $0x4500] sm:$0xff] }
 0x4c2   : > { %5969 = vmatpush2.msra.mxu1 %v2595_v33  ;;  %6008 = vmatpush1.msra.mxu0 %v2691_v28  ;;  %v10948_v33 = vrot.slane %v2817_v48, %v8630_v16 }
 0x4c3   : > { %5970 = vmatprep.subr.mxu1 %v2590_v31  ;;  %6009 = vmatprep.subr.mxu0 %v2686_v53  ;;  %v10951_v31 = vrot.slane %v2817_v48, %v8555_v8  ;;  %v2718_v48 = vld [vmem:[%s8453_s20 + $0x4728] sm:$0xff] }
 0x4c4   : > { %5971 = vmatpush2.msra.mxu1 %v2589_v38  ;;  %6010 = vmatpush1.msra.mxu0 %v2685_v39  ;;  %v2550_v38 = vld [vmem:[%s8453_s20 + $0x41e8] sm:$0xff] }
 0x4c5   : > { %5972 = vmatprep.subr.mxu1 %v2584_v40  ;;  %6011 = vmatprep.subr.mxu0 %v2680_v45  ;;  %v2742_v40 = vld [vmem:[%s8453_s20 + $0x47e8] sm:$0xff]  ;;  %v2549_v45 = vld [vmem:[%s8453_s20 + $0x41e0] sm:$0xff] }
 0x4c6   : > { %5973 = vmatpush2.msra.mxu1 %v2583_v52  ;;  %6012 = vmatpush1.msra.mxu0 %v2679_v56  ;;  %v2741_v52 = vld [vmem:[%s8453_s20 + $0x47e0] sm:$0xff]  ;;  %v2544_v56 = vld [vmem:[%s8453_s20 + $0x41b8] sm:$0xff] }
 0x4c7   : > { %5974 = vmatprep.subr.mxu1 %v2578_v17  ;;  %6013 = vmatprep.subr.mxu0 %v2674_v57  ;;  %v2736_v17 = vld [vmem:[%s8453_s20 + $0x47b8] sm:$0xff]  ;;  %v2543_v57 = vld [vmem:[%s8453_s20 + $0x41b0] sm:$0xff] }
 0x4c8   : > { %5975 = vmatpush2.msra.mxu1 %v2577_v61  ;;  %6014 = vmatpush1.msra.mxu0 %v2673_v32  ;;  %v2735_v61 = vld [vmem:[%s8453_s20 + $0x47b0] sm:$0xff]  ;;  %v2538_v32 = vld [vmem:[%s8453_s20 + $0x4188] sm:$0xff] }
 0x4c9   : > { %5976 = vmatprep.subr.mxu1 %v2572_v41  ;;  %6015 = vmatprep.subr.mxu0 %v2668_v46  ;;  %v2537_v41 = vld [vmem:[%s8453_s20 + $0x4180] sm:$0xff] }
 0x4ca   : > { %5977 = vmatpush2.msra.mxu1 %v2571_v63  ;;  %v5388_v6 = vpop.f32.mrf.mxu1  ;;  %6016 = vmatpush1.msra.mxu0 %v2667_v60  ;;  %v5459_v21 = vpop.f32.mrf.mxu0  ;;  %v2729_v46 = vld [vmem:[%s8453_s20 + $0x4780] sm:$0xff]  ;;  %v2532_v63 = vld [vmem:[%s8453_s20 + $0x4158] sm:$0xff] }
 0x4cb   : > { %5978 = vmatprep.subr.mxu1 %v2566_v29  ;;  %6017 = vmatprep.subr.mxu0 %v2662_v7  ;;  %v5460_v22 = vadd.f32 %v5459_v21, %v5388_v6  ;;  %v2724_v60 = vld [vmem:[%s8453_s20 + $0x4758] sm:$0xff]  ;;  %v2531_v29 = vld [vmem:[%s8453_s20 + $0x4150] sm:$0xff] }
 0x4cc   : > { %5979 = vmatpush2.msra.mxu1 %v2565_v62  ;;  %v5390_v18 = vpop.f32.mrf.mxu1  ;;  %6018 = vmatpush1.msra.mxu0 %v2661_v26  ;;  %v5461_v54 = vpop.f32.mrf.mxu0  ;;  %v2723_v7 = vld [vmem:[%s8453_s20 + $0x4750] sm:$0xff]  ;;  %v2526_v62 = vld [vmem:[%s8453_s20 + $0x4128] sm:$0xff]  ;;  %v2525_v26 = vld [vmem:[%s8453_s20 + $0x4120] sm:$0xff] }
 0x4cd   : > { %5980 = vmatprep.subr.mxu1 %v2560_v4  ;;  %6019 = vmatprep.subr.mxu0 %v2656_v25  ;;  %v6471_v27 = vrot.slane %v5460_v22, 3  ;;  %v5462_v28 = vadd.f32 %v5461_v54, %v5390_v18  ;;  %v2717_v4 = vld [vmem:[%s8453_s20 + $0x4720] sm:$0xff]  ;;  %v2520_v6 = vld [vmem:[%s8453_s20 + $0x40f8] sm:$0xff]  ;;  %v2711_v21 = vld [vmem:[%s8453_s20 + $0x46f0] sm:$0xff] }
 0x4ce   : > { %5981 = vmatpush2.msra.mxu1 %v2559_v59  ;;  %6020 = vmatpush1.msra.mxu0 %v2655_v10  ;;  %v2712_v25 = vld [vmem:[%s8453_s20 + $0x46f8] sm:$0xff]  ;;  %v2519_v59 = vld [vmem:[%s8453_s20 + $0x40f0] sm:$0xff]  ;;  %v2514_v10 = vld [vmem:[%s8453_s20 + $0x40c8] sm:$0xff] }
 0x4cf   : > { %5982 = vmatprep.subr.mxu1 %v2554_v13  ;;  %6021 = vmatprep.subr.mxu0 %v2650_v20  ;;  %v10955_v53 = vsel %vm6413_vm4, %v6471_v27, %v10654_v47  ;;  %v6485_v39 = vrot.slane %v5462_v28, 3  ;;  %v2706_v13 = vld [vmem:[%s8453_s20 + $0x46c8] sm:$0xff]  ;;  %v2513_v22 = vld [vmem:[%s8453_s20 + $0x40c0] sm:$0xff]  ;;  %v2508_v20 = vld [vmem:[%s8453_s20 + $0x4098] sm:$0xff] }
 0x4d0   : > { %5983 = vmatpush2.msra.mxu1 %v2553_v49  ;;  %5984 = vmatprep.mubr.f32.mxu1 %v10944_v35  ;;  %v2705_v18 = vld [vmem:[%s8453_s20 + $0x46c0] sm:$0xff]  ;;  %v2700_v49 = vld [vmem:[%s8453_s20 + $0x4698] sm:$0xff]  ;;  %v2507_v54 = vld [vmem:[%s8453_s20 + $0x4090] sm:$0xff] }
 0x4d1   : > { %6022 = vmatpush1.msra.mxu0 %v2649_v11  ;;  %6055 = vmatprep.mubr.f32.mxu0 %v8254_v0  ;;  %v10966_v47 = vsel %vm6413_vm4, %v6485_v39, %v10663_v24  ;;  %v2730_v24 = vld [vmem:[%s8453_s20 + $0x4788] sm:$0xff]  ;;  %v2699_v11 = vld [vmem:[%s8453_s20 + $0x4690] sm:$0xff]  ;;  %v2693_v39 = vld [vmem:[%s8453_s20 + $0x4660] sm:$0xff] }
 0x4d2   : > { %5985 = vmatmul.mubr.f32.vlgmr.msra.gmra.mxu1 %v10948_v33  ;;  %6056 = vmatmul.mubr.f32.vlgmr.msra.gmra.mxu0 %v10951_v31  ;;  %v2502_v27 = vld [vmem:[%s8453_s20 + $0x4068] sm:$0xff] }
 0x4d3   : > { %6062 = vmatprep.subr.mxu0 %v2550_v38  ;;  %6133 = vmatprep.subr.mxu1 %v2742_v40  ;;  %v2694_v28 = vld [vmem:[%s8453_s20 + $0x4668] sm:$0xff]  ;;  %v2501_v38 = vld [vmem:[%s8453_s20 + $0x4060] sm:$0xff]  ;;  %v2496_v40 = vld [vmem:[%s8453_s20 + $0x4038] sm:$0xff] }
 0x4d4   : > { %6063 = vmatpush1.msra.mxu0 %v2549_v45  ;;  %6134 = vmatpush1.msra.mxu1 %v2741_v52  ;;  %v2688_v45 = vld [vmem:[%s8453_s20 + $0x4638] sm:$0xff]  ;;  %v2495_v52 = vld [vmem:[%s8453_s20 + $0x4030] sm:$0xff] }
 0x4d5   : > { %6064 = vmatprep.subr.mxu0 %v2544_v56  ;;  %6135 = vmatprep.subr.mxu1 %v2736_v17  ;;  %v2687_v56 = vld [vmem:[%s8453_s20 + $0x4630] sm:$0xff]  ;;  %v2490_v17 = vld [vmem:[%s8453_s20 + $0x4008] sm:$0xff] }
 0x4d6   : > { %6065 = vmatpush1.msra.mxu0 %v2543_v57  ;;  %6136 = vmatpush1.msra.mxu1 %v2735_v61  ;;  %v2682_v57 = vld [vmem:[%s8453_s20 + $0x4608] sm:$0xff]  ;;  %v2489_v61 = vld [vmem:[%s8453_s20 + $0x4000] sm:$0xff] }
 0x4d7   : > { %6066 = vmatprep.subr.mxu0 %v2538_v32  ;;  %6137 = vmatprep.subr.mxu1 %v2730_v24  ;;  %v2681_v32 = vld [vmem:[%s8453_s20 + $0x4600] sm:$0xff]  ;;  %v2484_v24 = vld [vmem:[%s8453_s20 + $0x3fd8] sm:$0xff] }
 0x4d8   : > { %6067 = vmatpush1.msra.mxu0 %v2537_v41  ;;  %6138 = vmatpush1.msra.mxu1 %v2729_v46  ;;  %v2676_v41 = vld [vmem:[%s8453_s20 + $0x45d8] sm:$0xff]  ;;  %v2483_v46 = vld [vmem:[%s8453_s20 + $0x3fd0] sm:$0xff] }
 0x4d9   : > { %6068 = vmatprep.subr.mxu0 %v2532_v63  ;;  %6139 = vmatprep.subr.mxu1 %v2724_v60  ;;  %v2675_v63 = vld [vmem:[%s8453_s20 + $0x45d0] sm:$0xff]  ;;  %v2478_v60 = vld [vmem:[%s8453_s20 + $0x3fa8] sm:$0xff] }
 0x4da   : > { %6069 = vmatpush1.msra.mxu0 %v2531_v29  ;;  %6140 = vmatpush1.msra.mxu1 %v2723_v7  ;;  %v2670_v29 = vld [vmem:[%s8453_s20 + $0x45a8] sm:$0xff]  ;;  %v2477_v7 = vld [vmem:[%s8453_s20 + $0x3fa0] sm:$0xff] }
 0x4db   : > { %6070 = vmatprep.subr.mxu0 %v2526_v62  ;;  %6141 = vmatprep.subr.mxu1 %v2718_v48  ;;  %v2669_v62 = vld [vmem:[%s8453_s20 + $0x45a0] sm:$0xff]  ;;  %v2472_v48 = vld [vmem:[%s8453_s20 + $0x3f78] sm:$0xff] }
 0x4dc   : > { %6071 = vmatpush1.msra.mxu0 %v2525_v26  ;;  %6142 = vmatpush1.msra.mxu1 %v2717_v4  ;;  %v2664_v26 = vld [vmem:[%s8453_s20 + $0x4578] sm:$0xff]  ;;  %v2471_v4 = vld [vmem:[%s8453_s20 + $0x3f70] sm:$0xff] }
 0x4dd   : > { %6072 = vmatprep.subr.mxu0 %v2520_v6  ;;  %6143 = vmatprep.subr.mxu1 %v2712_v25  ;;  %v2663_v6 = vld [vmem:[%s8453_s20 + $0x4570] sm:$0xff]  ;;  %v2466_v25 = vld [vmem:[%s8453_s20 + $0x3f48] sm:$0xff] }
 0x4de   : > { %6073 = vmatpush1.msra.mxu0 %v2519_v59  ;;  %6144 = vmatpush1.msra.mxu1 %v2711_v21  ;;  %v2658_v59 = vld [vmem:[%s8453_s20 + $0x4548] sm:$0xff]  ;;  %v2465_v21 = vld [vmem:[%s8453_s20 + $0x3f40] sm:$0xff] }
 0x4df   : > { %6074 = vmatprep.subr.mxu0 %v2514_v10  ;;  %6145 = vmatprep.subr.mxu1 %v2706_v13  ;;  %v2657_v10 = vld [vmem:[%s8453_s20 + $0x4540] sm:$0xff]  ;;  %v2460_v13 = vld [vmem:[%s8453_s20 + $0x3f18] sm:$0xff] }
 0x4e0   : > { %6075 = vmatpush1.msra.mxu0 %v2513_v22  ;;  %6146 = vmatpush1.msra.mxu1 %v2705_v18  ;;  %v2652_v22 = vld [vmem:[%s8453_s20 + $0x4518] sm:$0xff]  ;;  %v2459_v18 = vld [vmem:[%s8453_s20 + $0x3f10] sm:$0xff] }
 0x4e1   : > { %6076 = vmatprep.subr.mxu0 %v2508_v20  ;;  %6147 = vmatprep.subr.mxu1 %v2700_v49  ;;  %v2651_v20 = vld [vmem:[%s8453_s20 + $0x4510] sm:$0xff]  ;;  %v2646_v49 = vld [vmem:[%s8453_s20 + $0x44e8] sm:$0xff] }
 0x4e2   : > { %6077 = vmatpush1.msra.mxu0 %v2507_v54  ;;  %6148 = vmatpush1.msra.mxu1 %v2699_v11  ;;  %v2552_v54 = vld [vmem:[%s8453_s20 + $0x41f8] sm:$0xff]  ;;  %v2645_v11 = vld [vmem:[%s8453_s20 + $0x44e0] sm:$0xff] }
 0x4e3   : > { %6078 = vmatprep.subr.mxu0 %v2502_v27  ;;  %6149 = vmatprep.subr.mxu1 %v2694_v28  ;;  %v2551_v27 = vld [vmem:[%s8453_s20 + $0x41f0] sm:$0xff]  ;;  %v2640_v28 = vld [vmem:[%s8453_s20 + $0x44b8] sm:$0xff] }
 0x4e4   : > { %6079 = vmatpush1.msra.mxu0 %v2501_v38  ;;  %6150 = vmatpush1.msra.mxu1 %v2693_v39  ;;  %v2546_v38 = vld [vmem:[%s8453_s20 + $0x41c8] sm:$0xff]  ;;  %v2639_v39 = vld [vmem:[%s8453_s20 + $0x44b0] sm:$0xff] }
 0x4e5   : > { %6080 = vmatprep.subr.mxu0 %v2496_v40  ;;  %6151 = vmatprep.subr.mxu1 %v2688_v45  ;;  %v2545_v40 = vld [vmem:[%s8453_s20 + $0x41c0] sm:$0xff]  ;;  %v2634_v45 = vld [vmem:[%s8453_s20 + $0x4488] sm:$0xff] }
 0x4e6   : > { %6081 = vmatpush1.msra.mxu0 %v2495_v52  ;;  %6152 = vmatpush1.msra.mxu1 %v2687_v56  ;;  %v2540_v52 = vld [vmem:[%s8453_s20 + $0x4198] sm:$0xff]  ;;  %v2633_v56 = vld [vmem:[%s8453_s20 + $0x4480] sm:$0xff] }
 0x4e7   : > { %6082 = vmatprep.subr.mxu0 %v2490_v17  ;;  %6153 = vmatprep.subr.mxu1 %v2682_v57  ;;  %v2539_v17 = vld [vmem:[%s8453_s20 + $0x4190] sm:$0xff]  ;;  %v2628_v57 = vld [vmem:[%s8453_s20 + $0x4458] sm:$0xff] }
 0x4e8   : > { %6083 = vmatpush1.msra.mxu0 %v2489_v61  ;;  %6154 = vmatpush1.msra.mxu1 %v2681_v32  ;;  %v2534_v61 = vld [vmem:[%s8453_s20 + $0x4168] sm:$0xff]  ;;  %v2627_v32 = vld [vmem:[%s8453_s20 + $0x4450] sm:$0xff] }
 0x4e9   : > { %6084 = vmatprep.subr.mxu0 %v2484_v24  ;;  %6155 = vmatprep.subr.mxu1 %v2676_v41  ;;  %v2533_v24 = vld [vmem:[%s8453_s20 + $0x4160] sm:$0xff]  ;;  %v2622_v41 = vld [vmem:[%s8453_s20 + $0x4428] sm:$0xff] }
 0x4ea   : > { %6085 = vmatpush1.msra.mxu0 %v2483_v46  ;;  %6156 = vmatpush1.msra.mxu1 %v2675_v63  ;;  %v2528_v46 = vld [vmem:[%s8453_s20 + $0x4138] sm:$0xff]  ;;  %v2621_v63 = vld [vmem:[%s8453_s20 + $0x4420] sm:$0xff] }
 0x4eb   : > { %6086 = vmatprep.subr.mxu0 %v2478_v60  ;;  %6157 = vmatprep.subr.mxu1 %v2670_v29  ;;  %v2527_v60 = vld [vmem:[%s8453_s20 + $0x4130] sm:$0xff]  ;;  %v2616_v29 = vld [vmem:[%s8453_s20 + $0x43f8] sm:$0xff] }
 0x4ec   : > { %6087 = vmatpush1.msra.mxu0 %v2477_v7  ;;  %6158 = vmatpush1.msra.mxu1 %v2669_v62  ;;  %v2522_v7 = vld [vmem:[%s8453_s20 + $0x4108] sm:$0xff]  ;;  %v2615_v62 = vld [vmem:[%s8453_s20 + $0x43f0] sm:$0xff] }
 0x4ed   : > { %6088 = vmatprep.subr.mxu0 %v2472_v48  ;;  %6159 = vmatprep.subr.mxu1 %v2664_v26  ;;  %v2521_v48 = vld [vmem:[%s8453_s20 + $0x4100] sm:$0xff]  ;;  %v2610_v26 = vld [vmem:[%s8453_s20 + $0x43c8] sm:$0xff] }
 0x4ee   : > { %6089 = vmatpush1.msra.mxu0 %v2471_v4  ;;  %6160 = vmatpush1.msra.mxu1 %v2663_v6  ;;  %v2516_v4 = vld [vmem:[%s8453_s20 + $0x40d8] sm:$0xff]  ;;  %v2609_v6 = vld [vmem:[%s8453_s20 + $0x43c0] sm:$0xff] }
 0x4ef   : > { %6090 = vmatprep.subr.mxu0 %v2466_v25  ;;  %6161 = vmatprep.subr.mxu1 %v2658_v59  ;;  %v2515_v25 = vld [vmem:[%s8453_s20 + $0x40d0] sm:$0xff]  ;;  %v2604_v59 = vld [vmem:[%s8453_s20 + $0x4398] sm:$0xff] }
 0x4f0   : > { %6091 = vmatpush1.msra.mxu0 %v2465_v21  ;;  %6162 = vmatpush1.msra.mxu1 %v2657_v10  ;;  %v2510_v21 = vld [vmem:[%s8453_s20 + $0x40a8] sm:$0xff]  ;;  %v2603_v10 = vld [vmem:[%s8453_s20 + $0x4390] sm:$0xff] }
 0x4f1   : > { %6092 = vmatprep.subr.mxu0 %v2460_v13  ;;  %6163 = vmatprep.subr.mxu1 %v2652_v22  ;;  %v2509_v13 = vld [vmem:[%s8453_s20 + $0x40a0] sm:$0xff]  ;;  %v2598_v22 = vld [vmem:[%s8453_s20 + $0x4368] sm:$0xff] }
 0x4f2   : > { %6093 = vmatpush1.msra.mxu0 %v2459_v18  ;;  %6164 = vmatpush1.msra.mxu1 %v2651_v20  ;;  %v2504_v18 = vld [vmem:[%s8453_s20 + $0x4078] sm:$0xff]  ;;  %v2597_v20 = vld [vmem:[%s8453_s20 + $0x4360] sm:$0xff] }
 0x4f3   : > { %6094 = vmatprep.subr.mxu0 %v2646_v49  ;;  %6197 = vmatprep.mubr.f32.mxu1 %v8254_v0  ;;  %v2503_v49 = vld [vmem:[%s8453_s20 + $0x4070] sm:$0xff] }
 0x4f4   : > { %6204 = vmatprep.subr.mxu1 %v2552_v54  ;;  %6095 = vmatpush2.msra.mxu0 %v2645_v11  ;;  %v2592_v54 = vld [vmem:[%s8453_s20 + $0x4338] sm:$0xff]  ;;  %v2498_v11 = vld [vmem:[%s8453_s20 + $0x4048] sm:$0xff] }
 0x4f5   : > { %6198 = vmatmul.mubr.f32.vlgmr.msra.gmra.mxu1 %v10951_v31  ;;  %6096 = vmatprep.subr.mxu0 %v2640_v28  ;;  %v2497_v28 = vld [vmem:[%s8453_s20 + $0x4040] sm:$0xff] }
 0x4f6   : > { %6205 = vmatpush1.msra.mxu1 %v2551_v27  ;;  %6097 = vmatpush2.msra.mxu0 %v2639_v39  ;;  %v2591_v27 = vld [vmem:[%s8453_s20 + $0x4330] sm:$0xff]  ;;  %v2492_v39 = vld [vmem:[%s8453_s20 + $0x4018] sm:$0xff] }
 0x4f7   : > { %6206 = vmatprep.subr.mxu1 %v2546_v38  ;;  %6098 = vmatprep.subr.mxu0 %v2634_v45  ;;  %v2586_v38 = vld [vmem:[%s8453_s20 + $0x4308] sm:$0xff]  ;;  %v2491_v45 = vld [vmem:[%s8453_s20 + $0x4010] sm:$0xff] }
 0x4f8   : > { %6207 = vmatpush1.msra.mxu1 %v2545_v40  ;;  %6099 = vmatpush2.msra.mxu0 %v2633_v56  ;;  %v2585_v40 = vld [vmem:[%s8453_s20 + $0x4300] sm:$0xff]  ;;  %v2486_v56 = vld [vmem:[%s8453_s20 + $0x3fe8] sm:$0xff] }
 0x4f9   : > { %6208 = vmatprep.subr.mxu1 %v2540_v52  ;;  %6100 = vmatprep.subr.mxu0 %v2628_v57  ;;  %v2580_v52 = vld [vmem:[%s8453_s20 + $0x42d8] sm:$0xff]  ;;  %v2485_v57 = vld [vmem:[%s8453_s20 + $0x3fe0] sm:$0xff] }
 0x4fa   : > { %6209 = vmatpush1.msra.mxu1 %v2539_v17  ;;  %6101 = vmatpush2.msra.mxu0 %v2627_v32  ;;  %v2579_v17 = vld [vmem:[%s8453_s20 + $0x42d0] sm:$0xff]  ;;  %v2480_v32 = vld [vmem:[%s8453_s20 + $0x3fb8] sm:$0xff] }
 0x4fb   : > { %6210 = vmatprep.subr.mxu1 %v2534_v61  ;;  %6102 = vmatprep.subr.mxu0 %v2622_v41  ;;  %v2574_v61 = vld [vmem:[%s8453_s20 + $0x42a8] sm:$0xff]  ;;  %v2479_v41 = vld [vmem:[%s8453_s20 + $0x3fb0] sm:$0xff] }
 0x4fc   : > { %6211 = vmatpush1.msra.mxu1 %v2533_v24  ;;  %6103 = vmatpush2.msra.mxu0 %v2621_v63  ;;  %v2573_v24 = vld [vmem:[%s8453_s20 + $0x42a0] sm:$0xff]  ;;  %v2474_v63 = vld [vmem:[%s8453_s20 + $0x3f88] sm:$0xff] }
 0x4fd   : > { %6212 = vmatprep.subr.mxu1 %v2528_v46  ;;  %6104 = vmatprep.subr.mxu0 %v2616_v29  ;;  %v2568_v46 = vld [vmem:[%s8453_s20 + $0x4278] sm:$0xff]  ;;  %v2473_v29 = vld [vmem:[%s8453_s20 + $0x3f80] sm:$0xff] }
 0x4fe   : > { %6213 = vmatpush1.msra.mxu1 %v2527_v60  ;;  %6105 = vmatpush2.msra.mxu0 %v2615_v62  ;;  %v2567_v60 = vld [vmem:[%s8453_s20 + $0x4270] sm:$0xff]  ;;  %v2562_v62 = vld [vmem:[%s8453_s20 + $0x4248] sm:$0xff] }
 0x4ff   : > { %6214 = vmatprep.subr.mxu1 %v2522_v7  ;;  %6106 = vmatprep.subr.mxu0 %v2610_v26  ;;  %v6518_v7 = vld [vmem:[%s430_s21] sm:$0xff]  ;;  %v2468_v26 = vld [vmem:[%s8453_s20 + $0x3f58] sm:$0xff] }
 0x500   : > { %6215 = vmatpush1.msra.mxu1 %v2521_v48  ;;  %6107 = vmatpush2.msra.mxu0 %v2609_v6  ;;  %v8256_v48 = vmov 0   ;;  %v2467_v6 = vld [vmem:[%s8453_s20 + $0x3f50] sm:$0xff] }
 0x501   : > { %6216 = vmatprep.subr.mxu1 %v2516_v4  ;;  %6108 = vmatprep.subr.mxu0 %v2604_v59  ;;  %v2561_v4 = vld [vmem:[%s8453_s20 + $0x4240] sm:$0xff]  ;;  %v2462_v59 = vld [vmem:[%s8453_s20 + $0x3f28] sm:$0xff] }
 0x502   : > { %6217 = vmatpush1.msra.mxu1 %v2515_v25  ;;  %6109 = vmatpush2.msra.mxu0 %v2603_v10  ;;  %v2556_v25 = vld [vmem:[%s8453_s20 + $0x4218] sm:$0xff]  ;;  %v2461_v10 = vld [vmem:[%s8453_s20 + $0x3f20] sm:$0xff] }
 0x503   : > { %6218 = vmatprep.subr.mxu1 %v2510_v21  ;;  %6110 = vmatprep.subr.mxu0 %v2598_v22  ;;  %v2555_v21 = vld [vmem:[%s8453_s20 + $0x4210] sm:$0xff]  ;;  %v2744_v22 = vld [vmem:[%s8453_s20 + $0x47f8] sm:$0xff] }
 0x504   : > { %6219 = vmatpush1.msra.mxu1 %v2509_v13  ;;  %6111 = vmatpush2.msra.mxu0 %v2597_v20  ;;  %v2648_v13 = vld [vmem:[%s8453_s20 + $0x44f8] sm:$0xff]  ;;  %v2743_v20 = vld [vmem:[%s8453_s20 + $0x47f0] sm:$0xff] }
 0x505   : > { %6220 = vmatprep.subr.mxu1 %v2504_v18  ;;  %6112 = vmatprep.subr.mxu0 %v2592_v54  ;;  %v2647_v18 = vld [vmem:[%s8453_s20 + $0x44f0] sm:$0xff]  ;;  %v2738_v54 = vld [vmem:[%s8453_s20 + $0x47c8] sm:$0xff] }
 0x506   : > { %6221 = vmatpush1.msra.mxu1 %v2503_v49  ;;  %6113 = vmatpush2.msra.mxu0 %v2591_v27  ;;  %v2642_v49 = vld [vmem:[%s8453_s20 + $0x44c8] sm:$0xff]  ;;  %v2737_v27 = vld [vmem:[%s8453_s20 + $0x47c0] sm:$0xff] }
 0x507   : > { %6222 = vmatprep.subr.mxu1 %v2498_v11  ;;  %6114 = vmatprep.subr.mxu0 %v2586_v38  ;;  %v2641_v11 = vld [vmem:[%s8453_s20 + $0x44c0] sm:$0xff]  ;;  %v2732_v38 = vld [vmem:[%s8453_s20 + $0x4798] sm:$0xff] }
 0x508   : > { %6223 = vmatpush1.msra.mxu1 %v2497_v28  ;;  %6115 = vmatpush2.msra.mxu0 %v2585_v40  ;;  %v2636_v28 = vld [vmem:[%s8453_s20 + $0x4498] sm:$0xff]  ;;  %v2731_v40 = vld [vmem:[%s8453_s20 + $0x4790] sm:$0xff] }
 0x509   : > { %6224 = vmatprep.subr.mxu1 %v2492_v39  ;;  %6116 = vmatprep.subr.mxu0 %v2580_v52  ;;  %v2635_v39 = vld [vmem:[%s8453_s20 + $0x4490] sm:$0xff]  ;;  %v2726_v52 = vld [vmem:[%s8453_s20 + $0x4768] sm:$0xff] }
 0x50a   : > { %6225 = vmatpush1.msra.mxu1 %v2491_v45  ;;  %6117 = vmatpush2.msra.mxu0 %v2579_v17  ;;  %v2630_v45 = vld [vmem:[%s8453_s20 + $0x4468] sm:$0xff]  ;;  %v2725_v17 = vld [vmem:[%s8453_s20 + $0x4760] sm:$0xff] }
 0x50b   : > { %6226 = vmatprep.subr.mxu1 %v2486_v56  ;;  %6118 = vmatprep.subr.mxu0 %v2574_v61  ;;  %v2629_v56 = vld [vmem:[%s8453_s20 + $0x4460] sm:$0xff]  ;;  %v2720_v61 = vld [vmem:[%s8453_s20 + $0x4738] sm:$0xff] }
 0x50c   : > { %6227 = vmatpush1.msra.mxu1 %v2485_v57  ;;  %6119 = vmatpush2.msra.mxu0 %v2573_v24  ;;  %v2624_v57 = vld [vmem:[%s8453_s20 + $0x4438] sm:$0xff]  ;;  %v2719_v24 = vld [vmem:[%s8453_s20 + $0x4730] sm:$0xff] }
 0x50d   : > { %6228 = vmatprep.subr.mxu1 %v2480_v32  ;;  %6120 = vmatprep.subr.mxu0 %v2568_v46  ;;  %v2623_v32 = vld [vmem:[%s8453_s20 + $0x4430] sm:$0xff]  ;;  %v2714_v46 = vld [vmem:[%s8453_s20 + $0x4708] sm:$0xff] }
 0x50e   : > { %6229 = vmatpush1.msra.mxu1 %v2479_v41  ;;  %7975 = vset.pattern.permute.xlu0 %v8256_v48  ;;  %v2618_v41 = vld [vmem:[%s8453_s20 + $0x4408] sm:$0xff]  ;;  %v2707_v48 = vld [vmem:[%s8453_s20 + $0x46d0] sm:$0xff] }
 0x50f   : > { %6230 = vmatprep.subr.mxu1 %v2474_v63  ;;  %6121 = vmatpush2.msra.mxu0 %v2567_v60  ;;  %v2617_v63 = vld [vmem:[%s8453_s20 + $0x4400] sm:$0xff] }
 0x510   : > { %6231 = vmatpush1.msra.mxu1 %v2473_v29  ;;  %6521 = vperm.xlu0 %7975, %v6518_v7   ;;  %v2713_v60 = vld [vmem:[%s8453_s20 + $0x4700] sm:$0xff]  ;;  %v2612_v29 = vld [vmem:[%s8453_s20 + $0x43d8] sm:$0xff] }
 0x511   : > { %6122 = vmatprep.subr.mxu0 %v2562_v62  ;;  %6232 = vmatprep.subr.mxu1 %v2468_v26  ;;  %v2708_v7 = vld [vmem:[%s8453_s20 + $0x46d8] sm:$0xff]  ;;  %v2611_v62 = vld [vmem:[%s8453_s20 + $0x43d0] sm:$0xff]  ;;  %v2606_v26 = vld [vmem:[%s8453_s20 + $0x43a8] sm:$0xff] }
 0x512   : > { %6123 = vmatpush2.msra.mxu0 %v2561_v4  ;;  %6233 = vmatpush1.msra.mxu1 %v2467_v6  ;;  %v2702_v4 = vld [vmem:[%s8453_s20 + $0x46a8] sm:$0xff]  ;;  %v2605_v6 = vld [vmem:[%s8453_s20 + $0x43a0] sm:$0xff] }
 0x513   : > { %6124 = vmatprep.subr.mxu0 %v2556_v25  ;;  %6234 = vmatprep.subr.mxu1 %v2462_v59  ;;  %v2701_v25 = vld [vmem:[%s8453_s20 + $0x46a0] sm:$0xff]  ;;  %v2600_v59 = vld [vmem:[%s8453_s20 + $0x4378] sm:$0xff] }
 0x514   : > { %6125 = vmatpush2.msra.mxu0 %v2555_v21  ;;  %6126 = vmatprep.mubr.f32.mxu0 %v10944_v35  ;;  %v2696_v21 = vld [vmem:[%s8453_s20 + $0x4678] sm:$0xff] }
 0x515   : > { %6235 = vmatpush1.msra.mxu1 %v2461_v10  ;;  %6127 = vmatmul.mubr.f32.vlgmr.msra.gmra.mxu0 %v10948_v33  ;;  %v2599_v10 = vld [vmem:[%s8453_s20 + $0x4370] sm:$0xff] }
 0x516   : > { %6236 = vmatprep.subr.mxu1 %v2648_v13  ;;  %6275 = vmatprep.subr.mxu0 %v2744_v22  ;;  %v2695_v13 = vld [vmem:[%s8453_s20 + $0x4670] sm:$0xff]  ;;  %v2594_v22 = vld [vmem:[%s8453_s20 + $0x4348] sm:$0xff] }
 0x517   : > { %6237 = vmatpush2.msra.mxu1 %v2647_v18  ;;  %6276 = vmatpush1.msra.mxu0 %v2743_v20  ;;  %v2690_v18 = vld [vmem:[%s8453_s20 + $0x4648] sm:$0xff]  ;;  %v2593_v20 = vld [vmem:[%s8453_s20 + $0x4340] sm:$0xff] }
 0x518   : > { %6238 = vmatprep.subr.mxu1 %v2642_v49  ;;  %6277 = vmatprep.subr.mxu0 %v2738_v54  ;;  %v2689_v49 = vld [vmem:[%s8453_s20 + $0x4640] sm:$0xff]  ;;  %v2588_v54 = vld [vmem:[%s8453_s20 + $0x4318] sm:$0xff] }
 0x519   : > { %6239 = vmatpush2.msra.mxu1 %v2641_v11  ;;  %6278 = vmatpush1.msra.mxu0 %v2737_v27  ;;  %v11148_v11 = vpop.f32.mrf.mxu1  ;;  %v2684_v27 = vld [vmem:[%s8453_s20 + $0x4618] sm:$0xff] }
 0x51a   : > { %6240 = vmatprep.subr.mxu1 %v2636_v28  ;;  %6279 = vmatprep.subr.mxu0 %v2732_v38  ;;  %v2587_v28 = vld [vmem:[%s8453_s20 + $0x4310] sm:$0xff]  ;;  %v11152_v38 = vpop.f32.mrf.mxu0 }
 0x51b   : > { %6241 = vmatpush2.msra.mxu1 %v2635_v39  ;;  %6280 = vmatpush1.msra.mxu0 %v2731_v40  ;;  %v2683_v39 = vld [vmem:[%s8453_s20 + $0x4610] sm:$0xff]  ;;  %v2582_v40 = vld [vmem:[%s8453_s20 + $0x42e8] sm:$0xff] }
 0x51c   : > { %6242 = vmatprep.subr.mxu1 %v2630_v45  ;;  %6281 = vmatprep.subr.mxu0 %v2726_v52  ;;  %v2678_v45 = vld [vmem:[%s8453_s20 + $0x45e8] sm:$0xff]  ;;  %v2581_v52 = vld [vmem:[%s8453_s20 + $0x42e0] sm:$0xff] }
 0x51d   : > { %6243 = vmatpush2.msra.mxu1 %v2629_v56  ;;  %6282 = vmatpush1.msra.mxu0 %v2725_v17  ;;  %v2677_v56 = vld [vmem:[%s8453_s20 + $0x45e0] sm:$0xff]  ;;  %v2576_v17 = vld [vmem:[%s8453_s20 + $0x42b8] sm:$0xff] }
 0x51e   : > { %6244 = vmatprep.subr.mxu1 %v2624_v57  ;;  %6283 = vmatprep.subr.mxu0 %v2720_v61  ;;  %v11160_v57 = vpop.f32.mrf.mxu1  ;;  %v2672_v61 = vld [vmem:[%s8453_s20 + $0x45b8] sm:$0xff] }
 0x51f   : > { %6245 = vmatpush2.msra.mxu1 %v2623_v32  ;;  %6284 = vmatpush1.msra.mxu0 %v2719_v24  ;;  %v2575_v32 = vld [vmem:[%s8453_s20 + $0x42b0] sm:$0xff]  ;;  %v11164_v24 = vpop.f32.mrf.mxu0 }
 0x520   : > { %6246 = vmatprep.subr.mxu1 %v2618_v41  ;;  %6285 = vmatprep.subr.mxu0 %v2714_v46  ;;  %v2671_v41 = vld [vmem:[%s8453_s20 + $0x45b0] sm:$0xff]  ;;  %v2570_v46 = vld [vmem:[%s8453_s20 + $0x4288] sm:$0xff] }
 0x521   : > { %6247 = vmatpush2.msra.mxu1 %v2617_v63  ;;  %6286 = vmatpush1.msra.mxu0 %v2713_v60  ;;  %v2666_v63 = vld [vmem:[%s8453_s20 + $0x4588] sm:$0xff]  ;;  %v2569_v60 = vld [vmem:[%s8453_s20 + $0x4280] sm:$0xff] }
 0x522   : > { %6248 = vmatprep.subr.mxu1 %v2612_v29  ;;  %6287 = vmatprep.subr.mxu0 %v2708_v7  ;;  %v2665_v7 = vld [vmem:[%s8453_s20 + $0x4580] sm:$0xff] }
 0x523   : > { %6249 = vmatpush2.msra.mxu1 %v2611_v62  ;;  %6288 = vmatpush1.msra.mxu0 %v2707_v48  ;;  %v2564_v62 = vld [vmem:[%s8453_s20 + $0x4258] sm:$0xff] }
 0x524   : > { %6250 = vmatprep.subr.mxu1 %v2606_v26  ;;  %6289 = vmatprep.subr.mxu0 %v2702_v4  ;;  %v2660_v26 = vld [vmem:[%s8453_s20 + $0x4558] sm:$0xff]  ;;  %v2563_v4 = vld [vmem:[%s8453_s20 + $0x4250] sm:$0xff] }
 0x525   : > { %6251 = vmatpush2.msra.mxu1 %v2605_v6  ;;  %6290 = vmatpush1.msra.mxu0 %v2701_v25 }
 0x526   : > { %6252 = vmatprep.subr.mxu1 %v2600_v59  ;;  %6291 = vmatprep.subr.mxu0 %v2696_v21  ;;  %v2659_v59 = vld [vmem:[%s8453_s20 + $0x4550] sm:$0xff]  ;;  %v2558_v21 = vld [vmem:[%s8453_s20 + $0x4228] sm:$0xff] }
 0x527   : > { %6253 = vmatpush2.msra.mxu1 %v2599_v10  ;;  %6292 = vmatpush1.msra.mxu0 %v2695_v13  ;;  %v2654_v13 = vld [vmem:[%s8453_s20 + $0x4528] sm:$0xff] }
 0x528   : > { %6254 = vmatprep.subr.mxu1 %v2594_v22  ;;  %6293 = vmatprep.subr.mxu0 %v2690_v18  ;;  %v2557_v22 = vld [vmem:[%s8453_s20 + $0x4220] sm:$0xff] }
 0x529   : > { %6255 = vmatpush2.msra.mxu1 %v2593_v20  ;;  %6294 = vmatpush1.msra.mxu0 %v2689_v49  ;;  %v2653_v49 = vld [vmem:[%s8453_s20 + $0x4520] sm:$0xff] }
 0x52a   : > { %6256 = vmatprep.subr.mxu1 %v2588_v54  ;;  %6295 = vmatprep.subr.mxu0 %v2684_v27 }
 0x52b   : > { %6257 = vmatpush2.msra.mxu1 %v2587_v28  ;;  %6296 = vmatpush1.msra.mxu0 %v2683_v39  ;;  %v6577_v28 = vld [vmem:[#allocation8 + $0x170] sm:$0xff] }
 0x52c   : > { %6258 = vmatprep.subr.mxu1 %v2582_v40  ;;  %6297 = vmatprep.subr.mxu0 %v2678_v45  ;;  %v6576_v40 = vld [vmem:[#allocation8 + $0x168] sm:$0xff]  ;;  %v6673_v45 = vld [vmem:[#allocation8 + $0x470] sm:$0xff] }
 0x52d   : > { %6259 = vmatpush2.msra.mxu1 %v2581_v52  ;;  %6298 = vmatpush1.msra.mxu0 %v2677_v56  ;;  %v6574_v52 = vld [vmem:[#allocation8 + $0x158] sm:$0xff]  ;;  %v6573_v56 = vld [vmem:[#allocation8 + $0x150] sm:$0xff] }
 0x52e   : > { %6260 = vmatprep.subr.mxu1 %v2576_v17  ;;  %v5687_v29 = vpop.f32.mrf.mxu1  ;;  %6299 = vmatprep.subr.mxu0 %v2672_v61  ;;  %v5758_v48 = vpop.f32.mrf.mxu0  ;;  %v6670_v17 = vld [vmem:[#allocation8 + $0x458] sm:$0xff]  ;;  %v6669_v61 = vld [vmem:[#allocation8 + $0x450] sm:$0xff] }
 0x52f   : > { %6261 = vmatpush2.msra.mxu1 %v2575_v32  ;;  %6300 = vmatpush1.msra.mxu0 %v2671_v41  ;;  %v5759_v6 = vadd.f32 %v5758_v48, %v5687_v29  ;;  %v6667_v32 = vld [vmem:[#allocation8 + $0x440] sm:$0xff]  ;;  %v6568_v41 = vld [vmem:[#allocation8 + $0x128] sm:$0xff] }
 0x530   : > { %6262 = vmatprep.subr.mxu1 %v2570_v46  ;;  %v5689_v25 = vpop.f32.mrf.mxu1  ;;  %6301 = vmatprep.subr.mxu0 %v2666_v63  ;;  %v5760_v10 = vpop.f32.mrf.mxu0  ;;  %v6666_v46 = vld [vmem:[#allocation8 + $0x438] sm:$0xff]  ;;  %v6664_v63 = vld [vmem:[#allocation8 + $0x428] sm:$0xff] }
 0x531   : > { %6263 = vmatpush2.msra.mxu1 %v2569_v60  ;;  %6302 = vmatpush1.msra.mxu0 %v2665_v7  ;;  %v6445_v18 = vrot.slane %v5759_v6, 2  ;;  %v5761_v20 = vadd.f32 %v5760_v10, %v5689_v25  ;;  %v6663_v60 = vld [vmem:[#allocation8 + $0x420] sm:$0xff]  ;;  %v6564_v29 = vld [vmem:[#allocation8 + $0x108] sm:$0xff]  ;;  %v6661_v7 = vld [vmem:[#allocation8 + $0x410] sm:$0xff] }
 0x532   : > { %6264 = vmatprep.subr.mxu1 %v2564_v62  ;;  %6303 = vmatprep.subr.mxu0 %v2660_v26  ;;  %v6562_v62 = vld [vmem:[#allocation8 + $0xf8] sm:$0xff]  ;;  %v6660_v48 = vld [vmem:[#allocation8 + $0x408] sm:$0xff]  ;;  %v6561_v26 = vld [vmem:[#allocation8 + $0xf0] sm:$0xff] }
 0x533   : > { %6265 = vmatpush2.msra.mxu1 %v2563_v4  ;;  %6304 = vmatpush1.msra.mxu0 %v2659_v59  ;;  %v11181_v54 = vsel %vm6416_vm5, %v6445_v18, %v10870_v30  ;;  %v6459_v27 = vrot.slane %v5761_v20, 2  ;;  %v6672_v30 = vld [vmem:[#allocation8 + $0x468] sm:$0xff]  ;;  %v6658_v4 = vld [vmem:[#allocation8 + $0x3f8] sm:$0xff]  ;;  %v6559_v6 = vld [vmem:[#allocation8 + $0xe0] sm:$0xff] }
 0x534   : > { %6266 = vmatprep.subr.mxu1 %v2558_v21  ;;  %6305 = vmatprep.subr.mxu0 %v2654_v13  ;;  %v6657_v25 = vld [vmem:[#allocation8 + $0x3f0] sm:$0xff]  ;;  %v6558_v59 = vld [vmem:[#allocation8 + $0xd8] sm:$0xff]  ;;  %v6655_v21 = vld [vmem:[#allocation8 + $0x3e0] sm:$0xff] }
 0x535   : > { %6267 = vmatpush2.msra.mxu1 %v2557_v22  ;;  %6268 = vmatprep.mubr.f32.mxu1 %v10944_v35  ;;  %v11186_v39 = vsel %vm6416_vm5, %v6459_v27, %v10879_v42  ;;  %v6571_v35 = vld [vmem:[#allocation8 + $0x140] sm:$0xff]  ;;  %v6570_v42 = vld [vmem:[#allocation8 + $0x138] sm:$0xff]  ;;  %v6556_v10 = vld [vmem:[#allocation8 + $0xc8] sm:$0xff] }
 0x536   : > { %6306 = vmatpush1.msra.mxu0 %v2653_v49  ;;  %6339 = vmatprep.mubr.f32.mxu0 %v8254_v0  ;;  %v6654_v13 = vld [vmem:[#allocation8 + $0x3d8] sm:$0xff]  ;;  %v6555_v22 = vld [vmem:[#allocation8 + $0xc0] sm:$0xff]  ;;  %v6652_v18 = vld [vmem:[#allocation8 + $0x3c8] sm:$0xff] }
 0x537   : > { %6269 = vmatmul.mubr.f32.vlgmr.msra.gmra.mxu1 %v10948_v33  ;;  %6340 = vmatmul.mubr.f32.vlgmr.msra.gmra.mxu0 %v10951_v31  ;;  %v6567_v33 = vld [vmem:[#allocation8 + $0x120] sm:$0xff]  ;;  %v6565_v31 = vld [vmem:[#allocation8 + $0x110] sm:$0xff]  ;;  %v6552_v27 = vld [vmem:[#allocation8 + $0xa8] sm:$0xff] }
 0x538   : > { %6836 = vmatprep.subr.mxu0 %v6577_v28  ;;  %6907 = vmatprep.subr.mxu1 %v6673_v45  ;;  %v6553_v20 = vld [vmem:[#allocation8 + $0xb0] sm:$0xff]  ;;  %v6651_v49 = vld [vmem:[#allocation8 + $0x3c0] sm:$0xff]  ;;  %v6648_v45 = vld [vmem:[#allocation8 + $0x3a8] sm:$0xff] }
 0x539   : > { %6837 = vmatpush1.msra.mxu0 %v6576_v40  ;;  %6908 = vmatpush1.msra.mxu1 %v6672_v30  ;;  %v6649_v28 = vld [vmem:[#allocation8 + $0x3b0] sm:$0xff]  ;;  %v6550_v40 = vld [vmem:[#allocation8 + $0x98] sm:$0xff] }
 0x53a   : > { %6838 = vmatprep.subr.mxu0 %v6574_v52  ;;  %6909 = vmatprep.subr.mxu1 %v6670_v17  ;;  %v6549_v52 = vld [vmem:[#allocation8 + $0x90] sm:$0xff]  ;;  %v6646_v30 = vld [vmem:[#allocation8 + $0x398] sm:$0xff] }
 0x53b   : > { %6839 = vmatpush1.msra.mxu0 %v6573_v56  ;;  %6910 = vmatpush1.msra.mxu1 %v6669_v61  ;;  %v6547_v56 = vld [vmem:[#allocation8 + $0x80] sm:$0xff]  ;;  %v6645_v17 = vld [vmem:[#allocation8 + $0x390] sm:$0xff] }
 0x53c   : > { %6840 = vmatprep.subr.mxu0 %v6571_v35  ;;  %6911 = vmatprep.subr.mxu1 %v6667_v32  ;;  %v6546_v35 = vld [vmem:[#allocation8 + $0x78] sm:$0xff]  ;;  %v6643_v61 = vld [vmem:[#allocation8 + $0x380] sm:$0xff] }
 0x53d   : > { %6841 = vmatpush1.msra.mxu0 %v6570_v42  ;;  %6912 = vmatpush1.msra.mxu1 %v6666_v46  ;;  %v6544_v42 = vld [vmem:[#allocation8 + $0x68] sm:$0xff]  ;;  %v6642_v32 = vld [vmem:[#allocation8 + $0x378] sm:$0xff] }
 0x53e   : > { %6842 = vmatprep.subr.mxu0 %v6568_v41  ;;  %6913 = vmatprep.subr.mxu1 %v6664_v63  ;;  %v6543_v41 = vld [vmem:[#allocation8 + $0x60] sm:$0xff]  ;;  %v6640_v46 = vld [vmem:[#allocation8 + $0x368] sm:$0xff] }
 0x53f   : > { %6843 = vmatpush1.msra.mxu0 %v6567_v33  ;;  %6914 = vmatpush1.msra.mxu1 %v6663_v60  ;;  %v6541_v33 = vld [vmem:[#allocation8 + $0x50] sm:$0xff]  ;;  %v6639_v63 = vld [vmem:[#allocation8 + $0x360] sm:$0xff] }
 0x540   : > { %6844 = vmatprep.subr.mxu0 %v6565_v31  ;;  %6915 = vmatprep.subr.mxu1 %v6661_v7  ;;  %v6540_v31 = vld [vmem:[#allocation8 + $0x48] sm:$0xff]  ;;  %v6637_v60 = vld [vmem:[#allocation8 + $0x350] sm:$0xff] }
 0x541   : > { %6845 = vmatpush1.msra.mxu0 %v6564_v29  ;;  %6916 = vmatpush1.msra.mxu1 %v6660_v48  ;;  %v6538_v29 = vld [vmem:[#allocation8 + $0x38] sm:$0xff]  ;;  %v6636_v7 = vld [vmem:[#allocation8 + $0x348] sm:$0xff] }
 0x542   : > { %6846 = vmatprep.subr.mxu0 %v6562_v62  ;;  %6917 = vmatprep.subr.mxu1 %v6658_v4  ;;  %v6537_v62 = vld [vmem:[#allocation8 + $0x30] sm:$0xff]  ;;  %v6634_v48 = vld [vmem:[#allocation8 + $0x338] sm:$0xff] }
 0x543   : > { %6847 = vmatpush1.msra.mxu0 %v6561_v26  ;;  %6918 = vmatpush1.msra.mxu1 %v6657_v25  ;;  %v6535_v26 = vld [vmem:[#allocation8 + $0x20] sm:$0xff]  ;;  %v6633_v4 = vld [vmem:[#allocation8 + $0x330] sm:$0xff] }
 0x544   : > { %6848 = vmatprep.subr.mxu0 %v6559_v6  ;;  %6919 = vmatprep.subr.mxu1 %v6655_v21  ;;  %v6534_v6 = vld [vmem:[#allocation8 + $0x18] sm:$0xff]  ;;  %v6631_v25 = vld [vmem:[#allocation8 + $0x320] sm:$0xff] }
 0x545   : > { %6849 = vmatpush1.msra.mxu0 %v6558_v59  ;;  %6920 = vmatpush1.msra.mxu1 %v6654_v13  ;;  %v6532_v59 = vld [vmem:[#allocation8 + $0x8] sm:$0xff]  ;;  %v6630_v21 = vld [vmem:[#allocation8 + $0x318] sm:$0xff] }
 0x546   : > { %6850 = vmatprep.subr.mxu0 %v6556_v10  ;;  %6921 = vmatprep.subr.mxu1 %v6652_v18  ;;  %v6531_v10 = vld [vmem:[#allocation8] sm:$0xff]  ;;  %v6628_v13 = vld [vmem:[#allocation8 + $0x308] sm:$0xff] }
 0x547   : > { %6851 = vmatpush1.msra.mxu0 %v6555_v22  ;;  %6922 = vmatpush1.msra.mxu1 %v6651_v49  ;;  %v6625_v22 = vld [vmem:[#allocation8 + $0x2f0] sm:$0xff]  ;;  %v6627_v18 = vld [vmem:[#allocation8 + $0x300] sm:$0xff] }
 0x548   : > { %6852 = vmatprep.subr.mxu0 %v6553_v20  ;;  %6923 = vmatprep.subr.mxu1 %v6649_v28  ;;  %v6624_v20 = vld [vmem:[#allocation8 + $0x2e8] sm:$0xff]  ;;  %v6721_v49 = vld [vmem:[#allocation8 + $0x5f0] sm:$0xff] }
 0x549   : > { %6853 = vmatpush1.msra.mxu0 %v6552_v27  ;;  %6924 = vmatpush1.msra.mxu1 %v6648_v45  ;;  %v6622_v27 = vld [vmem:[#allocation8 + $0x2d8] sm:$0xff]  ;;  %v6720_v28 = vld [vmem:[#allocation8 + $0x5e8] sm:$0xff] }
 0x54a   : > { %6854 = vmatprep.subr.mxu0 %v6550_v40  ;;  %6925 = vmatprep.subr.mxu1 %v6646_v30  ;;  %v6621_v40 = vld [vmem:[#allocation8 + $0x2d0] sm:$0xff]  ;;  %v6718_v45 = vld [vmem:[#allocation8 + $0x5d8] sm:$0xff] }
 0x54b   : > { %6855 = vmatpush1.msra.mxu0 %v6549_v52  ;;  %6926 = vmatpush1.msra.mxu1 %v6645_v17  ;;  %v6619_v52 = vld [vmem:[#allocation8 + $0x2c0] sm:$0xff]  ;;  %v6717_v30 = vld [vmem:[#allocation8 + $0x5d0] sm:$0xff] }
 0x54c   : > { %6856 = vmatprep.subr.mxu0 %v6547_v56  ;;  %6927 = vmatprep.subr.mxu1 %v6643_v61  ;;  %v6618_v56 = vld [vmem:[#allocation8 + $0x2b8] sm:$0xff]  ;;  %v6715_v17 = vld [vmem:[#allocation8 + $0x5c0] sm:$0xff] }
 0x54d   : > { %6857 = vmatpush1.msra.mxu0 %v6546_v35  ;;  %6928 = vmatpush1.msra.mxu1 %v6642_v32  ;;  %v6616_v35 = vld [vmem:[#allocation8 + $0x2a8] sm:$0xff]  ;;  %v6714_v61 = vld [vmem:[#allocation8 + $0x5b8] sm:$0xff] }
 0x54e   : > { %6858 = vmatprep.subr.mxu0 %v6544_v42  ;;  %6929 = vmatprep.subr.mxu1 %v6640_v46  ;;  %v6615_v42 = vld [vmem:[#allocation8 + $0x2a0] sm:$0xff]  ;;  %v6712_v32 = vld [vmem:[#allocation8 + $0x5a8] sm:$0xff] }
 0x54f   : > { %6859 = vmatpush1.msra.mxu0 %v6543_v41  ;;  %6930 = vmatpush1.msra.mxu1 %v6639_v63  ;;  %v6613_v41 = vld [vmem:[#allocation8 + $0x290] sm:$0xff]  ;;  %v6711_v46 = vld [vmem:[#allocation8 + $0x5a0] sm:$0xff] }
 0x550   : > { %6860 = vmatprep.subr.mxu0 %v6541_v33  ;;  %6931 = vmatprep.subr.mxu1 %v6637_v60  ;;  %v6612_v33 = vld [vmem:[#allocation8 + $0x288] sm:$0xff]  ;;  %v6709_v63 = vld [vmem:[#allocation8 + $0x590] sm:$0xff] }
 0x551   : > { %6861 = vmatpush1.msra.mxu0 %v6540_v31  ;;  %6932 = vmatpush1.msra.mxu1 %v6636_v7  ;;  %v6610_v31 = vld [vmem:[#allocation8 + $0x278] sm:$0xff]  ;;  %v6708_v60 = vld [vmem:[#allocation8 + $0x588] sm:$0xff] }
 0x552   : > { %6862 = vmatprep.subr.mxu0 %v6538_v29  ;;  %6933 = vmatprep.subr.mxu1 %v6634_v48  ;;  %v6609_v29 = vld [vmem:[#allocation8 + $0x270] sm:$0xff]  ;;  %v6706_v7 = vld [vmem:[#allocation8 + $0x578] sm:$0xff] }
 0x553   : > { %6863 = vmatpush1.msra.mxu0 %v6537_v62  ;;  %6934 = vmatpush1.msra.mxu1 %v6633_v4  ;;  %v6607_v62 = vld [vmem:[#allocation8 + $0x260] sm:$0xff]  ;;  %v6705_v48 = vld [vmem:[#allocation8 + $0x570] sm:$0xff] }
 0x554   : > { %6864 = vmatprep.subr.mxu0 %v6535_v26  ;;  %6935 = vmatprep.subr.mxu1 %v6631_v25  ;;  %v6606_v26 = vld [vmem:[#allocation8 + $0x258] sm:$0xff]  ;;  %v6703_v4 = vld [vmem:[#allocation8 + $0x560] sm:$0xff] }
 0x555   : > { %6865 = vmatpush1.msra.mxu0 %v6534_v6  ;;  %6936 = vmatpush1.msra.mxu1 %v6630_v21  ;;  %v6604_v6 = vld [vmem:[#allocation8 + $0x248] sm:$0xff]  ;;  %v6702_v25 = vld [vmem:[#allocation8 + $0x558] sm:$0xff] }
 0x556   : > { %6866 = vmatprep.subr.mxu0 %v6532_v59  ;;  %6937 = vmatprep.subr.mxu1 %v6628_v13  ;;  %v6603_v59 = vld [vmem:[#allocation8 + $0x240] sm:$0xff]  ;;  %v6700_v21 = vld [vmem:[#allocation8 + $0x548] sm:$0xff] }
 0x557   : > { %6867 = vmatpush1.msra.mxu0 %v6531_v10  ;;  %6938 = vmatpush1.msra.mxu1 %v6627_v18  ;;  %v6601_v10 = vld [vmem:[#allocation8 + $0x230] sm:$0xff]  ;;  %v6699_v13 = vld [vmem:[#allocation8 + $0x540] sm:$0xff] }
 0x558   : > { %6868 = vmatprep.subr.mxu0 %v6625_v22  ;;  %6939 = vmatprep.subr.mxu1 %v6721_v49  ;;  %v6600_v22 = vld [vmem:[#allocation8 + $0x228] sm:$0xff]  ;;  %v6697_v18 = vld [vmem:[#allocation8 + $0x530] sm:$0xff] }
 0x559   : > { %6869 = vmatpush2.msra.mxu0 %v6624_v20  ;;  %6940 = vmatpush2.msra.mxu1 %v6720_v28  ;;  %v6598_v20 = vld [vmem:[#allocation8 + $0x218] sm:$0xff]  ;;  %v6696_v49 = vld [vmem:[#allocation8 + $0x528] sm:$0xff] }
 0x55a   : > { %6870 = vmatprep.subr.mxu0 %v6622_v27  ;;  %6941 = vmatprep.subr.mxu1 %v6718_v45  ;;  %v6597_v27 = vld [vmem:[#allocation8 + $0x210] sm:$0xff]  ;;  %v6694_v28 = vld [vmem:[#allocation8 + $0x518] sm:$0xff] }
 0x55b   : > { %6871 = vmatpush2.msra.mxu0 %v6621_v40  ;;  %6942 = vmatpush2.msra.mxu1 %v6717_v30  ;;  %v6595_v40 = vld [vmem:[#allocation8 + $0x200] sm:$0xff]  ;;  %v6693_v45 = vld [vmem:[#allocation8 + $0x510] sm:$0xff] }
 0x55c   : > { %6872 = vmatprep.subr.mxu0 %v6619_v52  ;;  %6943 = vmatprep.subr.mxu1 %v6715_v17  ;;  %v6594_v52 = vld [vmem:[#allocation8 + $0x1f8] sm:$0xff]  ;;  %v6691_v30 = vld [vmem:[#allocation8 + $0x500] sm:$0xff] }
 0x55d   : > { %6873 = vmatpush2.msra.mxu0 %v6618_v56  ;;  %6944 = vmatpush2.msra.mxu1 %v6714_v61  ;;  %v6592_v56 = vld [vmem:[#allocation8 + $0x1e8] sm:$0xff]  ;;  %v6690_v17 = vld [vmem:[#allocation8 + $0x4f8] sm:$0xff] }
 0x55e   : > { %6874 = vmatprep.subr.mxu0 %v6616_v35  ;;  %6945 = vmatprep.subr.mxu1 %v6712_v32  ;;  %v6591_v35 = vld [vmem:[#allocation8 + $0x1e0] sm:$0xff]  ;;  %v6688_v61 = vld [vmem:[#allocation8 + $0x4e8] sm:$0xff] }
 0x55f   : > { %6875 = vmatpush2.msra.mxu0 %v6615_v42  ;;  %6946 = vmatpush2.msra.mxu1 %v6711_v46  ;;  %v6589_v42 = vld [vmem:[#allocation8 + $0x1d0] sm:$0xff]  ;;  %v6687_v32 = vld [vmem:[#allocation8 + $0x4e0] sm:$0xff] }
 0x560   : > { %6876 = vmatprep.subr.mxu0 %v6613_v41  ;;  %6947 = vmatprep.subr.mxu1 %v6709_v63  ;;  %v6588_v41 = vld [vmem:[#allocation8 + $0x1c8] sm:$0xff]  ;;  %v6685_v46 = vld [vmem:[#allocation8 + $0x4d0] sm:$0xff]  ;;  %v6586_v63 = vld [vmem:[#allocation8 + $0x1b8] sm:$0xff] }
 0x561   : > { %6877 = vmatpush2.msra.mxu0 %v6612_v33  ;;  %6948 = vmatpush2.msra.mxu1 %v6708_v60  ;;  %v5900_v33 = vpop.f32.mrf.mxu1  ;;  %v6585_v60 = vld [vmem:[#allocation8 + $0x1b0] sm:$0xff] }
 0x562   : > { %6878 = vmatprep.subr.mxu0 %v6610_v31  ;;  %6949 = vmatprep.subr.mxu1 %v6706_v7  ;;  %v6684_v31 = vld [vmem:[#allocation8 + $0x4c8] sm:$0xff] }
 0x563   : > { %6879 = vmatpush2.msra.mxu0 %v6609_v29  ;;  %6950 = vmatpush2.msra.mxu1 %v6705_v48  ;;  %v6682_v29 = vld [vmem:[#allocation8 + $0x4b8] sm:$0xff]  ;;  %v6681_v48 = vld [vmem:[#allocation8 + $0x4b0] sm:$0xff] }
 0x564   : > { %6880 = vmatprep.subr.mxu0 %v6607_v62  ;;  %6951 = vmatprep.subr.mxu1 %v6703_v4  ;;  %v6583_v62 = vld [vmem:[#allocation8 + $0x1a0] sm:$0xff]  ;;  %v6582_v4 = vld [vmem:[#allocation8 + $0x198] sm:$0xff] }
 0x565   : > { %6881 = vmatpush2.msra.mxu0 %v6606_v26  ;;  %6952 = vmatpush2.msra.mxu1 %v6702_v25  ;;  %v5902_v25 = vpop.f32.mrf.mxu1 }
 0x566   : > { %6882 = vmatprep.subr.mxu0 %v6604_v6  ;;  %6953 = vmatprep.subr.mxu1 %v6700_v21  ;;  %v6679_v6 = vld [vmem:[#allocation8 + $0x4a0] sm:$0xff]  ;;  %v6580_v21 = vld [vmem:[#allocation8 + $0x188] sm:$0xff] }
 0x567   : > { %6883 = vmatpush2.msra.mxu0 %v6603_v59  ;;  %6954 = vmatpush2.msra.mxu1 %v6699_v13 }
 0x568   : > { %6884 = vmatprep.subr.mxu0 %v6601_v10  ;;  %6955 = vmatprep.subr.mxu1 %v6697_v18  ;;  %v6678_v10 = vld [vmem:[#allocation8 + $0x498] sm:$0xff]  ;;  %v6579_v18 = vld [vmem:[#allocation8 + $0x180] sm:$0xff] }
 0x569   : > { %6885 = vmatpush2.msra.mxu0 %v6600_v22  ;;  %6956 = vmatpush2.msra.mxu1 %v6696_v49  ;;  %v6769_v49 = vld [vmem:[#allocation8 + $0x770] sm:$0xff] }
 0x56a   : > { %6886 = vmatprep.subr.mxu0 %v6598_v20  ;;  %6957 = vmatprep.subr.mxu1 %v6694_v28  ;;  %v6676_v20 = vld [vmem:[#allocation8 + $0x488] sm:$0xff] }
 0x56b   : > { %6887 = vmatpush2.msra.mxu0 %v6597_v27  ;;  %6958 = vmatpush2.msra.mxu1 %v6693_v45  ;;  %v6675_v27 = vld [vmem:[#allocation8 + $0x480] sm:$0xff]  ;;  %v6626_v45 = vld [vmem:[#allocation8 + $0x2f8] sm:$0xff] }
 0x56c   : > { %6888 = vmatprep.subr.mxu0 %v6595_v40  ;;  %6959 = vmatprep.subr.mxu1 %v6691_v30  ;;  %v3853_v30 = vadd.f32 %v9775_v14, %v9779_v9  ;;  %v5176_v14 = vadd.f32 %v10841_v50, %v10835_v37 }
 0x56d   : > { %6889 = vmatpush2.msra.mxu0 %v6594_v52  ;;  %6960 = vmatpush2.msra.mxu1 %v6690_v17  ;;  %v4294_v17 = vadd.f32 %v10160_v5, %v10154_v43 }
 0x56e   : > { %6890 = vmatprep.subr.mxu0 %v6592_v56  ;;  %6961 = vmatprep.subr.mxu1 %v6688_v61  ;;  %v6403_v61 = vrot.slane %v3853_v30, 6  ;;  %v6750_v30 = vld [vmem:[#allocation8 + $0x6d8] sm:$0xff] }
 0x56f   : > { %6891 = vmatpush2.msra.mxu0 %v6591_v35  ;;  %6962 = vmatpush2.msra.mxu1 %v6687_v32  ;;  %v4296_v35 = vadd.f32 %v10172_v23, %v10166_v2  ;;  %v6406_v43 = vrot.slane %v4294_v17, 5  ;;  %v5619_v2 = vadd.f32 %v11160_v57, %v11164_v24  ;;  %v6745_v17 = vld [vmem:[#allocation8 + $0x6b0] sm:$0xff] }
 0x570   : > { %6892 = vmatprep.subr.mxu0 %v6589_v42  ;;  %v5829_v7 = vpop.f32.mrf.mxu0  ;;  %6963 = vmatprep.subr.mxu1 %v6685_v46  ;;  %v4737_v42 = vadd.f32 %v10477_v15, %v10481_v19  ;;  %v6412_v19 = vrot.slane %v5176_v14, 3  ;;  %v6738_v14 = vld [vmem:[#allocation8 + $0x678] sm:$0xff] }
 0x571   : > { %6893 = vmatpush2.msra.mxu0 %v6588_v41  ;;  %v5901_v26 = vadd.f32 %v5900_v33, %v5829_v7  ;;  %6964 = vmatpush2.msra.mxu1 %v6684_v31  ;;  %v6425_v5 = vrot.slane %v4296_v35, 5  ;;  %v6431_v57 = vrot.slane %v5619_v2, 2  ;;  %v6744_v35 = vld [vmem:[#allocation8 + $0x6a8] sm:$0xff]  ;;  %v6729_v2 = vld [vmem:[#allocation8 + $0x630] sm:$0xff] }
 0x572   : > { %6894 = vmatprep.subr.mxu0 %v6586_v63  ;;  %v5831_v59 = vpop.f32.mrf.mxu0  ;;  %6965 = vmatprep.subr.mxu1 %v6682_v29  ;;  %v6427_v15 = vrot.slane %v4737_v42, 4  ;;  %v6739_v42 = vld [vmem:[#allocation8 + $0x680] sm:$0xff] }
 0x573   : > { %6895 = vmatpush2.msra.mxu0 %v6585_v60  ;;  %v6473_v13 = vrot.slane %v5901_v26, 2  ;;  %v5903_v22 = vadd.f32 %v5902_v25, %v5831_v59  ;;  %6966 = vmatpush2.msra.mxu1 %v6681_v48  ;;  %v6768_v25 = vld [vmem:[#allocation8 + $0x768] sm:$0xff]  ;;  %v6766_v59 = vld [vmem:[#allocation8 + $0x758] sm:$0xff] }
 0x574   : > { %6896 = vmatprep.subr.mxu0 %v6583_v62  ;;  %6967 = vmatprep.subr.mxu1 %v6679_v6 }
 0x575   : > { %6897 = vmatpush2.msra.mxu0 %v6582_v4  ;;  %v11193_v28 = vsel %vm6416_vm5, %v6473_v13, %v10955_v53  ;;  %v6487_v40 = vrot.slane %v5903_v22, 2  ;;  %6968 = vmatpush2.msra.mxu1 %v6678_v10  ;;  %v3855_v53 = vadd.f32 %v9787_v51, %v9791_v55  ;;  %v5178_v51 = vadd.f32 %v10853_v44, %v10847_v58  ;;  %v6763_v10 = vld [vmem:[#allocation8 + $0x740] sm:$0xff]  ;;  %v6762_v13 = vld [vmem:[#allocation8 + $0x738] sm:$0xff]  ;;  %v6760_v22 = vld [vmem:[#allocation8 + $0x728] sm:$0xff] }
 0x576   : > { %6898 = vmatprep.subr.mxu0 %v6580_v21  ;;  %6969 = vmatprep.subr.mxu1 %v6676_v20  ;;  %v5617_v55 = vadd.f32 %v11148_v11, %v11152_v38  ;;  %v6765_v21 = vld [vmem:[#allocation8 + $0x750] sm:$0xff] }
 0x577   : > { %6899 = vmatpush2.msra.mxu0 %v6579_v18  ;;  %v11197_v52 = vsel %vm6416_vm5, %v6487_v40, %v10966_v47  ;;  %6970 = vmatpush2.msra.mxu1 %v6675_v27  ;;  %v4735_v47 = vadd.f32 %v10465_v36, %v10469_v3  ;;  %v6423_v9 = vrot.slane %v3855_v53, 6  ;;  %v6405_v3 = vsel %vm6404_vm1, %v6403_v61, %v9363_v1  ;;  %v6759_v18 = vld [vmem:[#allocation8 + $0x720] sm:$0xff]  ;;  %v6757_v20 = vld [vmem:[#allocation8 + $0x710] sm:$0xff]  ;;  %v6754_v27 = vld [vmem:[#allocation8 + $0x6f8] sm:$0xff] }
 0x578   : > { %6978 = vmatprep.subr.mxu0 %v6769_v49  ;;  %7659 = vmatprep.subr.mxu1 %v6626_v45  ;;  %v6429_v58 = vrot.slane %v5178_v51, 3  ;;  %v6415_v44 = vrot.slane %v5617_v55, 2  ;;  %v6408_v38 = vsel %vm6407_vm2, %v6406_v43, %v6405_v3  ;;  %v6756_v49 = vld [vmem:[#allocation8 + $0x708] sm:$0xff]  ;;  %v6753_v40 = vld [vmem:[#allocation8 + $0x6f0] sm:$0xff]  ;;  %v6751_v45 = vld [vmem:[#allocation8 + $0x6e0] sm:$0xff] }
 0x579   : > { %v6409_v23 = vrot.slane %v4735_v47, 4  ;;  %v6424_v50 = vsel %vm6404_vm1, %v6423_v9, %v9374_v34  ;;  %v6748_v53 = vld [vmem:[#allocation8 + $0x6c8] sm:$0xff]  ;;  %v6742_v47 = vld [vmem:[#allocation8 + $0x698] sm:$0xff]  ;;  %v6741_v61 = vld [vmem:[#allocation8 + $0x690] sm:$0xff] }
 0x57a   : > { %v6426_v41 = vsel %vm6407_vm2, %v6425_v5, %v6424_v50  ;;  %v6736_v9 = vld [vmem:[#allocation8 + $0x668] sm:$0xff]  ;;  %v6735_v51 = vld [vmem:[#allocation8 + $0x660] sm:$0xff]  ;;  %v6733_v55 = vld [vmem:[#allocation8 + $0x650] sm:$0xff] }
 0x57b   : > { %v6411_v46 = vsel %vm6410_vm3, %v6409_v23, %v6408_v38  ;;  %v6428_v63 = vsel %vm6410_vm3, %v6427_v15, %v6426_v41  ;;  %v6732_v43 = vld [vmem:[#allocation8 + $0x648] sm:$0xff]  ;;  %v6730_v5 = vld [vmem:[#allocation8 + $0x638] sm:$0xff]  ;;  %v6727_v23 = vld [vmem:[#allocation8 + $0x620] sm:$0xff] }
 0x57c   : > { %v6414_v31 = vsel %vm6413_vm4, %v6412_v19, %v6411_v46  ;;  %v6430_v34 = vsel %vm6413_vm4, %v6429_v58, %v6428_v63  ;;  %v6724_v3 = vld [vmem:[#allocation8 + $0x608] sm:$0xff]  ;;  %v6723_v15 = vld [vmem:[#allocation8 + $0x600] sm:$0xff]  ;;  %v6817_v19 = vld [vmem:[#allocation8 + $0x8f0] sm:$0xff] }
 0x57d   : > { %v6417_v60 = vsel %vm6416_vm5, %v6415_v44, %v6414_v31  ;;  %v6432_v7 = vsel %vm6416_vm5, %v6431_v57, %v6430_v34  ;;  %v6814_v50 = vld [vmem:[#allocation8 + $0x8d8] sm:$0xff]  ;;  %v6813_v58 = vld [vmem:[#allocation8 + $0x8d0] sm:$0xff]  ;;  %v6811_v44 = vld [vmem:[#allocation8 + $0x8c0] sm:$0xff] }
 0x57e   : > { %v6807_v38 = vld [vmem:[#allocation8 + $0x8a0] sm:$0xff]  ;;  %v6805_v41 = vld [vmem:[#allocation8 + $0x890] sm:$0xff]  ;;  %v6804_v57 = vld [vmem:[#allocation8 + $0x888] sm:$0xff] }
 0x57f   : > { %v6801_v46 = vld [vmem:[#allocation8 + $0x870] sm:$0xff]  ;;  %v6796_v63 = vld [vmem:[#allocation8 + $0x848] sm:$0xff]  ;;  %v6795_v31 = vld [vmem:[#allocation8 + $0x840] sm:$0xff] }
 0x580   : > { %v6793_v34 = vld [vmem:[#allocation8 + $0x830] sm:$0xff] }
 0x58b   : > { %v6522_v56 = vpop.permute.xlu0 %6521 }
 0x58c   : > { %7980 = vrcp.f32 %v6522_v56  ;;  %v6747_v56 = vld [vmem:[#allocation8 + $0x6c0] sm:$0xff] }
 0x592   : > { %v5986_v36 = vpop.f32.mrf.mxu1  ;;  %v6057_v37 = vpop.f32.mrf.mxu0 }
 0x593   : > { %v6058_v32 = vadd.f32 %v6057_v37, %v5986_v36  ;;  %v6726_v36 = vld [vmem:[#allocation8 + $0x618] sm:$0xff]  ;;  %v6816_v37 = vld [vmem:[#allocation8 + $0x8e8] sm:$0xff] }
 0x594   : > { %v5988_v11 = vpop.f32.mrf.mxu1  ;;  %v6059_v24 = vpop.f32.mrf.mxu0 }
 0x595   : > { %v6418_v33 = vrot.slane %v6058_v32, 1  ;;  %v6060_v1 = vadd.f32 %v6059_v24, %v5988_v11  ;;  %v6810_v32 = vld [vmem:[#allocation8 + $0x8b8] sm:$0xff]  ;;  %v6808_v11 = vld [vmem:[#allocation8 + $0x8a8] sm:$0xff] }
 0x596   : > { %v6802_v24 = vld [vmem:[#allocation8 + $0x878] sm:$0xff] }
 0x597   : > { %v6433_v29 = vrot.slane %v6060_v1, 1  ;;  %v6420_v62 = vsel %vm6419_vm6, %v6418_v33, %v6417_v60  ;;  %v6799_v33 = vld [vmem:[#allocation8 + $0x860] sm:$0xff]  ;;  %v6798_v1 = vld [vmem:[#allocation8 + $0x858] sm:$0xff]  ;;  %v6792_v60 = vld [vmem:[#allocation8 + $0x828] sm:$0xff] }
 0x599   : > { %v11232_v48 = vpop.eup %7980  ;;  %v6434_v26 = vsel %vm6419_vm6, %v6433_v29, %v6432_v7  ;;  %v6790_v29 = vld [vmem:[#allocation8 + $0x818] sm:$0xff]  ;;  %v6789_v7 = vld [vmem:[#allocation8 + $0x810] sm:$0xff] }
 0x59a   : > { %v11236_v4 = vmul.f32 %v11232_v48, %v6434_v26  ;;  %v11239_v6 = vmul.f32 %v11232_v48, %v6420_v62  ;;  %v6787_v62 = vld [vmem:[#allocation8 + $0x800] sm:$0xff]  ;;  %v6786_v26 = vld [vmem:[#allocation8 + $0x7f8] sm:$0xff] }
 0x59c   : > { %6900 = vmatprep.mubr.f32.mxu0 %v11236_v4 }
 0x59d   : > { %6901 = vmatmul.mubr.f32.vlgmr.msra.gmra.mxu0 %v11239_v6 }
 0x59e   : > { %6979 = vmatpush1.msra.mxu0 %v6768_v25  ;;  %v6784_v25 = vld [vmem:[#allocation8 + $0x7e8] sm:$0xff] }
 0x59f   : > { %6980 = vmatprep.subr.mxu0 %v6766_v59  ;;  %v6783_v59 = vld [vmem:[#allocation8 + $0x7e0] sm:$0xff] }
 0x5a0   : > { %6981 = vmatpush1.msra.mxu0 %v6765_v21  ;;  %v6781_v21 = vld [vmem:[#allocation8 + $0x7d0] sm:$0xff] }
 0x5a1   : > { %6982 = vmatprep.subr.mxu0 %v6763_v10 }
 0x5a2   : > { %6983 = vmatpush1.msra.mxu0 %v6762_v13  ;;  %v6780_v13 = vld [vmem:[#allocation8 + $0x7c8] sm:$0xff] }
 0x5a3   : > { %6984 = vmatprep.subr.mxu0 %v6760_v22  ;;  %v6778_v22 = vld [vmem:[#allocation8 + $0x7b8] sm:$0xff] }
 0x5a4   : > { %6985 = vmatpush1.msra.mxu0 %v6759_v18 }
 0x5a5   : > { %6986 = vmatprep.subr.mxu0 %v6757_v20  ;;  %v6777_v20 = vld [vmem:[#allocation8 + $0x7b0] sm:$0xff] }
 0x5a6   : > { %6987 = vmatpush1.msra.mxu0 %v6756_v49 }
 0x5a7   : > { %6988 = vmatprep.subr.mxu0 %v6754_v27  ;;  %v6775_v27 = vld [vmem:[#allocation8 + $0x7a0] sm:$0xff] }
 0x5a8   : > { %6989 = vmatpush1.msra.mxu0 %v6753_v40 }
 0x5a9   : > { %6990 = vmatprep.subr.mxu0 %v6751_v45 }
 0x5aa   : > { %6991 = vmatpush1.msra.mxu0 %v6750_v30  ;;  %v6774_v30 = vld [vmem:[#allocation8 + $0x798] sm:$0xff] }
 0x5ab   : > { %6992 = vmatprep.subr.mxu0 %v6748_v53 }
 0x5ac   : > { %6993 = vmatpush1.msra.mxu0 %v6747_v56 }
 0x5ad   : > { %6994 = vmatprep.subr.mxu0 %v6745_v17  ;;  %v6772_v17 = vld [vmem:[#allocation8 + $0x788] sm:$0xff] }
 0x5ae   : > { %6995 = vmatpush1.msra.mxu0 %v6744_v35  ;;  %v6771_v35 = vld [vmem:[#allocation8 + $0x780] sm:$0xff] }
 0x5af   : > { %6996 = vmatprep.subr.mxu0 %v6742_v47 }
 0x5b0   : > { %6997 = vmatpush1.msra.mxu0 %v6741_v61  ;;  %v6818_v61 = vld [vmem:[#allocation8 + $0x8f8] sm:$0xff] }
 0x5b1   : > { %6998 = vmatprep.subr.mxu0 %v6739_v42 }
 0x5b2   : > { %6999 = vmatpush1.msra.mxu0 %v6738_v14 }
 0x5b3   : > { %7000 = vmatprep.subr.mxu0 %v6736_v9 }
 0x5b4   : > { %7001 = vmatpush1.msra.mxu0 %v6735_v51 }
 0x5b5   : > { %7002 = vmatprep.subr.mxu0 %v6733_v55  ;;  %v6199_v10 = vpop.f32.mrf.mxu1  ;;  %v6578_v55 = vld [vmem:[#allocation8 + $0x178] sm:$0xff] }
 0x5b6   : > { %7003 = vmatpush1.msra.mxu0 %v6732_v43  ;;  %v6623_v43 = vld [vmem:[#allocation8 + $0x2e0] sm:$0xff] }
 0x5b7   : > { %7004 = vmatprep.subr.mxu0 %v6730_v5  ;;  %v6201_v40 = vpop.f32.mrf.mxu1  ;;  %v6575_v5 = vld [vmem:[#allocation8 + $0x160] sm:$0xff] }
 0x5b8   : > { %7005 = vmatpush1.msra.mxu0 %v6729_v2  ;;  %v6617_v2 = vld [vmem:[#allocation8 + $0x2b0] sm:$0xff] }
 0x5b9   : > { %7006 = vmatprep.subr.mxu0 %v6727_v23  ;;  %v6569_v23 = vld [vmem:[#allocation8 + $0x130] sm:$0xff] }
 0x5ba   : > { %7007 = vmatpush1.msra.mxu0 %v6726_v36  ;;  %v6614_v36 = vld [vmem:[#allocation8 + $0x298] sm:$0xff] }
 0x5bb   : > { %7008 = vmatprep.subr.mxu0 %v6724_v3  ;;  %v6566_v3 = vld [vmem:[#allocation8 + $0x118] sm:$0xff] }
 0x5bc   : > { %7009 = vmatpush1.msra.mxu0 %v6723_v15  ;;  %v6611_v15 = vld [vmem:[#allocation8 + $0x280] sm:$0xff] }
 0x5bd   : > { %7010 = vmatprep.subr.mxu0 %v6817_v19  ;;  %v6563_v19 = vld [vmem:[#allocation8 + $0x100] sm:$0xff] }
 0x5be   : > { %7011 = vmatpush2.msra.mxu0 %v6816_v37  ;;  %v6608_v37 = vld [vmem:[#allocation8 + $0x268] sm:$0xff] }
 0x5bf   : > { %7012 = vmatprep.subr.mxu0 %v6814_v50  ;;  %v6560_v50 = vld [vmem:[#allocation8 + $0xe8] sm:$0xff] }
 0x5c0   : > { %7013 = vmatpush2.msra.mxu0 %v6813_v58  ;;  %v6557_v58 = vld [vmem:[#allocation8 + $0xd0] sm:$0xff] }
 0x5c1   : > { %7014 = vmatprep.subr.mxu0 %v6811_v44  ;;  %v6602_v44 = vld [vmem:[#allocation8 + $0x238] sm:$0xff] }
 0x5c2   : > { %7015 = vmatpush2.msra.mxu0 %v6810_v32  ;;  %v6554_v32 = vld [vmem:[#allocation8 + $0xb8] sm:$0xff] }
 0x5c3   : > { %7016 = vmatprep.subr.mxu0 %v6808_v11  ;;  %v6599_v11 = vld [vmem:[#allocation8 + $0x220] sm:$0xff] }
 0x5c4   : > { %7017 = vmatpush2.msra.mxu0 %v6807_v38  ;;  %v6551_v38 = vld [vmem:[#allocation8 + $0xa0] sm:$0xff] }
 0x5c5   : > { %7018 = vmatprep.subr.mxu0 %v6805_v41  ;;  %v6596_v41 = vld [vmem:[#allocation8 + $0x208] sm:$0xff] }
 0x5c6   : > { %7019 = vmatpush2.msra.mxu0 %v6804_v57  ;;  %v6548_v57 = vld [vmem:[#allocation8 + $0x88] sm:$0xff] }
 0x5c7   : > { %7020 = vmatprep.subr.mxu0 %v6802_v24  ;;  %v6593_v24 = vld [vmem:[#allocation8 + $0x1f0] sm:$0xff] }
 0x5c8   : > { %7021 = vmatpush2.msra.mxu0 %v6801_v46  ;;  %v6545_v46 = vld [vmem:[#allocation8 + $0x70] sm:$0xff] }
 0x5c9   : > { %7022 = vmatprep.subr.mxu0 %v6799_v33  ;;  %v6590_v33 = vld [vmem:[#allocation8 + $0x1d8] sm:$0xff] }
 0x5ca   : > { %7023 = vmatpush2.msra.mxu0 %v6798_v1 }
 0x5cb   : > { %7024 = vmatprep.subr.mxu0 %v6796_v63  ;;  %v6542_v63 = vld [vmem:[#allocation8 + $0x58] sm:$0xff] }
 0x5cc   : > { %7025 = vmatpush2.msra.mxu0 %v6795_v31 }
 0x5cd   : > { %7026 = vmatprep.subr.mxu0 %v6793_v34  ;;  %v6587_v34 = vld [vmem:[#allocation8 + $0x1c0] sm:$0xff] }
 0x5ce   : > { %7027 = vmatpush2.msra.mxu0 %v6792_v60 }
 0x5cf   : > { %7028 = vmatprep.subr.mxu0 %v6790_v29 }
 0x5d0   : > { %7029 = vmatpush2.msra.mxu0 %v6789_v7  ;;  %v6539_v7 = vld [vmem:[#allocation8 + $0x40] sm:$0xff] }
 0x5d1   : > { %7030 = vmatprep.subr.mxu0 %v6787_v62 }
 0x5d2   : > { %7031 = vmatpush2.msra.mxu0 %v6786_v26  ;;  %v6584_v26 = vld [vmem:[#allocation8 + $0x1a8] sm:$0xff] }
 0x5d3   : > { %7032 = vmatprep.subr.mxu0 %v6784_v25 }
 0x5d4   : > { %7033 = vmatpush2.msra.mxu0 %v6783_v59 }
 0x5d5   : > { %v6128_v18 = vpop.f32.mrf.mxu0  ;;  %7034 = vmatprep.subr.mxu0 %v6781_v21  ;;  %v6536_v21 = vld [vmem:[#allocation8 + $0x28] sm:$0xff] }
 0x5d6   : > { %v6200_v49 = vadd.f32 %v6199_v10, %v6128_v18  ;;  %7035 = vmatpush2.msra.mxu0 %v6780_v13  ;;  %v6581_v10 = vld [vmem:[#allocation8 + $0x190] sm:$0xff] }
 0x5d7   : > { %v6130_v45 = vpop.f32.mrf.mxu0  ;;  %7036 = vmatprep.subr.mxu0 %v6778_v22  ;;  %v6533_v22 = vld [vmem:[#allocation8 + $0x10] sm:$0xff] }
 0x5d8   : > { %v6447_v53 = vrot.slane %v6200_v49, 1  ;;  %v6202_v56 = vadd.f32 %v6201_v40, %v6130_v45  ;;  %7037 = vmatpush2.msra.mxu0 %v6777_v20  ;;  %v6722_v20 = vld [vmem:[#allocation8 + $0x5f8] sm:$0xff] }
 0x5d9   : > { %7038 = vmatprep.subr.mxu0 %v6775_v27  ;;  %v6674_v27 = vld [vmem:[#allocation8 + $0x478] sm:$0xff] }
 0x5da   : > { %v6461_v47 = vrot.slane %v6202_v56, 1  ;;  %7039 = vmatpush2.msra.mxu0 %v6774_v30  ;;  %v6448_v42 = vsel %vm6419_vm6, %v6447_v53, %v11181_v54  ;;  %v6620_v54 = vld [vmem:[#allocation8 + $0x2c8] sm:$0xff]  ;;  %v6770_v30 = vld [vmem:[#allocation8 + $0x778] sm:$0xff]  ;;  %v6719_v53 = vld [vmem:[#allocation8 + $0x5e0] sm:$0xff] }
 0x5db   : > { %7040 = vmatprep.subr.mxu0 %v6772_v17  ;;  %v11251_v51 = vmul.f32 %v11232_v48, %v6448_v42  ;;  %v6767_v56 = vld [vmem:[#allocation8 + $0x760] sm:$0xff]  ;;  %v6716_v17 = vld [vmem:[#allocation8 + $0x5c8] sm:$0xff]  ;;  %v6665_v42 = vld [vmem:[#allocation8 + $0x430] sm:$0xff] }
 0x5dc   : > { %v6462_v14 = vsel %vm6419_vm6, %v6461_v47, %v11186_v39  ;;  %7041 = vmatpush2.msra.mxu0 %v6771_v35  ;;  %v6572_v39 = vld [vmem:[#allocation8 + $0x148] sm:$0xff]  ;;  %v6713_v47 = vld [vmem:[#allocation8 + $0x5b0] sm:$0xff] }
 0x5dd   : > { %v11248_v9 = vmul.f32 %v11232_v48, %v6462_v14  ;;  %7729 = vmatprep.subr.mxu0 %v6818_v61  ;;  %v6812_v35 = vld [vmem:[#allocation8 + $0x8c8] sm:$0xff]  ;;  %v6809_v61 = vld [vmem:[#allocation8 + $0x8b0] sm:$0xff] }
 0x5de   : > { %v6761_v14 = vld [vmem:[#allocation8 + $0x730] sm:$0xff] }
 0x5df   : > { %6971 = vmatprep.mubr.f32.mxu1 %v11248_v9 }
 0x5e0   : > { %6972 = vmatmul.mubr.f32.vlgmr.msra.gmra.mxu1 %v11251_v51 }
 0x5e1   : > { %7660 = vmatpush3.msra.mxu1 %v6578_v55  ;;  %7113 = vmatprep.mubr.f32.mxu1 %v11236_v4  ;;  %v6605_v4 = vld [vmem:[#allocation8 + $0x250] sm:$0xff]  ;;  %v6806_v55 = vld [vmem:[#allocation8 + $0x898] sm:$0xff] }
 0x5e2   : > { %7661 = vmatprep.subr.mxu1 %v6623_v43  ;;  %v6662_v43 = vld [vmem:[#allocation8 + $0x418] sm:$0xff] }
 0x5e3   : > { %7662 = vmatpush3.msra.mxu1 %v6575_v5  ;;  %v6758_v5 = vld [vmem:[#allocation8 + $0x718] sm:$0xff] }
 0x5e4   : > { %7663 = vmatprep.subr.mxu1 %v6620_v54  ;;  %v6707_v54 = vld [vmem:[#allocation8 + $0x580] sm:$0xff] }
 0x5e5   : > { %7664 = vmatpush3.msra.mxu1 %v6572_v39  ;;  %v6803_v39 = vld [vmem:[#allocation8 + $0x880] sm:$0xff] }
 0x5e6   : > { %7665 = vmatprep.subr.mxu1 %v6617_v2  ;;  %v6659_v2 = vld [vmem:[#allocation8 + $0x400] sm:$0xff] }
 0x5e7   : > { %7666 = vmatpush3.msra.mxu1 %v6569_v23  ;;  %v6755_v23 = vld [vmem:[#allocation8 + $0x700] sm:$0xff] }
 0x5e8   : > { %7667 = vmatprep.subr.mxu1 %v6614_v36  ;;  %v6704_v36 = vld [vmem:[#allocation8 + $0x568] sm:$0xff] }
 0x5e9   : > { %7668 = vmatpush3.msra.mxu1 %v6566_v3  ;;  %v6800_v3 = vld [vmem:[#allocation8 + $0x868] sm:$0xff] }
 0x5ea   : > { %7669 = vmatprep.subr.mxu1 %v6611_v15  ;;  %v6656_v15 = vld [vmem:[#allocation8 + $0x3e8] sm:$0xff] }
 0x5eb   : > { %7670 = vmatpush3.msra.mxu1 %v6563_v19  ;;  %v6752_v19 = vld [vmem:[#allocation8 + $0x6e8] sm:$0xff] }
 0x5ec   : > { %7671 = vmatprep.subr.mxu1 %v6608_v37  ;;  %v6701_v37 = vld [vmem:[#allocation8 + $0x550] sm:$0xff] }
 0x5ed   : > { %7672 = vmatpush3.msra.mxu1 %v6560_v50  ;;  %v6797_v50 = vld [vmem:[#allocation8 + $0x850] sm:$0xff] }
 0x5ee   : > { %7673 = vmatprep.subr.mxu1 %v6605_v4  ;;  %v6653_v4 = vld [vmem:[#allocation8 + $0x3d0] sm:$0xff] }
 0x5ef   : > { %7674 = vmatpush3.msra.mxu1 %v6557_v58  ;;  %v6749_v58 = vld [vmem:[#allocation8 + $0x6d0] sm:$0xff] }
 0x5f0   : > { %7675 = vmatprep.subr.mxu1 %v6602_v44  ;;  %v6698_v44 = vld [vmem:[#allocation8 + $0x538] sm:$0xff] }
 0x5f1   : > { %7676 = vmatpush3.msra.mxu1 %v6554_v32  ;;  %v6794_v32 = vld [vmem:[#allocation8 + $0x838] sm:$0xff] }
 0x5f2   : > { %7677 = vmatprep.subr.mxu1 %v6599_v11  ;;  %v6650_v11 = vld [vmem:[#allocation8 + $0x3b8] sm:$0xff] }
 0x5f3   : > { %7678 = vmatpush3.msra.mxu1 %v6551_v38  ;;  %v6746_v38 = vld [vmem:[#allocation8 + $0x6b8] sm:$0xff] }
 0x5f4   : > { %7679 = vmatprep.subr.mxu1 %v6596_v41  ;;  %v6695_v41 = vld [vmem:[#allocation8 + $0x520] sm:$0xff] }
 0x5f5   : > { %7680 = vmatpush3.msra.mxu1 %v6548_v57  ;;  %v6791_v57 = vld [vmem:[#allocation8 + $0x820] sm:$0xff] }
 0x5f6   : > { %7681 = vmatprep.subr.mxu1 %v6593_v24  ;;  %v6647_v24 = vld [vmem:[#allocation8 + $0x3a0] sm:$0xff] }
 0x5f7   : > { %v6270_v1 = vpop.f32.mrf.mxu1  ;;  %v6341_v31 = vpop.f32.mrf.mxu0  ;;  %7682 = vmatpush3.msra.mxu1 %v6545_v46  ;;  %v6743_v46 = vld [vmem:[#allocation8 + $0x6a0] sm:$0xff] }
 0x5f8   : > { %v6342_v60 = vadd.f32 %v6341_v31, %v6270_v1  ;;  %7683 = vmatprep.subr.mxu1 %v6590_v33  ;;  %v6692_v33 = vld [vmem:[#allocation8 + $0x508] sm:$0xff] }
 0x5f9   : > { %v6272_v29 = vpop.f32.mrf.mxu1  ;;  %v6343_v62 = vpop.f32.mrf.mxu0  ;;  %7684 = vmatpush3.msra.mxu1 %v6542_v63  ;;  %v6788_v1 = vld [vmem:[#allocation8 + $0x808] sm:$0xff] }
 0x5fa   : > { %v6475_v25 = vrot.slane %v6342_v60, 1  ;;  %v6344_v59 = vadd.f32 %v6343_v62, %v6272_v29  ;;  %7685 = vmatprep.subr.mxu1 %v6587_v34  ;;  %v6644_v63 = vld [vmem:[#allocation8 + $0x388] sm:$0xff]  ;;  %v6689_v34 = vld [vmem:[#allocation8 + $0x4f0] sm:$0xff]  ;;  %v6686_v62 = vld [vmem:[#allocation8 + $0x4d8] sm:$0xff] }
 0x5fb   : > { %7686 = vmatpush3.msra.mxu1 %v6539_v7  ;;  %v6740_v31 = vld [vmem:[#allocation8 + $0x688] sm:$0xff]  ;;  %v6785_v60 = vld [vmem:[#allocation8 + $0x7f0] sm:$0xff] }
 0x5fc   : > { %v6489_v13 = vrot.slane %v6344_v59, 1  ;;  %7687 = vmatprep.subr.mxu1 %v6584_v26  ;;  %v6476_v18 = vsel %vm6419_vm6, %v6475_v25, %v11193_v28  ;;  %v6815_v28 = vld [vmem:[#allocation8 + $0x8e0] sm:$0xff]  ;;  %v6641_v29 = vld [vmem:[#allocation8 + $0x370] sm:$0xff]  ;;  %v6782_v26 = vld [vmem:[#allocation8 + $0x7d8] sm:$0xff] }
 0x5fd   : > { %7688 = vmatpush3.msra.mxu1 %v6536_v21  ;;  %v11262_v45 = vmul.f32 %v11232_v48, %v6476_v18  ;;  %v6737_v7 = vld [vmem:[#allocation8 + $0x670] sm:$0xff]  ;;  %v6638_v25 = vld [vmem:[#allocation8 + $0x358] sm:$0xff]  ;;  %v6683_v21 = vld [vmem:[#allocation8 + $0x4c0] sm:$0xff] }
 0x5fe   : > { %7689 = vmatprep.subr.mxu1 %v6581_v10  ;;  %v6490_v49 = vsel %vm6419_vm6, %v6489_v13, %v11197_v52  ;;  %v6671_v52 = vld [vmem:[#allocation8 + $0x460] sm:$0xff]  ;;  %v6734_v59 = vld [vmem:[#allocation8 + $0x658] sm:$0xff]  ;;  %v6680_v18 = vld [vmem:[#allocation8 + $0x4a8] sm:$0xff] }
 0x5ff   : > { %7690 = vmatpush3.msra.mxu1 %v6533_v22  ;;  %v6530_v40 = vmul.f32 %v11232_v48, %v6490_v49  ;;  %v6668_v48 = vld [vmem:[#allocation8 + $0x448] sm:$0xff]  ;;  %v6779_v10 = vld [vmem:[#allocation8 + $0x7c0] sm:$0xff] }
 0x600   : > { %7114 = vmatmul.mubr.f32.vlgmr.msra.gmra.mxu1 %v11239_v6  ;;  %7694 = vmatprep.subr.mxu1 %v6722_v20  ;;  %v6764_v6 = vld [vmem:[#allocation8 + $0x748] sm:$0xff]  ;;  %v6635_v13 = vld [vmem:[#allocation8 + $0x340] sm:$0xff] }
 0x601   : > { %7042 = vmatprep.mubr.f32.mxu0 %v6530_v40  ;;  %7695 = vmatpush3.msra.mxu1 %v6674_v27  ;;  %v6731_v22 = vld [vmem:[#allocation8 + $0x640] sm:$0xff]  ;;  %v6776_v20 = vld [vmem:[#allocation8 + $0x7a8] sm:$0xff] }
 0x602   : > { %7043 = vmatmul.mubr.f32.vlgmr.msra.gmra.mxu0 %v11262_v45  ;;  %7183 = vmatprep.mubr.f32.mxu1 %v11248_v9  ;;  %v6710_v9 = vld [vmem:[#allocation8 + $0x598] sm:$0xff]  ;;  %v6632_v49 = vld [vmem:[#allocation8 + $0x328] sm:$0xff] }
 0x603   : > { %7730 = vmatpush3.msra.mxu0 %v6770_v30  ;;  %7696 = vmatprep.subr.mxu1 %v6719_v53  ;;  %v6728_v27 = vld [vmem:[#allocation8 + $0x628] sm:$0xff]  ;;  %v6773_v30 = vld [vmem:[#allocation8 + $0x790] sm:$0xff] }
 0x604   : > { %7731 = vmatprep.subr.mxu0 %v6815_v28  ;;  %7253 = vmatprep.mubr.f32.mxu0 %v6530_v40  ;;  %v6677_v40 = vld [vmem:[#allocation8 + $0x490] sm:$0xff] }
 0x605   : > { %7697 = vmatpush3.msra.mxu1 %v6671_v52  ;;  %7732 = vmatpush3.msra.mxu0 %v6767_v56  ;;  %v6629_v53 = vld [vmem:[#allocation8 + $0x310] sm:$0xff]  ;;  %v7299_v52 = vld [vmem:[#allocation11 + $0xf8] sm:$0xff] }
 0x606   : > { %7698 = vmatprep.subr.mxu1 %v6716_v17  ;;  %7733 = vmatprep.subr.mxu0 %v6812_v35  ;;  %v6725_v28 = vld [vmem:[#allocation8 + $0x610] sm:$0xff]  ;;  %v7283_v56 = vld [vmem:[#allocation11 + $0x78] sm:$0xff] }
 0x607   : > { %7699 = vmatpush3.msra.mxu1 %v6668_v48  ;;  %7734 = vmatpush3.msra.mxu0 %v6764_v6  ;;  %v7298_v17 = vld [vmem:[#allocation11 + $0xf0] sm:$0xff]  ;;  %v7297_v48 = vld [vmem:[#allocation11 + $0xe8] sm:$0xff] }
 0x608   : > { %7700 = vmatprep.subr.mxu1 %v6713_v47  ;;  %7735 = vmatprep.subr.mxu0 %v6809_v61  ;;  %v7282_v35 = vld [vmem:[#allocation11 + $0x70] sm:$0xff]  ;;  %v7281_v6 = vld [vmem:[#allocation11 + $0x68] sm:$0xff]  ;;  %v7296_v47 = vld [vmem:[#allocation11 + $0xe0] sm:$0xff] }
 0x609   : > { %7701 = vmatpush3.msra.mxu1 %v6665_v42  ;;  %7736 = vmatpush3.msra.mxu0 %v6761_v14  ;;  %v7280_v61 = vld [vmem:[#allocation11 + $0x60] sm:$0xff]  ;;  %v7295_v42 = vld [vmem:[#allocation11 + $0xd8] sm:$0xff]  ;;  %v7278_v14 = vld [vmem:[#allocation11 + $0x50] sm:$0xff] }
 0x60a   : > { %7702 = vmatprep.subr.mxu1 %v6710_v9  ;;  %7737 = vmatprep.subr.mxu0 %v6806_v55  ;;  %v7293_v9 = vld [vmem:[#allocation11 + $0xc8] sm:$0xff] }
 0x60b   : > { %7703 = vmatpush3.msra.mxu1 %v6662_v43  ;;  %7738 = vmatpush3.msra.mxu0 %v6758_v5  ;;  %v7277_v55 = vld [vmem:[#allocation11 + $0x48] sm:$0xff]  ;;  %v7292_v43 = vld [vmem:[#allocation11 + $0xc0] sm:$0xff] }
 0x60c   : > { %7704 = vmatprep.subr.mxu1 %v6707_v54  ;;  %7739 = vmatprep.subr.mxu0 %v6803_v39  ;;  %v7276_v5 = vld [vmem:[#allocation11 + $0x40] sm:$0xff]  ;;  %v7291_v54 = vld [vmem:[#allocation11 + $0xb8] sm:$0xff] }
 0x60d   : > { %7705 = vmatpush3.msra.mxu1 %v6659_v2  ;;  %7740 = vmatpush3.msra.mxu0 %v6755_v23  ;;  %v7275_v39 = vld [vmem:[#allocation11 + $0x38] sm:$0xff]  ;;  %v7290_v2 = vld [vmem:[#allocation11 + $0xb0] sm:$0xff] }
 0x60e   : > { %7706 = vmatprep.subr.mxu1 %v6704_v36  ;;  %7741 = vmatprep.subr.mxu0 %v6800_v3  ;;  %v7274_v23 = vld [vmem:[#allocation11 + $0x30] sm:$0xff]  ;;  %v7289_v36 = vld [vmem:[#allocation11 + $0xa8] sm:$0xff] }
 0x60f   : > { %7707 = vmatpush3.msra.mxu1 %v6656_v15  ;;  %7742 = vmatpush3.msra.mxu0 %v6752_v19  ;;  %v7273_v3 = vld [vmem:[#allocation11 + $0x28] sm:$0xff]  ;;  %v7288_v15 = vld [vmem:[#allocation11 + $0xa0] sm:$0xff] }
 0x610   : > { %7708 = vmatprep.subr.mxu1 %v6701_v37  ;;  %7743 = vmatprep.subr.mxu0 %v6797_v50  ;;  %v7272_v19 = vld [vmem:[#allocation11 + $0x20] sm:$0xff]  ;;  %v7287_v37 = vld [vmem:[#allocation11 + $0x98] sm:$0xff] }
 0x611   : > { %7709 = vmatpush3.msra.mxu1 %v6653_v4  ;;  %7744 = vmatpush3.msra.mxu0 %v6749_v58  ;;  %v7271_v50 = vld [vmem:[#allocation11 + $0x18] sm:$0xff]  ;;  %v7286_v4 = vld [vmem:[#allocation11 + $0x90] sm:$0xff] }
 0x612   : > { %7710 = vmatprep.subr.mxu1 %v6698_v44  ;;  %7745 = vmatprep.subr.mxu0 %v6794_v32  ;;  %v7270_v58 = vld [vmem:[#allocation11 + $0x10] sm:$0xff]  ;;  %v7285_v44 = vld [vmem:[#allocation11 + $0x88] sm:$0xff] }
 0x613   : > { %7711 = vmatpush3.msra.mxu1 %v6650_v11  ;;  %7746 = vmatpush3.msra.mxu0 %v6746_v38  ;;  %v7269_v32 = vld [vmem:[#allocation11 + $0x8] sm:$0xff]  ;;  %v7284_v11 = vld [vmem:[#allocation11 + $0x80] sm:$0xff] }
 0x614   : > { %7712 = vmatprep.subr.mxu1 %v6695_v41  ;;  %7747 = vmatprep.subr.mxu0 %v6791_v57  ;;  %v7268_v38 = vld [vmem:[#allocation11] sm:$0xff]  ;;  %v7315_v41 = vld [vmem:[#allocation11 + $0x178] sm:$0xff]  ;;  %v7314_v57 = vld [vmem:[#allocation11 + $0x170] sm:$0xff] }
 0x615   : > { %7713 = vmatpush3.msra.mxu1 %v6647_v24  ;;  %7748 = vmatpush3.msra.mxu0 %v6743_v46  ;;  %v7313_v24 = vld [vmem:[#allocation11 + $0x168] sm:$0xff]  ;;  %v7312_v46 = vld [vmem:[#allocation11 + $0x160] sm:$0xff] }
 0x616   : > { %7714 = vmatprep.subr.mxu1 %v6692_v33  ;;  %7749 = vmatprep.subr.mxu0 %v6788_v1  ;;  %v7311_v33 = vld [vmem:[#allocation11 + $0x158] sm:$0xff]  ;;  %v7310_v1 = vld [vmem:[#allocation11 + $0x150] sm:$0xff] }
 0x617   : > { %7715 = vmatpush3.msra.mxu1 %v6644_v63  ;;  %7750 = vmatpush3.msra.mxu0 %v6740_v31  ;;  %v7309_v63 = vld [vmem:[#allocation11 + $0x148] sm:$0xff]  ;;  %v7308_v31 = vld [vmem:[#allocation11 + $0x140] sm:$0xff] }
 0x618   : > { %7716 = vmatprep.subr.mxu1 %v6689_v34  ;;  %7751 = vmatprep.subr.mxu0 %v6785_v60  ;;  %v7307_v34 = vld [vmem:[#allocation11 + $0x138] sm:$0xff]  ;;  %v7306_v60 = vld [vmem:[#allocation11 + $0x130] sm:$0xff] }
 0x619   : > { %7717 = vmatpush3.msra.mxu1 %v6641_v29  ;;  %7752 = vmatpush3.msra.mxu0 %v6737_v7  ;;  %v7305_v29 = vld [vmem:[#allocation11 + $0x128] sm:$0xff]  ;;  %v7304_v7 = vld [vmem:[#allocation11 + $0x120] sm:$0xff] }
 0x61a   : > { %7718 = vmatprep.subr.mxu1 %v6686_v62  ;;  %7753 = vmatprep.subr.mxu0 %v6782_v26  ;;  %v7303_v62 = vld [vmem:[#allocation11 + $0x118] sm:$0xff]  ;;  %v7302_v26 = vld [vmem:[#allocation11 + $0x110] sm:$0xff] }
 0x61b   : > { %7719 = vmatpush3.msra.mxu1 %v6638_v25  ;;  %7754 = vmatpush3.msra.mxu0 %v6734_v59  ;;  %v7301_v25 = vld [vmem:[#allocation11 + $0x108] sm:$0xff]  ;;  %v7300_v59 = vld [vmem:[#allocation11 + $0x100] sm:$0xff] }
 0x61c   : > { %7720 = vmatprep.subr.mxu1 %v6683_v21  ;;  %7755 = vmatprep.subr.mxu0 %v6779_v10  ;;  %v6819_v21 = vld [vmem:[#allocation9] sm:$0x7] }
 0x61d   : > { %7721 = vmatpush3.msra.mxu1 %v6635_v13  ;;  %7756 = vmatpush3.msra.mxu0 %v6731_v22  ;;  %v6824_v13 = vrot.slane %v6819_v21, %v8630_v16 }
 0x61e   : > { %7722 = vmatprep.subr.mxu1 %v6680_v18  ;;  %7757 = vmatprep.subr.mxu0 %v6776_v20  ;;  %v6828_v18 = vrot.slane %v6819_v21, %v8625_v12 }
 0x61f   : > { %7723 = vmatpush3.msra.mxu1 %v6632_v49  ;;  %7758 = vmatpush3.msra.mxu0 %v6728_v27 }
 0x620   : > { %7724 = vmatprep.subr.mxu1 %v6677_v40  ;;  %7759 = vmatprep.subr.mxu0 %v6773_v30 }
 0x621   : > { %7725 = vmatpush3.msra.mxu1 %v6629_v53  ;;  %7760 = vmatpush3.msra.mxu0 %v6725_v28 }
 0x622   : > { %7184 = vmatmul.mubr.f32.vlgmr.msra.gmra.mxu1 %v11251_v51  ;;  %7254 = vmatmul.mubr.f32.vlgmr.msra.gmra.mxu0 %v11262_v45  ;;  %v7279_v51 = vld [vmem:[#allocation11 + $0x58] sm:$0xff]  ;;  %v7294_v45 = vld [vmem:[#allocation11 + $0xd0] sm:$0xff] }
 0x623   : > { %7816 = vmatprep.subr.mxu0 %v8254_v0  ;;  %7764 = vmatprep.subr.mxu1 %v7299_v52 }
 0x624   : > { %7765 = vmatpush3.msra.mxu1 %v7283_v56  ;;  %7817 = vmatpush3.msra.mxu0 %v7315_v41 }
 0x625   : > { %7766 = vmatprep.subr.mxu1 %v7298_v17  ;;  %7818 = vmatprep.subr.mxu0 %v8254_v0 }
 0x626   : > { %7767 = vmatpush3.msra.mxu1 %v7282_v35  ;;  %7819 = vmatpush3.msra.mxu0 %v7314_v57 }
 0x627   : > { %7768 = vmatprep.subr.mxu1 %v7297_v48  ;;  %7820 = vmatprep.subr.mxu0 %v8254_v0 }
 0x628   : > { %7769 = vmatpush3.msra.mxu1 %v7281_v6  ;;  %7821 = vmatpush3.msra.mxu0 %v7313_v24 }
 0x629   : > { %7770 = vmatprep.subr.mxu1 %v7296_v47  ;;  %7822 = vmatprep.subr.mxu0 %v8254_v0  ;;  %v6832_v47 = vrot.slane %v6819_v21, %v8555_v8 }
 0x62a   : > { %7771 = vmatpush3.msra.mxu1 %v7280_v61  ;;  %7823 = vmatpush3.msra.mxu0 %v7312_v46 }
 0x62b   : > { %7772 = vmatprep.subr.mxu1 %v7295_v42  ;;  %7824 = vmatprep.subr.mxu0 %v8254_v0 }
 0x62c   : > { %7773 = vmatpush3.msra.mxu1 %v7279_v51  ;;  %7825 = vmatpush3.msra.mxu0 %v7311_v33 }
 0x62d   : > { %7774 = vmatprep.subr.mxu1 %v7294_v45  ;;  %7826 = vmatprep.subr.mxu0 %v8254_v0 }
 0x62e   : > { %7775 = vmatpush3.msra.mxu1 %v7278_v14  ;;  %7827 = vmatpush3.msra.mxu0 %v7310_v1 }
 0x62f   : > { %7776 = vmatprep.subr.mxu1 %v7293_v9  ;;  %7828 = vmatprep.subr.mxu0 %v8254_v0 }
 0x630   : > { %7777 = vmatpush3.msra.mxu1 %v7277_v55  ;;  %7829 = vmatpush3.msra.mxu0 %v7309_v63 }
 0x631   : > { %7778 = vmatprep.subr.mxu1 %v7292_v43  ;;  %7830 = vmatprep.subr.mxu0 %v8254_v0 }
 0x632   : > { %7779 = vmatpush3.msra.mxu1 %v7276_v5  ;;  %7831 = vmatpush3.msra.mxu0 %v7308_v31 }
 0x633   : > { %7780 = vmatprep.subr.mxu1 %v7291_v54  ;;  %7832 = vmatprep.subr.mxu0 %v8254_v0 }
 0x634   : > { %7781 = vmatpush3.msra.mxu1 %v7275_v39  ;;  %7833 = vmatpush3.msra.mxu0 %v7307_v34 }
 0x635   : > { %7782 = vmatprep.subr.mxu1 %v7290_v2  ;;  %7834 = vmatprep.subr.mxu0 %v8254_v0 }
 0x636   : > { %7783 = vmatpush3.msra.mxu1 %v7274_v23  ;;  %7835 = vmatpush3.msra.mxu0 %v7306_v60 }
 0x637   : > { %7784 = vmatprep.subr.mxu1 %v7289_v36  ;;  %7836 = vmatprep.subr.mxu0 %v8254_v0 }
 0x638   : > { %7785 = vmatpush3.msra.mxu1 %v7273_v3  ;;  %7837 = vmatpush3.msra.mxu0 %v7305_v29  ;;  %v7654_v3 = vld [vmem:[#allocation12] ss:$0 sm:$0xff] }
 0x639   : > { %7786 = vmatprep.subr.mxu1 %v7288_v15  ;;  %7838 = vmatprep.subr.mxu0 %v8254_v0 }
 0x63a   : > { %7787 = vmatpush3.msra.mxu1 %v7272_v19  ;;  %7839 = vmatpush3.msra.mxu0 %v7304_v7 }
 0x63b   : > { %7788 = vmatprep.subr.mxu1 %v7287_v37  ;;  %7840 = vmatprep.subr.mxu0 %v8254_v0 }
 0x63c   : > { %7789 = vmatpush3.msra.mxu1 %v7271_v50  ;;  %7841 = vmatpush3.msra.mxu0 %v7303_v62 }
 0x63d   : > { %7790 = vmatprep.subr.mxu1 %v7286_v4  ;;  %7842 = vmatprep.subr.mxu0 %v8254_v0 }
 0x63e   : > { %7791 = vmatpush3.msra.mxu1 %v7270_v58  ;;  %7843 = vmatpush3.msra.mxu0 %v7302_v26 }
 0x63f   : > { %7792 = vmatprep.subr.mxu1 %v7285_v44  ;;  %7844 = vmatprep.subr.mxu0 %v8254_v0 }
 0x640   : > { %7793 = vmatpush3.msra.mxu1 %v7269_v32  ;;  %7845 = vmatpush3.msra.mxu0 %v7301_v25 }
 0x641   : > { %7794 = vmatprep.subr.mxu1 %v7284_v11  ;;  %7846 = vmatprep.subr.mxu0 %v8254_v0 }
 0x642   : > { %7795 = vmatpush3.msra.mxu1 %v7268_v38  ;;  %7848 = vmatprep.mubr.msk.f32.mxu0 %vm8257_vm7, %v8254_v0 }
 0x643   : > { %7847 = vmatpush3.msra.mxu0 %v7300_v59 }
 0x65d   : > { %v6902_v10 = vpop.f32.mrf.mxu0 }
 0x65e   : > { %v6903_v49 = vadd.f32 %v6902_v10, %v6824_v13 }
 0x65f   : > { %v6904_v20 = vpop.f32.mrf.mxu0 }
 0x660   : > { %v6905_v40 = vadd.f32 %v6904_v20, %v6828_v18 }
 0x6a0   : > { %v6973_v22 = vpop.f32.mrf.mxu1 }
 0x6a1   : > { %v6974_v30 = vadd.f32 %v6973_v22, %v6903_v49 }
 0x6a2   : > { %v6975_v27 = vpop.f32.mrf.mxu1 }
 0x6a3   : > { %v6976_v28 = vadd.f32 %v6975_v27, %v6905_v40 }
 0x6c0   : > { %v7691_v6 = vpop.f32.mrf.mxu1 }
 0x6c2   : > { %v7044_v53 = vpop.f32.mrf.mxu0  ;;  %v7692_v12 = vpop.f32.mrf.mxu1 }
 0x6c3   : > { %v7045_v52 = vadd.f32 %v7044_v53, %v6974_v30  ;;  %v7693_v61 = vadd.f32 %v7692_v12, %v7691_v6 }
 0x6c4   : > { %v7046_v56 = vpop.f32.mrf.mxu0 }
 0x6c5   : > { %v7047_v17 = vadd.f32 %v7046_v56, %v6976_v28  ;;  %v7262_v35 = vmul.f32 0.01, %v7045_v52  ;;  %vm7259_vm8 = vcmp.ge.f32.partialorder %v7045_v52, 0.0  ;;  %v7116_v9 = vadd.f32 %v7693_v61, %v6832_v47 }
 0x6c7   : > { %v7263_v0 = vmul.f32 0.01, %v7047_v17  ;;  %vm7260_vm9 = vcmp.ge.f32.partialorder %v7047_v17, 0.0  ;;  %v7265_v16 = vsel %vm7259_vm8, %v7045_v52, %v7262_v35 }
 0x6c9   : > { %v7266_v48 = vsel %vm7260_vm9, %v7047_v17, %v7263_v0 }
 0x6ca   : > { %7387 = vmatprep.mubr.f32.mxu1 %v7266_v48 }
 0x6cb   : > { %7388 = vmatmul.mubr.f32.vlgmr.msra.gmra.mxu1 %v7265_v16 }
 0x6e2   : > { %v7726_v42 = vpop.f32.mrf.mxu1  ;;  %v7761_v51 = vpop.f32.mrf.mxu0 }
 0x6e4   : > { %v7727_v45 = vpop.f32.mrf.mxu1  ;;  %v7762_v14 = vpop.f32.mrf.mxu0 }
 0x6e5   : > { %v7728_v55 = vadd.f32 %v7727_v45, %v7726_v42  ;;  %v7763_v5 = vadd.f32 %v7762_v14, %v7761_v51 }
 0x6e7   : > { %v7186_v43 = vadd.f32 %v7728_v55, %v7116_v9 }
 0x6e9   : > { %v7256_v54 = vadd.f32 %v7763_v5, %v7186_v43 }
 0x6eb   : > { %v7264_v39 = vmul.f32 0.01, %v7256_v54  ;;  %vm7261_vm10 = vcmp.ge.f32.partialorder %v7256_v54, 0.0 }
 0x6ed   : > { %v7267_v2 = vsel %vm7261_vm10, %v7256_v54, %v7264_v39 }
 0x6ee   : > { %7849 = vmatmul.mubr.f32.vlgmr.msra.gmra.mxu0 %v7267_v2 }
 0x78b   : > { %v7796_v23 = vpop.f32.mrf.mxu1 }
 0x78d   : > { %v7797_v36 = vpop.f32.mrf.mxu1 }
 0x78e   : > { %v7798_v8 = vadd.f32 %v7797_v36, %v7796_v23 }
 0x790   : > { %v7390_v15 = vadd.f32 %v7798_v8, %v7654_v3 }
 0x7ae   : > { %v7459_v19 = vpop.f32.mrf.mxu0 }
 0x7af   : > { %v7460_v37 = vadd.f32 %v7459_v19, %v7390_v15 }
 0x7b0   : > { %v7850_v50 = vpop.f32.mrf.mxu0 }
 0x7b1   : > { %7463 = vst [vmem:[%s423_s15] sm:$0xff] %v7460_v37 }
 0x7b2   : > { %8157 = shalt.err (!%p8154_p8)
}
 0x7b3   : > { %s8158_s20 = scalar_lea.hbm %s11294_s6, 128  ;;  %s8162_s11 = scalar_lea.hbm %s11343_s7, 256 }
 0x7b4   : > { %p8159_p6 = scmp.ne.s32.totalorder %s11294_s6, %s8158_s20  ;;  %p8163_p13 = scmp.lt.s32.totalorder %s11294_s6, %s11343_s7 }
 0x7b5   : > { %p8164_p2 = scmp.lt.s32.totalorder %s8162_s11, %s8158_s20 }
 0x7b6   : > { %p8160_p1 = pnand %p8159_p6, %p8406_p5 }
 0x7b7   : > { %p8165_p0 = por %p8164_p2, %p8163_p13 }
 0x7b8   : > { %p8161_p9 = pneg %p8160_p1 }
 0x7ba   : > { %p8166_p11 = pnand %p8165_p0, %p8161_p9 }
 0x7bc   : > { %8169 = shalt.err (!%p8166_p11)
}
 0x7bd   : > { %7877 = dma.vmem_to_hbm [thread:$0]  (%p8406_p5), %s7479_s17, 128, %s11294_s6, %s7465_s19  }
 0x7be PF: > { %s11377_s30 = sld [smem:[#allocation22_spill]]  ;;  %s7490_s9 = sand.u32 1, %s8220_s24  }
 0x7bf   : > { %p11379_p10 = scmp.ge.s32.totalorder %s8240_s29, 2  ;;  %s7491_s16 = scalar_lea.sflag [#allocation5], %s7490_s9 }
 0x7c4   : > { %p11378_p3 = scmp.ne.s32.totalorder %s11377_s30, 0 }
 0x7c6   : > { %p7900_p7 = pnand %p11379_p10, %p11378_p3 }
 0x7c8   : > { %p7901_p12 = pneg %p7900_p7 }
 0x7ca   : > { %8215 = dma.done.wait (%p7901_p12), %s7491_s16, 128  }
 0x7cb   : > { %8217 = vsyncadd (%p7901_p12), %s7491_s16, 4294967168  ;;  %s28_s29 = sadd.s32 1, %s8240_s29   ;;  %s11380_s12 = sld [smem:[#allocation21_spill]] }
 0x7cc   : > { %p25_p4 = scmp.ge.s32.totalorder %s28_s29, 4   ;;  %s11381_s26 = sld [smem:[#allocation24_spill]] }
 0x7cd   : > { %s11382_s14 = sld [smem:[#allocation23_spill]]  ;;  %s11383_s24 = smov %s8224_s25 }
 0x7ce   : > { %s11385_s27 = smov %s8236_s28 }
 0x7cf   :  { %27 = sbr.rel (!%p25_p4) target bundleno = 16 (0x10), region = 133 }
 0x7d1   : > { %s11384_s25 = smov %s11380_s12 }
 0x7d3   : > { %s11386_s28 = smov %s11382_s14 }
 0x7d4   :  { %7496 = vsyncpa [#allocation4], 1 }
 0x7d5   :  { %7498 = vsyncpa [#allocation4 + $0x1], 1 }
 0x7d6   :  { %7499 = vsyncpa [#allocation7], 1 }
 0x7d7   :  { %7501 = vsyncpa [#allocation7 + $0x1], 1 }
 0x7d8   :  { %7502 = vsyncpa [#allocation10], 1 }
 0x7d9   :  { %7503 = vsyncpa [#allocation13], 1 }
 0x7da   :  { %7504 = vsyncpa [#allocation5], 1 }
 0x7db   :  { %7506 = vsyncpa [#allocation5 + $0x1], 1 }

</bundles_post_ra>
